<compile_context>
chip_gen: v7x
topology: tpu7x:2x2x1
jax: 0.10.0
libtpu: 0.0.40
codegen_flags: <defaults>
</compile_context>

<pallas_src>
import functools

import jax
import jax.numpy as jnp
from jax.experimental import pallas as pl
from jax.experimental.pallas import tpu as pltpu


def _round_up(x, m):
    return (x + m - 1) // m * m


# ----------------------------------------------------------------------------
# Fused kernel: conv3x3+BN+ReLU -> conv3x3+BN+ReLU for `n_per` images per step
# ----------------------------------------------------------------------------
def _make_decoder_kernel(n_per, Ho, Wo, Wp, cin, cout, slot, row_chunk,
                         compute_dtype):
    T = Ho * Wp                    # flat output rows per image (padded width)
    Ta = (Ho + 3) * Wp             # flat padded-input rows per image
    taps = tuple(dy * Wp + dx for dy in range(3) for dx in range(3))

    # static row chunks (bounds vreg pressure of the f32 matmul result)
    chunks, r = [], 0
    while r < T:
        chunks.append((r, min(row_chunk, T - r)))
        r += row_chunk
    chunks = tuple(chunks)

    def kernel(x_ref, mask_ref, w1_ref, s1_ref, t1_ref, w2_ref, s2_ref,
               t2_ref, o_ref, mid_ref, cat_ref):
        # Zero the im2col staging buffer once per grid step so the zero-padded
        # weight rows only ever multiply finite (zero) data.  Skipped entirely
        # when the channel count already fills the 128-lane slot.
        if slot > cin:
            cat_ref[...] = jnp.zeros_like(cat_ref)

        for img in range(n_per):
            xb = img * Ta              # image base row in x_ref / mid_ref
            mb = xb + Wp + 1           # conv1 activations base row inside mid
            ob = img * T               # image base row in o_ref

            # conv2 halo: zero only the pad rows that are never overwritten
            # (top pad row + left pad of row 1, and the bottom pad rows).
            mid_ref[xb:xb + Wp + 1, :] = jnp.zeros((Wp + 1, cout), compute_dtype)
            mid_ref[mb + T:xb + Ta, :] = jnp.zeros(
                (Ta - Wp - 1 - T, cout), compute_dtype)

            # ---------------- conv1 + BN1 + ReLU -> mid (bf16, VMEM) ---------
            for r0, rn in chunks:
                for t, off in enumerate(taps):
                    # lane-tile-aligned staging store (offset t*slot, slot%128==0)
                    cat_ref[0:rn, t * slot:t * slot + cin] = \
                        x_ref[0, xb + off + r0:xb + off + r0 + rn, :]
                y = jnp.dot(cat_ref[0:rn, :], w1_ref[...],
                            preferred_element_type=jnp.float32)
                h = jnp.maximum(y * s1_ref[...] + t1_ref[...], 0.0)
                h = h * mask_ref[r0:r0 + rn, :]          # zero W-pad columns
                mid_ref[mb + r0:mb + r0 + rn, :] = h.astype(compute_dtype)

            # ---------------- conv2 + BN2 + ReLU -> output -------------------
            for r0, rn in chunks:
                for t, off in enumerate(taps):
                    cat_ref[0:rn, t * slot:t * slot + cout] = \
                        mid_ref[xb + off + r0:xb + off + r0 + rn, :]
                y = jnp.dot(cat_ref[0:rn, :], w2_ref[...],
                            preferred_element_type=jnp.float32)
                o_ref[0, ob + r0:ob + r0 + rn, :] = \
                    jnp.maximum(y * s2_ref[...] + t2_ref[...], 0.0)

    return kernel


# ----------------------------------------------------------------------------
# Wrapper helpers
# ----------------------------------------------------------------------------
def _bn_fold(bn, eps=1e-5):
    """Inference BatchNorm -> per-channel scale/shift, shape (1, C), f32."""
    inv = jax.lax.rsqrt(bn["var"].astype(jnp.float32) + eps)
    scale = bn["weight"].astype(jnp.float32) * inv
    shift = bn["bias"].astype(jnp.float32) - bn["mean"].astype(jnp.float32) * scale
    return scale.reshape(1, -1), shift.reshape(1, -1)


def convert_torch_conv_weight(w_oihw):
    """PyTorch Conv2d weight (Cout, Cin, kh, kw) -> kernel layout (kh, kw, Cin, Cout)."""
    return jnp.transpose(w_oihw, (2, 3, 1, 0))


# ----------------------------------------------------------------------------
# DecoderBlock forward
# ----------------------------------------------------------------------------
def decoder_block_forward(x1, x2, params, compute_dtype=jnp.bfloat16,
                          row_chunk=256, max_grid_steps=2):
    """x1: (B, C1, H, W), x2: (B, C2, 2H, 2W) or None, NCHW like PyTorch."""
    cin, cout = params["cin"], params["cout"]
    B, C1, H, W = x1.shape
    Ho, Wo = 2 * H, 2 * W
    Wp = _round_up(Wo + 2, 8)              # sublane-aligned padded row stride
    T = Ho * Wp
    Ta = (Ho + 3) * Wp
    slot = _round_up(max(cin, cout), 128)  # lane-aligned per-tap K slot

    # bf16 *before* upsample/transpose/concat (nearest duplication, concat and
    # zero-pad all commute exactly with the cast) -> half the HBM traffic of
    # the layout pass that feeds the kernel.
    a = jnp.transpose(x1.astype(compute_dtype), (0, 2, 3, 1))
    a = jnp.repeat(jnp.repeat(a, 2, axis=1), 2, axis=2)
    if x2 is not None:
        if x2.shape[2] != Ho or x2.shape[3] != Wo:
            raise ValueError("x2 spatial dims must be 2x those of x1")
        a = jnp.concatenate(
            [a, jnp.transpose(x2.astype(compute_dtype), (0, 2, 3, 1))], axis=-1)
    if a.shape[-1] < cin:
        raise ValueError("not enough channels in [up(x1), x2] for conv1")
    x = a[..., :cin]

    # pad H by (1,2), W by (1, Wp-Wo-1), flatten spatial dims (fuses into the
    # same XLA transpose/upsample pass).
    xp = jnp.pad(x, ((0, 0), (1, 2), (1, Wp - Wo - 1), (0, 0)))
    xf = xp.reshape(B, Ta, cin)

    # grid: keep up to `max_grid_steps` parallel steps (v7x has 2 TensorCores),
    # fold the remaining batch into the flat-row (M) axis of each step so
    # single-TC chips (v5e/v6e) don't pay per-grid-step overhead per image.
    G = max_grid_steps if (B >= max_grid_steps and B % max_grid_steps == 0) else 1
    n_per = B // G
    xf = xf.reshape(G, n_per * Ta, cin)

    # weights: (3,3,Ci,Cout) -> zero-padded (9*slot, Cout) matching the im2col
    # column layout (tap-major, channel-minor, lane-tile aligned slots).
    def pack_w(w, ci):
        w9 = w.reshape(9, ci, cout).astype(compute_dtype)
        wpad = jnp.zeros((9, slot, cout), compute_dtype).at[:, :ci, :].set(w9)
        return wpad.reshape(9 * slot, cout)

    w1p = pack_w(params["w1"], cin)
    w2p = pack_w(params["w2"], cout)
    s1, t1 = _bn_fold(params["bn1"])
    s2, t2 = _bn_fold(params["bn2"])

    # grid-invariant per-image W-pad-column mask (one vmul in the kernel).
    mask = ((jnp.arange(T, dtype=jnp.int32) % Wp) < Wo)
    mask = mask.astype(jnp.float32).reshape(T, 1)

    row_chunk = min(row_chunk, T)
    kernel = _make_decoder_kernel(n_per, Ho, Wo, Wp, cin, cout, slot,
                                  row_chunk, compute_dtype)

    # explicit per-step VMEM budget (v7x only has 64 MiB physical per core)
    est = (2 * n_per * Ta * cin * 2            # double-buffered input block
           + 2 * n_per * T * cout * 4          # double-buffered output block
           + 2 * 2 * 9 * slot * cout * 2       # both conv weights
           + n_per * Ta * cout * 2             # mid scratch (bf16)
           + row_chunk * 9 * slot * 2          # im2col staging scratch
           + 2 * T * 4 + 8 * cout * 4)         # mask + BN scale/shift
    vmem_limit = int(min(64 * 1024 * 1024, max(16 * 1024 * 1024, 2 * est)))

    out_flat = pl.pallas_call(
        kernel,
        out_shape=jax.ShapeDtypeStruct((G, n_per * T, cout), jnp.float32),
        grid=(G,),
        in_specs=[
            pl.BlockSpec((1, n_per * Ta, cin), lambda i: (i, 0, 0)),
            pl.BlockSpec((T, 1), lambda i: (0, 0)),
            pl.BlockSpec((9 * slot, cout), lambda i: (0, 0)),
            pl.BlockSpec((1, cout), lambda i: (0, 0)),
            pl.BlockSpec((1, cout), lambda i: (0, 0)),
            pl.BlockSpec((9 * slot, cout), lambda i: (0, 0)),
            pl.BlockSpec((1, cout), lambda i: (0, 0)),
            pl.BlockSpec((1, cout), lambda i: (0, 0)),
        ],
        out_specs=pl.BlockSpec((1, n_per * T, cout), lambda i: (i, 0, 0)),
        scratch_shapes=[
            pltpu.VMEM((n_per * Ta, cout), compute_dtype),      # conv1->conv2 mid
            pltpu.VMEM((row_chunk, 9 * slot), compute_dtype),   # im2col staging
        ],
        compiler_params=pltpu.CompilerParams(
            dimension_semantics=("parallel",),
            vmem_limit_bytes=vmem_limit),
    )(xf, mask, w1p, s1, t1, w2p, s2, t2)

    # drop the W-pad columns per row, back to NCHW like the PyTorch module
    out = out_flat.reshape(B, Ho, Wp, cout)[:, :, :Wo, :]
    return jnp.transpose(out, (0, 3, 1, 2))


# ----------------------------------------------------------------------------
# Synthetic parameters (DecoderBlock(cin, cadd, cout), eval-mode BatchNorm)
# ----------------------------------------------------------------------------
def init_params(key, cin, cadd, cout):
    cin_total = cin + cadd
    ks = jax.random.split(key, 4)

    def conv_w(k, ci, co):
        return (0.05 * jax.random.normal(k, (3, 3, ci, co))).astype(jnp.float32)

    def bn(k, c):
        k1, k2, k3, k4 = jax.random.split(k, 4)
        return dict(
            weight=(1.0 + 0.1 * jax.random.normal(k1, (c,))).astype(jnp.float32),
            bias=(0.1 * jax.random.normal(k2, (c,))).astype(jnp.float32),
            mean=(0.1 * jax.random.normal(k3, (c,))).astype(jnp.float32),
            var=(1.0 + 0.5 * jax.random.uniform(k4, (c,))).astype(jnp.float32),
        )

    return dict(
        cin=cin_total, cout=cout,
        w1=conv_w(ks[0], cin_total, cout), bn1=bn(ks[1], cout),
        w2=conv_w(ks[2], cout, cout), bn2=bn(ks[3], cout),
    )


# ----------------------------------------------------------------------------
# Pure-JAX/XLA reference (same bf16 operand casts as the kernel path)
# ----------------------------------------------------------------------------
def reference_forward(x1, x2, params, compute_dtype=jnp.bfloat16):
    cin = params["cin"]
    a = jnp.transpose(x1.astype(compute_dtype), (0, 2, 3, 1))
    a = jnp.repeat(jnp.repeat(a, 2, axis=1), 2, axis=2)
    if x2 is not None:
        a = jnp.concatenate(
            [a, jnp.transpose(x2.astype(compute_dtype), (0, 2, 3, 1))], axis=-1)
    x = a[..., :cin]
    s1, t1 = _bn_fold(params["bn1"])
    s2, t2 = _bn_fold(params["bn2"])

    def cbr(x, w, s, t):
        y = jax.lax.conv_general_dilated(
            x.astype(compute_dtype), w.astype(compute_dtype),
            window_strides=(1, 1), padding="SAME",
            dimension_numbers=("NHWC", "HWIO", "NHWC"),
            preferred_element_type=jnp.float32)
        return jnp.maximum(y * s + t, 0.0)

    h = cbr(x, params["w1"], s1, t1)
    o = cbr(h, params["w2"], s2, t2)
    return jnp.transpose(o, (0, 3, 1, 2))


# ----------------------------------------------------------------------------
if __name__ == "__main__":
    B, C1, Cadd, Cout = 2, 8, 8, 16
    H, W = 8, 8                                  # x1 spatial; x2 is (2H, 2W)

    key = jax.random.PRNGKey(0)
    k1, k2, kp = jax.random.split(key, 3)
    x1 = jax.random.normal(k1, (B, C1, H, W), dtype=jnp.float32)
    x2 = jax.random.normal(k2, (B, Cadd, 2 * H, 2 * W), dtype=jnp.float32)
    params = init_params(kp, cin=C1, cadd=Cadd, cout=Cout)

    fwd = jax.jit(functools.partial(decoder_block_forward, params=params))
    out = fwd(x1, x2)
    jax.block_until_ready(out)

    assert out.shape == (B, Cout, 2 * H, 2 * W), out.shape
    assert bool(jnp.all(jnp.isfinite(out)))

    ref = jax.jit(functools.partial(reference_forward, params=params))(x1, x2)
    err = float(jnp.max(jnp.abs(out - ref)))
    tol = 1e-2 * (float(jnp.max(jnp.abs(ref))) + 1.0)
    assert err <= tol, f"kernel/reference mismatch: max abs err {err} > {tol}"

    print("KERNEL_OK")
</pallas_src>

<mosaic_0001>
module attributes {stable_mosaic.version = 11 : i64} {
  func.func @kernel(%arg0: i32, %arg1: memref<1x456x16xbf16, #tpu.memory_space<vmem>>, %arg2: memref<384x1xf32, #tpu.memory_space<vmem>>, %arg3: memref<1152x16xbf16, #tpu.memory_space<vmem>>, %arg4: memref<1x16xf32, #tpu.memory_space<vmem>>, %arg5: memref<1x16xf32, #tpu.memory_space<vmem>>, %arg6: memref<1152x16xbf16, #tpu.memory_space<vmem>>, %arg7: memref<1x16xf32, #tpu.memory_space<vmem>>, %arg8: memref<1x16xf32, #tpu.memory_space<vmem>>, %arg9: memref<1x384x16xf32, #tpu.memory_space<vmem>>, %arg10: memref<456x16xbf16, #tpu.memory_space<vmem>>, %arg11: memref<256x1152xbf16, #tpu.memory_space<vmem>>) attributes {dimension_semantics = [#tpu.dimension_semantics<parallel>], iteration_bounds = array<i64: 2>, scalar_prefetch = 0 : i64, scratch_operands = 2 : i64, tpu.core_type = #tpu.core_type<tc>, window_params = [{transform_indices = @transform_0, window_bounds = array<i64: 1, 456, 16>}, {pipeline_mode = #tpu.pipeline_mode<synchronous>, transform_indices = @transform_1, window_bounds = array<i64: 384, 1>}, {pipeline_mode = #tpu.pipeline_mode<synchronous>, transform_indices = @transform_2, window_bounds = array<i64: 1152, 16>}, {pipeline_mode = #tpu.pipeline_mode<synchronous>, transform_indices = @transform_3, window_bounds = array<i64: 1, 16>}, {pipeline_mode = #tpu.pipeline_mode<synchronous>, transform_indices = @transform_4, window_bounds = array<i64: 1, 16>}, {pipeline_mode = #tpu.pipeline_mode<synchronous>, transform_indices = @transform_5, window_bounds = array<i64: 1152, 16>}, {pipeline_mode = #tpu.pipeline_mode<synchronous>, transform_indices = @transform_6, window_bounds = array<i64: 1, 16>}, {pipeline_mode = #tpu.pipeline_mode<synchronous>, transform_indices = @transform_7, window_bounds = array<i64: 1, 16>}, {transform_indices = @transform_8, window_bounds = array<i64: 1, 384, 16>}]} {
    %cst = arith.constant 0.000000e+00 : bf16
    %0 = vector.broadcast %cst : bf16 to vector<256x1152xbf16>
    %c0 = arith.constant 0 : index
    %c0_0 = arith.constant 0 : index
    %1 = vector.load %arg11[%c0, %c0_0] : memref<256x1152xbf16, #tpu.memory_space<vmem>>, vector<256x1152xbf16>
    tpu.vector_store %arg11[%c0, %c0_0], %0 {strides = array<i32>} : memref<256x1152xbf16, #tpu.memory_space<vmem>>, vector<256x1152xbf16>,
    %cst_1 = arith.constant 0.000000e+00 : bf16
    %2 = vector.broadcast %cst_1 : bf16 to vector<25x16xbf16>
    %c0_2 = arith.constant 0 : index
    %c0_3 = arith.constant 0 : index
    %3 = vector.load %arg10[%c0_2, %c0_3] : memref<456x16xbf16, #tpu.memory_space<vmem>>, vector<25x16xbf16>
    tpu.vector_store %arg10[%c0_2, %c0_3], %2 {strides = array<i32>} : memref<456x16xbf16, #tpu.memory_space<vmem>>, vector<25x16xbf16>,
    %cst_4 = arith.constant 0.000000e+00 : bf16
    %4 = vector.broadcast %cst_4 : bf16 to vector<47x16xbf16>
    %c409 = arith.constant 409 : index
    %c0_5 = arith.constant 0 : index
    %5 = vector.load %arg10[%c409, %c0_5] : memref<456x16xbf16, #tpu.memory_space<vmem>>, vector<47x16xbf16>
    tpu.vector_store %arg10[%c409, %c0_5], %4 {strides = array<i32>} : memref<456x16xbf16, #tpu.memory_space<vmem>>, vector<47x16xbf16>,
    %c0_6 = arith.constant 0 : index
    %c0_7 = arith.constant 0 : index
    %c0_8 = arith.constant 0 : index
    %6 = vector.load %arg1[%c0_6, %c0_7, %c0_8] : memref<1x456x16xbf16, #tpu.memory_space<vmem>>, vector<1x256x16xbf16>
    %7 = vector.shape_cast %6 : vector<1x256x16xbf16> to vector<256x16xbf16>
    %c0_9 = arith.constant 0 : index
    %c0_10 = arith.constant 0 : index
    %8 = vector.load %arg11[%c0_9, %c0_10] : memref<256x1152xbf16, #tpu.memory_space<vmem>>, vector<256x16xbf16>
    tpu.vector_store %arg11[%c0_9, %c0_10], %7 {strides = array<i32>} : memref<256x1152xbf16, #tpu.memory_space<vmem>>, vector<256x16xbf16>,
    %c0_11 = arith.constant 0 : index
    %c1 = arith.constant 1 : index
    %c0_12 = arith.constant 0 : index
    %9 = vector.load %arg1[%c0_11, %c1, %c0_12] : memref<1x456x16xbf16, #tpu.memory_space<vmem>>, vector<1x256x16xbf16>
    %10 = vector.shape_cast %9 : vector<1x256x16xbf16> to vector<256x16xbf16>
    %c0_13 = arith.constant 0 : index
    %c128 = arith.constant 128 : index
    %11 = vector.load %arg11[%c0_13, %c128] : memref<256x1152xbf16, #tpu.memory_space<vmem>>, vector<256x16xbf16>
    tpu.vector_store %arg11[%c0_13, %c128], %10 {strides = array<i32>} : memref<256x1152xbf16, #tpu.memory_space<vmem>>, vector<256x16xbf16>,
    %c0_14 = arith.constant 0 : index
    %c2 = arith.constant 2 : index
    %c0_15 = arith.constant 0 : index
    %12 = vector.load %arg1[%c0_14, %c2, %c0_15] : memref<1x456x16xbf16, #tpu.memory_space<vmem>>, vector<1x256x16xbf16>
    %13 = vector.shape_cast %12 : vector<1x256x16xbf16> to vector<256x16xbf16>
    %c0_16 = arith.constant 0 : index
    %c256 = arith.constant 256 : index
    %14 = vector.load %arg11[%c0_16, %c256] : memref<256x1152xbf16, #tpu.memory_space<vmem>>, vector<256x16xbf16>
    tpu.vector_store %arg11[%c0_16, %c256], %13 {strides = array<i32>} : memref<256x1152xbf16, #tpu.memory_space<vmem>>, vector<256x16xbf16>,
    %c0_17 = arith.constant 0 : index
    %c24 = arith.constant 24 : index
    %c0_18 = arith.constant 0 : index
    %15 = vector.load %arg1[%c0_17, %c24, %c0_18] : memref<1x456x16xbf16, #tpu.memory_space<vmem>>, vector<1x256x16xbf16>
    %16 = vector.shape_cast %15 : vector<1x256x16xbf16> to vector<256x16xbf16>
    %c0_19 = arith.constant 0 : index
    %c384 = arith.constant 384 : index
    %17 = vector.load %arg11[%c0_19, %c384] : memref<256x1152xbf16, #tpu.memory_space<vmem>>, vector<256x16xbf16>
    tpu.vector_store %arg11[%c0_19, %c384], %16 {strides = array<i32>} : memref<256x1152xbf16, #tpu.memory_space<vmem>>, vector<256x16xbf16>,
    %c0_20 = arith.constant 0 : index
    %c25 = arith.constant 25 : index
    %c0_21 = arith.constant 0 : index
    %18 = vector.load %arg1[%c0_20, %c25, %c0_21] : memref<1x456x16xbf16, #tpu.memory_space<vmem>>, vector<1x256x16xbf16>
    %19 = vector.shape_cast %18 : vector<1x256x16xbf16> to vector<256x16xbf16>
    %c0_22 = arith.constant 0 : index
    %c512 = arith.constant 512 : index
    %20 = vector.load %arg11[%c0_22, %c512] : memref<256x1152xbf16, #tpu.memory_space<vmem>>, vector<256x16xbf16>
    tpu.vector_store %arg11[%c0_22, %c512], %19 {strides = array<i32>} : memref<256x1152xbf16, #tpu.memory_space<vmem>>, vector<256x16xbf16>,
    %c0_23 = arith.constant 0 : index
    %c26 = arith.constant 26 : index
    %c0_24 = arith.constant 0 : index
    %21 = vector.load %arg1[%c0_23, %c26, %c0_24] : memref<1x456x16xbf16, #tpu.memory_space<vmem>>, vector<1x256x16xbf16>
    %22 = vector.shape_cast %21 : vector<1x256x16xbf16> to vector<256x16xbf16>
    %c0_25 = arith.constant 0 : index
    %c640 = arith.constant 640 : index
    %23 = vector.load %arg11[%c0_25, %c640] : memref<256x1152xbf16, #tpu.memory_space<vmem>>, vector<256x16xbf16>
    tpu.vector_store %arg11[%c0_25, %c640], %22 {strides = array<i32>} : memref<256x1152xbf16, #tpu.memory_space<vmem>>, vector<256x16xbf16>,
    %c0_26 = arith.constant 0 : index
    %c48 = arith.constant 48 : index
    %c0_27 = arith.constant 0 : index
    %24 = vector.load %arg1[%c0_26, %c48, %c0_27] : memref<1x456x16xbf16, #tpu.memory_space<vmem>>, vector<1x256x16xbf16>
    %25 = vector.shape_cast %24 : vector<1x256x16xbf16> to vector<256x16xbf16>
    %c0_28 = arith.constant 0 : index
    %c768 = arith.constant 768 : index
    %26 = vector.load %arg11[%c0_28, %c768] : memref<256x1152xbf16, #tpu.memory_space<vmem>>, vector<256x16xbf16>
    tpu.vector_store %arg11[%c0_28, %c768], %25 {strides = array<i32>} : memref<256x1152xbf16, #tpu.memory_space<vmem>>, vector<256x16xbf16>,
    %c0_29 = arith.constant 0 : index
    %c49 = arith.constant 49 : index
    %c0_30 = arith.constant 0 : index
    %27 = vector.load %arg1[%c0_29, %c49, %c0_30] : memref<1x456x16xbf16, #tpu.memory_space<vmem>>, vector<1x256x16xbf16>
    %28 = vector.shape_cast %27 : vector<1x256x16xbf16> to vector<256x16xbf16>
    %c0_31 = arith.constant 0 : index
    %c896 = arith.constant 896 : index
    %29 = vector.load %arg11[%c0_31, %c896] : memref<256x1152xbf16, #tpu.memory_space<vmem>>, vector<256x16xbf16>
    tpu.vector_store %arg11[%c0_31, %c896], %28 {strides = array<i32>} : memref<256x1152xbf16, #tpu.memory_space<vmem>>, vector<256x16xbf16>,
    %c0_32 = arith.constant 0 : index
    %c50 = arith.constant 50 : index
    %c0_33 = arith.constant 0 : index
    %30 = vector.load %arg1[%c0_32, %c50, %c0_33] : memref<1x456x16xbf16, #tpu.memory_space<vmem>>, vector<1x256x16xbf16>
    %31 = vector.shape_cast %30 : vector<1x256x16xbf16> to vector<256x16xbf16>
    %c0_34 = arith.constant 0 : index
    %c1024 = arith.constant 1024 : index
    %32 = vector.load %arg11[%c0_34, %c1024] : memref<256x1152xbf16, #tpu.memory_space<vmem>>, vector<256x16xbf16>
    tpu.vector_store %arg11[%c0_34, %c1024], %31 {strides = array<i32>} : memref<256x1152xbf16, #tpu.memory_space<vmem>>, vector<256x16xbf16>,
    %c0_35 = arith.constant 0 : index
    %c0_36 = arith.constant 0 : index
    %33 = vector.load %arg11[%c0_35, %c0_36] : memref<256x1152xbf16, #tpu.memory_space<vmem>>, vector<256x1152xbf16>
    %c0_37 = arith.constant 0 : index
    %c0_38 = arith.constant 0 : index
    %34 = vector.load %arg3[%c0_37, %c0_38] : memref<1152x16xbf16, #tpu.memory_space<vmem>>, vector<1152x16xbf16>
    %cst_39 = arith.constant dense<0.000000e+00> : vector<256x16xf32>
    %35 = tpu.matmul %33, %34, %cst_39 {dimension_numbers = #tpu.dot_dimension_numbers<[1], [0], [0], [1], [0, 0, 1, 1], [], []>} : vector<256x1152xbf16>, vector<1152x16xbf16>, vector<256x16xf32> -> vector<256x16xf32>
    %c0_40 = arith.constant 0 : index
    %c0_41 = arith.constant 0 : index
    %36 = vector.load %arg4[%c0_40, %c0_41] : memref<1x16xf32, #tpu.memory_space<vmem>>, vector<1x16xf32>
    %37 = vector.broadcast %36 : vector<1x16xf32> to vector<256x16xf32>
    %38 = arith.mulf %35, %37 : vector<256x16xf32>
    %c0_42 = arith.constant 0 : index
    %c0_43 = arith.constant 0 : index
    %39 = vector.load %arg5[%c0_42, %c0_43] : memref<1x16xf32, #tpu.memory_space<vmem>>, vector<1x16xf32>
    %40 = vector.broadcast %39 : vector<1x16xf32> to vector<256x16xf32>
    %41 = arith.addf %38, %40 : vector<256x16xf32>
    %cst_44 = arith.constant 0.000000e+00 : f32
    %42 = vector.broadcast %cst_44 : f32 to vector<256x16xf32>
    %43 = arith.maximumf %41, %42 : vector<256x16xf32>
    %c0_45 = arith.constant 0 : index
    %c0_46 = arith.constant 0 : index
    %44 = vector.load %arg2[%c0_45, %c0_46] : memref<384x1xf32, #tpu.memory_space<vmem>>, vector<256x1xf32>
    %45 = vector.broadcast %44 : vector<256x1xf32> to vector<256x16xf32>
    %46 = arith.mulf %43, %45 : vector<256x16xf32>
    %47 = arith.truncf %46 : vector<256x16xf32> to vector<256x16xbf16>
    %c25_47 = arith.constant 25 : index
    %c0_48 = arith.constant 0 : index
    %48 = vector.load %arg10[%c25_47, %c0_48] : memref<456x16xbf16, #tpu.memory_space<vmem>>, vector<256x16xbf16>
    tpu.vector_store %arg10[%c25_47, %c0_48], %47 {strides = array<i32>} : memref<456x16xbf16, #tpu.memory_space<vmem>>, vector<256x16xbf16>,
    %c0_49 = arith.constant 0 : index
    %c256_50 = arith.constant 256 : index
    %c0_51 = arith.constant 0 : index
    %49 = vector.load %arg1[%c0_49, %c256_50, %c0_51] : memref<1x456x16xbf16, #tpu.memory_space<vmem>>, vector<1x128x16xbf16>
    %50 = vector.shape_cast %49 : vector<1x128x16xbf16> to vector<128x16xbf16>
    %c0_52 = arith.constant 0 : index
    %c0_53 = arith.constant 0 : index
    %51 = vector.load %arg11[%c0_52, %c0_53] : memref<256x1152xbf16, #tpu.memory_space<vmem>>, vector<128x16xbf16>
    tpu.vector_store %arg11[%c0_52, %c0_53], %50 {strides = array<i32>} : memref<256x1152xbf16, #tpu.memory_space<vmem>>, vector<128x16xbf16>,
    %c0_54 = arith.constant 0 : index
    %c257 = arith.constant 257 : index
    %c0_55 = arith.constant 0 : index
    %52 = vector.load %arg1[%c0_54, %c257, %c0_55] : memref<1x456x16xbf16, #tpu.memory_space<vmem>>, vector<1x128x16xbf16>
    %53 = vector.shape_cast %52 : vector<1x128x16xbf16> to vector<128x16xbf16>
    %c0_56 = arith.constant 0 : index
    %c128_57 = arith.constant 128 : index
    %54 = vector.load %arg11[%c0_56, %c128_57] : memref<256x1152xbf16, #tpu.memory_space<vmem>>, vector<128x16xbf16>
    tpu.vector_store %arg11[%c0_56, %c128_57], %53 {strides = array<i32>} : memref<256x1152xbf16, #tpu.memory_space<vmem>>, vector<128x16xbf16>,
    %c0_58 = arith.constant 0 : index
    %c258 = arith.constant 258 : index
    %c0_59 = arith.constant 0 : index
    %55 = vector.load %arg1[%c0_58, %c258, %c0_59] : memref<1x456x16xbf16, #tpu.memory_space<vmem>>, vector<1x128x16xbf16>
    %56 = vector.shape_cast %55 : vector<1x128x16xbf16> to vector<128x16xbf16>
    %c0_60 = arith.constant 0 : index
    %c256_61 = arith.constant 256 : index
    %57 = vector.load %arg11[%c0_60, %c256_61] : memref<256x1152xbf16, #tpu.memory_space<vmem>>, vector<128x16xbf16>
    tpu.vector_store %arg11[%c0_60, %c256_61], %56 {strides = array<i32>} : memref<256x1152xbf16, #tpu.memory_space<vmem>>, vector<128x16xbf16>,
    %c0_62 = arith.constant 0 : index
    %c280 = arith.constant 280 : index
    %c0_63 = arith.constant 0 : index
    %58 = vector.load %arg1[%c0_62, %c280, %c0_63] : memref<1x456x16xbf16, #tpu.memory_space<vmem>>, vector<1x128x16xbf16>
    %59 = vector.shape_cast %58 : vector<1x128x16xbf16> to vector<128x16xbf16>
    %c0_64 = arith.constant 0 : index
    %c384_65 = arith.constant 384 : index
    %60 = vector.load %arg11[%c0_64, %c384_65] : memref<256x1152xbf16, #tpu.memory_space<vmem>>, vector<128x16xbf16>
    tpu.vector_store %arg11[%c0_64, %c384_65], %59 {strides = array<i32>} : memref<256x1152xbf16, #tpu.memory_space<vmem>>, vector<128x16xbf16>,
    %c0_66 = arith.constant 0 : index
    %c281 = arith.constant 281 : index
    %c0_67 = arith.constant 0 : index
    %61 = vector.load %arg1[%c0_66, %c281, %c0_67] : memref<1x456x16xbf16, #tpu.memory_space<vmem>>, vector<1x128x16xbf16>
    %62 = vector.shape_cast %61 : vector<1x128x16xbf16> to vector<128x16xbf16>
    %c0_68 = arith.constant 0 : index
    %c512_69 = arith.constant 512 : index
    %63 = vector.load %arg11[%c0_68, %c512_69] : memref<256x1152xbf16, #tpu.memory_space<vmem>>, vector<128x16xbf16>
    tpu.vector_store %arg11[%c0_68, %c512_69], %62 {strides = array<i32>} : memref<256x1152xbf16, #tpu.memory_space<vmem>>, vector<128x16xbf16>,
    %c0_70 = arith.constant 0 : index
    %c282 = arith.constant 282 : index
    %c0_71 = arith.constant 0 : index
    %64 = vector.load %arg1[%c0_70, %c282, %c0_71] : memref<1x456x16xbf16, #tpu.memory_space<vmem>>, vector<1x128x16xbf16>
    %65 = vector.shape_cast %64 : vector<1x128x16xbf16> to vector<128x16xbf16>
    %c0_72 = arith.constant 0 : index
    %c640_73 = arith.constant 640 : index
    %66 = vector.load %arg11[%c0_72, %c640_73] : memref<256x1152xbf16, #tpu.memory_space<vmem>>, vector<128x16xbf16>
    tpu.vector_store %arg11[%c0_72, %c640_73], %65 {strides = array<i32>} : memref<256x1152xbf16, #tpu.memory_space<vmem>>, vector<128x16xbf16>,
    %c0_74 = arith.constant 0 : index
    %c304 = arith.constant 304 : index
    %c0_75 = arith.constant 0 : index
    %67 = vector.load %arg1[%c0_74, %c304, %c0_75] : memref<1x456x16xbf16, #tpu.memory_space<vmem>>, vector<1x128x16xbf16>
    %68 = vector.shape_cast %67 : vector<1x128x16xbf16> to vector<128x16xbf16>
    %c0_76 = arith.constant 0 : index
    %c768_77 = arith.constant 768 : index
    %69 = vector.load %arg11[%c0_76, %c768_77] : memref<256x1152xbf16, #tpu.memory_space<vmem>>, vector<128x16xbf16>
    tpu.vector_store %arg11[%c0_76, %c768_77], %68 {strides = array<i32>} : memref<256x1152xbf16, #tpu.memory_space<vmem>>, vector<128x16xbf16>,
    %c0_78 = arith.constant 0 : index
    %c305 = arith.constant 305 : index
    %c0_79 = arith.constant 0 : index
    %70 = vector.load %arg1[%c0_78, %c305, %c0_79] : memref<1x456x16xbf16, #tpu.memory_space<vmem>>, vector<1x128x16xbf16>
    %71 = vector.shape_cast %70 : vector<1x128x16xbf16> to vector<128x16xbf16>
    %c0_80 = arith.constant 0 : index
    %c896_81 = arith.constant 896 : index
    %72 = vector.load %arg11[%c0_80, %c896_81] : memref<256x1152xbf16, #tpu.memory_space<vmem>>, vector<128x16xbf16>
    tpu.vector_store %arg11[%c0_80, %c896_81], %71 {strides = array<i32>} : memref<256x1152xbf16, #tpu.memory_space<vmem>>, vector<128x16xbf16>,
    %c0_82 = arith.constant 0 : index
    %c306 = arith.constant 306 : index
    %c0_83 = arith.constant 0 : index
    %73 = vector.load %arg1[%c0_82, %c306, %c0_83] : memref<1x456x16xbf16, #tpu.memory_space<vmem>>, vector<1x128x16xbf16>
    %74 = vector.shape_cast %73 : vector<1x128x16xbf16> to vector<128x16xbf16>
    %c0_84 = arith.constant 0 : index
    %c1024_85 = arith.constant 1024 : index
    %75 = vector.load %arg11[%c0_84, %c1024_85] : memref<256x1152xbf16, #tpu.memory_space<vmem>>, vector<128x16xbf16>
    tpu.vector_store %arg11[%c0_84, %c1024_85], %74 {strides = array<i32>} : memref<256x1152xbf16, #tpu.memory_space<vmem>>, vector<128x16xbf16>,
    %c0_86 = arith.constant 0 : index
    %c0_87 = arith.constant 0 : index
    %76 = vector.load %arg11[%c0_86, %c0_87] : memref<256x1152xbf16, #tpu.memory_space<vmem>>, vector<128x1152xbf16>
    %c0_88 = arith.constant 0 : index
    %c0_89 = arith.constant 0 : index
    %77 = vector.load %arg3[%c0_88, %c0_89] : memref<1152x16xbf16, #tpu.memory_space<vmem>>, vector<1152x16xbf16>
    %cst_90 = arith.constant dense<0.000000e+00> : vector<128x16xf32>
    %78 = tpu.matmul %76, %77, %cst_90 {dimension_numbers = #tpu.dot_dimension_numbers<[1], [0], [0], [1], [0, 0, 1, 1], [], []>} : vector<128x1152xbf16>, vector<1152x16xbf16>, vector<128x16xf32> -> vector<128x16xf32>
    %c0_91 = arith.constant 0 : index
    %c0_92 = arith.constant 0 : index
    %79 = vector.load %arg4[%c0_91, %c0_92] : memref<1x16xf32, #tpu.memory_space<vmem>>, vector<1x16xf32>
    %80 = vector.broadcast %79 : vector<1x16xf32> to vector<128x16xf32>
    %81 = arith.mulf %78, %80 : vector<128x16xf32>
    %c0_93 = arith.constant 0 : index
    %c0_94 = arith.constant 0 : index
    %82 = vector.load %arg5[%c0_93, %c0_94] : memref<1x16xf32, #tpu.memory_space<vmem>>, vector<1x16xf32>
    %83 = vector.broadcast %82 : vector<1x16xf32> to vector<128x16xf32>
    %84 = arith.addf %81, %83 : vector<128x16xf32>
    %cst_95 = arith.constant 0.000000e+00 : f32
    %85 = vector.broadcast %cst_95 : f32 to vector<128x16xf32>
    %86 = arith.maximumf %84, %85 : vector<128x16xf32>
    %c256_96 = arith.constant 256 : index
    %c0_97 = arith.constant 0 : index
    %87 = vector.load %arg2[%c256_96, %c0_97] : memref<384x1xf32, #tpu.memory_space<vmem>>, vector<128x1xf32>
    %88 = vector.broadcast %87 : vector<128x1xf32> to vector<128x16xf32>
    %89 = arith.mulf %86, %88 : vector<128x16xf32>
    %90 = arith.truncf %89 : vector<128x16xf32> to vector<128x16xbf16>
    %c281_98 = arith.constant 281 : index
    %c0_99 = arith.constant 0 : index
    %91 = vector.load %arg10[%c281_98, %c0_99] : memref<456x16xbf16, #tpu.memory_space<vmem>>, vector<128x16xbf16>
    tpu.vector_store %arg10[%c281_98, %c0_99], %90 {strides = array<i32>} : memref<456x16xbf16, #tpu.memory_space<vmem>>, vector<128x16xbf16>,
    %c0_100 = arith.constant 0 : index
    %c0_101 = arith.constant 0 : index
    %92 = vector.load %arg10[%c0_100, %c0_101] : memref<456x16xbf16, #tpu.memory_space<vmem>>, vector<256x16xbf16>
    %c0_102 = arith.constant 0 : index
    %c0_103 = arith.constant 0 : index
    %93 = vector.load %arg11[%c0_102, %c0_103] : memref<256x1152xbf16, #tpu.memory_space<vmem>>, vector<256x16xbf16>
    tpu.vector_store %arg11[%c0_102, %c0_103], %92 {strides = array<i32>} : memref<256x1152xbf16, #tpu.memory_space<vmem>>, vector<256x16xbf16>,
    %c1_104 = arith.constant 1 : index
    %c0_105 = arith.constant 0 : index
    %94 = vector.load %arg10[%c1_104, %c0_105] : memref<456x16xbf16, #tpu.memory_space<vmem>>, vector<256x16xbf16>
    %c0_106 = arith.constant 0 : index
    %c128_107 = arith.constant 128 : index
    %95 = vector.load %arg11[%c0_106, %c128_107] : memref<256x1152xbf16, #tpu.memory_space<vmem>>, vector<256x16xbf16>
    tpu.vector_store %arg11[%c0_106, %c128_107], %94 {strides = array<i32>} : memref<256x1152xbf16, #tpu.memory_space<vmem>>, vector<256x16xbf16>,
    %c2_108 = arith.constant 2 : index
    %c0_109 = arith.constant 0 : index
    %96 = vector.load %arg10[%c2_108, %c0_109] : memref<456x16xbf16, #tpu.memory_space<vmem>>, vector<256x16xbf16>
    %c0_110 = arith.constant 0 : index
    %c256_111 = arith.constant 256 : index
    %97 = vector.load %arg11[%c0_110, %c256_111] : memref<256x1152xbf16, #tpu.memory_space<vmem>>, vector<256x16xbf16>
    tpu.vector_store %arg11[%c0_110, %c256_111], %96 {strides = array<i32>} : memref<256x1152xbf16, #tpu.memory_space<vmem>>, vector<256x16xbf16>,
    %c24_112 = arith.constant 24 : index
    %c0_113 = arith.constant 0 : index
    %98 = vector.load %arg10[%c24_112, %c0_113] : memref<456x16xbf16, #tpu.memory_space<vmem>>, vector<256x16xbf16>
    %c0_114 = arith.constant 0 : index
    %c384_115 = arith.constant 384 : index
    %99 = vector.load %arg11[%c0_114, %c384_115] : memref<256x1152xbf16, #tpu.memory_space<vmem>>, vector<256x16xbf16>
    tpu.vector_store %arg11[%c0_114, %c384_115], %98 {strides = array<i32>} : memref<256x1152xbf16, #tpu.memory_space<vmem>>, vector<256x16xbf16>,
    %c25_116 = arith.constant 25 : index
    %c0_117 = arith.constant 0 : index
    %100 = vector.load %arg10[%c25_116, %c0_117] : memref<456x16xbf16, #tpu.memory_space<vmem>>, vector<256x16xbf16>
    %c0_118 = arith.constant 0 : index
    %c512_119 = arith.constant 512 : index
    %101 = vector.load %arg11[%c0_118, %c512_119] : memref<256x1152xbf16, #tpu.memory_space<vmem>>, vector<256x16xbf16>
    tpu.vector_store %arg11[%c0_118, %c512_119], %100 {strides = array<i32>} : memref<256x1152xbf16, #tpu.memory_space<vmem>>, vector<256x16xbf16>,
    %c26_120 = arith.constant 26 : index
    %c0_121 = arith.constant 0 : index
    %102 = vector.load %arg10[%c26_120, %c0_121] : memref<456x16xbf16, #tpu.memory_space<vmem>>, vector<256x16xbf16>
    %c0_122 = arith.constant 0 : index
    %c640_123 = arith.constant 640 : index
    %103 = vector.load %arg11[%c0_122, %c640_123] : memref<256x1152xbf16, #tpu.memory_space<vmem>>, vector<256x16xbf16>
    tpu.vector_store %arg11[%c0_122, %c640_123], %102 {strides = array<i32>} : memref<256x1152xbf16, #tpu.memory_space<vmem>>, vector<256x16xbf16>,
    %c48_124 = arith.constant 48 : index
    %c0_125 = arith.constant 0 : index
    %104 = vector.load %arg10[%c48_124, %c0_125] : memref<456x16xbf16, #tpu.memory_space<vmem>>, vector<256x16xbf16>
    %c0_126 = arith.constant 0 : index
    %c768_127 = arith.constant 768 : index
    %105 = vector.load %arg11[%c0_126, %c768_127] : memref<256x1152xbf16, #tpu.memory_space<vmem>>, vector<256x16xbf16>
    tpu.vector_store %arg11[%c0_126, %c768_127], %104 {strides = array<i32>} : memref<256x1152xbf16, #tpu.memory_space<vmem>>, vector<256x16xbf16>,
    %c49_128 = arith.constant 49 : index
    %c0_129 = arith.constant 0 : index
    %106 = vector.load %arg10[%c49_128, %c0_129] : memref<456x16xbf16, #tpu.memory_space<vmem>>, vector<256x16xbf16>
    %c0_130 = arith.constant 0 : index
    %c896_131 = arith.constant 896 : index
    %107 = vector.load %arg11[%c0_130, %c896_131] : memref<256x1152xbf16, #tpu.memory_space<vmem>>, vector<256x16xbf16>
    tpu.vector_store %arg11[%c0_130, %c896_131], %106 {strides = array<i32>} : memref<256x1152xbf16, #tpu.memory_space<vmem>>, vector<256x16xbf16>,
    %c50_132 = arith.constant 50 : index
    %c0_133 = arith.constant 0 : index
    %108 = vector.load %arg10[%c50_132, %c0_133] : memref<456x16xbf16, #tpu.memory_space<vmem>>, vector<256x16xbf16>
    %c0_134 = arith.constant 0 : index
    %c1024_135 = arith.constant 1024 : index
    %109 = vector.load %arg11[%c0_134, %c1024_135] : memref<256x1152xbf16, #tpu.memory_space<vmem>>, vector<256x16xbf16>
    tpu.vector_store %arg11[%c0_134, %c1024_135], %108 {strides = array<i32>} : memref<256x1152xbf16, #tpu.memory_space<vmem>>, vector<256x16xbf16>,
    %c0_136 = arith.constant 0 : index
    %c0_137 = arith.constant 0 : index
    %110 = vector.load %arg11[%c0_136, %c0_137] : memref<256x1152xbf16, #tpu.memory_space<vmem>>, vector<256x1152xbf16>
    %c0_138 = arith.constant 0 : index
    %c0_139 = arith.constant 0 : index
    %111 = vector.load %arg6[%c0_138, %c0_139] : memref<1152x16xbf16, #tpu.memory_space<vmem>>, vector<1152x16xbf16>
    %cst_140 = arith.constant dense<0.000000e+00> : vector<256x16xf32>
    %112 = tpu.matmul %110, %111, %cst_140 {dimension_numbers = #tpu.dot_dimension_numbers<[1], [0], [0], [1], [0, 0, 1, 1], [], []>} : vector<256x1152xbf16>, vector<1152x16xbf16>, vector<256x16xf32> -> vector<256x16xf32>
    %c0_141 = arith.constant 0 : index
    %c0_142 = arith.constant 0 : index
    %113 = vector.load %arg7[%c0_141, %c0_142] : memref<1x16xf32, #tpu.memory_space<vmem>>, vector<1x16xf32>
    %114 = vector.broadcast %113 : vector<1x16xf32> to vector<256x16xf32>
    %115 = arith.mulf %112, %114 : vector<256x16xf32>
    %c0_143 = arith.constant 0 : index
    %c0_144 = arith.constant 0 : index
    %116 = vector.load %arg8[%c0_143, %c0_144] : memref<1x16xf32, #tpu.memory_space<vmem>>, vector<1x16xf32>
    %117 = vector.broadcast %116 : vector<1x16xf32> to vector<256x16xf32>
    %118 = arith.addf %115, %117 : vector<256x16xf32>
    %cst_145 = arith.constant 0.000000e+00 : f32
    %119 = vector.broadcast %cst_145 : f32 to vector<256x16xf32>
    %120 = arith.maximumf %118, %119 : vector<256x16xf32>
    %c0_146 = arith.constant 0 : index
    %c0_147 = arith.constant 0 : index
    %c0_148 = arith.constant 0 : index
    %121 = vector.load %arg9[%c0_146, %c0_147, %c0_148] : memref<1x384x16xf32, #tpu.memory_space<vmem>>, vector<1x256x16xf32>
    %122 = vector.shape_cast %121 : vector<1x256x16xf32> to vector<256x16xf32>
    %123 = vector.shape_cast %120 : vector<256x16xf32> to vector<1x256x16xf32>
    tpu.vector_store %arg9[%c0_146, %c0_147, %c0_148], %123 {strides = array<i32>} : memref<1x384x16xf32, #tpu.memory_space<vmem>>, vector<1x256x16xf32>,
    %c256_149 = arith.constant 256 : index
    %c0_150 = arith.constant 0 : index
    %124 = vector.load %arg10[%c256_149, %c0_150] : memref<456x16xbf16, #tpu.memory_space<vmem>>, vector<128x16xbf16>
    %c0_151 = arith.constant 0 : index
    %c0_152 = arith.constant 0 : index
    %125 = vector.load %arg11[%c0_151, %c0_152] : memref<256x1152xbf16, #tpu.memory_space<vmem>>, vector<128x16xbf16>
    tpu.vector_store %arg11[%c0_151, %c0_152], %124 {strides = array<i32>} : memref<256x1152xbf16, #tpu.memory_space<vmem>>, vector<128x16xbf16>,
    %c257_153 = arith.constant 257 : index
    %c0_154 = arith.constant 0 : index
    %126 = vector.load %arg10[%c257_153, %c0_154] : memref<456x16xbf16, #tpu.memory_space<vmem>>, vector<128x16xbf16>
    %c0_155 = arith.constant 0 : index
    %c128_156 = arith.constant 128 : index
    %127 = vector.load %arg11[%c0_155, %c128_156] : memref<256x1152xbf16, #tpu.memory_space<vmem>>, vector<128x16xbf16>
    tpu.vector_store %arg11[%c0_155, %c128_156], %126 {strides = array<i32>} : memref<256x1152xbf16, #tpu.memory_space<vmem>>, vector<128x16xbf16>,
    %c258_157 = arith.constant 258 : index
    %c0_158 = arith.constant 0 : index
    %128 = vector.load %arg10[%c258_157, %c0_158] : memref<456x16xbf16, #tpu.memory_space<vmem>>, vector<128x16xbf16>
    %c0_159 = arith.constant 0 : index
    %c256_160 = arith.constant 256 : index
    %129 = vector.load %arg11[%c0_159, %c256_160] : memref<256x1152xbf16, #tpu.memory_space<vmem>>, vector<128x16xbf16>
    tpu.vector_store %arg11[%c0_159, %c256_160], %128 {strides = array<i32>} : memref<256x1152xbf16, #tpu.memory_space<vmem>>, vector<128x16xbf16>,
    %c280_161 = arith.constant 280 : index
    %c0_162 = arith.constant 0 : index
    %130 = vector.load %arg10[%c280_161, %c0_162] : memref<456x16xbf16, #tpu.memory_space<vmem>>, vector<128x16xbf16>
    %c0_163 = arith.constant 0 : index
    %c384_164 = arith.constant 384 : index
    %131 = vector.load %arg11[%c0_163, %c384_164] : memref<256x1152xbf16, #tpu.memory_space<vmem>>, vector<128x16xbf16>
    tpu.vector_store %arg11[%c0_163, %c384_164], %130 {strides = array<i32>} : memref<256x1152xbf16, #tpu.memory_space<vmem>>, vector<128x16xbf16>,
    %c281_165 = arith.constant 281 : index
    %c0_166 = arith.constant 0 : index
    %132 = vector.load %arg10[%c281_165, %c0_166] : memref<456x16xbf16, #tpu.memory_space<vmem>>, vector<128x16xbf16>
    %c0_167 = arith.constant 0 : index
    %c512_168 = arith.constant 512 : index
    %133 = vector.load %arg11[%c0_167, %c512_168] : memref<256x1152xbf16, #tpu.memory_space<vmem>>, vector<128x16xbf16>
    tpu.vector_store %arg11[%c0_167, %c512_168], %132 {strides = array<i32>} : memref<256x1152xbf16, #tpu.memory_space<vmem>>, vector<128x16xbf16>,
    %c282_169 = arith.constant 282 : index
    %c0_170 = arith.constant 0 : index
    %134 = vector.load %arg10[%c282_169, %c0_170] : memref<456x16xbf16, #tpu.memory_space<vmem>>, vector<128x16xbf16>
    %c0_171 = arith.constant 0 : index
    %c640_172 = arith.constant 640 : index
    %135 = vector.load %arg11[%c0_171, %c640_172] : memref<256x1152xbf16, #tpu.memory_space<vmem>>, vector<128x16xbf16>
    tpu.vector_store %arg11[%c0_171, %c640_172], %134 {strides = array<i32>} : memref<256x1152xbf16, #tpu.memory_space<vmem>>, vector<128x16xbf16>,
    %c304_173 = arith.constant 304 : index
    %c0_174 = arith.constant 0 : index
    %136 = vector.load %arg10[%c304_173, %c0_174] : memref<456x16xbf16, #tpu.memory_space<vmem>>, vector<128x16xbf16>
    %c0_175 = arith.constant 0 : index
    %c768_176 = arith.constant 768 : index
    %137 = vector.load %arg11[%c0_175, %c768_176] : memref<256x1152xbf16, #tpu.memory_space<vmem>>, vector<128x16xbf16>
    tpu.vector_store %arg11[%c0_175, %c768_176], %136 {strides = array<i32>} : memref<256x1152xbf16, #tpu.memory_space<vmem>>, vector<128x16xbf16>,
    %c305_177 = arith.constant 305 : index
    %c0_178 = arith.constant 0 : index
    %138 = vector.load %arg10[%c305_177, %c0_178] : memref<456x16xbf16, #tpu.memory_space<vmem>>, vector<128x16xbf16>
    %c0_179 = arith.constant 0 : index
    %c896_180 = arith.constant 896 : index
    %139 = vector.load %arg11[%c0_179, %c896_180] : memref<256x1152xbf16, #tpu.memory_space<vmem>>, vector<128x16xbf16>
    tpu.vector_store %arg11[%c0_179, %c896_180], %138 {strides = array<i32>} : memref<256x1152xbf16, #tpu.memory_space<vmem>>, vector<128x16xbf16>,
    %c306_181 = arith.constant 306 : index
    %c0_182 = arith.constant 0 : index
    %140 = vector.load %arg10[%c306_181, %c0_182] : memref<456x16xbf16, #tpu.memory_space<vmem>>, vector<128x16xbf16>
    %c0_183 = arith.constant 0 : index
    %c1024_184 = arith.constant 1024 : index
    %141 = vector.load %arg11[%c0_183, %c1024_184] : memref<256x1152xbf16, #tpu.memory_space<vmem>>, vector<128x16xbf16>
    tpu.vector_store %arg11[%c0_183, %c1024_184], %140 {strides = array<i32>} : memref<256x1152xbf16, #tpu.memory_space<vmem>>, vector<128x16xbf16>,
    %c0_185 = arith.constant 0 : index
    %c0_186 = arith.constant 0 : index
    %142 = vector.load %arg11[%c0_185, %c0_186] : memref<256x1152xbf16, #tpu.memory_space<vmem>>, vector<128x1152xbf16>
    %c0_187 = arith.constant 0 : index
    %c0_188 = arith.constant 0 : index
    %143 = vector.load %arg6[%c0_187, %c0_188] : memref<1152x16xbf16, #tpu.memory_space<vmem>>, vector<1152x16xbf16>
    %cst_189 = arith.constant dense<0.000000e+00> : vector<128x16xf32>
    %144 = tpu.matmul %142, %143, %cst_189 {dimension_numbers = #tpu.dot_dimension_numbers<[1], [0], [0], [1], [0, 0, 1, 1], [], []>} : vector<128x1152xbf16>, vector<1152x16xbf16>, vector<128x16xf32> -> vector<128x16xf32>
    %c0_190 = arith.constant 0 : index
    %c0_191 = arith.constant 0 : index
    %145 = vector.load %arg7[%c0_190, %c0_191] : memref<1x16xf32, #tpu.memory_space<vmem>>, vector<1x16xf32>
    %146 = vector.broadcast %145 : vector<1x16xf32> to vector<128x16xf32>
    %147 = arith.mulf %144, %146 : vector<128x16xf32>
    %c0_192 = arith.constant 0 : index
    %c0_193 = arith.constant 0 : index
    %148 = vector.load %arg8[%c0_192, %c0_193] : memref<1x16xf32, #tpu.memory_space<vmem>>, vector<1x16xf32>
    %149 = vector.broadcast %148 : vector<1x16xf32> to vector<128x16xf32>
    %150 = arith.addf %147, %149 : vector<128x16xf32>
    %cst_194 = arith.constant 0.000000e+00 : f32
    %151 = vector.broadcast %cst_194 : f32 to vector<128x16xf32>
    %152 = arith.maximumf %150, %151 : vector<128x16xf32>
    %c0_195 = arith.constant 0 : index
    %c256_196 = arith.constant 256 : index
    %c0_197 = arith.constant 0 : index
    %153 = vector.load %arg9[%c0_195, %c256_196, %c0_197] : memref<1x384x16xf32, #tpu.memory_space<vmem>>, vector<1x128x16xf32>
    %154 = vector.shape_cast %153 : vector<1x128x16xf32> to vector<128x16xf32>
    %155 = vector.shape_cast %152 : vector<128x16xf32> to vector<1x128x16xf32>
    tpu.vector_store %arg9[%c0_195, %c256_196, %c0_197], %155 {strides = array<i32>} : memref<1x384x16xf32, #tpu.memory_space<vmem>>, vector<1x128x16xf32>,
    return
  }
  func.func @transform_0(%arg0: i32) -> (i32, i32, i32) {
    %c0_i32 = arith.constant 0 : i32
    %c0_i32_0 = arith.constant 0 : i32
    %c0_i32_1 = arith.constant 0 : i32
    return %arg0, %c0_i32, %c0_i32_0 : i32, i32, i32
  }
  func.func @transform_1(%arg0: i32) -> (i32, i32) {
    %c0_i32 = arith.constant 0 : i32
    %c0_i32_0 = arith.constant 0 : i32
    %c0_i32_1 = arith.constant 0 : i32
    return %c0_i32, %c0_i32_0 : i32, i32
  }
  func.func @transform_2(%arg0: i32) -> (i32, i32) {
    %c0_i32 = arith.constant 0 : i32
    %c0_i32_0 = arith.constant 0 : i32
    %c0_i32_1 = arith.constant 0 : i32
    return %c0_i32, %c0_i32_0 : i32, i32
  }
  func.func @transform_3(%arg0: i32) -> (i32, i32) {
    %c0_i32 = arith.constant 0 : i32
    %c0_i32_0 = arith.constant 0 : i32
    %c0_i32_1 = arith.constant 0 : i32
    return %c0_i32, %c0_i32_0 : i32, i32
  }
  func.func @transform_4(%arg0: i32) -> (i32, i32) {
    %c0_i32 = arith.constant 0 : i32
    %c0_i32_0 = arith.constant 0 : i32
    %c0_i32_1 = arith.constant 0 : i32
    return %c0_i32, %c0_i32_0 : i32, i32
  }
  func.func @transform_5(%arg0: i32) -> (i32, i32) {
    %c0_i32 = arith.constant 0 : i32
    %c0_i32_0 = arith.constant 0 : i32
    %c0_i32_1 = arith.constant 0 : i32
    return %c0_i32, %c0_i32_0 : i32, i32
  }
  func.func @transform_6(%arg0: i32) -> (i32, i32) {
    %c0_i32 = arith.constant 0 : i32
    %c0_i32_0 = arith.constant 0 : i32
    %c0_i32_1 = arith.constant 0 : i32
    return %c0_i32, %c0_i32_0 : i32, i32
  }
  func.func @transform_7(%arg0: i32) -> (i32, i32) {
    %c0_i32 = arith.constant 0 : i32
    %c0_i32_0 = arith.constant 0 : i32
    %c0_i32_1 = arith.constant 0 : i32
    return %c0_i32, %c0_i32_0 : i32, i32
  }
  func.func @transform_8(%arg0: i32) -> (i32, i32, i32) {
    %c0_i32 = arith.constant 0 : i32
    %c0_i32_0 = arith.constant 0 : i32
    %c0_i32_1 = arith.constant 0 : i32
    return %arg0, %c0_i32, %c0_i32_0 : i32, i32, i32
  }
}

</mosaic_0001>

<bundles_post_ra>
// kernel: decoder_block_forward.1
= control target key start
LH: loop header
LB: loop body
LE: loop exit
PB: predicated region body
PF: predicated region fallthrough
CT: control target
= control target key end

     0   :  { %s16039_s27 = smov 0   ;;  %s20891_s0 = inlined_call_operand.vmem [shape: bf16[2,456,16], index: 0, kind: input, shape index: {}]   ;;  %s20892_s1 = inlined_call_operand.vmem [shape: f32[384,1], index: 1, kind: input, shape index: {}]   ;;  %s20893_s2 = inlined_call_operand.vmem [shape: bf16[1152,16], index: 2, kind: input, shape index: {}]   ;;  %s20894_s3 = inlined_call_operand.vmem [shape: f32[1,16], index: 3, kind: input, shape index: {}]   ;;  %s20895_s4 = inlined_call_operand.vmem [shape: f32[1,16], index: 4, kind: input, shape index: {}]   ;;  %s20896_s5 = inlined_call_operand.vmem [shape: bf16[1152,16], index: 5, kind: input, shape index: {}]   ;;  %s20897_s6 = inlined_call_operand.vmem [shape: f32[1,16], index: 6, kind: input, shape index: {}]   ;;  %s20898_s7 = inlined_call_operand.vmem [shape: f32[1,16], index: 7, kind: input, shape index: {}]   ;;  %s20899_s8 = inlined_call_operand.vmem [shape: f32[2,384,16], index: 8, kind: output, shape index: {}]  }
   0x1 LB: > { %s12742_s28 = sadd.s32 4294967295, %s15991_s27   ;;  %p12746_p0 = scmp.ge.s32.totalorder %s15991_s27, 1  ;;  %s15991_s27 = sphi %s16039_s27, %s18_s27  }
   0x2   : > { %p262_p1 = scmp.lt.s32.totalorder %s15991_s27, 3 }
   0x4   : > { %p263_p2 = pnand %p12746_p0, %p262_p1 }
   0x6   : > { %266 = sbr.rel (%p263_p2) target bundleno = 1353 (0x549), region = 52 }
   0xd   : > { %v15260_v0 = vld [vmem:[%s20893_s2 + $0x40] sm:$0xff]   ;;  %v15993_v3 = vmov 0   ;;  %v15264_v5 = vld [vmem:[%s20893_s2 + $0x48] sm:$0xff]   ;;  %v15268_v9 = vld [vmem:[%s20893_s2 + $0x50] sm:$0xff]   ;;  %p296_p3 = scmp.lt.s32.totalorder %s12742_s28, 1  ;;  %vm600_vm0 = vcmask 130048  }
   0xe   : > { %v16053_v1 = vld [vmem:[%s20893_s2 + $0xc0] sm:$0xff]   ;;  %13599 = vmatprep.subr.bf16.mxu0 %v15260_v0  ;;  %308 = vst [vmem:[#allocation3 + $0x8] sm:$0xff] %v15993_v3  ;;  %307 = vst [vmem:[#allocation3] sm:$0xff] %v15993_v3  ;;  %15258 = vset.pattern.permute.xlu0 %v15993_v3  ;;  %v15265_v6 = vld [vmem:[%s20893_s2 + $0xc8] sm:$0xff]   ;;  %vm1014_vm1 = vcmask 1046528   ;;  %vm451_vm3 = vcmask 125952  }
   0xf   : > { %v16058_v2 = vld [vmem:[%s20893_s2] sm:$0xff]   ;;  %309 = vst [vmem:[#allocation3 + $0x10] sm:$0xff] %v15993_v3  ;;  %310 = vst [vmem:[#allocation3 + $0x18] sm:$0xff] %v15993_v3  ;;  %13711 = vmatprep.subr.bf16.mxu1 %v16053_v1  ;;  %15259 = vset.pattern.permute.xlu1 %v15993_v3  ;;  %v15266_v7 = vld [vmem:[%s20893_s2 + $0x8] sm:$0xff]   ;;  %s21023_s28 = smov (!%p296_p3, %s12742_s28), 1  ;;  %vm455_vm4 = vcmask 122880  }
  0x10   : > { %311 = vst [vmem:[#allocation3 + $0x20] sm:$0xff] %v15993_v3  ;;  %312 = vst [vmem:[#allocation3 + $0x28] sm:$0xff] %v15993_v3  ;;  %v15263_v4 = vld [vmem:[%s20893_s2 + $0x80] sm:$0xff]   ;;  %13600 = vmatpush3.bf16.msra.mxu0 %v16058_v2  ;;  %v15267_v8 = vld [vmem:[%s20893_s2 + $0x88] sm:$0xff]   ;;  %s15247_s21 = smul.u32 228, %s21023_s28 }
  0x11   : > { %313 = vst [vmem:[#allocation3 + $0x30] sm:$0xff] %v15993_v3  ;;  %314 = vst [vmem:[#allocation3 + $0x38] sm:$0xff] %v15993_v3  ;;  %13712 = vmatpush3.bf16.msra.mxu1 %v15263_v4  ;;  %13601 = vmatprep.subr.bf16.mxu0 %v15264_v5  ;;  %v15269_v10 = vld [vmem:[%s20893_s2 + $0xd0] sm:$0xff]   ;;  %v15272_v13 = vld [vmem:[%s20893_s2 + $0x58] sm:$0xff]   ;;  %vm733_vm2 = vsmask.f32 7424 }
  0x12   : > { %315 = vst [vmem:[#allocation3 + $0x40] sm:$0xff] %v15993_v3  ;;  %316 = vst [vmem:[#allocation3 + $0x48] sm:$0xff] %v15993_v3  ;;  %13713 = vmatprep.subr.bf16.mxu1 %v15265_v6  ;;  %v15270_v11 = vld [vmem:[%s20893_s2 + $0x10] sm:$0xff]   ;;  %v15273_v14 = vld [vmem:[%s20893_s2 + $0xd8] sm:$0xff]   ;;  %s16302_s12 = scalar_lea.vmem %s20891_s0, %s15247_s21  ;;  %vm456_vm5 = vsmask.f32 256 }
  0x13   : > { %317 = vst [vmem:[#allocation3 + $0x50] sm:$0xff] %v15993_v3  ;;  %318 = vst [vmem:[#allocation3 + $0x58] sm:$0xff] %v15993_v3  ;;  %v15271_v12 = vld [vmem:[%s20893_s2 + $0x90] sm:$0xff]   ;;  %v15274_v15 = vld [vmem:[%s20893_s2 + $0x18] sm:$0xff]   ;;  %vm462_vm6 = vsmask.f32 7938 }
  0x14   : > { %319 = vst [vmem:[#allocation3 + $0x60] sm:$0xff] %v15993_v3  ;;  %320 = vst [vmem:[#allocation3 + $0x68] sm:$0xff] %v15993_v3  ;;  %13602 = vmatpush3.bf16.msra.mxu0 %v15266_v7  ;;  %v15275_v16 = vld [vmem:[%s20893_s2 + $0x98] sm:$0xff]   ;;  %v15276_v17 = vld [vmem:[%s20893_s2 + $0x60] sm:$0xff]   ;;  %vm4245_vm9 = vsmask.f32 4368 }
  0x15   : > { %321 = vst [vmem:[#allocation3 + $0x70] sm:$0xff] %v15993_v3  ;;  %322 = vst [vmem:[#allocation3 + $0x78] sm:$0xff] %v15993_v3  ;;  %13714 = vmatpush3.bf16.msra.mxu1 %v15267_v8  ;;  %13603 = vmatprep.subr.bf16.mxu0 %v15268_v9  ;;  %v15277_v18 = vld [vmem:[%s20893_s2 + $0xe0] sm:$0xff]   ;;  %v15280_v21 = vld [vmem:[%s20893_s2 + $0x68] sm:$0xff]   ;;  %s15248_s14 = smul.u32 384, %s21023_s28 }
  0x16   : > { %323 = vst [vmem:[#allocation3 + $0x80] sm:$0xff] %v15993_v3  ;;  %324 = vst [vmem:[#allocation3 + $0x88] sm:$0xff] %v15993_v3  ;;  %13715 = vmatprep.subr.bf16.mxu1 %v15269_v10  ;;  %v15278_v19 = vld [vmem:[%s20893_s2 + $0x20] sm:$0xff]   ;;  %v15281_v22 = vld [vmem:[%s20893_s2 + $0xe8] sm:$0xff]  }
  0x17   : > { %325 = vst [vmem:[#allocation3 + $0x90] sm:$0xff] %v15993_v3  ;;  %326 = vst [vmem:[#allocation3 + $0x98] sm:$0xff] %v15993_v3  ;;  %v15279_v20 = vld [vmem:[%s20893_s2 + $0xa0] sm:$0xff]   ;;  %v15282_v23 = vld [vmem:[%s20893_s2 + $0x28] sm:$0xff]  }
  0x18   : > { %327 = vst [vmem:[#allocation3 + $0xa0] sm:$0xff] %v15993_v3  ;;  %328 = vst [vmem:[#allocation3 + $0xa8] sm:$0xff] %v15993_v3  ;;  %13604 = vmatpush3.bf16.msra.mxu0 %v15270_v11  ;;  %v15283_v24 = vld [vmem:[%s20893_s2 + $0xa8] sm:$0xff]   ;;  %v15284_v25 = vld [vmem:[%s20893_s2 + $0x70] sm:$0xff]  }
  0x19   : > { %329 = vst [vmem:[#allocation3 + $0xb0] sm:$0xff] %v15993_v3  ;;  %330 = vst [vmem:[#allocation3 + $0xb8] sm:$0xff] %v15993_v3  ;;  %13716 = vmatpush3.bf16.msra.mxu1 %v15271_v12  ;;  %13605 = vmatprep.subr.bf16.mxu0 %v15272_v13  ;;  %v15285_v26 = vld [vmem:[%s20893_s2 + $0xf0] sm:$0xff]   ;;  %v15288_v29 = vld [vmem:[%s20893_s2 + $0x78] sm:$0xff]  }
  0x1a   : > { %331 = vst [vmem:[#allocation3 + $0xc0] sm:$0xff] %v15993_v3  ;;  %332 = vst [vmem:[#allocation3 + $0xc8] sm:$0xff] %v15993_v3  ;;  %13717 = vmatprep.subr.bf16.mxu1 %v15273_v14  ;;  %v15286_v27 = vld [vmem:[%s20893_s2 + $0x30] sm:$0xff]   ;;  %v15289_v30 = vld [vmem:[%s20893_s2 + $0xf8] sm:$0xff]  }
  0x1b   : > { %333 = vst [vmem:[#allocation3 + $0xd0] sm:$0xff] %v15993_v3  ;;  %334 = vst [vmem:[#allocation3 + $0xd8] sm:$0xff] %v15993_v3  ;;  %v15287_v28 = vld [vmem:[%s20893_s2 + $0xb0] sm:$0xff]   ;;  %v15290_v31 = vld [vmem:[%s20893_s2 + $0x38] sm:$0xff]  }
  0x1c   : > { %335 = vst [vmem:[#allocation3 + $0xe0] sm:$0xff] %v15993_v3  ;;  %336 = vst [vmem:[#allocation3 + $0xe8] sm:$0xff] %v15993_v3  ;;  %13606 = vmatpush3.bf16.msra.mxu0 %v15274_v15  ;;  %v15291_v32 = vld [vmem:[%s20893_s2 + $0xb8] sm:$0xff]   ;;  %v15292_v33 = vld [vmem:[%s16302_s12] sm:$0xff]  }
  0x1d   : > { %337 = vst [vmem:[#allocation3 + $0xf0] sm:$0xff] %v15993_v3  ;;  %338 = vst [vmem:[#allocation3 + $0xf8] sm:$0xff] %v15993_v3  ;;  %13718 = vmatpush3.bf16.msra.mxu1 %v15275_v16  ;;  %13607 = vmatprep.subr.bf16.mxu0 %v15276_v17  ;;  %v15293_v34 = vld [vmem:[%s16302_s12 + $0x8] sm:$0xff]   ;;  %v735_v35 = vshrl.u32 %v15292_v33, 16  ;;  %v737_v36 = vshll.u32 %v15292_v33, 16  ;;  %v15294_v38 = vld [vmem:[%s16302_s12 + $0x80] sm:$0xff]  }
  0x1e   : > { %339 = vst [vmem:[#allocation3 + $0x100] sm:$0xff] %v15993_v3  ;;  %340 = vst [vmem:[#allocation3 + $0x108] sm:$0xff] %v15993_v3  ;;  %13719 = vmatprep.subr.bf16.mxu1 %v15277_v18  ;;  %v742_v37 = vshll.u32 %v15293_v34, 16  ;;  %v16311_v39 = vld [vmem:[%s16302_s12 + $0x88] sm:$0xff]   ;;  %v4739_v42 = vshll.u32 %v15294_v38, 16  ;;  %v15298_v45 = vld [vmem:[%s16302_s12] sm:$0xff]  }
  0x1f   : > { %341 = vst [vmem:[#allocation3 + $0x110] sm:$0xff] %v15993_v3  ;;  %342 = vst [vmem:[#allocation3 + $0x118] sm:$0xff] %v15993_v3  ;;  %v739_v40 = vrot.slane %v737_v36, 1  ;;  %v15296_v43 = vld [vmem:[%s16302_s12 + $0xc] sm:$0xff]   ;;  %v4744_v44 = vshll.u32 %v16311_v39, 16  ;;  %v4737_v47 = vshrl.u32 %v15294_v38, 16 }
  0x20   : > { %343 = vst [vmem:[#allocation3 + $0x120] sm:$0xff] %v15993_v3  ;;  %344 = vst [vmem:[#allocation3 + $0x128] sm:$0xff] %v15993_v3  ;;  %13608 = vmatpush3.bf16.msra.mxu0 %v15278_v19  ;;  %v744_v41 = vrot.slane %v742_v37, 1  ;;  %v4741_v48 = vrot.slane %v4739_v42, 1  ;;  %v15301_v50 = vld [vmem:[%s16302_s12 + $0x8] sm:$0xff]   ;;  %v15299_v57 = vld [vmem:[%s16302_s12 + $0x80] sm:$0xff]  }
  0x21   : > { %345 = vst [vmem:[#allocation3 + $0x130] sm:$0xff] %v15993_v3  ;;  %346 = vst [vmem:[#allocation3 + $0x138] sm:$0xff] %v15993_v3  ;;  %13720 = vmatpush3.bf16.msra.mxu1 %v15279_v20  ;;  %13609 = vmatprep.subr.bf16.mxu0 %v15280_v21  ;;  %v740_v46 = vor.u32 %v739_v40, %v735_v35  ;;  %v4746_v49 = vrot.slane %v4744_v44, 1  ;;  %v15297_v52 = vld [vmem:[%s16302_s12 + $0x8c] sm:$0xff]   ;;  %v15300_v53 = vld [vmem:[%s16302_s12] sm:$0xfe]  }
  0x22   : > { %347 = vst [vmem:[#allocation3 + $0x140] sm:$0xff] %v15993_v3  ;;  %348 = vst [vmem:[#allocation3 + $0x148] sm:$0xff] %v15993_v3  ;;  %13721 = vmatprep.subr.bf16.mxu1 %v15281_v22  ;;  %v1016_v54 = vrot.slane %v15301_v50, 1  ;;  %v16324_v55 = vld [vmem:[%s16302_s12 + $0x88] sm:$0xff]   ;;  %v4742_v56 = vor.u32 %v4741_v48, %v4737_v47  ;;  %v1015_v58 = vrot.slane %v15300_v53, 1  ;;  %v15304_v60 = vld [vmem:[%s20893_s2 + $0x140] sm:$0xff]  }
  0x23   : > { %349 = vst [vmem:[#allocation3 + $0x150] sm:$0xff] %v15993_v3  ;;  %350 = vst [vmem:[#allocation3 + $0x158] sm:$0xff] %v15993_v3  ;;  %v745_v51 = vsel %vm733_vm2, %v740_v46, %v744_v41  ;;  %v15302_v59 = vld [vmem:[%s16302_s12 + $0x80] sm:$0xfe]   ;;  %v746_v63 = vshrl.u32 %v15293_v34, 16  ;;  %v4881_v2 = vrot.slane %v16324_v55, 1 }
  0x24   : > { %351 = vst [vmem:[#allocation3 + $0x160] sm:$0xff] %v15993_v3  ;;  %352 = vst [vmem:[#allocation3 + $0x168] sm:$0xff] %v15993_v3  ;;  %13610 = vmatpush3.bf16.msra.mxu0 %v15282_v23  ;;  %v1017_v62 = vsel %vm1014_vm1, %v1015_v58, %v1016_v54  ;;  %v4747_v0 = vsel %vm733_vm2, %v4742_v56, %v4746_v49  ;;  %v4880_v4 = vrot.slane %v15302_v59, 1  ;;  %v15306_v5 = vld [vmem:[%s16302_s12 + $0x10] sm:$0xff]   ;;  %v4748_v11 = vshrl.u32 %v16311_v39, 16  ;;  %v15310_v15 = vld [vmem:[%s16302_s12 + $0x8] sm:$0xff]  }
  0x25   : > { %353 = vst [vmem:[#allocation3 + $0x170] sm:$0xff] %v15993_v3  ;;  %354 = vst [vmem:[#allocation3 + $0x178] sm:$0xff] %v15993_v3  ;;  %13722 = vmatpush3.bf16.msra.mxu1 %v15283_v24  ;;  %13611 = vmatprep.subr.bf16.mxu0 %v15284_v25  ;;  %v15307_v7 = vld [vmem:[%s16302_s12 + $0x90] sm:$0xff]   ;;  %v748_v8 = vor.u32 %v746_v63, %v744_v41  ;;  %v750_v9 = vshll.u32 %v15306_v5, 16  ;;  %v754_v20 = vshrl.u32 %v15306_v5, 16  ;;  %v15311_v23 = vld [vmem:[%s16302_s12 + $0x88] sm:$0xff]  }
  0x26   : > { %355 = vst [vmem:[#allocation3 + $0x180] sm:$0xff] %v15993_v3  ;;  %356 = vst [vmem:[#allocation3 + $0x188] sm:$0xff] %v15993_v3  ;;  %13723 = vmatprep.subr.bf16.mxu1 %v15285_v26  ;;  %v15308_v10 = vld [vmem:[%s16302_s12 + $0x14] sm:$0xff]   ;;  %v4752_v12 = vshll.u32 %v15307_v7, 16  ;;  %v4882_v13 = vsel %vm1014_vm1, %v4880_v4, %v4881_v2  ;;  %v4750_v21 = vor.u32 %v4748_v11, %v4746_v49  ;;  %v4756_v35 = vshrl.u32 %v15307_v7, 16  ;;  %v15317_v42 = vld [vmem:[%s16302_s12 + $0x9c] sm:$0xff]  }
  0x27   : > { %357 = vst [vmem:[#allocation3 + $0x190] sm:$0xff] %v15993_v3  ;;  %358 = vst [vmem:[#allocation3 + $0x198] sm:$0xff] %v15993_v3  ;;  %v752_v14 = vrot.slane %v750_v9, 1  ;;  %v15309_v18 = vld [vmem:[%s16302_s12 + $0x94] sm:$0xff]   ;;  %v15323_v53 = vld [vmem:[%s20893_s2 + $0x108] sm:$0xff]  }
  0x28   : > { %359 = vst [vmem:[#allocation3 + $0x1a0] sm:$0xff] %v15993_v3  ;;  %360 = vst [vmem:[#allocation3 + $0x1a8] sm:$0xff] %v15993_v3  ;;  %13612 = vmatpush3.bf16.msra.mxu0 %v15286_v27  ;;  %v15312_v19 = vld [vmem:[%s16302_s12 + $0x10] sm:$0xff]   ;;  %v4754_v22 = vrot.slane %v4752_v12, 1  ;;  %v15314_v26 = vld [vmem:[%s16302_s12 + $0x18] sm:$0xff]  }
  0x29   : > { %361 = vst [vmem:[#allocation3 + $0x1b0] sm:$0xff] %v15993_v3  ;;  %362 = vst [vmem:[#allocation3 + $0x1b8] sm:$0xff] %v15993_v3  ;;  %13724 = vmatpush3.bf16.msra.mxu1 %v15287_v28  ;;  %13613 = vmatprep.subr.bf16.mxu0 %v15288_v29  ;;  %v753_v17 = vsel %vm733_vm2, %v748_v8, %v752_v14  ;;  %v16358_v24 = vld [vmem:[%s16302_s12 + $0x90] sm:$0xff]   ;;  %v1018_v25 = vrot.slane %v15312_v19, 1  ;;  %v16362_v27 = vld [vmem:[%s16302_s12 + $0x98] sm:$0xff]   ;;  %v762_v44 = vshrl.u32 %v15314_v26, 16 }
  0x2a   : > { %363 = vst [vmem:[#allocation3 + $0x1c0] sm:$0xff] %v15993_v3  ;;  %364 = vst [vmem:[#allocation3 + $0x1c8] sm:$0xff] %v15993_v3  ;;  %13725 = vmatprep.subr.bf16.mxu1 %v15289_v30  ;;  %v756_v30 = vor.u32 %v754_v20, %v752_v14  ;;  %v4755_v33 = vsel %vm733_vm2, %v4750_v21, %v4754_v22  ;;  %v4883_v34 = vrot.slane %v16358_v24, 1  ;;  %v4760_v38 = vshll.u32 %v16362_v27, 16  ;;  %v15318_v39 = vld [vmem:[%s16302_s12 + $0x10] sm:$0xff]   ;;  %v16385_v49 = vld [vmem:[%s16302_s12 + $0x98] sm:$0xff]  }
  0x2b   : > { %365 = vst [vmem:[#allocation3 + $0x1d0] sm:$0xff] %v15993_v3  ;;  %366 = vst [vmem:[#allocation3 + $0x1d8] sm:$0xff] %v15993_v3  ;;  %v1019_v29 = vsel %vm1014_vm1, %v1016_v54, %v1018_v25  ;;  %v4758_v46 = vor.u32 %v4756_v35, %v4754_v22  ;;  %v15319_v48 = vld [vmem:[%s16302_s12 + $0x90] sm:$0xff]   ;;  %v15324_v56 = vld [vmem:[%s16302_s12 + $0x20] sm:$0xff]   ;;  %v4885_v58 = vrot.slane %v16385_v49, 1 }
  0x2c   : > { %367 = vst [vmem:[#allocation3 + $0x1e0] sm:$0xff] %v15993_v3  ;;  %368 = vst [vmem:[#allocation3 + $0x1e8] sm:$0xff] %v15993_v3  ;;  %13614 = vmatpush3.bf16.msra.mxu0 %v15290_v31  ;;  %v758_v31 = vshll.u32 %v15314_v26, 16  ;;  %v4762_v47 = vrot.slane %v4760_v38, 1  ;;  %v15325_v59 = vld [vmem:[%s16302_s12 + $0xa0] sm:$0xff]   ;;  %v15328_v4 = vld [vmem:[%s16302_s12 + $0x18] sm:$0xff]  }
  0x2d   : > { %369 = vst [vmem:[#allocation3 + $0x1f0] sm:$0xff] %v15993_v3  ;;  %370 = vst [vmem:[#allocation3 + $0x1f8] sm:$0xff] %v15993_v3  ;;  %13726 = vmatpush3.bf16.msra.mxu1 %v15291_v32  ;;  %13823 = vmatprep.subr.bf16.mxu0 %v15304_v60  ;;  %v15316_v32 = vld [vmem:[%s16302_s12 + $0x1c] sm:$0xff]   ;;  %v4886_v5 = vsel %vm1014_vm1, %v4883_v34, %v4885_v58  ;;  %v15327_v7 = vld [vmem:[%s16302_s12 + $0xa4] sm:$0xff]   ;;  %v770_v9 = vshrl.u32 %v15324_v56, 16 }
  0x2e   : > { %371 = vst [vmem:[#allocation3 + $0x200] sm:$0xff] %v15993_v3  ;;  %372 = vst [vmem:[#allocation3 + $0x208] sm:$0xff] %v15993_v3  ;;  %v760_v37 = vrot.slane %v758_v31, 1  ;;  %v15330_v8 = vld [vmem:[%s16302_s12 + $0x20] sm:$0xff]   ;;  %v15329_v14 = vld [vmem:[%s16302_s12 + $0x98] sm:$0xff]  }
  0x2f   : > { %373 = vst [vmem:[#allocation3 + $0x210] sm:$0xff] %v15993_v3  ;;  %374 = vst [vmem:[#allocation3 + $0x218] sm:$0xff] %v15993_v3  ;;  %v15334_v22 = vld [vmem:[%s16302_s12 + $0x2c] sm:$0xff]   ;;  %v15337_v38 = vld [vmem:[%s16302_s12 + $0xa0] sm:$0xff]  }
  0x30   : > { %375 = vst [vmem:[#allocation3 + $0x220] sm:$0xff] %v15993_v3  ;;  %376 = vst [vmem:[#allocation3 + $0x228] sm:$0xff] %v15993_v3  ;;  %v761_v41 = vsel %vm733_vm2, %v756_v30, %v760_v37  ;;  %v15336_v30 = vld [vmem:[%s16302_s12 + $0x20] sm:$0xff]   ;;  %v15343_v49 = vld [vmem:[%s16302_s12 + $0xb0] sm:$0xff]  }
  0x31   : > { %377 = vst [vmem:[#allocation3 + $0x230] sm:$0xff] %v15993_v3  ;;  %378 = vst [vmem:[#allocation3 + $0x238] sm:$0xff] %v15993_v3 }
  0x32   : > { %379 = vst [vmem:[#allocation3 + $0x240] sm:$0xff] %v15993_v3  ;;  %380 = vst [vmem:[#allocation3 + $0x248] sm:$0xff] %v15993_v3 }
  0x33   : > { %381 = vst [vmem:[#allocation3 + $0x250] sm:$0xff] %v15993_v3  ;;  %382 = vst [vmem:[#allocation3 + $0x258] sm:$0xff] %v15993_v3 }
  0x34   : > { %383 = vst [vmem:[#allocation3 + $0x260] sm:$0xff] %v15993_v3  ;;  %384 = vst [vmem:[#allocation3 + $0x268] sm:$0xff] %v15993_v3 }
  0x35   : > { %385 = vst [vmem:[#allocation3 + $0x270] sm:$0xff] %v15993_v3  ;;  %386 = vst [vmem:[#allocation3 + $0x278] sm:$0xff] %v15993_v3 }
  0x36   : > { %387 = vst [vmem:[#allocation3 + $0x280] sm:$0xff] %v15993_v3  ;;  %388 = vst [vmem:[#allocation3 + $0x288] sm:$0xff] %v15993_v3 }
  0x37   : > { %389 = vst [vmem:[#allocation3 + $0x290] sm:$0xff] %v15993_v3  ;;  %390 = vst [vmem:[#allocation3 + $0x298] sm:$0xff] %v15993_v3 }
  0x38   : > { %391 = vst [vmem:[#allocation3 + $0x2a0] sm:$0xff] %v15993_v3  ;;  %392 = vst [vmem:[#allocation3 + $0x2a8] sm:$0xff] %v15993_v3 }
  0x39   : > { %393 = vst [vmem:[#allocation3 + $0x2b0] sm:$0xff] %v15993_v3  ;;  %394 = vst [vmem:[#allocation3 + $0x2b8] sm:$0xff] %v15993_v3 }
  0x3a   : > { %395 = vst [vmem:[#allocation3 + $0x2c0] sm:$0xff] %v15993_v3  ;;  %396 = vst [vmem:[#allocation3 + $0x2c8] sm:$0xff] %v15993_v3 }
  0x3b   : > { %397 = vst [vmem:[#allocation3 + $0x2d0] sm:$0xff] %v15993_v3  ;;  %398 = vst [vmem:[#allocation3 + $0x2d8] sm:$0xff] %v15993_v3 }
  0x3c   : > { %399 = vst [vmem:[#allocation3 + $0x2e0] sm:$0xff] %v15993_v3  ;;  %400 = vst [vmem:[#allocation3 + $0x2e8] sm:$0xff] %v15993_v3 }
  0x3d   : > { %401 = vst [vmem:[#allocation3 + $0x2f0] sm:$0xff] %v15993_v3  ;;  %402 = vst [vmem:[#allocation3 + $0x2f8] sm:$0xff] %v15993_v3 }
  0x3e   : > { %403 = vst [vmem:[#allocation3 + $0x300] sm:$0xff] %v15993_v3  ;;  %404 = vst [vmem:[#allocation3 + $0x308] sm:$0xff] %v15993_v3 }
  0x3f   : > { %405 = vst [vmem:[#allocation3 + $0x310] sm:$0xff] %v15993_v3  ;;  %406 = vst [vmem:[#allocation3 + $0x318] sm:$0xff] %v15993_v3 }
  0x40   : > { %407 = vst [vmem:[#allocation3 + $0x320] sm:$0xff] %v15993_v3  ;;  %408 = vst [vmem:[#allocation3 + $0x328] sm:$0xff] %v15993_v3 }
  0x41   : > { %409 = vst [vmem:[#allocation3 + $0x330] sm:$0xff] %v15993_v3  ;;  %410 = vst [vmem:[#allocation3 + $0x338] sm:$0xff] %v15993_v3 }
  0x42   : > { %411 = vst [vmem:[#allocation3 + $0x340] sm:$0xff] %v15993_v3  ;;  %412 = vst [vmem:[#allocation3 + $0x348] sm:$0xff] %v15993_v3 }
  0x43   : > { %413 = vst [vmem:[#allocation3 + $0x350] sm:$0xff] %v15993_v3  ;;  %414 = vst [vmem:[#allocation3 + $0x358] sm:$0xff] %v15993_v3 }
  0x44   : > { %415 = vst [vmem:[#allocation3 + $0x360] sm:$0xff] %v15993_v3  ;;  %416 = vst [vmem:[#allocation3 + $0x368] sm:$0xff] %v15993_v3 }
  0x45   : > { %417 = vst [vmem:[#allocation3 + $0x370] sm:$0xff] %v15993_v3  ;;  %418 = vst [vmem:[#allocation3 + $0x378] sm:$0xff] %v15993_v3 }
  0x46   : > { %419 = vst [vmem:[#allocation3 + $0x380] sm:$0xff] %v15993_v3  ;;  %420 = vst [vmem:[#allocation3 + $0x388] sm:$0xff] %v15993_v3 }
  0x47   : > { %421 = vst [vmem:[#allocation3 + $0x390] sm:$0xff] %v15993_v3  ;;  %422 = vst [vmem:[#allocation3 + $0x398] sm:$0xff] %v15993_v3 }
  0x48   : > { %423 = vst [vmem:[#allocation3 + $0x3a0] sm:$0xff] %v15993_v3  ;;  %424 = vst [vmem:[#allocation3 + $0x3a8] sm:$0xff] %v15993_v3 }
  0x49   : > { %425 = vst [vmem:[#allocation3 + $0x3b0] sm:$0xff] %v15993_v3  ;;  %426 = vst [vmem:[#allocation3 + $0x3b8] sm:$0xff] %v15993_v3 }
  0x4a   : > { %427 = vst [vmem:[#allocation3 + $0x3c0] sm:$0xff] %v15993_v3  ;;  %428 = vst [vmem:[#allocation3 + $0x3c8] sm:$0xff] %v15993_v3 }
  0x4b   : > { %429 = vst [vmem:[#allocation3 + $0x3d0] sm:$0xff] %v15993_v3  ;;  %430 = vst [vmem:[#allocation3 + $0x3d8] sm:$0xff] %v15993_v3 }
  0x4c   : > { %431 = vst [vmem:[#allocation3 + $0x3e0] sm:$0xff] %v15993_v3  ;;  %432 = vst [vmem:[#allocation3 + $0x3e8] sm:$0xff] %v15993_v3 }
  0x4d   : > { %433 = vst [vmem:[#allocation3 + $0x3f0] sm:$0xff] %v15993_v3  ;;  %434 = vst [vmem:[#allocation3 + $0x3f8] sm:$0xff] %v15993_v3 }
  0x4e   : > { %435 = vst [vmem:[#allocation3 + $0x400] sm:$0xff] %v15993_v3  ;;  %436 = vst [vmem:[#allocation3 + $0x408] sm:$0xff] %v15993_v3 }
  0x4f   : > { %437 = vst [vmem:[#allocation3 + $0x410] sm:$0xff] %v15993_v3  ;;  %438 = vst [vmem:[#allocation3 + $0x418] sm:$0xff] %v15993_v3 }
  0x50   : > { %439 = vst [vmem:[#allocation3 + $0x420] sm:$0xff] %v15993_v3  ;;  %440 = vst [vmem:[#allocation3 + $0x428] sm:$0xff] %v15993_v3 }
  0x51   : > { %441 = vst [vmem:[#allocation3 + $0x430] sm:$0xff] %v15993_v3  ;;  %442 = vst [vmem:[#allocation3 + $0x438] sm:$0xff] %v15993_v3 }
  0x52   : > { %443 = vst [vmem:[#allocation3 + $0x440] sm:$0xff] %v15993_v3  ;;  %444 = vst [vmem:[#allocation3 + $0x448] sm:$0xff] %v15993_v3 }
  0x53   : > { %445 = vst [vmem:[#allocation3 + $0x450] sm:$0xff] %v15993_v3  ;;  %446 = vst [vmem:[#allocation3 + $0x458] sm:$0xff] %v15993_v3 }
  0x54   : > { %447 = vst [vmem:[#allocation3 + $0x460] sm:$0xff] %v15993_v3  ;;  %448 = vst [vmem:[#allocation3 + $0x468] sm:$0xff] %v15993_v3 }
  0x55   : > { %449 = vst [vmem:[#allocation3 + $0x470] sm:$0xff] %v15993_v3  ;;  %450 = vst [vmem:[#allocation3 + $0x478] sm:$0xff] %v15993_v3  ;;  %v15305_v3 = vld [vmem:[%s20893_s2 + $0x100] sm:$0xff]  }
  0x56   : > { %1208 = vst.msk [vmem:[#allocation3 + $0x18] sm:$0xff] %vm600_vm0, %v15296_v43  ;;  %601 = vst.msk [vmem:[#allocation3] sm:$0xff] %vm600_vm0, %v15298_v45  ;;  %v15320_v43 = vld [vmem:[%s16302_s12 + $0x18] sm:$0xff]   ;;  %v4884_v45 = vsel %vm1014_vm1, %v4881_v2, %v4883_v34 }
  0x57   : > { %882 = vst.msk [vmem:[#allocation3 + $0x8] sm:$0xff] %vm600_vm0, %v745_v51  ;;  %1064 = vst.msk [vmem:[#allocation3 + $0x10] sm:$0xff] %vm600_vm0, %v1017_v62  ;;  %v1020_v50 = vrot.slane %v15320_v43, 1  ;;  %v15322_v51 = vld [vmem:[%s20893_s2 + $0x148] sm:$0xff]   ;;  %v766_v62 = vshll.u32 %v15324_v56, 16 }
  0x58   : > { %1209 = vst.msk [vmem:[#allocation3 + $0x60] sm:$0xff] %vm600_vm0, %v15308_v10  ;;  %602 = vst.msk [vmem:[#allocation3 + $0x48] sm:$0xff] %vm600_vm0, %v15310_v15  ;;  %v1022_v15 = vrot.slane %v15330_v8, 1 }
  0x59   : > { %883 = vst.msk [vmem:[#allocation3 + $0x50] sm:$0xff] %vm600_vm0, %v753_v17  ;;  %1065 = vst.msk [vmem:[#allocation3 + $0x58] sm:$0xff] %vm600_vm0, %v1019_v29  ;;  %v1021_v55 = vsel %vm1014_vm1, %v1018_v25, %v1020_v50  ;;  %v768_v2 = vrot.slane %v766_v62, 1  ;;  %v16420_v17 = vld [vmem:[%s16302_s12 + $0xa8] sm:$0xff]   ;;  %v15345_v62 = vld [vmem:[%s16302_s12 + $0xb4] sm:$0xff]  }
  0x5a   : > { %1210 = vst.msk [vmem:[#allocation3 + $0xa8] sm:$0xff] %vm600_vm0, %v15316_v32  ;;  %603 = vst.msk [vmem:[#allocation3 + $0x90] sm:$0xff] %vm600_vm0, %v15318_v39  ;;  %v1023_v19 = vsel %vm1014_vm1, %v1020_v50, %v1022_v15  ;;  %v15335_v32 = vld [vmem:[%s16302_s12 + $0xac] sm:$0xff]  }
  0x5b   : > { %884 = vst.msk [vmem:[#allocation3 + $0x98] sm:$0xff] %vm600_vm0, %v761_v41  ;;  %1066 = vst.msk [vmem:[#allocation3 + $0xa0] sm:$0xff] %vm600_vm0, %v1021_v55  ;;  %v772_v20 = vor.u32 %v770_v9, %v768_v2  ;;  %v15344_v55 = vld [vmem:[%s16302_s12 + $0x34] sm:$0xff]  }
  0x5c   : > { %604 = vst.msk [vmem:[#allocation3 + $0xd8] sm:$0xff] %vm600_vm0, %v15328_v4  ;;  %1067 = vst.msk [vmem:[#allocation3 + $0xe8] sm:$0xff] %vm600_vm0, %v1023_v19  ;;  %v15347_v4 = vld [vmem:[%s16302_s12 + $0xa8] sm:$0xff]  }
  0x5d   : > { %v2293_v61 = vld [vmem:[#allocation3 + $0x18] sm:$0xff]  ;;  %v2290_v1 = vld [vmem:[#allocation3] sm:$0xff]  ;;  %1212 = vst.msk [vmem:[#allocation3 + $0x138] sm:$0xff] %vm600_vm0, %v15334_v22  ;;  %605 = vst.msk [vmem:[#allocation3 + $0x120] sm:$0xff] %vm600_vm0, %v15336_v30 }
  0x5e   : > { %3203 = vmatprep.mubr.bf16.mxu1 %v2293_v61  ;;  %4977 = vst.msk [vmem:[#allocation3 + $0x18] sm:$0xff] %vm600_vm0, %v15297_v52  ;;  %4668 = vst.msk [vmem:[#allocation3] sm:$0xff] %vm600_vm0, %v15299_v57  ;;  %v2291_v6 = vld [vmem:[#allocation3 + $0x8] sm:$0xff]  ;;  %v2292_v16 = vld [vmem:[#allocation3 + $0x10] sm:$0xff]  ;;  %v4763_v57 = vsel %vm733_vm2, %v4758_v46, %v4762_v47  ;;  %v764_v61 = vor.u32 %v762_v44, %v760_v37 }
  0x5f   : > { %3042 = vmatprep.mubr.bf16.mxu0 %v2291_v6  ;;  %4812 = vst.msk [vmem:[#allocation3 + $0x8] sm:$0xff] %vm600_vm0, %v4747_v0  ;;  %3204 = vmatmul.mubr.bf16.vlgmr.msra.gmra.mrb[0].mxu1 %v2292_v16  ;;  %4905 = vst.msk [vmem:[#allocation3 + $0x10] sm:$0xff] %vm600_vm0, %v4882_v13  ;;  %v2302_v28 = vld [vmem:[#allocation3 + $0x60] sm:$0xff]  ;;  %v2299_v36 = vld [vmem:[#allocation3 + $0x48] sm:$0xff]  ;;  %v4764_v0 = vshrl.u32 %v16362_v27, 16  ;;  %v4776_v27 = vshll.u32 %v16420_v17, 16 }
  0x60   : > { %3043 = vmatmul.mubr.bf16.vlgmr.msra.gmra.mrb[0].mxu0 %v2290_v1  ;;  %3211 = vmatprep.mubr.bf16.mxu1 %v2302_v28  ;;  %4978 = vst.msk [vmem:[#allocation3 + $0x60] sm:$0xff] %vm600_vm0, %v15309_v18  ;;  %v2300_v40 = vld [vmem:[#allocation3 + $0x50] sm:$0xff]  ;;  %4669 = vst.msk [vmem:[#allocation3 + $0x48] sm:$0xff] %vm600_vm0, %v15311_v23  ;;  %v2301_v52 = vld [vmem:[#allocation3 + $0x58] sm:$0xff]  ;;  %v769_v6 = vsel %vm733_vm2, %v764_v61, %v768_v2  ;;  %v4772_v18 = vshrl.u32 %v15325_v59, 16 }
  0x61   : > { %13824 = vmatpush3.bf16.msra.mxu0 %v15305_v3  ;;  %3050 = vmatprep.mubr.bf16.mxu0 %v2300_v40  ;;  %4813 = vst.msk [vmem:[#allocation3 + $0x50] sm:$0xff] %vm600_vm0, %v4755_v33  ;;  %4906 = vst.msk [vmem:[#allocation3 + $0x58] sm:$0xff] %vm600_vm0, %v4884_v45  ;;  %v2311_v54 = vld [vmem:[#allocation3 + $0xa8] sm:$0xff]  ;;  %v2308_v60 = vld [vmem:[#allocation3 + $0x90] sm:$0xff]  ;;  %v4768_v3 = vshll.u32 %v15325_v59, 16  ;;  %v4766_v11 = vor.u32 %v4764_v0, %v4762_v47 }
  0x62   : > { %13825 = vmatprep.subr.bf16.mxu0 %v15322_v51  ;;  %4979 = vst.msk [vmem:[#allocation3 + $0xa8] sm:$0xff] %vm600_vm0, %v15317_v42  ;;  %v2309_v63 = vld [vmem:[#allocation3 + $0x98] sm:$0xff]  ;;  %4670 = vst.msk [vmem:[#allocation3 + $0x90] sm:$0xff] %vm600_vm0, %v15319_v48  ;;  %v15326_v1 = vld [vmem:[%s16302_s12 + $0x24] sm:$0xff]  }
  0x63   : > { %4814 = vst.msk [vmem:[#allocation3 + $0x98] sm:$0xff] %vm600_vm0, %v4763_v57  ;;  %1211 = vst.msk [vmem:[#allocation3 + $0xf0] sm:$0xff] %vm600_vm0, %v15326_v1  ;;  %v2310_v10 = vld [vmem:[#allocation3 + $0xa0] sm:$0xff]  ;;  %v4770_v12 = vrot.slane %v4768_v3, 1  ;;  %v2317_v29 = vld [vmem:[#allocation3 + $0xd8] sm:$0xff]  ;;  %v4784_v57 = vshll.u32 %v15343_v49, 16 }
  0x64   : > { %885 = vst.msk [vmem:[#allocation3 + $0xe0] sm:$0xff] %vm600_vm0, %v769_v6  ;;  %v16414_v13 = vld [vmem:[%s16302_s12 + $0xa0] sm:$0xff]   ;;  %4907 = vst.msk [vmem:[#allocation3 + $0xa0] sm:$0xff] %vm600_vm0, %v4886_v5  ;;  %v15332_v16 = vld [vmem:[%s16302_s12 + $0x28] sm:$0xff]  }
  0x65   : > { %13826 = vmatpush3.bf16.msra.mxu0 %v15323_v53  ;;  %v774_v21 = vshll.u32 %v15332_v16, 16  ;;  %v4771_v23 = vsel %vm733_vm2, %v4766_v11, %v4770_v12  ;;  %v4887_v25 = vrot.slane %v16414_v13, 1  ;;  %4671 = vst.msk [vmem:[#allocation3 + $0xd8] sm:$0xff] %vm600_vm0, %v15329_v14  ;;  %v15338_v33 = vld [vmem:[%s16302_s12 + $0x28] sm:$0xff]   ;;  %v4774_v35 = vor.u32 %v4772_v18, %v4770_v12  ;;  %v15340_v40 = vld [vmem:[%s20893_s2 + $0x150] sm:$0xff]   ;;  %v2329_v43 = vld [vmem:[#allocation3 + $0x138] sm:$0xff] }
  0x66   : > { %v16440_v37 = vld [vmem:[%s16302_s12 + $0xa8] sm:$0xff]   ;;  %v1024_v39 = vrot.slane %v15338_v33, 1  ;;  %v778_v42 = vshrl.u32 %v15332_v16, 16  ;;  %13827 = vmatprep.subr.bf16.mxu0 %v15340_v40  ;;  %v15341_v45 = vld [vmem:[%s20893_s2 + $0x110] sm:$0xff]   ;;  %4981 = vst.msk [vmem:[#allocation3 + $0x138] sm:$0xff] %vm600_vm0, %v15335_v32  ;;  %1213 = vst.msk [vmem:[#allocation3 + $0x180] sm:$0xff] %vm600_vm0, %v15344_v55 }
  0x67   : > { %3212 = vmatmul.mubr.bf16.gmra.mrb[4].mxu1 %v2301_v52  ;;  %v776_v26 = vrot.slane %v774_v21, 1  ;;  %v4888_v34 = vsel %vm1014_vm1, %v4885_v58, %v4887_v25  ;;  %v2319_v41 = vld [vmem:[#allocation3 + $0xe8] sm:$0xff]  ;;  %v4889_v48 = vrot.slane %v16440_v37, 1  ;;  %v2326_v51 = vld [vmem:[#allocation3 + $0x120] sm:$0xff]  ;;  %v4786_v2 = vrot.slane %v4784_v57, 1  ;;  %v15350_v6 = vld [vmem:[%s16302_s12 + $0x38] sm:$0xff]  }
  0x68   : > { %3051 = vmatmul.mubr.bf16.gmra.mrb[4].mxu0 %v2299_v36  ;;  %3219 = vmatprep.mubr.bf16.mxu1 %v2311_v54  ;;  %v4778_v36 = vrot.slane %v4776_v27, 1  ;;  %4908 = vst.msk [vmem:[#allocation3 + $0xe8] sm:$0xff] %vm600_vm0, %v4888_v34  ;;  %v1025_v44 = vsel %vm1014_vm1, %v1022_v15, %v1024_v39  ;;  %v15342_v47 = vld [vmem:[%s16302_s12 + $0x30] sm:$0xff]   ;;  %4672 = vst.msk [vmem:[#allocation3 + $0x120] sm:$0xff] %vm600_vm0, %v15337_v38  ;;  %v4780_v54 = vshrl.u32 %v16420_v17, 16  ;;  %v15346_v59 = vld [vmem:[%s16302_s12 + $0x28] sm:$0xff]  }
  0x69   : > { %3058 = vmatprep.mubr.bf16.mxu0 %v2309_v63  ;;  %v777_v31 = vsel %vm733_vm2, %v772_v20, %v776_v26  ;;  %1068 = vst.msk [vmem:[#allocation3 + $0x130] sm:$0xff] %vm600_vm0, %v1025_v44  ;;  %13828 = vmatpush3.bf16.msra.mxu0 %v15341_v45  ;;  %v780_v52 = vor.u32 %v778_v42, %v776_v26  ;;  %v782_v53 = vshll.u32 %v15342_v47, 16  ;;  %606 = vst.msk [vmem:[#allocation3 + $0x168] sm:$0xff] %vm600_vm0, %v15346_v59  ;;  %v15348_v63 = vld [vmem:[%s16302_s12 + $0x30] sm:$0xff]   ;;  %v15352_v11 = vld [vmem:[%s16302_s12 + $0x3c] sm:$0xff]  }
  0x6a   : > { %v2320_v24 = vld [vmem:[#allocation3 + $0xf0] sm:$0xff]  ;;  %886 = vst.msk [vmem:[#allocation3 + $0x128] sm:$0xff] %vm600_vm0, %v777_v31  ;;  %v4779_v46 = vsel %vm733_vm2, %v4774_v35, %v4778_v36  ;;  %v4890_v58 = vsel %vm1014_vm1, %v4887_v25, %v4889_v48  ;;  %v786_v0 = vshrl.u32 %v15342_v47, 16  ;;  %v4782_v1 = vor.u32 %v4780_v54, %v4778_v36  ;;  %1214 = vst.msk [vmem:[#allocation3 + $0x1c8] sm:$0xff] %vm600_vm0, %v15352_v11  ;;  %v15353_v22 = vld [vmem:[%s16302_s12 + $0xbc] sm:$0xff]  }
  0x6b   : > { %4980 = vst.msk [vmem:[#allocation3 + $0xf0] sm:$0xff] %vm600_vm0, %v15327_v7  ;;  %v2318_v28 = vld [vmem:[#allocation3 + $0xe0] sm:$0xff]  ;;  %v784_v56 = vrot.slane %v782_v53, 1  ;;  %v16471_v3 = vld [vmem:[%s16302_s12 + $0xb0] sm:$0xff]   ;;  %v1026_v5 = vrot.slane %v15348_v63, 1  ;;  %v16476_v7 = vld [vmem:[%s16302_s12 + $0xb8] sm:$0xff]  }
  0x6c   : > { %4815 = vst.msk [vmem:[#allocation3 + $0xe0] sm:$0xff] %vm600_vm0, %v4771_v23  ;;  %v4787_v12 = vsel %vm733_vm2, %v4782_v1, %v4786_v2  ;;  %v4891_v14 = vrot.slane %v16471_v3, 1  ;;  %v4788_v15 = vshrl.u32 %v15343_v49, 16  ;;  %v4792_v16 = vshll.u32 %v16476_v7, 16  ;;  %v15354_v18 = vld [vmem:[%s16302_s12 + $0x30] sm:$0xff]   ;;  %v16494_v23 = vld [vmem:[%s16302_s12 + $0x38] sm:$0xff]   ;;  %vm17809_vm7 = vmand %vm455_vm4, %vm456_vm5 }
  0x6d   : > { %v1027_v8 = vsel %vm1014_vm1, %v1024_v39, %v1026_v5  ;;  %v788_v9 = vor.u32 %v786_v0, %v784_v56  ;;  %v2338_v13 = vld [vmem:[#allocation3 + $0x180] sm:$0xff]  ;;  %607 = vst.msk [vmem:[#allocation3 + $0x1b0] sm:$0xff] %vm600_vm0, %v15354_v18  ;;  %v15355_v27 = vld [vmem:[%s16302_s12 + $0xb0] sm:$0xff]   ;;  %v15358_v30 = vld [vmem:[%s20893_s2 + $0x158] sm:$0xff]   ;;  %v794_v35 = vshrl.u32 %v15350_v6, 16 }
  0x6e   : > { %1069 = vst.msk [vmem:[#allocation3 + $0x178] sm:$0xff] %vm600_vm0, %v1027_v8  ;;  %4982 = vst.msk [vmem:[#allocation3 + $0x180] sm:$0xff] %vm600_vm0, %v15345_v62  ;;  %v4790_v25 = vor.u32 %v4788_v15, %v4786_v2  ;;  %v4794_v26 = vrot.slane %v4792_v16, 1  ;;  %v15359_v32 = vld [vmem:[%s20893_s2 + $0x118] sm:$0xff]   ;;  %13829 = vmatprep.subr.bf16.mxu0 %v15358_v30  ;;  %v15360_v39 = vld [vmem:[%s16302_s12 + $0x40] sm:$0xff]  }
  0x6f   : > { %3220 = vmatmul.mubr.bf16.gmra.mrb[8].mxu1 %v2310_v10  ;;  %v790_v10 = vshll.u32 %v15350_v6, 16  ;;  %13830 = vmatpush3.bf16.msra.mxu0 %v15359_v32  ;;  %v16520_v42 = vld [vmem:[%s16302_s12 + $0x50] sm:$0xff]   ;;  %v798_v45 = vshll.u32 %v15360_v39, 16  ;;  %v15364_v53 = vld [vmem:[%s16302_s12 + $0x44] sm:$0xff]   ;;  %v15379_v30 = vld [vmem:[%s16302_s12 + $0x5c] sm:$0xff]  }
  0x70   : > { %3059 = vmatmul.mubr.bf16.gmra.mrb[8].mxu0 %v2308_v60  ;;  %3227 = vmatprep.mubr.bf16.mxu1 %v2320_v24  ;;  %v785_v60 = vsel %vm733_vm2, %v780_v52, %v784_v56  ;;  %v2328_v61 = vld [vmem:[#allocation3 + $0x130] sm:$0xff]  ;;  %v2335_v20 = vld [vmem:[#allocation3 + $0x168] sm:$0xff]  ;;  %v4892_v24 = vsel %vm1014_vm1, %v4889_v48, %v4891_v14  ;;  %v4795_v36 = vsel %vm733_vm2, %v4790_v25, %v4794_v26  ;;  %v814_v49 = vshll.u32 %v16520_v42, 16  ;;  %v15365_v1 = vld [vmem:[%s16302_s12 + $0xc4] sm:$0xff]  }
  0x71   : > { %3066 = vmatprep.mubr.bf16.mxu0 %v2318_v28  ;;  %v2327_v50 = vld [vmem:[#allocation3 + $0x128] sm:$0xff]  ;;  %887 = vst.msk [vmem:[#allocation3 + $0x170] sm:$0xff] %vm600_vm0, %v785_v60  ;;  %4909 = vst.msk [vmem:[#allocation3 + $0x130] sm:$0xff] %vm600_vm0, %v4890_v58  ;;  %v792_v17 = vrot.slane %v790_v10, 1  ;;  %v16499_v28 = vld [vmem:[%s16302_s12 + $0xb8] sm:$0xff]   ;;  %v800_v52 = vrot.slane %v798_v45, 1 }
  0x72   : > { %4816 = vst.msk [vmem:[#allocation3 + $0x128] sm:$0xff] %vm600_vm0, %v4779_v46  ;;  %4673 = vst.msk [vmem:[#allocation3 + $0x168] sm:$0xff] %vm600_vm0, %v15347_v4  ;;  %v2347_v33 = vld [vmem:[#allocation3 + $0x1c8] sm:$0xff]  ;;  %v4893_v38 = vrot.slane %v16499_v28, 1  ;;  %v802_v46 = vshrl.u32 %v15360_v39, 16  ;;  %v16530_v55 = vrot.slane %v814_v49, 1 }
  0x73   : > { %v793_v21 = vsel %vm733_vm2, %v788_v9, %v792_v17  ;;  %4983 = vst.msk [vmem:[#allocation3 + $0x1c8] sm:$0xff] %vm600_vm0, %v15353_v22  ;;  %v796_v44 = vor.u32 %v794_v35, %v792_v17  ;;  %1215 = vst.msk [vmem:[#allocation3 + $0x210] sm:$0xff] %vm600_vm0, %v15364_v53  ;;  %v15368_v3 = vld [vmem:[%s16302_s12 + $0x40] sm:$0xff]   ;;  %v15369_v4 = vld [vmem:[%s16302_s12 + $0x48] sm:$0xff]   ;;  %v818_v25 = vshrl.u32 %v16520_v42, 16 }
  0x74   : > { %888 = vst.msk [vmem:[#allocation3 + $0x1b8] sm:$0xff] %vm600_vm0, %v793_v21  ;;  %v2344_v37 = vld [vmem:[#allocation3 + $0x1b0] sm:$0xff]  ;;  %v804_v59 = vor.u32 %v802_v46, %v800_v52  ;;  %v1030_v9 = vrot.slane %v15368_v3, 1  ;;  %v1032_v10 = vrot.slane %v15369_v4, 1  ;;  %v15373_v17 = vld [vmem:[%s16302_s12 + $0x40] sm:$0xff]   ;;  %1218 = vst.msk [vmem:[#allocation3 + $0x2e8] sm:$0xff] %vm600_vm0, %v15379_v30 }
  0x75   : > { %v2337_v31 = vld [vmem:[#allocation3 + $0x178] sm:$0xff]  ;;  %4674 = vst.msk [vmem:[#allocation3 + $0x1b0] sm:$0xff] %vm600_vm0, %v15355_v27  ;;  %v801_v58 = vsel %vm733_vm2, %v796_v44, %v800_v52  ;;  %v16548_v6 = vld [vmem:[%s16302_s12 + $0x50] sm:$0xff]   ;;  %609 = vst.msk [vmem:[#allocation3 + $0x240] sm:$0xff] %vm600_vm0, %v15373_v17 }
  0x76   : > { %4910 = vst.msk [vmem:[#allocation3 + $0x178] sm:$0xff] %vm600_vm0, %v4892_v24  ;;  %889 = vst.msk [vmem:[#allocation3 + $0x200] sm:$0xff] %vm600_vm0, %v801_v58  ;;  %v1033_v16 = vsel %vm1014_vm1, %v1030_v9, %v1032_v10  ;;  %v15376_v24 = vld [vmem:[%s16302_s12 + $0x54] sm:$0xff]   ;;  %v15385_v49 = vld [vmem:[%s16302_s12 + $0x64] sm:$0xff]  }
  0x77   : > { %3228 = vmatmul.mubr.bf16.gmra.mrb[12].mxu1 %v2319_v41  ;;  %v15361_v41 = vld [vmem:[%s16302_s12 + $0x48] sm:$0xff]   ;;  %1072 = vst.msk [vmem:[#allocation3 + $0x250] sm:$0xff] %vm600_vm0, %v1033_v16  ;;  %1217 = vst.msk [vmem:[#allocation3 + $0x2a0] sm:$0xff] %vm600_vm0, %v15376_v24  ;;  %v15386_v52 = vld [vmem:[%s16302_s12 + $0x58] sm:$0xff]  }
  0x78   : > { %3067 = vmatmul.mubr.bf16.gmra.mrb[12].mxu0 %v2317_v29  ;;  %3235 = vmatprep.mubr.bf16.mxu1 %v2329_v43  ;;  %v2336_v19 = vld [vmem:[#allocation3 + $0x170] sm:$0xff]  ;;  %v1028_v29 = vrot.slane %v16494_v23, 1  ;;  %v4796_v43 = vshrl.u32 %v16476_v7, 16  ;;  %v806_v47 = vshll.u32 %v15361_v41, 16  ;;  %v810_v48 = vshrl.u32 %v15361_v41, 16  ;;  %v15375_v23 = vld [vmem:[%s20893_s2 + $0x120] sm:$0xff]   ;;  %vm17816_vm8 = vmand %vm451_vm3, %vm462_vm6 }
  0x79   : > { %3074 = vmatprep.mubr.bf16.mxu0 %v2327_v50  ;;  %4817 = vst.msk [vmem:[#allocation3 + $0x170] sm:$0xff] %vm600_vm0, %v4787_v12  ;;  %v15363_v50 = vld [vmem:[%s16302_s12 + $0xc0] ss:$0 sps:$4 sm:$0x11]   ;;  %v1034_v12 = vrot.slane %v16548_v6, 1  ;;  %1219 = vst.msk [vmem:[#allocation3 + $0x330] sm:$0xff] %vm600_vm0, %v15385_v49 }
  0x7a   : > { %v1029_v34 = vsel %vm1014_vm1, %v1026_v5, %v1028_v29  ;;  %v808_v54 = vrot.slane %v806_v47, 1  ;;  %v4800_v56 = vshll.u32 %v15363_v50, 16  ;;  %v4798_v63 = vor.u32 %v4796_v43, %v4794_v26  ;;  %v15367_v5 = vld [vmem:[%s16302_s12 + $0xb8] sm:$0xff]   ;;  %v15371_v7 = vld [vmem:[%s16302_s12 + $0xc0] ss:$0 sps:$4 sm:$0x11]   ;;  %vm18059_vm10 = vmor %vm456_vm5, %vm4245_vm9 }
  0x7b   : > { %1070 = vst.msk [vmem:[#allocation3 + $0x1c0] sm:$0xff] %vm600_vm0, %v1029_v34  ;;  %v2345_v40 = vld [vmem:[#allocation3 + $0x1b8] sm:$0xff]  ;;  %v2356_v11 = vld [vmem:[#allocation3 + $0x210] sm:$0xff]  ;;  %v1031_v15 = vsel %vm1014_vm1, %v1028_v29, %v1030_v9  ;;  %v1035_v18 = vsel %vm1014_vm1, %v1032_v10, %v1034_v12  ;;  %v4895_v21 = vrot.slane %v15371_v7, 1  ;;  %v15377_v26 = vld [vmem:[%s16302_s12 + $0x48] sm:$0xff]  }
  0x7c   : > { %4818 = vst.msk [vmem:[#allocation3 + $0x1b8] sm:$0xff] %vm600_vm0, %v4795_v36  ;;  %v812_v60 = vor.u32 %v810_v48, %v808_v54  ;;  %v809_v62 = vsel %vm733_vm2, %v804_v59, %v808_v54  ;;  %v4802_v0 = vrot.slane %v4800_v56, 1  ;;  %4984 = vst.msk [vmem:[#allocation3 + $0x210] sm:$0xff] %vm600_vm0, %v15365_v1  ;;  %v15378_v29 = vld [vmem:[%s16302_s12 + $0x58] sm:$0xff]   ;;  %v2362_v35 = vld [vmem:[#allocation3 + $0x240] sm:$0xff] }
  0x7d   : > { %890 = vst.msk [vmem:[#allocation3 + $0x248] sm:$0xff] %vm600_vm0, %v809_v62  ;;  %1071 = vst.msk [vmem:[#allocation3 + $0x208] sm:$0xff] %vm600_vm0, %v1031_v15  ;;  %v4896_v27 = vsel %vm1014_vm1, %v4893_v38, %v4895_v21  ;;  %v822_v34 = vshll.u32 %v15378_v29, 16  ;;  %v15383_v43 = vld [vmem:[%s20893_s2 + $0x128] sm:$0xff]   ;;  %v826_v44 = vshrl.u32 %v15378_v29, 16  ;;  %v15384_v47 = vld [vmem:[%s16302_s12 + $0x60] sm:$0xff]  }
  0x7e   : > { %v817_v2 = vsel %vm733_vm2, %v812_v60, %v16530_v55  ;;  %v4803_v8 = vsel %vm733_vm2, %v4798_v63, %v4802_v0  ;;  %1073 = vst.msk [vmem:[#allocation3 + $0x298] sm:$0xff] %vm600_vm0, %v1035_v18  ;;  %610 = vst.msk [vmem:[#allocation3 + $0x288] sm:$0xff] %vm600_vm0, %v15377_v26  ;;  %v2364_v41 = vld [vmem:[#allocation3 + $0x250] sm:$0xff]  ;;  %v2374_v45 = vld [vmem:[#allocation3 + $0x2a0] sm:$0xff]  ;;  %v834_v54 = vshrl.u32 %v15384_v47, 16 }
  0x7f   : > { %3236 = vmatmul.mubr.bf16.gmra.mrb[16].mxu1 %v2328_v61  ;;  %v15366_v61 = vld [vmem:[%s16302_s12 + $0x38] sm:$0xff]   ;;  %891 = vst.msk [vmem:[#allocation3 + $0x290] sm:$0xff] %vm600_vm0, %v817_v2  ;;  %v824_v36 = vrot.slane %v822_v34, 1  ;;  %v15387_v53 = vld [vmem:[%s16302_s12 + $0x60] sm:$0xff]   ;;  %612 = vst.msk [vmem:[#allocation3 + $0x318] sm:$0xff] %vm600_vm0, %v15386_v52 }
  0x80   : > { %3075 = vmatmul.mubr.bf16.gmra.mrb[16].mxu0 %v2326_v51  ;;  %3243 = vmatprep.mubr.bf16.mxu1 %v2338_v13  ;;  %v4894_v51 = vsel %vm1014_vm1, %v4891_v14, %v4893_v38  ;;  %608 = vst.msk [vmem:[#allocation3 + $0x1f8] sm:$0xff] %vm600_vm0, %v15366_v61  ;;  %v15372_v13 = vld [vmem:[%s16302_s12 + $0x4c] sm:$0xff]   ;;  %v2354_v14 = vld [vmem:[#allocation3 + $0x200] sm:$0xff]  ;;  %v15381_v38 = vld [vmem:[%s16302_s12 + $0x58] sm:$0xff]   ;;  %v1038_v59 = vrot.slane %v15387_v53, 1 }
  0x81   : > { %3082 = vmatprep.mubr.bf16.mxu0 %v2336_v19  ;;  %4819 = vst.msk [vmem:[#allocation3 + $0x200] sm:$0xff] %vm600_vm0, %v4803_v8  ;;  %1216 = vst.msk [vmem:[#allocation3 + $0x258] sm:$0xff] %vm600_vm0, %v15372_v13  ;;  %v15374_v19 = vld [vmem:[%s20893_s2 + $0x160] sm:$0xff]   ;;  %v1036_v42 = vrot.slane %v15381_v38, 1  ;;  %v828_v50 = vor.u32 %v826_v44, %v824_v36  ;;  %v15388_v56 = vld [vmem:[%s16302_s12 + $0x68] sm:$0xff]  }
  0x82   : > { %v2346_v57 = vld [vmem:[#allocation3 + $0x1c0] sm:$0xff]  ;;  %13831 = vmatprep.subr.bf16.mxu0 %v15374_v19  ;;  %v2383_v60 = vld [vmem:[#allocation3 + $0x2e8] sm:$0xff]  ;;  %v838_v63 = vshll.u32 %v15388_v56, 16  ;;  %v842_v15 = vshrl.u32 %v15388_v56, 16  ;;  %v2392_v17 = vld [vmem:[#allocation3 + $0x330] sm:$0xff] }
  0x83   : > { %4911 = vst.msk [vmem:[#allocation3 + $0x1c0] sm:$0xff] %vm600_vm0, %v4894_v51  ;;  %13832 = vmatpush3.bf16.msra.mxu0 %v15375_v23  ;;  %v1037_v46 = vsel %vm1014_vm1, %v1034_v12, %v1036_v42  ;;  %v830_v51 = vshll.u32 %v15384_v47, 16  ;;  %v15389_v0 = vld [vmem:[%s16302_s12 + $0x6c] sm:$0xff]   ;;  %v1039_v1 = vsel %vm1014_vm1, %v1036_v42, %v1038_v59  ;;  %v15390_v2 = vld [vmem:[%s16302_s12 + $0x60] sm:$0xff]   ;;  %v15405_v38 = vld [vmem:[%s16302_s12 + $0x78] sm:$0xff]  }
  0x84   : > { %v2363_v22 = vld [vmem:[#allocation3 + $0x248] sm:$0xff]  ;;  %1074 = vst.msk [vmem:[#allocation3 + $0x2e0] sm:$0xff] %vm600_vm0, %v1037_v46  ;;  %1075 = vst.msk [vmem:[#allocation3 + $0x328] sm:$0xff] %vm600_vm0, %v1039_v1  ;;  %v840_v4 = vrot.slane %v838_v63, 1  ;;  %v15393_v9 = vld [vmem:[%s20893_s2 + $0x1c0] sm:$0xff]  }
  0x85   : > { %v2371_v48 = vld [vmem:[#allocation3 + $0x288] sm:$0xff]  ;;  %1220 = vst.msk [vmem:[#allocation3 + $0x378] sm:$0xff] %vm600_vm0, %v15389_v0  ;;  %613 = vst.msk [vmem:[#allocation3 + $0x360] sm:$0xff] %vm600_vm0, %v15390_v2  ;;  %13935 = vmatprep.subr.bf16.mxu1 %v15393_v9  ;;  %v15395_v12 = vld [vmem:[%s20893_s2 + $0x180] sm:$0xff]  }
  0x86   : > { %v2372_v28 = vld [vmem:[#allocation3 + $0x290] sm:$0xff]  ;;  %13936 = vmatpush3.bf16.msra.mxu1 %v15395_v12  ;;  %v2389_v18 = vld [vmem:[#allocation3 + $0x318] sm:$0xff]  ;;  %v15399_v24 = vld [vmem:[%s20893_s2 + $0x188] sm:$0xff]  }
  0x87   : > { %3244 = vmatmul.mubr.bf16.gmra.mrb[20].mxu1 %v2337_v31  ;;  %v2355_v31 = vld [vmem:[#allocation3 + $0x208] sm:$0xff]  ;;  %v15407_v42 = vld [vmem:[%s20893_s2 + $0x198] sm:$0xff]   ;;  %v15413_v56 = vld [vmem:[%s20893_s2 + $0x1a0] sm:$0xff]  }
  0x88   : > { %3083 = vmatmul.mubr.bf16.gmra.mrb[20].mxu0 %v2335_v20  ;;  %3251 = vmatprep.mubr.bf16.mxu1 %v2347_v33  ;;  %v2353_v20 = vld [vmem:[#allocation3 + $0x1f8] sm:$0xff]  ;;  %v820_v33 = vor.u32 %v818_v25, %v16530_v55  ;;  %4912 = vst.msk [vmem:[#allocation3 + $0x208] sm:$0xff] %vm600_vm0, %v4896_v27  ;;  %v832_v55 = vrot.slane %v830_v51, 1  ;;  %v15392_v6 = vld [vmem:[%s20893_s2 + $0x170] sm:$0xff]   ;;  %v15400_v25 = vld [vmem:[%s16302_s12 + $0x68] sm:$0xff]  }
  0x89   : > { %3090 = vmatprep.mubr.bf16.mxu0 %v2345_v40  ;;  %4675 = vst.msk [vmem:[#allocation3 + $0x1f8] sm:$0xff] %vm600_vm0, %v15367_v5  ;;  %v2365_v32 = vld [vmem:[#allocation3 + $0x258] sm:$0xff]  ;;  %v15382_v40 = vld [vmem:[%s20893_s2 + $0x168] sm:$0xff]   ;;  %v15397_v19 = vld [vmem:[%s16302_s12 + $0x70] sm:$0xff]  }
  0x8a   : > { %v825_v39 = vsel %vm733_vm2, %v820_v33, %v824_v36  ;;  %13833 = vmatprep.subr.bf16.mxu0 %v15382_v40  ;;  %v833_v61 = vsel %vm733_vm2, %v828_v50, %v832_v55  ;;  %v836_v62 = vor.u32 %v834_v54, %v832_v55  ;;  %v15391_v5 = vld [vmem:[%s16302_s12 + $0x68] sm:$0xff]   ;;  %v846_v23 = vshll.u32 %v15397_v19, 16  ;;  %614 = vst.msk [vmem:[#allocation3 + $0x3a8] sm:$0xff] %vm600_vm0, %v15400_v25  ;;  %v15401_v29 = vld [vmem:[%s16302_s12 + $0x70] sm:$0xff]   ;;  %v15404_v36 = vld [vmem:[%s20893_s2 + $0x1d8] sm:$0xff]  }
  0x8b   : > { %892 = vst.msk [vmem:[#allocation3 + $0x2d8] sm:$0xff] %vm600_vm0, %v825_v39  ;;  %13834 = vmatpush3.bf16.msra.mxu0 %v15383_v43  ;;  %893 = vst.msk [vmem:[#allocation3 + $0x320] sm:$0xff] %vm600_vm0, %v833_v61  ;;  %v1040_v8 = vrot.slane %v15391_v5, 1  ;;  %v2382_v16 = vld [vmem:[#allocation3 + $0x2e0] sm:$0xff]  ;;  %v2391_v27 = vld [vmem:[#allocation3 + $0x328] sm:$0xff]  ;;  %v850_v33 = vshrl.u32 %v15397_v19, 16 }
  0x8c   : > { %v841_v7 = vsel %vm733_vm2, %v836_v62, %v840_v4  ;;  %13835 = vmatprep.subr.bf16.mxu0 %v15392_v6  ;;  %v848_v26 = vrot.slane %v846_v23, 1  ;;  %v2401_v30 = vld [vmem:[#allocation3 + $0x378] sm:$0xff]  ;;  %v2398_v34 = vld [vmem:[#allocation3 + $0x360] sm:$0xff]  ;;  %v15408_v43 = vld [vmem:[%s16302_s12 + $0x70] sm:$0xff]  }
  0x8d   : > { %894 = vst.msk [vmem:[#allocation3 + $0x368] sm:$0xff] %vm600_vm0, %v841_v7  ;;  %v1041_v10 = vsel %vm1014_vm1, %v1038_v59, %v1040_v8  ;;  %v15406_v39 = vld [vmem:[%s16302_s12 + $0x7c] sm:$0xff]   ;;  %615 = vst.msk [vmem:[#allocation3 + $0x3f0] sm:$0xff] %vm600_vm0, %v15408_v43  ;;  %v15417_v1 = vld [vmem:[%s20893_s2 + $0x1a8] sm:$0xff]  }
  0x8e   : > { %1076 = vst.msk [vmem:[#allocation3 + $0x370] sm:$0xff] %vm600_vm0, %v1041_v10  ;;  %v852_v40 = vor.u32 %v850_v33, %v848_v26  ;;  %1222 = vst.msk [vmem:[#allocation3 + $0x408] sm:$0xff] %vm600_vm0, %v15406_v39  ;;  %v15409_v46 = vld [vmem:[%s16302_s12 + $0x78] sm:$0xff]   ;;  %v15412_v55 = vld [vmem:[%s20893_s2 + $0x1e0] sm:$0xff]  }
  0x8f   : > { %3252 = vmatmul.mubr.bf16.gmra.mrb[24].mxu1 %v2346_v57  ;;  %v2373_v57 = vld [vmem:[#allocation3 + $0x298] sm:$0xff]  ;;  %v1044_v50 = vrot.slane %v15409_v46, 1  ;;  %v15421_v10 = vld [vmem:[%s20893_s2 + $0x1b0] sm:$0xff]  }
  0x90   : > { %3091 = vmatmul.mubr.bf16.gmra.mrb[24].mxu0 %v2344_v37  ;;  %3259 = vmatprep.mubr.bf16.mxu1 %v2356_v11  ;;  %v15380_v37 = vld [vmem:[%s16302_s12 + $0x50] sm:$0xff]   ;;  %v15410_v51 = vld [vmem:[%s20893_s2 + $0x178] sm:$0xff]   ;;  %v15415_v59 = vld [vmem:[%s16302_s12 + $0x80] ss:$0 sps:$4 sm:$0x11]  }
  0x91   : > { %3098 = vmatprep.mubr.bf16.mxu0 %v2354_v14  ;;  %611 = vst.msk [vmem:[#allocation3 + $0x2d0] sm:$0xff] %vm600_vm0, %v15380_v37  ;;  %v15394_v11 = vld [vmem:[%s20893_s2 + $0x130] sm:$0xff]   ;;  %v15396_v14 = vld [vmem:[%s20893_s2 + $0x1c8] sm:$0xff]   ;;  %v15411_v52 = vld [vmem:[%s20893_s2 + $0x138] sm:$0xff]   ;;  %v862_v0 = vshll.u32 %v15415_v59, 16 }
  0x92   : > { %v2381_v58 = vld [vmem:[#allocation3 + $0x2d8] sm:$0xff]  ;;  %v2390_v13 = vld [vmem:[#allocation3 + $0x320] sm:$0xff]  ;;  %13836 = vmatpush3.bf16.msra.mxu0 %v15394_v11  ;;  %13937 = vmatprep.subr.bf16.mxu1 %v15396_v14  ;;  %v2407_v53 = vld [vmem:[#allocation3 + $0x3a8] sm:$0xff] }
  0x93   : > { %13938 = vmatpush3.bf16.msra.mxu1 %v15399_v24  ;;  %13837 = vmatprep.subr.bf16.mxu0 %v15410_v51  ;;  %v15419_v6 = vld [vmem:[%s16302_s12 + $0x80] ss:$0 sps:$4 sm:$0x11]   ;;  %v15422_v11 = vld [vmem:[%s20893_s2 + $0x1f8] sm:$0xff]   ;;  %v15425_v19 = vld [vmem:[%s16302_s12 + $0x8c] sm:$0xfe]  }
  0x94   : > { %v2399_v21 = vld [vmem:[#allocation3 + $0x368] sm:$0xff]  ;;  %v2416_v5 = vld [vmem:[#allocation3 + $0x3f0] sm:$0xff]  ;;  %v1046_v9 = vrot.slane %v15419_v6, 1  ;;  %v5189_v25 = vrot.slane %v15425_v19, 1 }
  0x95   : > { %v2400_v44 = vld [vmem:[#allocation3 + $0x370] sm:$0xff]  ;;  %v2419_v62 = vld [vmem:[#allocation3 + $0x408] sm:$0xff] }
  0x96   : > { %13838 = vmatpush3.bf16.msra.mxu0 %v15411_v52  ;;  %v15438_v6 = vld [vmem:[%s16302_s12 + $0x98] sm:$0xff]   ;;  %v15443_v19 = vld [vmem:[%s16302_s12 + $0x28] sm:$0xff]  }
  0x97   : > { %3260 = vmatmul.mubr.bf16.gmra.mrb[28].mxu1 %v2355_v31 }
  0x98   : > { %3099 = vmatmul.mubr.bf16.gmra.mrb[28].mxu0 %v2353_v20  ;;  %3267 = vmatprep.mubr.bf16.mxu1 %v2365_v32  ;;  %v2380_v3 = vld [vmem:[#allocation3 + $0x2d0] sm:$0xff] }
  0x99   : > { %3106 = vmatprep.mubr.bf16.mxu0 %v2363_v22  ;;  %v15398_v20 = vld [vmem:[%s16302_s12 + $0x74] sm:$0xff]   ;;  %v844_v22 = vor.u32 %v842_v15, %v840_v4  ;;  %v15423_v15 = vld [vmem:[%s16302_s12 + $0xc] sm:$0xfe]  }
  0x9a   : > { %1221 = vst.msk [vmem:[#allocation3 + $0x3c0] sm:$0xff] %vm600_vm0, %v15398_v20  ;;  %v15402_v32 = vld [vmem:[%s20893_s2 + $0x1d0] sm:$0xff]   ;;  %v15418_v4 = vld [vmem:[%s16302_s12 + $0x78] sm:$0xff]  }
  0x9b   : > { %v849_v31 = vsel %vm733_vm2, %v844_v22, %v848_v26  ;;  %13939 = vmatprep.subr.bf16.mxu1 %v15402_v32  ;;  %616 = vst.msk [vmem:[#allocation3 + $0x438] sm:$0xff] %vm600_vm0, %v15418_v4  ;;  %v16714_v20 = vld [vmem:[%s16302_s12 + $0x94] sm:$0xff]   ;;  %v15430_v32 = vld [vmem:[%s16302_s12 + $0x8c] sm:$0xff]  }
  0x9c   : > { %895 = vst.msk [vmem:[#allocation3 + $0x3b0] sm:$0xff] %vm600_vm0, %v849_v31  ;;  %v5190_v26 = vrot.slane %v16714_v20, 1 }
  0x9e   : > { %v5191_v39 = vsel %vm1014_vm1, %v5189_v25, %v5190_v26 }
  0x9f   : > { %3268 = vmatmul.mubr.bf16.gmra.mrb[32].mxu1 %v2364_v41  ;;  %v854_v41 = vshll.u32 %v15405_v38, 16 }
  0xa0   : > { %3107 = vmatmul.mubr.bf16.gmra.mrb[32].mxu0 %v2362_v35  ;;  %3275 = vmatprep.mubr.bf16.mxu1 %v2374_v45  ;;  %v1042_v35 = vrot.slane %v15401_v29, 1  ;;  %v15429_v29 = vld [vmem:[%s16302_s12 + $0x14] sm:$0xff]  }
  0xa1   : > { %3114 = vmatprep.mubr.bf16.mxu0 %v2372_v28  ;;  %v15403_v28 = vld [vmem:[%s20893_s2 + $0x190] sm:$0xff]   ;;  %v856_v45 = vrot.slane %v854_v41, 1 }
  0xa2   : > { %v1043_v37 = vsel %vm1014_vm1, %v1040_v8, %v1042_v35  ;;  %13940 = vmatpush3.bf16.msra.mxu1 %v15403_v28  ;;  %v1045_v54 = vsel %vm1014_vm1, %v1042_v35, %v1044_v50  ;;  %v15420_v8 = vld [vmem:[%s20893_s2 + $0x1f0] sm:$0xff]   ;;  %v2425_v22 = vld [vmem:[#allocation3 + $0x438] sm:$0xff]  ;;  %v1348_v35 = vshll.u32 %v15429_v29, 16 }
  0xa3   : > { %1077 = vst.msk [vmem:[#allocation3 + $0x3b8] sm:$0xff] %vm600_vm0, %v1043_v37  ;;  %13941 = vmatprep.subr.bf16.mxu1 %v15404_v36  ;;  %v2408_v47 = vld [vmem:[#allocation3 + $0x3b0] sm:$0xff]  ;;  %v857_v49 = vsel %vm733_vm2, %v852_v40, %v856_v45  ;;  %1078 = vst.msk [vmem:[#allocation3 + $0x400] sm:$0xff] %vm600_vm0, %v1045_v54  ;;  %v5046_v36 = vshrl.u32 %v15430_v32, 16  ;;  %v5048_v37 = vshll.u32 %v15430_v32, 16  ;;  %v16744_v54 = vld [vmem:[%s16302_s12 + $0xa0] sm:$0xff]  }
  0xa4   : > { %896 = vst.msk [vmem:[#allocation3 + $0x3f8] sm:$0xff] %vm600_vm0, %v857_v49  ;;  %v16728_v28 = vld [vmem:[%s16302_s12 + $0x94] sm:$0xff]   ;;  %v1350_v41 = vrot.slane %v1348_v35, 1  ;;  %v5362_v59 = vshll.u32 %v16744_v54, 16 }
  0xa5   : > { %v5050_v43 = vrot.slane %v5048_v37, 1 }
  0xa6   : > { %13942 = vmatpush3.bf16.msra.mxu1 %v15407_v42  ;;  %v5053_v42 = vshll.u32 %v16728_v28, 16 }
  0xa7   : > { %3276 = vmatmul.mubr.bf16.gmra.mrb[36].mxu1 %v2373_v57  ;;  %v858_v57 = vshrl.u32 %v15405_v38, 16  ;;  %13943 = vmatprep.subr.bf16.mxu1 %v15412_v55  ;;  %v15432_v38 = vld [vmem:[%s20893_s2 + $0x200] sm:$0xff]  }
  0xa8   : > { %3115 = vmatmul.mubr.bf16.gmra.mrb[36].mxu0 %v2371_v48  ;;  %3283 = vmatprep.mubr.bf16.mxu1 %v2383_v60  ;;  %v2410_v48 = vld [vmem:[#allocation3 + $0x3c0] sm:$0xff]  ;;  %v5055_v51 = vrot.slane %v5053_v42, 1 }
  0xa9   : > { %3122 = vmatprep.mubr.bf16.mxu0 %v2381_v58  ;;  %v15414_v58 = vld [vmem:[%s20893_s2 + $0x1e8] sm:$0xff]   ;;  %v860_v63 = vor.u32 %v858_v57, %v856_v45  ;;  %15087 = vmatprep.subr.bf16.mxu0 %v15432_v38 }
  0xaa   : > { %13944 = vmatpush3.bf16.msra.mxu1 %v15413_v56  ;;  %v15416_v60 = vld [vmem:[%s16302_s12 + $0x84] sm:$0xff]   ;;  %v2409_v61 = vld [vmem:[#allocation3 + $0x3b8] sm:$0xff] }
  0xab   : > { %13945 = vmatprep.subr.bf16.mxu1 %v15414_v58  ;;  %1223 = vst.msk [vmem:[#allocation3 + $0x450] sm:$0xff] %vm600_vm0, %v15416_v60  ;;  %v2417_v2 = vld [vmem:[#allocation3 + $0x3f8] sm:$0xff]  ;;  %v2418_v12 = vld [vmem:[#allocation3 + $0x400] sm:$0xff]  ;;  %v1352_v60 = vshrl.u32 %v15429_v29, 16 }
  0xac   : > { %v15437_v56 = vld [vmem:[%s16302_s12 + $0x18] sm:$0xff]   ;;  %v15445_v29 = vld [vmem:[%s16302_s12 + $0x20] sm:$0xff]  }
  0xad   : > { %1813 = vst.msk [vmem:[#allocation3 + $0x30] sm:$0xff] %vm600_vm0, %v15437_v56  ;;  %1814 = vst.msk [vmem:[#allocation3 + $0x78] sm:$0xff] %vm600_vm0, %v15445_v29  ;;  %v15452_v56 = vld [vmem:[%s16302_s12 + $0x30] sm:$0xff]  }
  0xae   : > { %13946 = vmatpush3.bf16.msra.mxu1 %v15417_v1 }
  0xaf   : > { %3284 = vmatmul.mubr.bf16.gmra.mrb[40].mxu1 %v2382_v16  ;;  %13947 = vmatprep.subr.bf16.mxu1 %v15420_v8  ;;  %v16709_v16 = vld [vmem:[%s16302_s12 + $0x14] sm:$0xff]   ;;  %v5364_v8 = vrot.slane %v5362_v59, 1 }
  0xb0   : > { %3123 = vmatmul.mubr.bf16.gmra.mrb[40].mxu0 %v2380_v3  ;;  %3291 = vmatprep.mubr.bf16.mxu1 %v2392_v17  ;;  %v864_v3 = vrot.slane %v862_v0, 1  ;;  %v1620_v17 = vrot.slane %v15423_v15, 1  ;;  %v1354_v15 = vor.u32 %v1352_v60, %v1350_v41  ;;  %v16818_v59 = vld [vmem:[%s16302_s12 + $0xb0] sm:$0xff]  }
  0xb1   : > { %3130 = vmatprep.mubr.bf16.mxu0 %v2390_v13  ;;  %v1047_v13 = vsel %vm1014_vm1, %v1044_v50, %v1046_v9  ;;  %v5051_v50 = vor.u32 %v5050_v43, %v5046_v36 }
  0xb2   : > { %v865_v7 = vsel %vm733_vm2, %v860_v63, %v864_v3  ;;  %13948 = vmatpush3.bf16.msra.mxu1 %v15421_v10  ;;  %v2428_v14 = vld [vmem:[#allocation3 + $0x450] sm:$0xff]  ;;  %1079 = vst.msk [vmem:[#allocation3 + $0x448] sm:$0xff] %vm600_vm0, %v1047_v13  ;;  %v5057_v63 = vshrl.u32 %v16728_v28, 16  ;;  %v16753_v3 = vld [vmem:[%s16302_s12 + $0x9c] sm:$0xff]   ;;  %v16784_v28 = vld [vmem:[%s16302_s12 + $0x24] sm:$0xff]  }
  0xb3   : > { %897 = vst.msk [vmem:[#allocation3 + $0x440] sm:$0xff] %vm600_vm0, %v865_v7  ;;  %13949 = vmatprep.subr.bf16.mxu1 %v15422_v11  ;;  %v5056_v0 = vsel %vm733_vm2, %v5051_v50, %v5055_v51  ;;  %v15441_v10 = vld [vmem:[%s16302_s12 + $0x1c] sm:$0xff]   ;;  %v1625_v43 = vrot.slane %v16784_v28, 1 }
  0xb4   : > { %v16762_v13 = vld [vmem:[%s16302_s12 + $0x9c] sm:$0xff]   ;;  %v1360_v36 = vshrl.u32 %v15441_v10, 16 }
  0xb5   : > { %v5065_v42 = vshrl.u32 %v16762_v13, 16 }
  0xb7   : > { %3292 = vmatmul.mubr.bf16.gmra.mrb[44].mxu1 %v2391_v27  ;;  %v15428_v27 = vld [vmem:[%s16302_s12 + $0xc] sm:$0xff]  }
  0xb8   : > { %3131 = vmatmul.mubr.bf16.gmra.mrb[44].mxu0 %v2389_v18  ;;  %3299 = vmatprep.mubr.bf16.mxu1 %v2401_v30  ;;  %v1621_v18 = vrot.slane %v16709_v16, 1  ;;  %v1341_v30 = vshrl.u32 %v15428_v27, 16  ;;  %v1343_v31 = vshll.u32 %v15428_v27, 16  ;;  %v1961_v27 = vshll.u32 %v15443_v19, 16 }
  0xb9   : > { %3138 = vmatprep.mubr.bf16.mxu0 %v2399_v21  ;;  %v15427_v21 = vld [vmem:[%s20893_s2 + $0x1b8] sm:$0xff]   ;;  %v2427_v33 = vld [vmem:[#allocation3 + $0x448] sm:$0xff]  ;;  %v5366_v16 = vshrl.u32 %v16744_v54, 16 }
  0xba   : > { %v2426_v23 = vld [vmem:[#allocation3 + $0x440] sm:$0xff]  ;;  %v1622_v24 = vsel %vm1014_vm1, %v1620_v17, %v1621_v18  ;;  %13950 = vmatpush3.bf16.msra.mxu1 %v15427_v21  ;;  %v1356_v17 = vshll.u32 %v15441_v10, 16  ;;  %v5061_v21 = vshll.u32 %v16762_v13, 16 }
  0xbb   : > { %1669 = vst.msk [vmem:[#allocation3 + $0x28] sm:$0xff] %vm600_vm0, %v1622_v24  ;;  %v5368_v20 = vor.u32 %v5366_v16, %v5364_v8 }
  0xbc   : > { %v1358_v24 = vrot.slane %v1356_v17, 1  ;;  %v5063_v32 = vrot.slane %v5061_v21, 1 }
  0xbf   : > { %3300 = vmatmul.mubr.bf16.gmra.mrb[48].mxu1 %v2400_v44  ;;  %v15433_v44 = vld [vmem:[%s16302_s12 + $0x18] sm:$0xff]  }
  0xc0   : > { %3139 = vmatmul.mubr.bf16.gmra.mrb[48].mxu0 %v2398_v34  ;;  %3307 = vmatprep.mubr.bf16.mxu1 %v2410_v48  ;;  %v1345_v34 = vrot.slane %v1343_v31, 1  ;;  %v1946_v48 = vshrl.u32 %v15433_v44, 16  ;;  %v1948_v49 = vshll.u32 %v15433_v44, 16  ;;  %v1359_v31 = vsel %vm733_vm2, %v1354_v15, %v1358_v24  ;;  %v15449_v44 = vld [vmem:[%s16302_s12 + $0x24] sm:$0xff]  }
  0xc1   : > { %3146 = vmatprep.mubr.bf16.mxu0 %v2408_v47  ;;  %v15434_v47 = vld [vmem:[%s16302_s12 + $0x20] sm:$0xff]   ;;  %1489 = vst.msk [vmem:[#allocation3 + $0x68] sm:$0xff] %vm600_vm0, %v1359_v31  ;;  %v15455_v15 = vld [vmem:[%s16302_s12 + $0xa8] sm:$0xff]  }
  0xc2   : > { %v1346_v40 = vor.u32 %v1345_v34, %v1341_v30  ;;  %v2295_v45 = vld [vmem:[#allocation3 + $0x28] sm:$0xff]  ;;  %v1953_v52 = vshll.u32 %v15434_v47, 16  ;;  %v1950_v55 = vrot.slane %v1948_v49, 1  ;;  %v1957_v4 = vshrl.u32 %v15434_v47, 16  ;;  %v16805_v49 = vld [vmem:[%s16302_s12 + $0xa4] sm:$0xff]  }
  0xc3   : > { %5214 = vst.msk [vmem:[#allocation3 + $0x28] sm:$0xff] %vm600_vm0, %v5191_v39  ;;  %v1362_v47 = vor.u32 %v1360_v36, %v1358_v24  ;;  %v5073_v10 = vshrl.u32 %v16805_v49, 16  ;;  %v16847_v24 = vld [vmem:[%s16302_s12 + $0xac] sm:$0xff]  }
  0xc4   : > { %v1351_v46 = vsel %vm733_vm2, %v1346_v40, %v1350_v41  ;;  %v1955_v57 = vrot.slane %v1953_v52, 1  ;;  %v15446_v40 = vld [vmem:[%s16302_s12 + $0xa0] sm:$0xff]   ;;  %v1965_v52 = vshrl.u32 %v15443_v19, 16  ;;  %v15458_v19 = vld [vmem:[%s16302_s12 + $0x2c] sm:$0xff]  }
  0xc5   : > { %1488 = vst.msk [vmem:[#allocation3 + $0x20] sm:$0xff] %vm600_vm0, %v1351_v46  ;;  %v16795_v41 = vld [vmem:[%s16302_s12 + $0xa4] sm:$0xff]   ;;  %v1372_v29 = vshll.u32 %v15458_v19, 16 }
  0xc6   : > { %v1959_v25 = vor.u32 %v1957_v4, %v1955_v57  ;;  %v1368_v4 = vshrl.u32 %v15449_v44, 16 }
  0xc7   : > { %3308 = vmatmul.mubr.bf16.gmra.mrb[52].mxu1 %v2409_v61  ;;  %v1951_v61 = vor.u32 %v1950_v55, %v1946_v48  ;;  %v1364_v48 = vshll.u32 %v15449_v44, 16  ;;  %v5069_v55 = vshll.u32 %v16805_v49, 16  ;;  %v1374_v31 = vrot.slane %v1372_v29, 1  ;;  %v16933_v29 = vld [vmem:[%s16302_s12 + $0xbc] sm:$0xff]  }
  0xc8   : > { %3147 = vmatmul.mubr.bf16.gmra.mrb[52].mxu0 %v2407_v53  ;;  %3315 = vmatprep.mubr.bf16.mxu1 %v2419_v62  ;;  %v15435_v53 = vld [vmem:[%s16302_s12 + $0x98] sm:$0xff]   ;;  %v1376_v49 = vshrl.u32 %v15458_v19, 16 }
  0xc9   : > { %3154 = vmatprep.mubr.bf16.mxu0 %v2417_v2  ;;  %v5357_v58 = vshll.u32 %v15435_v53, 16  ;;  %v5355_v62 = vshrl.u32 %v15435_v53, 16  ;;  %v15439_v2 = vld [vmem:[%s16302_s12 + $0x1c] sm:$0xff]   ;;  %v1366_v54 = vrot.slane %v1364_v48, 1 }
  0xca   : > { %v1623_v9 = vrot.slane %v15439_v2, 1  ;;  %v2305_v53 = vld [vmem:[#allocation3 + $0x78] sm:$0xff]  ;;  %v15454_v2 = vld [vmem:[%s16302_s12 + $0x28] sm:$0xff]  }
  0xcb   : > { %v5359_v1 = vrot.slane %v5357_v58, 1  ;;  %5287 = vst.msk [vmem:[#allocation3 + $0x78] sm:$0xff] %vm600_vm0, %v15446_v40  ;;  %v1367_v60 = vsel %vm733_vm2, %v1362_v47, %v1366_v54  ;;  %1815 = vst.msk [vmem:[#allocation3 + $0xc0] sm:$0xff] %vm600_vm0, %v15454_v2  ;;  %v15463_v47 = vld [vmem:[%s16302_s12 + $0xb0] sm:$0xff]  }
  0xcc   : > { %v2294_v7 = vld [vmem:[#allocation3 + $0x20] sm:$0xff]  ;;  %v1626_v46 = vsel %vm1014_vm1, %v1623_v9, %v1625_v43  ;;  %1490 = vst.msk [vmem:[#allocation3 + $0xb0] sm:$0xff] %vm600_vm0, %v1367_v60  ;;  %v15468_v60 = vld [vmem:[%s20893_s2 + $0x210] sm:$0xff]  }
  0xcd   : > { %5121 = vst.msk [vmem:[#allocation3 + $0x20] sm:$0xff] %vm600_vm0, %v5056_v0  ;;  %v5360_v11 = vor.u32 %v5359_v1, %v5355_v62  ;;  %1671 = vst.msk [vmem:[#allocation3 + $0xb8] sm:$0xff] %vm600_vm0, %v1626_v46  ;;  %v1969_v62 = vshll.u32 %v15452_v56, 16  ;;  %v5378_v1 = vshll.u32 %v16818_v59, 16 }
  0xcf   : > { %3316 = vmatmul.mubr.bf16.gmra.mrb[56].mxu1 %v2418_v12  ;;  %v5192_v12 = vrot.slane %v16753_v3, 1  ;;  %v5365_v30 = vsel %vm733_vm2, %v5360_v11, %v5364_v8  ;;  %v1971_v8 = vrot.slane %v1969_v62, 1  ;;  %v16837_v3 = vld [vmem:[%s16302_s12 + $0xac] sm:$0xff]   ;;  %v5081_v62 = vshrl.u32 %v16847_v24, 16 }
  0xd0   : > { %3155 = vmatmul.mubr.bf16.gmra.mrb[56].mxu0 %v2416_v5  ;;  %3323 = vmatprep.mubr.bf16.mxu1 %v2428_v14  ;;  %v1956_v5 = vsel %vm733_vm2, %v1951_v61, %v1955_v57  ;;  %v1624_v14 = vsel %vm1014_vm1, %v1621_v18, %v1623_v9  ;;  %v2303_v57 = vld [vmem:[#allocation3 + $0x68] sm:$0xff] }
  0xd1   : > { %3162 = vmatprep.mubr.bf16.mxu0 %v2426_v23  ;;  %2093 = vst.msk [vmem:[#allocation3 + $0x38] sm:$0xff] %vm600_vm0, %v1956_v5  ;;  %1670 = vst.msk [vmem:[#allocation3 + $0x70] sm:$0xff] %vm600_vm0, %v1624_v14  ;;  %v2296_v23 = vld [vmem:[#allocation3 + $0x30] sm:$0xff]  ;;  %v5193_v37 = vsel %vm1014_vm1, %v5190_v26, %v5192_v12  ;;  %v5194_v26 = vrot.slane %v16795_v41, 1  ;;  %v15456_v9 = vld [vmem:[%s16302_s12 + $0x2c] sm:$0xff]   ;;  %v5380_v14 = vrot.slane %v5378_v1, 1 }
  0xd2   : > { %5286 = vst.msk [vmem:[#allocation3 + $0x30] sm:$0xff] %vm600_vm0, %v15438_v6  ;;  %v5067_v6 = vor.u32 %v5065_v42, %v5063_v32  ;;  %v1627_v17 = vrot.slane %v15456_v9, 1  ;;  %v2314_v36 = vld [vmem:[#allocation3 + $0xc0] sm:$0xff]  ;;  %v16865_v42 = vld [vmem:[%s16302_s12 + $0x34] sm:$0xff]  }
  0xd3   : > { %v5195_v5 = vsel %vm1014_vm1, %v5192_v12, %v5194_v26  ;;  %v1973_v12 = vshrl.u32 %v15452_v56, 16  ;;  %v2312_v16 = vld [vmem:[#allocation3 + $0xb0] sm:$0xff]  ;;  %5288 = vst.msk [vmem:[#allocation3 + $0xc0] sm:$0xff] %vm600_vm0, %v15455_v15  ;;  %v1629_v48 = vrot.slane %v16865_v42, 1  ;;  %v16957_v42 = vld [vmem:[%s16302_s12 + $0xc8] sm:$0xff]  }
  0xd4   : > { %v2313_v11 = vld [vmem:[#allocation3 + $0xb8] sm:$0xff]  ;;  %v16891_v56 = vld [vmem:[%s16302_s12 + $0xb4] sm:$0xff]  }
  0xd5   : > { %5216 = vst.msk [vmem:[#allocation3 + $0xb8] sm:$0xff] %vm600_vm0, %v5195_v5  ;;  %v1630_v41 = vsel %vm1014_vm1, %v1627_v17, %v1629_v48 }
  0xd6   : > { %1673 = vst.msk [vmem:[#allocation3 + $0x148] sm:$0xff] %vm600_vm0, %v1630_v41 }
  0xd7   : > { %3324 = vmatmul.mubr.bf16.gmra.mrb[60].mxu1 %v2427_v33  ;;  %v1963_v33 = vrot.slane %v1961_v27, 1  ;;  %v1370_v27 = vor.u32 %v1368_v4, %v1366_v54 }
  0xd8   : > { %3163 = vmatmul.mubr.bf16.gmra.mrb[60].mxu0 %v2425_v22  ;;  %v16771_v22 = vld [vmem:[%s16302_s12 + $0xa8] sm:$0xff]   ;;  %v2297_v34 = vld [vmem:[#allocation3 + $0x38] sm:$0xff] }
  0xd9   : > { %3364 = vmatprep.mubr.bf16.mxu0 %v2295_v45  ;;  %v5370_v18 = vshll.u32 %v16771_v22, 16  ;;  %3525 = vmatprep.mubr.bf16.mxu1 %v2297_v34  ;;  %5430 = vst.msk [vmem:[#allocation3 + $0x38] sm:$0xff] %vm600_vm0, %v5365_v30  ;;  %v1964_v39 = vsel %vm733_vm2, %v1959_v25, %v1963_v33  ;;  %v2304_v45 = vld [vmem:[#allocation3 + $0x70] sm:$0xff]  ;;  %v1967_v61 = vor.u32 %v1965_v52, %v1963_v33 }
  0xda   : > { %2094 = vst.msk [vmem:[#allocation3 + $0x80] sm:$0xff] %vm600_vm0, %v1964_v39  ;;  %5215 = vst.msk [vmem:[#allocation3 + $0x70] sm:$0xff] %vm600_vm0, %v5193_v37  ;;  %v1628_v25 = vsel %vm1014_vm1, %v1625_v43, %v1627_v17  ;;  %v15460_v30 = vld [vmem:[%s16302_s12 + $0x38] sm:$0xff]   ;;  %v1375_v37 = vsel %vm733_vm2, %v1370_v27, %v1374_v31  ;;  %v5382_v39 = vshrl.u32 %v16818_v59, 16 }
  0xdb   : > { %v16781_v35 = vrot.slane %v5370_v18, 1  ;;  %v1972_v13 = vsel %vm733_vm2, %v1967_v61, %v1971_v8  ;;  %1672 = vst.msk [vmem:[#allocation3 + $0x100] sm:$0xff] %vm600_vm0, %v1628_v25  ;;  %v5077_v18 = vshll.u32 %v16847_v24, 16  ;;  %v1977_v33 = vshll.u32 %v15460_v30, 16  ;;  %v16855_v34 = vld [vmem:[%s16302_s12 + $0xb8] sm:$0xff]   ;;  %1491 = vst.msk [vmem:[#allocation3 + $0xf8] sm:$0xff] %vm600_vm0, %v1375_v37 }
  0xdc   : > { %2095 = vst.msk [vmem:[#allocation3 + $0xc8] sm:$0xff] %vm600_vm0, %v1972_v13  ;;  %v5386_v40 = vshll.u32 %v16855_v34, 16  ;;  %v5384_v52 = vor.u32 %v5382_v39, %v5380_v14  ;;  %v1981_v54 = vshrl.u32 %v15460_v30, 16  ;;  %v5390_v13 = vshrl.u32 %v16855_v34, 16  ;;  %v15977_v34 = vld [vmem:[#allocation3 + $0x40] sm:$0xff] }
  0xdd   : > { %v5373_v58 = vsel %vm733_vm2, %v5368_v20, %v16781_v35  ;;  %v2331_v17 = vld [vmem:[#allocation3 + $0x148] sm:$0xff]  ;;  %452 = vst.msk [vmem:[#allocation2] sm:$0xf] %vm451_vm3, %v15977_v34  ;;  %453 = vst.msk [vmem:[#allocation2 + $0x4] sm:$0xf] %vm451_vm3, %v15977_v34  ;;  %v5089_v39 = vshrl.u32 %v16891_v56, 16 }
  0xde   : > { %454 = vst.msk [vmem:[#allocation2 + $0x8] sm:$0xf] %vm451_vm3, %v15977_v34  ;;  %467 = vst.msk [vmem:[#allocation2 + $0xd0] sm:$0xf] %vm451_vm3, %v15977_v34 }
  0xdf   : > { %3526 = vmatmul.mubr.bf16.vlgmr.msra.gmra.mrb[64].mxu1 %v2296_v23  ;;  %v5196_v23 = vrot.slane %v16837_v3, 1  ;;  %v16923_v3 = vld [vmem:[%s16302_s12 + $0x3c] sm:$0xff]   ;;  %468 = vst.msk [vmem:[#allocation2 + $0xd4] sm:$0xf] %vm451_vm3, %v15977_v34  ;;  %469 = vst.msk [vmem:[#allocation2 + $0xd8] sm:$0xf] %vm451_vm3, %v15977_v34 }
  0xe0   : > { %3365 = vmatmul.mubr.bf16.vlgmr.msra.gmra.mrb[64].mxu0 %v2294_v7  ;;  %v5071_v7 = vrot.slane %v5069_v55, 1  ;;  %v1631_v24 = vrot.slane %v16923_v3, 1 }
  0xe1   : > { %15088 = vmatpush3.bf16.msra.mxu0 %v15432_v38  ;;  %v5059_v38 = vor.u32 %v5057_v63, %v5055_v51  ;;  %3372 = vmatprep.mubr.bf16.mxu0 %v2304_v45  ;;  %v15451_v51 = vld [vmem:[%s20893_s2 + $0x208] sm:$0xff]   ;;  %v5374_v63 = vshrl.u32 %v16771_v22, 16  ;;  %v5079_v45 = vrot.slane %v5077_v18, 1  ;;  %v5197_v20 = vsel %vm1014_vm1, %v5194_v26, %v5196_v23  ;;  %v16885_v26 = vld [vmem:[%s16302_s12 + $0x34] sm:$0xff]   ;;  %v15475_v18 = vld [vmem:[%s16302_s12 + $0x3c] sm:$0xff]  }
  0xe2   : > { %15089 = vmatprep.subr.bf16.mxu0 %v15451_v51  ;;  %v2306_v0 = vld [vmem:[#allocation3 + $0x80] sm:$0xff]  ;;  %v5072_v21 = vsel %vm733_vm2, %v5067_v6, %v5071_v7  ;;  %v5075_v44 = vor.u32 %v5073_v10, %v5071_v7  ;;  %v1380_v59 = vshll.u32 %v16885_v26, 16  ;;  %v2321_v1 = vld [vmem:[#allocation3 + $0xf8] sm:$0xff]  ;;  %v1384_v15 = vshrl.u32 %v16885_v26, 16 }
  0xe3   : > { %v5064_v50 = vsel %vm733_vm2, %v5059_v38, %v5063_v32  ;;  %3533 = vmatprep.mubr.bf16.mxu1 %v2306_v0  ;;  %5431 = vst.msk [vmem:[#allocation3 + $0x80] sm:$0xff] %vm600_vm0, %v5373_v58  ;;  %v5376_v22 = vor.u32 %v5374_v63, %v16781_v35  ;;  %5123 = vst.msk [vmem:[#allocation3 + $0xb0] sm:$0xff] %vm600_vm0, %v5072_v21  ;;  %v1975_v32 = vor.u32 %v1973_v12, %v1971_v8  ;;  %v15462_v35 = vld [vmem:[%s16302_s12 + $0x30] sm:$0xff]   ;;  %v16901_v0 = vld [vmem:[%s16302_s12 + $0x40] sm:$0xff]  }
  0xe4   : > { %5122 = vst.msk [vmem:[#allocation3 + $0x68] sm:$0xff] %vm600_vm0, %v5064_v50  ;;  %v1979_v38 = vrot.slane %v1977_v33, 1  ;;  %1816 = vst.msk [vmem:[#allocation3 + $0x108] sm:$0xff] %vm600_vm0, %v15462_v35  ;;  %v2315_v43 = vld [vmem:[#allocation3 + $0xc8] sm:$0xff]  ;;  %v16879_v50 = vld [vmem:[%s16302_s12 + $0xb4] sm:$0xff]   ;;  %v1378_v58 = vor.u32 %v1376_v49, %v1374_v31  ;;  %v5085_v63 = vshll.u32 %v16891_v56, 16  ;;  %v5083_v19 = vor.u32 %v5081_v62, %v5079_v45 }
  0xe5   : > { %15090 = vmatpush3.bf16.msra.mxu0 %v15451_v51  ;;  %v5381_v28 = vsel %vm733_vm2, %v5376_v22, %v5380_v14  ;;  %v2322_v51 = vld [vmem:[#allocation3 + $0x100] sm:$0xff]  ;;  %v5198_v55 = vrot.slane %v16879_v50, 1  ;;  %v1382_v4 = vrot.slane %v1380_v59, 1  ;;  %v1985_v6 = vshll.u32 %v16901_v0, 16  ;;  %v15471_v8 = vld [vmem:[%s16302_s12 + $0x38] sm:$0xff]  }
  0xe6   : > { %5432 = vst.msk [vmem:[#allocation3 + $0xc8] sm:$0xff] %vm600_vm0, %v5381_v28  ;;  %v1980_v46 = vsel %vm733_vm2, %v1975_v32, %v1979_v38  ;;  %5217 = vst.msk [vmem:[#allocation3 + $0x100] sm:$0xff] %vm600_vm0, %v5197_v20  ;;  %15091 = vmatprep.subr.bf16.mxu0 %v15468_v60  ;;  %v1983_v5 = vor.u32 %v1981_v54, %v1979_v38  ;;  %v16908_v7 = vld [vmem:[%s16302_s12 + $0xc0] sm:$0xff]   ;;  %v5087_v21 = vrot.slane %v5085_v63, 1  ;;  %v1989_v25 = vshrl.u32 %v16901_v0, 16 }
  0xe7   : > { %3534 = vmatmul.mubr.bf16.gmra.mrb[68].mxu1 %v2305_v53  ;;  %2096 = vst.msk [vmem:[#allocation3 + $0x110] sm:$0xff] %vm600_vm0, %v1980_v46  ;;  %v5388_v53 = vrot.slane %v5386_v40, 1  ;;  %v5199_v10 = vsel %vm1014_vm1, %v5196_v23, %v5198_v55  ;;  %v1987_v14 = vrot.slane %v1985_v6, 1  ;;  %v5394_v12 = vshll.u32 %v16908_v7, 16  ;;  %1817 = vst.msk [vmem:[#allocation3 + $0x150] sm:$0xff] %vm600_vm0, %v15471_v8  ;;  %v15472_v23 = vld [vmem:[%s16302_s12 + $0xb8] sm:$0xff]  }
  0xe8   : > { %3373 = vmatmul.mubr.bf16.gmra.mrb[68].mxu0 %v2303_v57  ;;  %3541 = vmatprep.mubr.bf16.mxu1 %v2315_v43  ;;  %v5080_v57 = vsel %vm733_vm2, %v5075_v44, %v5079_v45  ;;  %5218 = vst.msk [vmem:[#allocation3 + $0x148] sm:$0xff] %vm600_vm0, %v5199_v10  ;;  %v5088_v31 = vsel %vm733_vm2, %v5083_v19, %v5087_v21  ;;  %v5200_v32 = vrot.slane %v16933_v29, 1  ;;  %v16945_v33 = vld [vmem:[%s16302_s12 + $0xbc] sm:$0xff]   ;;  %v1388_v28 = vshll.u32 %v15475_v18, 16  ;;  %v16976_v56 = vld [vmem:[%s16302_s12 + $0x44] sm:$0xff]   ;;  %v17004_v10 = vld [vmem:[%s16302_s12 + $0x50] sm:$0xff]  }
  0xe9   : > { %3380 = vmatprep.mubr.bf16.mxu0 %v2313_v11  ;;  %v5389_v2 = vsel %vm733_vm2, %v5384_v52, %v5388_v53  ;;  %5124 = vst.msk [vmem:[#allocation3 + $0xf8] sm:$0xff] %vm600_vm0, %v5080_v57  ;;  %v1383_v11 = vsel %vm733_vm2, %v1378_v58, %v1382_v4  ;;  %15092 = vmatpush3.bf16.msra.mxu0 %v15468_v60  ;;  %v5396_v27 = vrot.slane %v5394_v12, 1  ;;  %v5093_v40 = vshll.u32 %v16945_v33, 16  ;;  %v16980_v59 = vld [vmem:[%s16302_s12 + $0xc4] sm:$0xff]   ;;  %v15491_v29 = vld [vmem:[%s16302_s12 + $0x54] sm:$0xff]  }
  0xea   : > { %1492 = vst.msk [vmem:[#allocation3 + $0x140] sm:$0xff] %vm600_vm0, %v1383_v11  ;;  %v1988_v22 = vsel %vm733_vm2, %v1983_v5, %v1987_v14  ;;  %v5392_v30 = vor.u32 %v5390_v13, %v5388_v53  ;;  %v1386_v35 = vor.u32 %v1384_v15, %v1382_v4  ;;  %v5398_v43 = vshrl.u32 %v16908_v7, 16  ;;  %v16987_v63 = vld [vmem:[%s16302_s12 + $0x44] sm:$0xff]   ;;  %v15485_v7 = vld [vmem:[%s20893_s2 + $0x218] sm:$0xff]   ;;  %v17007_v13 = vld [vmem:[%s16302_s12 + $0xd0] sm:$0xff]  }
  0xeb   : > { %v2323_v61 = vld [vmem:[#allocation3 + $0x108] sm:$0xff]  ;;  %2097 = vst.msk [vmem:[#allocation3 + $0x158] sm:$0xff] %vm600_vm0, %v1988_v22  ;;  %v1390_v45 = vrot.slane %v1388_v28, 1  ;;  %v1991_v20 = vor.u32 %v1989_v25, %v1987_v14  ;;  %v1392_v49 = vshrl.u32 %v15475_v18, 16  ;;  %v5201_v53 = vsel %vm1014_vm1, %v5198_v55, %v5200_v32  ;;  %15093 = vmatprep.subr.bf16.mxu0 %v15485_v7 }
  0xec   : > { %5289 = vst.msk [vmem:[#allocation3 + $0x108] sm:$0xff] %vm600_vm0, %v15463_v47  ;;  %v5397_v44 = vsel %vm733_vm2, %v5392_v30, %v5396_v27  ;;  %v5402_v47 = vshll.u32 %v16957_v42, 16  ;;  %v5095_v54 = vrot.slane %v5093_v40, 1  ;;  %v5091_v57 = vor.u32 %v5089_v39, %v5087_v21  ;;  %v15489_v28 = vld [vmem:[%s16302_s12 + $0xc8] sm:$0xff]  }
  0xed   : > { %v1391_v41 = vsel %vm733_vm2, %v1386_v35, %v1390_v45  ;;  %v1633_v62 = vrot.slane %v16976_v56, 1  ;;  %v5400_v0 = vor.u32 %v5398_v43, %v5396_v27  ;;  %v1394_v5 = vor.u32 %v1392_v49, %v1390_v45  ;;  %15094 = vmatpush3.bf16.msra.mxu0 %v15485_v7  ;;  %v15493_v39 = vld [vmem:[%s16302_s12 + $0xcc] ss:$0 sps:$4 sm:$0x11]  }
  0xee   : > { %v2324_v9 = vld [vmem:[#allocation3 + $0x110] sm:$0xff]  ;;  %1493 = vst.msk [vmem:[#allocation3 + $0x188] sm:$0xff] %vm600_vm0, %v1391_v41  ;;  %v5404_v58 = vrot.slane %v5402_v47, 1  ;;  %v1396_v6 = vshll.u32 %v16987_v63, 16  ;;  %v5096_v8 = vsel %vm733_vm2, %v5091_v57, %v5095_v54  ;;  %v5406_v19 = vshrl.u32 %v16957_v42, 16 }
  0xef   : > { %3542 = vmatmul.mubr.bf16.gmra.mrb[72].mxu1 %v2314_v36  ;;  %5433 = vst.msk [vmem:[#allocation3 + $0x110] sm:$0xff] %vm600_vm0, %v5389_v2  ;;  %v15477_v36 = vld [vmem:[%s16302_s12 + $0x48] sm:$0xff]   ;;  %v2332_v38 = vld [vmem:[#allocation3 + $0x150] sm:$0xff]  ;;  %v1634_v4 = vsel %vm1014_vm1, %v1631_v24, %v1633_v62  ;;  %v5410_v22 = vshll.u32 %v17007_v13, 16  ;;  %v1400_v30 = vshrl.u32 %v16987_v63, 16  ;;  %v1637_v43 = vrot.slane %v15491_v29, 1 }
  0xf0   : > { %3381 = vmatmul.mubr.bf16.gmra.mrb[72].mxu0 %v2312_v16  ;;  %3549 = vmatprep.mubr.bf16.mxu1 %v2324_v9  ;;  %v1632_v16 = vsel %vm1014_vm1, %v1629_v48, %v1631_v24  ;;  %5290 = vst.msk [vmem:[#allocation3 + $0x150] sm:$0xff] %vm600_vm0, %v15472_v23  ;;  %v1993_v46 = vshll.u32 %v15477_v36, 16  ;;  %v15479_v48 = vld [vmem:[%s16302_s12 + $0x40] sm:$0xff]   ;;  %v1997_v60 = vshrl.u32 %v15477_v36, 16  ;;  %1675 = vst.msk [vmem:[#allocation3 + $0x1d8] sm:$0xff] %vm600_vm0, %v1634_v4  ;;  %v1398_v11 = vrot.slane %v1396_v6, 1 }
  0xf1   : > { %3388 = vmatprep.mubr.bf16.mxu0 %v2322_v51  ;;  %1674 = vst.msk [vmem:[#allocation3 + $0x190] sm:$0xff] %vm600_vm0, %v1632_v16  ;;  %v2330_v37 = vld [vmem:[#allocation3 + $0x140] sm:$0xff]  ;;  %v5097_v51 = vshrl.u32 %v16945_v33, 16  ;;  %1818 = vst.msk [vmem:[#allocation3 + $0x198] sm:$0xff] %vm600_vm0, %v15479_v48  ;;  %v5405_v12 = vsel %vm733_vm2, %v5400_v0, %v5404_v58  ;;  %v15490_v33 = vld [vmem:[%s16302_s12 + $0x4c] sm:$0xff]   ;;  %v2005_v56 = vshrl.u32 %v17004_v10, 16 }
  0xf2   : > { %5125 = vst.msk [vmem:[#allocation3 + $0x140] sm:$0xff] %vm600_vm0, %v5088_v31  ;;  %v2333_v52 = vld [vmem:[#allocation3 + $0x158] sm:$0xff]  ;;  %v1995_v26 = vrot.slane %v1993_v46, 1  ;;  %v16991_v2 = vld [vmem:[%s16302_s12 + $0xc4] sm:$0xff]   ;;  %v1399_v21 = vsel %vm733_vm2, %v1394_v5, %v1398_v11  ;;  %v17029_v31 = vrot.slane %v5410_v22, 1  ;;  %v1635_v36 = vrot.slane %v15490_v33, 1 }
  0xf3   : > { %5434 = vst.msk [vmem:[#allocation3 + $0x158] sm:$0xff] %vm600_vm0, %v5397_v44  ;;  %v5101_v9 = vshll.u32 %v16991_v2, 16  ;;  %v15488_v23 = vld [vmem:[%s16302_s12 + $0x48] sm:$0xff]   ;;  %1494 = vst.msk [vmem:[#allocation3 + $0x1d0] sm:$0xff] %vm600_vm0, %v1399_v21  ;;  %v5099_v18 = vor.u32 %v5097_v51, %v5095_v54  ;;  %v1402_v48 = vor.u32 %v1400_v30, %v1398_v11  ;;  %v15495_v41 = vld [vmem:[%s16302_s12 + $0x54] sm:$0xff]  }
  0xf4   : > { %v1996_v55 = vsel %vm733_vm2, %v1991_v20, %v1995_v26  ;;  %v1999_v15 = vor.u32 %v1997_v60, %v1995_v26  ;;  %1819 = vst.msk [vmem:[#allocation3 + $0x1e0] sm:$0xff] %vm600_vm0, %v15488_v23  ;;  %v1636_v42 = vsel %vm1014_vm1, %v1633_v62, %v1635_v36  ;;  %v15494_v44 = vld [vmem:[%s16302_s12 + $0x4c] sm:$0xff]   ;;  %v5204_v20 = vrot.slane %v15493_v39, 1  ;;  %v17060_v26 = vld [vmem:[%s16302_s12 + $0x5c] sm:$0xff]  }
  0xf5   : > { %2098 = vst.msk [vmem:[#allocation3 + $0x1a0] sm:$0xff] %vm600_vm0, %v1996_v55  ;;  %v2339_v14 = vld [vmem:[#allocation3 + $0x188] sm:$0xff]  ;;  %v17018_v25 = vrot.slane %v5101_v9, 1  ;;  %1676 = vst.msk [vmem:[#allocation3 + $0x220] sm:$0xff] %vm600_vm0, %v1636_v42  ;;  %v1638_v47 = vsel %vm1014_vm1, %v1635_v36, %v1637_v43  ;;  %v1404_v49 = vshll.u32 %v15494_v44, 16  ;;  %v1408_v54 = vshrl.u32 %v15494_v44, 16 }
  0xf6   : > { %5126 = vst.msk [vmem:[#allocation3 + $0x188] sm:$0xff] %vm600_vm0, %v5096_v8  ;;  %1677 = vst.msk [vmem:[#allocation3 + $0x268] sm:$0xff] %vm600_vm0, %v1638_v47  ;;  %v15497_v55 = vld [vmem:[%s16302_s12 + $0xcc] ss:$0 sps:$4 sm:$0x11]   ;;  %v1412_v60 = vshll.u32 %v15495_v41, 16 }
  0xf7   : > { %3550 = vmatmul.mubr.bf16.gmra.mrb[76].mxu1 %v2323_v61  ;;  %v15480_v61 = vld [vmem:[%s16302_s12 + $0xc0] sm:$0xff]   ;;  %v5104_v40 = vsel %vm733_vm2, %v5099_v18, %v17018_v25  ;;  %v1406_v57 = vrot.slane %v1404_v49, 1  ;;  %v1420_v62 = vshll.u32 %v17060_v26, 16  ;;  %v5109_v4 = vshll.u32 %v15497_v55, 16  ;;  %v15498_v5 = vld [vmem:[%s16302_s12 + $0x58] sm:$0xff]  }
  0xf8   : > { %3389 = vmatmul.mubr.bf16.gmra.mrb[76].mxu0 %v2321_v1  ;;  %3557 = vmatprep.mubr.bf16.mxu1 %v2333_v52  ;;  %v2340_v50 = vld [vmem:[#allocation3 + $0x190] sm:$0xff]  ;;  %v5202_v1 = vrot.slane %v16980_v59, 1  ;;  %v2341_v3 = vld [vmem:[#allocation3 + $0x198] sm:$0xff]  ;;  %v1414_v6 = vrot.slane %v1412_v60, 1  ;;  %v2009_v11 = vshll.u32 %v15498_v5, 16  ;;  %v15508_v55 = vld [vmem:[%s16302_s12 + $0x64] sm:$0xff]  }
  0xf9   : > { %3396 = vmatprep.mubr.bf16.mxu0 %v2331_v17  ;;  %5219 = vst.msk [vmem:[#allocation3 + $0x190] sm:$0xff] %vm600_vm0, %v5201_v53  ;;  %v2001_v17 = vshll.u32 %v17004_v10, 16  ;;  %5291 = vst.msk [vmem:[#allocation3 + $0x198] sm:$0xff] %vm600_vm0, %v15480_v61  ;;  %v2349_v35 = vld [vmem:[#allocation3 + $0x1d8] sm:$0xff]  ;;  %v1416_v61 = vshrl.u32 %v15495_v41, 16  ;;  %v1407_v0 = vsel %vm733_vm2, %v1402_v48, %v1406_v57  ;;  %v17075_v7 = vrot.slane %v1420_v62, 1 }
  0xfa   : > { %v5203_v16 = vsel %vm1014_vm1, %v5200_v32, %v5202_v1  ;;  %v5105_v32 = vshrl.u32 %v16991_v2, 16  ;;  %v2348_v46 = vld [vmem:[#allocation3 + $0x1d0] sm:$0xff]  ;;  %v5205_v63 = vsel %vm1014_vm1, %v5202_v1, %v5204_v20  ;;  %v1410_v2 = vor.u32 %v1408_v54, %v1406_v57  ;;  %1495 = vst.msk [vmem:[#allocation3 + $0x218] sm:$0xff] %vm600_vm0, %v1407_v0  ;;  %v15499_v59 = vld [vmem:[%s16302_s12 + $0x60] sm:$0xff]  }
  0xfb   : > { %v17020_v27 = vrot.slane %v2001_v17, 1  ;;  %5220 = vst.msk [vmem:[#allocation3 + $0x1d8] sm:$0xff] %vm600_vm0, %v5203_v16  ;;  %5127 = vst.msk [vmem:[#allocation3 + $0x1d0] sm:$0xff] %vm600_vm0, %v5104_v40  ;;  %v2350_v52 = vld [vmem:[#allocation3 + $0x1e0] sm:$0xff]  ;;  %v5111_v10 = vrot.slane %v5109_v4, 1  ;;  %v5414_v17 = vshrl.u32 %v17007_v13, 16 }
  0xfc   : > { %v2342_v24 = vld [vmem:[#allocation3 + $0x1a0] sm:$0xff]  ;;  %5292 = vst.msk [vmem:[#allocation3 + $0x1e0] sm:$0xff] %vm600_vm0, %v15489_v28  ;;  %v5107_v8 = vor.u32 %v5105_v32, %v17018_v25  ;;  %v2011_v21 = vrot.slane %v2009_v11, 1  ;;  %v2017_v22 = vshll.u32 %v15499_v59, 16  ;;  %v2021_v23 = vshrl.u32 %v15499_v59, 16  ;;  %v15503_v40 = vld [vmem:[%s16302_s12 + $0xd0] sm:$0xff]  }
  0xfd   : > { %5435 = vst.msk [vmem:[#allocation3 + $0x1a0] sm:$0xff] %vm600_vm0, %v5405_v12  ;;  %v2004_v34 = vsel %vm733_vm2, %v1999_v15, %v17020_v27  ;;  %v2358_v9 = vld [vmem:[#allocation3 + $0x220] sm:$0xff]  ;;  %v2007_v1 = vor.u32 %v2005_v56, %v17020_v27  ;;  %v1418_v12 = vor.u32 %v1416_v61, %v1414_v6  ;;  %v2013_v15 = vshrl.u32 %v15498_v5, 16  ;;  %v15505_v42 = vld [vmem:[%s16302_s12 + $0x58] sm:$0xff]  }
  0xfe   : > { %2099 = vst.msk [vmem:[#allocation3 + $0x1e8] sm:$0xff] %vm600_vm0, %v2004_v34  ;;  %5221 = vst.msk [vmem:[#allocation3 + $0x220] sm:$0xff] %vm600_vm0, %v5205_v63  ;;  %v5112_v27 = vsel %vm733_vm2, %v5107_v8, %v5111_v10  ;;  %v2019_v18 = vrot.slane %v2017_v22, 1  ;;  %v5416_v32 = vor.u32 %v5414_v17, %v17029_v31  ;;  %v15504_v39 = vld [vmem:[%s20893_s2 + $0x220] sm:$0xff]   ;;  %v1428_v4 = vshll.u32 %v15508_v55, 16  ;;  %v15509_v5 = vld [vmem:[%s20893_s2 + $0x228] sm:$0xff]  }
  0xff   : > { %3558 = vmatmul.mubr.bf16.gmra.mrb[80].mxu1 %v2332_v38  ;;  %v17041_v38 = vld [vmem:[%s16302_s12 + $0x5c] sm:$0xff]   ;;  %v1423_v25 = vsel %vm733_vm2, %v1418_v12, %v17075_v7  ;;  %v2012_v13 = vsel %vm733_vm2, %v2007_v1, %v2011_v21  ;;  %v2015_v16 = vor.u32 %v2013_v15, %v2011_v21  ;;  %15095 = vmatprep.subr.bf16.mxu0 %v15504_v39  ;;  %v15511_v1 = vld [vmem:[%s16302_s12 + $0x68] sm:$0xff]  }
 0x100   : > { %3397 = vmatmul.mubr.bf16.gmra.mrb[80].mxu0 %v2330_v37  ;;  %3565 = vmatprep.mubr.bf16.mxu1 %v2342_v24  ;;  %v5408_v37 = vor.u32 %v5406_v19, %v5404_v58  ;;  %v1639_v45 = vrot.slane %v17041_v38, 1  ;;  %v15502_v19 = vld [vmem:[%s16302_s12 + $0x50] sm:$0xff]   ;;  %v15501_v24 = vld [vmem:[%s16302_s12 + $0xd8] ss:$0 sps:$4 sm:$0x11]   ;;  %1497 = vst.msk [vmem:[#allocation3 + $0x2a8] sm:$0xff] %vm600_vm0, %v1423_v25  ;;  %v2023_v36 = vor.u32 %v2021_v23, %v2019_v18 }
 0x101   : > { %3404 = vmatprep.mubr.bf16.mxu0 %v2340_v50  ;;  %1820 = vst.msk [vmem:[#allocation3 + $0x228] sm:$0xff] %vm600_vm0, %v15502_v19  ;;  %v5418_v33 = vshll.u32 %v15501_v24, 16  ;;  %2100 = vst.msk [vmem:[#allocation3 + $0x230] sm:$0xff] %vm600_vm0, %v2012_v13  ;;  %v2357_v28 = vld [vmem:[#allocation3 + $0x218] sm:$0xff]  ;;  %v2020_v29 = vsel %vm733_vm2, %v2015_v16, %v2019_v18  ;;  %15096 = vmatpush3.bf16.msra.mxu0 %v15504_v39  ;;  %v1432_v38 = vshrl.u32 %v15508_v55, 16  ;;  %v15513_v24 = vld [vmem:[%s16302_s12 + $0x6c] sm:$0xff]  }
 0x102   : > { %v5413_v51 = vsel %vm733_vm2, %v5408_v37, %v17029_v31  ;;  %v1640_v53 = vsel %vm1014_vm1, %v1637_v43, %v1639_v45  ;;  %5128 = vst.msk [vmem:[#allocation3 + $0x218] sm:$0xff] %vm600_vm0, %v5112_v27  ;;  %2101 = vst.msk [vmem:[#allocation3 + $0x278] sm:$0xff] %vm600_vm0, %v2020_v29  ;;  %v1424_v43 = vshrl.u32 %v17060_v26, 16  ;;  %v15506_v31 = vld [vmem:[%s16302_s12 + $0x60] sm:$0xff]   ;;  %15097 = vmatprep.subr.bf16.mxu0 %v15509_v5  ;;  %v1436_v18 = vshll.u32 %v15513_v24, 16 }
 0x103   : > { %1678 = vst.msk [vmem:[#allocation3 + $0x2b0] sm:$0xff] %vm600_vm0, %v1640_v53  ;;  %v5420_v37 = vrot.slane %v5418_v33, 1  ;;  %1821 = vst.msk [vmem:[#allocation3 + $0x270] sm:$0xff] %vm600_vm0, %v15505_v42  ;;  %v15507_v53 = vld [vmem:[%s16302_s12 + $0x64] sm:$0xff]   ;;  %v15515_v33 = vld [vmem:[%s16302_s12 + $0x70] sm:$0xff]  }
 0x104   : > { %1822 = vst.msk [vmem:[#allocation3 + $0x2b8] sm:$0xff] %vm600_vm0, %v15506_v31  ;;  %1823 = vst.msk [vmem:[#allocation3 + $0x300] sm:$0xff] %vm600_vm0, %v15511_v1  ;;  %v17154_v31 = vld [vmem:[%s16302_s12 + $0x74] sm:$0xff]  }
 0x105   : > { %v2351_v58 = vld [vmem:[#allocation3 + $0x1e8] sm:$0xff]  ;;  %15098 = vmatpush3.bf16.msra.mxu0 %v15509_v5  ;;  %1824 = vst.msk [vmem:[#allocation3 + $0x348] sm:$0xff] %vm600_vm0, %v15515_v33  ;;  %v15521_v5 = vld [vmem:[%s20893_s2] sm:$0xff]  }
 0x106   : > { %5436 = vst.msk [vmem:[#allocation3 + $0x1e8] sm:$0xff] %vm600_vm0, %v5413_v51  ;;  %v5421_v51 = vsel %vm733_vm2, %v5416_v32, %v5420_v37 }
 0x107   : > { %3566 = vmatmul.mubr.bf16.gmra.mrb[84].mxu1 %v2341_v3  ;;  %v17084_v3 = vld [vmem:[%s16302_s12 + $0x68] sm:$0xff]  }
 0x108   : > { %3405 = vmatmul.mubr.bf16.gmra.mrb[84].mxu0 %v2339_v14  ;;  %3573 = vmatprep.mubr.bf16.mxu1 %v2351_v58  ;;  %v1415_v14 = vsel %vm733_vm2, %v1410_v2, %v1414_v6  ;;  %v2025_v30 = vshll.u32 %v17084_v3, 16  ;;  %v2029_v47 = vshrl.u32 %v17084_v3, 16  ;;  %v2360_v61 = vld [vmem:[#allocation3 + $0x230] sm:$0xff]  ;;  %v1426_v2 = vor.u32 %v1424_v43, %v17075_v7  ;;  %v15512_v3 = vld [vmem:[%s16302_s12 + $0x6c] sm:$0xff]  }
 0x109   : > { %3412 = vmatprep.mubr.bf16.mxu0 %v2349_v35  ;;  %1496 = vst.msk [vmem:[#allocation3 + $0x260] sm:$0xff] %vm600_vm0, %v1415_v14  ;;  %v2367_v35 = vld [vmem:[#allocation3 + $0x268] sm:$0xff]  ;;  %5437 = vst.msk [vmem:[#allocation3 + $0x230] sm:$0xff] %vm600_vm0, %v5421_v51  ;;  %v2369_v6 = vld [vmem:[#allocation3 + $0x278] sm:$0xff]  ;;  %v1430_v7 = vrot.slane %v1428_v4, 1  ;;  %v1643_v27 = vrot.slane %v15512_v3, 1 }
 0x10a   : > { %v17097_v34 = vrot.slane %v2025_v30, 1  ;;  %v2376_v57 = vld [vmem:[#allocation3 + $0x2b0] sm:$0xff]  ;;  %v2375_v21 = vld [vmem:[#allocation3 + $0x2a8] sm:$0xff]  ;;  %v1438_v43 = vrot.slane %v1436_v18, 1  ;;  %v17182_v3 = vld [vmem:[%s16302_s12 + $0x7c] sm:$0xff]  }
 0x10b   : > { %v1431_v12 = vsel %vm733_vm2, %v1426_v2, %v1430_v7  ;;  %v15514_v30 = vld [vmem:[%s16302_s12 + $0x78] sm:$0xff]   ;;  %v1434_v16 = vor.u32 %v1432_v38, %v1430_v7 }
 0x10c   : > { %v2028_v20 = vsel %vm733_vm2, %v2023_v36, %v17097_v34  ;;  %v2031_v11 = vor.u32 %v2029_v47, %v17097_v34  ;;  %1498 = vst.msk [vmem:[#allocation3 + $0x2f0] sm:$0xff] %vm600_vm0, %v1431_v12  ;;  %v2041_v36 = vshll.u32 %v15514_v30, 16  ;;  %v2045_v55 = vshrl.u32 %v15514_v30, 16 }
 0x10d   : > { %2102 = vst.msk [vmem:[#allocation3 + $0x2c0] sm:$0xff] %vm600_vm0, %v2028_v20  ;;  %v1439_v51 = vsel %vm733_vm2, %v1434_v16, %v1438_v43 }
 0x10e   : > { %1499 = vst.msk [vmem:[#allocation3 + $0x338] sm:$0xff] %vm600_vm0, %v1439_v51 }
 0x10f   : > { %3574 = vmatmul.mubr.bf16.gmra.mrb[88].mxu1 %v2350_v52  ;;  %v2359_v52 = vld [vmem:[#allocation3 + $0x228] sm:$0xff] }
 0x110   : > { %3413 = vmatmul.mubr.bf16.gmra.mrb[88].mxu0 %v2348_v46  ;;  %5293 = vst.msk [vmem:[#allocation3 + $0x228] sm:$0xff] %vm600_vm0, %v15503_v40  ;;  %v2366_v56 = vld [vmem:[#allocation3 + $0x260] sm:$0xff]  ;;  %3581 = vmatprep.mubr.bf16.mxu1 %v2360_v61  ;;  %v17149_v40 = vld [vmem:[%s16302_s12 + $0x74] sm:$0xff]  }
 0x111   : > { %3420 = vmatprep.mubr.bf16.mxu0 %v2358_v9  ;;  %v15510_v9 = vld [vmem:[%s16302_s12 + $0x70] sm:$0xff]  }
 0x112   : > { %v2033_v14 = vshll.u32 %v15510_v9, 16  ;;  %v2037_v15 = vshrl.u32 %v15510_v9, 16 }
 0x114   : > { %v2378_v22 = vld [vmem:[#allocation3 + $0x2c0] sm:$0xff]  ;;  %v2035_v23 = vrot.slane %v2033_v14, 1  ;;  %v15522_v14 = vld [vmem:[%s16302_s12 + $0x78] sm:$0xff]  }
 0x115   : > { %1825 = vst.msk [vmem:[#allocation3 + $0x390] sm:$0xff] %vm600_vm0, %v15522_v14  ;;  %v2393_v18 = vld [vmem:[#allocation3 + $0x338] sm:$0xff] }
 0x116   : > { %v2036_v13 = vsel %vm733_vm2, %v2031_v11, %v2035_v23  ;;  %v2039_v29 = vor.u32 %v2037_v15, %v2035_v23 }
 0x117   : > { %3582 = vmatmul.mubr.bf16.gmra.mrb[92].mxu1 %v2359_v52  ;;  %2103 = vst.msk [vmem:[#allocation3 + $0x308] sm:$0xff] %vm600_vm0, %v2036_v13  ;;  %v1440_v52 = vshrl.u32 %v15513_v24, 16  ;;  %v1448_v13 = vshrl.u32 %v17154_v31, 16 }
 0x118   : > { %3421 = vmatmul.mubr.bf16.gmra.mrb[92].mxu0 %v2357_v28  ;;  %3589 = vmatprep.mubr.bf16.mxu1 %v2369_v6 }
 0x119   : > { %3428 = vmatprep.mubr.bf16.mxu0 %v2367_v35 }
 0x11e   : > { %v2387_v2 = vld [vmem:[#allocation3 + $0x308] sm:$0xff] }
 0x120   : > { %3429 = vmatmul.mubr.bf16.gmra.mrb[96].mxu0 %v2366_v56 }
 0x121   : > { %3436 = vmatprep.mubr.bf16.mxu0 %v2376_v57 }
 0x128   : > { %3437 = vmatmul.mubr.bf16.gmra.mrb[100].mxu0 %v2375_v21  ;;  %v17185_v21 = vld [vmem:[%s16302_s12 + $0x7c] sm:$0xff]  }
 0x129   : > { %v1452_v16 = vshll.u32 %v17185_v21, 16 }
 0x132   : > { %v13727_v44 = vpop.f32.mrb[0].mxu1 }
 0x133   : > { %v17063_v50 = vpop.f32.mrb[0].mxu0  ;;  %v13728_v49 = vpop.f32.mrb[1].mxu1 }
 0x134   : > { %v13616_v46 = vpop.f32.mrb[1].mxu0  ;;  %v13729_v41 = vadd.f32 %v13728_v49, %v13727_v44  ;;  %v13730_v54 = vpop.f32.mrb[2].mxu1  ;;  %v1645_v49 = vrot.slane %v17149_v40, 1 }
 0x135   : > { %v13617_v48 = vadd.f32 %v13616_v46, %v17063_v50  ;;  %v13618_v26 = vpop.f32.mrb[2].mxu0  ;;  %v13731_v60 = vpop.f32.mrb[3].mxu1  ;;  %v1641_v50 = vrot.slane %v15507_v53, 1  ;;  %v2043_v46 = vrot.slane %v2041_v36, 1  ;;  %v1444_v53 = vshll.u32 %v17154_v31, 16  ;;  %v15528_v31 = vld [vmem:[%s16302_s12 + $0x80] sm:$0xff]  }
 0x136   : > { %v13619_v58 = vpop.f32.mrb[3].mxu0  ;;  %v13732_v0 = vadd.f32 %v13731_v60, %v13730_v54  ;;  %v1646_v57 = vsel %vm1014_vm1, %v1643_v27, %v1645_v49  ;;  %v1442_v60 = vor.u32 %v1440_v52, %v1438_v43  ;;  %1826 = vst.msk [vmem:[#allocation3 + $0x3d8] sm:$0xff] %vm600_vm0, %v15528_v31  ;;  %v15540_v31 = vld [vmem:[%s16302_s12 + $0x8c] ss:$0 sps:$4 sm:$0x11]  }
 0x137   : > { %v17122_v62 = vadd.f32 %v13729_v41, %v13617_v48  ;;  %v13620_v63 = vadd.f32 %v13619_v58, %v13618_v26  ;;  %v1642_v8 = vsel %vm1014_vm1, %v1639_v45, %v1641_v50  ;;  %v2368_v45 = vld [vmem:[#allocation3 + $0x270] sm:$0xff]  ;;  %v1644_v28 = vsel %vm1014_vm1, %v1641_v50, %v1643_v27  ;;  %v2377_v26 = vld [vmem:[#allocation3 + $0x2b8] sm:$0xff]  ;;  %1681 = vst.msk [vmem:[#allocation3 + $0x388] sm:$0xff] %vm600_vm0, %v1646_v57  ;;  %v2386_v27 = vld [vmem:[#allocation3 + $0x300] sm:$0xff] }
 0x138   : > { %1679 = vst.msk [vmem:[#allocation3 + $0x2f8] sm:$0xff] %vm600_vm0, %v1642_v8  ;;  %3590 = vmatmul.mubr.bf16.gmra.mrb[96].mxu1 %v2368_v45  ;;  %1680 = vst.msk [vmem:[#allocation3 + $0x340] sm:$0xff] %vm600_vm0, %v1644_v28  ;;  %v15518_v41 = vld [vmem:[%s20893_s2 + $0x230] sm:$0xff]   ;;  %v2044_v54 = vsel %vm733_vm2, %v2039_v29, %v2043_v46  ;;  %v1446_v61 = vrot.slane %v1444_v53, 1  ;;  %v15519_v50 = vld [vmem:[%s20893_s2 + $0x40] sm:$0xff]  }
 0x139   : > { %v17133_v10 = vadd.f32 %v13732_v0, %v13620_v63  ;;  %3597 = vmatprep.mubr.bf16.mxu1 %v2378_v22  ;;  %v2384_v58 = vld [vmem:[#allocation3 + $0x2f0] sm:$0xff]  ;;  %2104 = vst.msk [vmem:[#allocation3 + $0x350] sm:$0xff] %vm600_vm0, %v2044_v54  ;;  %15099 = vmatprep.subr.bf16.mxu0 %v15518_v41  ;;  %v15520_v63 = vld [vmem:[%s16302_s12 + $0x80] sm:$0xff]   ;;  %v15525_v28 = vld [vmem:[%s20893_s2 + $0x48] sm:$0xff]  }
 0x13a   : > { %v13733_v17 = vpop.f32.mrb[4].mxu1  ;;  %15100 = vmatpush3.bf16.msra.mxu0 %v15518_v41  ;;  %v1447_v4 = vsel %vm733_vm2, %v1442_v60, %v1446_v61  ;;  %14071 = vmatprep.subr.bf16.mxu1 %v15519_v50  ;;  %v2049_v7 = vshll.u32 %v15520_v63, 16  ;;  %v2053_v29 = vshrl.u32 %v15520_v63, 16  ;;  %v1450_v36 = vor.u32 %v1448_v13, %v1446_v61  ;;  %v15530_v57 = vld [vmem:[%s20893_s2 + $0x10] sm:$0xff]   ;;  %v17218_v50 = vld [vmem:[%s16302_s12 + $0x84] sm:$0xff]  }
 0x13b   : > { %v13621_v59 = vpop.f32.mrb[4].mxu0  ;;  %v13734_v34 = vpop.f32.mrb[5].mxu1  ;;  %1500 = vst.msk [vmem:[#allocation3 + $0x380] sm:$0xff] %vm600_vm0, %v1447_v4  ;;  %14072 = vmatpush3.bf16.msra.mxu1 %v15521_v5 }
 0x13c   : > { %v13622_v19 = vpop.f32.mrb[5].mxu0  ;;  %v13735_v32 = vadd.f32 %v13734_v34, %v13733_v17  ;;  %v13736_v37 = vpop.f32.mrb[6].mxu1  ;;  %v2051_v15 = vrot.slane %v2049_v7, 1  ;;  %14073 = vmatprep.subr.bf16.mxu1 %v15525_v28  ;;  %v15533_v7 = vld [vmem:[%s20893_s2 + $0x238] sm:$0xff]  }
 0x13d   : > { %v13623_v25 = vadd.f32 %v13622_v19, %v13621_v59  ;;  %v13624_v35 = vpop.f32.mrb[6].mxu0  ;;  %v13737_v20 = vpop.f32.mrb[7].mxu1  ;;  %v2047_v59 = vor.u32 %v2045_v55, %v2043_v46  ;;  %v2395_v55 = vld [vmem:[#allocation3 + $0x348] sm:$0xff]  ;;  %15101 = vmatprep.subr.bf16.mxu0 %v15533_v7 }
 0x13e   : > { %v13625_v39 = vpop.f32.mrb[7].mxu0  ;;  %v13738_v48 = vadd.f32 %v13737_v20, %v13736_v37  ;;  %v15526_v37 = vld [vmem:[%s16302_s12 + $0x88] sm:$0xff]   ;;  %v2055_v43 = vor.u32 %v2053_v29, %v2051_v15  ;;  %15102 = vmatpush3.bf16.msra.mxu0 %v15533_v7 }
 0x13f   : > { %v2385_v42 = vld [vmem:[#allocation3 + $0x2f8] sm:$0xff]  ;;  %v13626_v44 = vadd.f32 %v13625_v39, %v13624_v35  ;;  %v17156_v47 = vadd.f32 %v13735_v32, %v13623_v25  ;;  %v2394_v9 = vld [vmem:[#allocation3 + $0x340] sm:$0xff]  ;;  %v1647_v25 = vrot.slane %v17182_v3, 1  ;;  %v2052_v30 = vsel %vm733_vm2, %v2047_v59, %v2051_v15  ;;  %v2403_v39 = vld [vmem:[#allocation3 + $0x388] sm:$0xff] }
 0x140   : > { %3444 = vmatprep.mubr.bf16.mxu0 %v2385_v42  ;;  %3598 = vmatmul.mubr.bf16.gmra.mrb[100].mxu1 %v2377_v26  ;;  %v2396_v33 = vld [vmem:[#allocation3 + $0x350] sm:$0xff]  ;;  %2105 = vst.msk [vmem:[#allocation3 + $0x398] sm:$0xff] %vm600_vm0, %v2052_v30  ;;  %v1454_v32 = vrot.slane %v1452_v16, 1  ;;  %v15527_v20 = vld [vmem:[%s20893_s2 + $0x8] sm:$0xff]  }
 0x141   : > { %v17166_v56 = vadd.f32 %v13738_v48, %v13626_v44  ;;  %3445 = vmatmul.mubr.bf16.gmra.mrb[104].mxu0 %v2384_v58  ;;  %3605 = vmatprep.mubr.bf16.mxu1 %v2387_v2  ;;  %v1648_v35 = vsel %vm1014_vm1, %v1645_v49, %v1647_v25  ;;  %v2057_v44 = vshll.u32 %v15526_v37, 16  ;;  %v15529_v49 = vld [vmem:[%s20893_s2 + $0x50] sm:$0xff]   ;;  %v15537_v30 = vld [vmem:[%s16302_s12 + $0x88] sm:$0xff]  }
 0x142   : > { %v13739_v6 = vpop.f32.mrb[8].mxu1  ;;  %3452 = vmatprep.mubr.bf16.mxu0 %v2394_v9  ;;  %1682 = vst.msk [vmem:[#allocation3 + $0x3d0] sm:$0xff] %vm600_vm0, %v1648_v35  ;;  %v1455_v42 = vsel %vm733_vm2, %v1450_v36, %v1454_v32  ;;  %14074 = vmatpush3.bf16.msra.mxu1 %v15527_v20  ;;  %v2402_v63 = vld [vmem:[#allocation3 + $0x380] sm:$0xff]  ;;  %v15535_v15 = vld [vmem:[%s16302_s12 + $0x90] sm:$0xff]   ;;  %1827 = vst.msk [vmem:[#allocation3 + $0x420] sm:$0xff] %vm600_vm0, %v15537_v30 }
 0x143   : > { %v13627_v0 = vpop.f32.mrb[8].mxu0  ;;  %v13740_v11 = vpop.f32.mrb[9].mxu1  ;;  %1501 = vst.msk [vmem:[#allocation3 + $0x3c8] sm:$0xff] %vm600_vm0, %v1455_v42  ;;  %v2059_v51 = vrot.slane %v2057_v44, 1  ;;  %14075 = vmatprep.subr.bf16.mxu1 %v15529_v49  ;;  %v17226_v9 = vld [vmem:[%s16302_s12 + $0x84] sm:$0xff]  }
 0x144   : > { %v13628_v8 = vpop.f32.mrb[9].mxu0  ;;  %v13741_v38 = vadd.f32 %v13740_v11, %v13739_v6  ;;  %v13742_v12 = vpop.f32.mrb[10].mxu1  ;;  %v1456_v6 = vshrl.u32 %v17185_v21, 16  ;;  %v15538_v36 = vld [vmem:[%s20893_s2 + $0x60] sm:$0xff]   ;;  %v15548_v30 = vld [vmem:[%s16302_s12 + $0x18] sm:$0xfe]  }
 0x145   : > { %v13629_v1 = vadd.f32 %v13628_v8, %v13627_v0  ;;  %v13630_v45 = vpop.f32.mrb[10].mxu0  ;;  %v13743_v19 = vpop.f32.mrb[11].mxu1  ;;  %v2060_v58 = vsel %vm733_vm2, %v2055_v43, %v2059_v51  ;;  %v1649_v8 = vrot.slane %v17218_v50, 1  ;;  %v15541_v49 = vld [vmem:[%s16302_s12 + $0x8c] ss:$0 sps:$4 sm:$0x11]  }
 0x146   : > { %v13631_v17 = vpop.f32.mrb[11].mxu0  ;;  %v13744_v24 = vadd.f32 %v13743_v19, %v13742_v12  ;;  %2106 = vst.msk [vmem:[#allocation3 + $0x3e0] sm:$0xff] %vm600_vm0, %v2060_v58  ;;  %14076 = vmatpush3.bf16.msra.mxu1 %v15530_v57  ;;  %v15534_v12 = vld [vmem:[%s20893_s2 + $0x58] sm:$0xff]   ;;  %v15544_v57 = vld [vmem:[%s20893_s2 + $0x28] sm:$0xff]  }
 0x147   : > { %v17188_v22 = vadd.f32 %v13741_v38, %v13629_v1  ;;  %v13632_v23 = vadd.f32 %v13631_v17, %v13630_v45  ;;  %v2405_v0 = vld [vmem:[#allocation3 + $0x398] sm:$0xff]  ;;  %v2061_v1 = vshrl.u32 %v15526_v37, 16  ;;  %v1650_v14 = vsel %vm1014_vm1, %v1647_v25, %v1649_v8  ;;  %14077 = vmatprep.subr.bf16.mxu1 %v15534_v12  ;;  %v2404_v25 = vld [vmem:[#allocation3 + $0x390] sm:$0xff] }
 0x148   : > { %3606 = vmatmul.mubr.bf16.gmra.mrb[104].mxu1 %v2386_v27  ;;  %v1458_v38 = vor.u32 %v1456_v6, %v1454_v32  ;;  %v1460_v45 = vshll.u32 %v17226_v9, 16  ;;  %1683 = vst.msk [vmem:[#allocation3 + $0x418] sm:$0xff] %vm600_vm0, %v1650_v14  ;;  %v15546_v12 = vld [vmem:[%s20893_s2 + $0x70] sm:$0xff]  }
 0x149   : > { %v17195_v34 = vadd.f32 %v13744_v24, %v13632_v23  ;;  %3453 = vmatmul.mubr.bf16.gmra.mrb[108].mxu0 %v2393_v18  ;;  %3613 = vmatprep.mubr.bf16.mxu1 %v2396_v33  ;;  %v2412_v11 = vld [vmem:[#allocation3 + $0x3d0] sm:$0xff]  ;;  %v2063_v21 = vor.u32 %v2061_v1, %v2059_v51  ;;  %v2065_v23 = vshll.u32 %v15535_v15, 16  ;;  %v1651_v51 = vrot.slane %v15540_v31, 1 }
 0x14a   : > { %v13745_v46 = vpop.f32.mrb[12].mxu1  ;;  %3460 = vmatprep.mubr.bf16.mxu0 %v2403_v39  ;;  %v1462_v19 = vrot.slane %v1460_v45, 1  ;;  %v15536_v24 = vld [vmem:[%s20893_s2 + $0x18] sm:$0xff]   ;;  %v2411_v18 = vld [vmem:[#allocation3 + $0x3c8] sm:$0xff]  ;;  %v15539_v39 = vld [vmem:[%s20893_s2 + $0x20] sm:$0xff]  }
 0x14b   : > { %v13633_v40 = vpop.f32.mrb[12].mxu0  ;;  %v13746_v53 = vpop.f32.mrb[13].mxu1  ;;  %v2067_v35 = vrot.slane %v2065_v23, 1  ;;  %14078 = vmatpush3.bf16.msra.mxu1 %v15536_v24 }
 0x14c   : > { %v13634_v48 = vpop.f32.mrb[13].mxu0  ;;  %v13747_v26 = vadd.f32 %v13746_v53, %v13745_v46  ;;  %v13748_v54 = vpop.f32.mrb[14].mxu1  ;;  %v1463_v27 = vsel %vm733_vm2, %v1458_v38, %v1462_v19  ;;  %14079 = vmatprep.subr.bf16.mxu1 %v15538_v36 }
 0x14d   : > { %v13635_v52 = vadd.f32 %v13634_v48, %v13633_v40  ;;  %v13636_v41 = vpop.f32.mrb[14].mxu0  ;;  %v13749_v61 = vpop.f32.mrb[15].mxu1  ;;  %v2414_v33 = vld [vmem:[#allocation3 + $0x3e0] sm:$0xff]  ;;  %1502 = vst.msk [vmem:[#allocation3 + $0x410] sm:$0xff] %vm600_vm0, %v1463_v27  ;;  %v2068_v42 = vsel %vm733_vm2, %v2063_v21, %v2067_v35 }
 0x14e   : > { %v13637_v60 = vpop.f32.mrb[15].mxu0  ;;  %v13750_v5 = vadd.f32 %v13749_v61, %v13748_v54  ;;  %2107 = vst.msk [vmem:[#allocation3 + $0x428] sm:$0xff] %vm600_vm0, %v2068_v42  ;;  %v2069_v54 = vshrl.u32 %v15535_v15, 16  ;;  %v15545_v61 = vld [vmem:[%s16302_s12 + $0x90] sm:$0xff]  }
 0x14f   : > { %v17221_v2 = vadd.f32 %v13747_v26, %v13635_v52  ;;  %v13638_v4 = vadd.f32 %v13637_v60, %v13636_v41  ;;  %v2421_v46 = vld [vmem:[#allocation3 + $0x418] sm:$0xff]  ;;  %v1464_v52 = vshrl.u32 %v17226_v9, 16  ;;  %v1468_v41 = vshll.u32 %v15541_v49, 16  ;;  %v15542_v26 = vld [vmem:[%s20893_s2 + $0x68] sm:$0xff]   ;;  %14080 = vmatpush3.bf16.msra.mxu1 %v15539_v39  ;;  %1828 = vst.msk [vmem:[#allocation3 + $0x468] sm:$0xff] %vm600_vm0, %v15545_v61 }
 0x150   : > { %3614 = vmatmul.mubr.bf16.gmra.mrb[108].mxu1 %v2395_v55  ;;  %v1652_v55 = vsel %vm1014_vm1, %v1649_v8, %v1651_v51  ;;  %v15543_v60 = vld [vmem:[%s16302_s12 + $0x98] ss:$0 sps:$4 sm:$0x11]   ;;  %14081 = vmatprep.subr.bf16.mxu1 %v15542_v26  ;;  %v17313_v61 = vld [vmem:[#allocation3] sm:$0xff] }
 0x151   : > { %v17228_v59 = vadd.f32 %v13750_v5, %v13638_v4  ;;  %3461 = vmatmul.mubr.bf16.gmra.mrb[112].mxu0 %v2402_v63  ;;  %3621 = vmatprep.mubr.bf16.mxu1 %v2405_v0  ;;  %v1466_v58 = vor.u32 %v1464_v52, %v1462_v19  ;;  %v2413_v63 = vld [vmem:[#allocation3 + $0x3d8] sm:$0xff]  ;;  %1684 = vst.msk [vmem:[#allocation3 + $0x460] sm:$0xff] %vm600_vm0, %v1652_v55  ;;  %v1470_v0 = vrot.slane %v1468_v41, 1  ;;  %v2073_v6 = vshll.u32 %v15543_v60, 16 }
 0x152   : > { %v13751_v17 = vpop.f32.mrb[16].mxu1  ;;  %3468 = vmatprep.mubr.bf16.mxu0 %v2412_v11  ;;  %v2071_v5 = vor.u32 %v2069_v54, %v2067_v35  ;;  %v2422_v35 = vld [vmem:[#allocation3 + $0x420] sm:$0xff]  ;;  %v15554_v51 = vld [vmem:[%s20893_s2 + $0x78] sm:$0xff]  }
 0x153   : > { %v13639_v3 = vpop.f32.mrb[16].mxu0  ;;  %v13752_v16 = vpop.f32.mrb[17].mxu1  ;;  %v1471_v1 = vsel %vm733_vm2, %v1466_v58, %v1470_v0  ;;  %v2075_v14 = vrot.slane %v2073_v6, 1  ;;  %14082 = vmatpush3.bf16.msra.mxu1 %v15544_v57  ;;  %v15555_v54 = vld [vmem:[%s20893_s2 + $0x38] sm:$0xff]   ;;  %v3925_v57 = vld [vmem:[%s20892_s1] sm:$0xff]  ;;  %v3926_v6 = vld [vmem:[%s20892_s1 + $0x8] sm:$0xff] }
 0x154   : > { %v13640_v13 = vpop.f32.mrb[17].mxu0  ;;  %v13753_v29 = vadd.f32 %v13752_v16, %v13751_v17  ;;  %v13754_v37 = vpop.f32.mrb[18].mxu1  ;;  %v2420_v4 = vld [vmem:[#allocation3 + $0x410] sm:$0xff]  ;;  %1503 = vst.msk [vmem:[#allocation3 + $0x458] sm:$0xff] %vm600_vm0, %v1471_v1  ;;  %14083 = vmatprep.subr.bf16.mxu1 %v15546_v12  ;;  %3959 = vperm.xlu0 %15258, %v3925_v57   ;;  %v5532_v1 = vld [vmem:[#allocation3 + $0x8] sm:$0xff] }
 0x155   : > { %v13641_v28 = vadd.f32 %v13640_v13, %v13639_v3  ;;  %v13642_v32 = vpop.f32.mrb[18].mxu0  ;;  %v13755_v20 = vpop.f32.mrb[19].mxu1  ;;  %v2423_v8 = vld [vmem:[#allocation3 + $0x428] sm:$0xff]  ;;  %v2076_v23 = vsel %vm733_vm2, %v2071_v5, %v2075_v14  ;;  %v15549_v13 = vld [vmem:[%s16302_s12 + $0x20] sm:$0xff]  }
 0x156   : > { %v13643_v40 = vpop.f32.mrb[19].mxu0  ;;  %v13756_v48 = vadd.f32 %v13755_v20, %v13754_v37  ;;  %v15547_v17 = vld [vmem:[%s20893_s2 + $0x30] sm:$0xff]   ;;  %2108 = vst.msk [vmem:[#allocation3 + $0x470] sm:$0xff] %vm600_vm0, %v2076_v23  ;;  %v2226_v36 = vrot.slane %v15549_v13, 1  ;;  %v15550_v37 = vld [vmem:[%s16302_s12 + $0x98] sm:$0xfe]  }
 0x157   : > { %v17256_v43 = vadd.f32 %v13753_v29, %v13641_v28  ;;  %v13644_v44 = vadd.f32 %v13643_v40, %v13642_v32  ;;  %14084 = vmatpush3.bf16.msra.mxu1 %v15547_v17  ;;  %v2225_v29 = vrot.slane %v15548_v30, 1  ;;  %v15551_v32 = vld [vmem:[%s16302_s12 + $0xa0] sm:$0xff]   ;;  %v5498_v31 = vrot.slane %v15550_v37, 1  ;;  %v2431_v0 = vld [vmem:[#allocation3 + $0x468] sm:$0xff] }
 0x158   : > { %3622 = vmatmul.mubr.bf16.gmra.mrb[112].mxu1 %v2404_v25  ;;  %v5499_v42 = vrot.slane %v15551_v32, 1  ;;  %14085 = vmatprep.subr.bf16.mxu1 %v15554_v51  ;;  %v15556_v5 = vld [vmem:[#allocation2] sm:$0xff]   ;;  %v15557_v14 = vld [vmem:[%s16302_s12 + $0x30] sm:$0xff]  }
 0x159   : > { %3469 = vmatmul.mubr.bf16.gmra.mrb[116].mxu0 %v2411_v18  ;;  %3629 = vmatprep.mubr.bf16.mxu1 %v2414_v33  ;;  %v17262_v53 = vadd.f32 %v13756_v48, %v13644_v44  ;;  %v2430_v18 = vld [vmem:[#allocation3 + $0x460] sm:$0xff]  ;;  %v2227_v40 = vsel %vm1014_vm1, %v2225_v29, %v2226_v36  ;;  %7195 = vst.msk [vmem:[#allocation3] sm:$0xff] %vm600_vm0, %v15556_v5  ;;  %v17324_v12 = vld [vmem:[%s16302_s12 + $0xb0] sm:$0xff]  }
 0x15a   : > { %3476 = vmatprep.mubr.bf16.mxu0 %v2421_v46  ;;  %v13757_v7 = vpop.f32.mrb[20].mxu1  ;;  %v15552_v44 = vld [vmem:[%s16302_s12 + $0x28] sm:$0xff]   ;;  %2274 = vst.msk [vmem:[#allocation3 + $0x40] sm:$0xff] %vm600_vm0, %v2227_v40  ;;  %3964 = vperm.xlu0 %15258, %v3926_v6   ;;  %v3928_v40 = vld [vmem:[%s20892_s1 + $0x18] sm:$0xff] }
 0x15b   : > { %v13645_v9 = vpop.f32.mrb[20].mxu0  ;;  %v13758_v11 = vpop.f32.mrb[21].mxu1  ;;  %v2429_v39 = vld [vmem:[#allocation3 + $0x458] sm:$0xff]  ;;  %v17299_v46 = vld [vmem:[%s16302_s12 + $0xa8] sm:$0xff]   ;;  %v2228_v49 = vrot.slane %v15552_v44, 1  ;;  %14086 = vmatpush3.bf16.msra.mxu1 %v15555_v54 }
 0x15c   : > { %v13646_v50 = vpop.f32.mrb[21].mxu0  ;;  %v13759_v45 = vadd.f32 %v13758_v11, %v13757_v7  ;;  %v13760_v15 = vpop.f32.mrb[22].mxu1  ;;  %v5501_v26 = vrot.slane %v17299_v46, 1  ;;  %v17359_v54 = vld [vmem:[%s16302_s12 + $0xc0] sm:$0xff]  }
 0x15d   : > { %v13647_v38 = vadd.f32 %v13646_v50, %v13645_v9  ;;  %v13648_v3 = vpop.f32.mrb[22].mxu0  ;;  %v13761_v21 = vpop.f32.mrb[23].mxu1  ;;  %v2432_v52 = vld [vmem:[#allocation3 + $0x470] sm:$0xff]  ;;  %v2229_v41 = vsel %vm1014_vm1, %v2226_v36, %v2228_v49  ;;  %v5503_v36 = vrot.slane %v17324_v12, 1  ;;  %v3933_v46 = vld [vmem:[%s20892_s1 + $0x40] sm:$0xff]  ;;  %v5507_v12 = vrot.slane %v17359_v54, 1 }
 0x15e   : > { %v13649_v19 = vpop.f32.mrb[23].mxu0  ;;  %v13762_v27 = vadd.f32 %v13761_v21, %v13760_v15  ;;  %2275 = vst.msk [vmem:[#allocation3 + $0x88] sm:$0xff] %vm600_vm0, %v2229_v41  ;;  %v15559_v21 = vld [vmem:[%s16302_s12 + $0x38] sm:$0xff]  }
 0x15f   : > { %v17286_v24 = vadd.f32 %v13759_v45, %v13647_v38  ;;  %v13650_v25 = vadd.f32 %v13649_v19, %v13648_v3  ;;  %v2230_v19 = vrot.slane %v15557_v14, 1  ;;  %v2232_v13 = vrot.slane %v15559_v21, 1  ;;  %v15565_v21 = vld [vmem:[%s16302_s12 + $0x50] sm:$0xff]   ;;  %v15570_v54 = vld [vmem:[%s16302_s12 + $0xd8] ss:$0 sps:$4 sm:$0x11]  }
 0x160   : > { %3630 = vmatmul.mubr.bf16.gmra.mrb[116].mxu1 %v2413_v63 }
 0x161   : > { %3477 = vmatmul.mubr.bf16.gmra.mrb[120].mxu0 %v2420_v4  ;;  %3637 = vmatprep.mubr.bf16.mxu1 %v2423_v8  ;;  %v17291_v28 = vadd.f32 %v13762_v27, %v13650_v25  ;;  %v5500_v4 = vsel %vm1014_vm1, %v5498_v31, %v5499_v42  ;;  %v2298_v45 = vld [vmem:[#allocation3 + $0x40] sm:$0xff]  ;;  %v5502_v25 = vsel %vm1014_vm1, %v5499_v42, %v5501_v26  ;;  %v17334_v27 = vld [vmem:[%s16302_s12 + $0xb8] sm:$0xff]  }
 0x162   : > { %v13763_v33 = vpop.f32.mrb[24].mxu1  ;;  %3484 = vmatprep.mubr.bf16.mxu0 %v2430_v18  ;;  %5523 = vst.msk [vmem:[#allocation3 + $0x40] sm:$0xff] %vm600_vm0, %v5500_v4  ;;  %v2231_v30 = vsel %vm1014_vm1, %v2228_v49, %v2230_v19  ;;  %v3929_v18 = vld [vmem:[%s20892_s1 + $0x20] sm:$0xff]  ;;  %v5505_v32 = vrot.slane %v17334_v27, 1  ;;  %v2233_v44 = vsel %vm1014_vm1, %v2230_v19, %v2232_v13  ;;  %v17368_v4 = vld [vmem:[%s16302_s12 + $0xc8] sm:$0xff]  }
 0x163   : > { %v13651_v16 = vpop.f32.mrb[24].mxu0  ;;  %v13764_v55 = vpop.f32.mrb[25].mxu1  ;;  %2276 = vst.msk [vmem:[#allocation3 + $0xd0] sm:$0xff] %vm600_vm0, %v2231_v30  ;;  %3979 = vperm.xlu0 %15258, %v3929_v18   ;;  %2277 = vst.msk [vmem:[#allocation3 + $0x118] sm:$0xff] %vm600_vm0, %v2233_v44  ;;  %v3935_v30 = vld [vmem:[%s20892_s1 + $0x50] sm:$0xff]  ;;  %v15567_v44 = vld [vmem:[%s16302_s12 + $0x58] sm:$0xff]  }
 0x164   : > { %v13652_v20 = vpop.f32.mrb[25].mxu0  ;;  %v13765_v60 = vadd.f32 %v13764_v55, %v13763_v33  ;;  %v13766_v63 = vpop.f32.mrb[26].mxu1 }
 0x165   : > { %v13653_v48 = vadd.f32 %v13652_v20, %v13651_v16  ;;  %v13654_v58 = vpop.f32.mrb[26].mxu0  ;;  %v13767_v7 = vpop.f32.mrb[27].mxu1  ;;  %v3927_v16 = vld [vmem:[%s20892_s1 + $0x10] sm:$0xff] }
 0x166   : > { %v13655_v9 = vpop.f32.mrb[27].mxu0  ;;  %v13768_v8 = vadd.f32 %v13767_v7, %v13766_v63  ;;  %v2307_v29 = vld [vmem:[#allocation3 + $0x88] sm:$0xff]  ;;  %3969 = vperm.xlu1 %15259, %v3927_v16   ;;  %v5504_v63 = vsel %vm1014_vm1, %v5501_v26, %v5503_v36 }
 0x167   : > { %v17319_v50 = vadd.f32 %v13765_v60, %v13653_v48  ;;  %v13656_v11 = vadd.f32 %v13655_v9, %v13654_v58  ;;  %5524 = vst.msk [vmem:[#allocation3 + $0x88] sm:$0xff] %vm600_vm0, %v5502_v25  ;;  %v3931_v20 = vld [vmem:[%s20892_s1 + $0x30] sm:$0xff]  ;;  %v15563_v60 = vld [vmem:[%s16302_s12 + $0x48] sm:$0xff]   ;;  %v3932_v25 = vld [vmem:[%s20892_s1 + $0x38] sm:$0xff] }
 0x168   : > { %3638 = vmatmul.mubr.bf16.gmra.mrb[120].mxu1 %v2422_v35  ;;  %3989 = vperm.xlu0 %15258, %v3931_v20   ;;  %v2236_v7 = vrot.slane %v15563_v60, 1  ;;  %v5508_v20 = vsel %vm1014_vm1, %v5505_v32, %v5507_v12 }
 0x169   : > { %3485 = vmatmul.mubr.bf16.gmra.mrb[124].mxu0 %v2429_v39  ;;  %3645 = vmatprep.mubr.bf16.mxu1 %v2432_v52  ;;  %v17327_v17 = vadd.f32 %v13768_v8, %v13656_v11  ;;  %v15561_v52 = vld [vmem:[%s16302_s12 + $0x40] sm:$0xff]  }
 0x16a   : > { %v13769_v3 = vpop.f32.mrb[28].mxu1  ;;  %15103 = vmatprep.mubr.bf16.mxu0 %v2298_v45  ;;  %3974 = vperm.xlu1 %15259, %v3928_v40   ;;  %v2234_v58 = vrot.slane %v15561_v52, 1  ;;  %v5506_v45 = vsel %vm1014_vm1, %v5503_v36, %v5505_v32  ;;  %v2325_v16 = vld [vmem:[#allocation3 + $0x118] sm:$0xff]  ;;  %v5540_v36 = vld [vmem:[#allocation3 + $0x48] sm:$0xff] }
 0x16b   : > { %v13657_v38 = vpop.f32.mrb[28].mxu0  ;;  %v13770_v33 = vpop.f32.mrb[29].mxu1  ;;  %5526 = vst.msk [vmem:[#allocation3 + $0x118] sm:$0xff] %vm600_vm0, %v5506_v45 }
 0x16c   : > { %v13658_v15 = vpop.f32.mrb[29].mxu0  ;;  %v13771_v37 = vadd.f32 %v13770_v33, %v13769_v3  ;;  %v13772_v39 = vpop.f32.mrb[30].mxu1  ;;  %v2235_v9 = vsel %vm1014_vm1, %v2232_v13, %v2234_v58  ;;  %v5509_v3 = vrot.slane %v17368_v4, 1  ;;  %3999 = vperm.xlu0 %15258, %v3933_v46   ;;  %v2238_v33 = vrot.slane %v15565_v21, 1  ;;  %v15571_v21 = vld [vmem:[%s20893_s2 + $0xc0] sm:$0xff]   ;;  %v3939_v4 = vld [vmem:[%s20892_s1 + $0x70] sm:$0xff] }
 0x16d   : > { %v13659_v23 = vadd.f32 %v13658_v15, %v13657_v38  ;;  %v13660_v35 = vpop.f32.mrb[30].mxu0  ;;  %v13773_v48 = vpop.f32.mrb[31].mxu1  ;;  %v2316_v38 = vld [vmem:[#allocation3 + $0xd0] sm:$0xff]  ;;  %2278 = vst.msk [vmem:[#allocation3 + $0x160] sm:$0xff] %vm600_vm0, %v2235_v9  ;;  %v5513_v9 = vrot.slane %v15570_v54, 1  ;;  %14135 = vmatprep.subr.bf16.mxu0 %v15571_v21 }
 0x16e   : > { %v13661_v42 = vpop.f32.mrb[31].mxu0  ;;  %v13774_v51 = vadd.f32 %v13773_v48, %v13772_v39  ;;  %5525 = vst.msk [vmem:[#allocation3 + $0xd0] sm:$0xff] %vm600_vm0, %v5504_v63  ;;  %v2239_v40 = vsel %vm1014_vm1, %v2236_v7, %v2238_v33  ;;  %v17411_v48 = vld [vmem:[%s16302_s12 + $0x68] sm:$0xff]   ;;  %v5510_v60 = vsel %vm1014_vm1, %v5507_v12, %v5509_v3 }
 0x16f   : > { %v13662_v31 = vadd.f32 %v13661_v42, %v13660_v35  ;;  %v17355_v49 = vadd.f32 %v13771_v37, %v13659_v23  ;;  %v17397_v35 = vld [vmem:[%s16302_s12 + $0xd0] sm:$0xff]   ;;  %v5550_v37 = vld [vmem:[#allocation3 + $0x98] sm:$0xff]  ;;  %2280 = vst.msk [vmem:[#allocation3 + $0x1f0] sm:$0xff] %vm600_vm0, %v2239_v40  ;;  %v2244_v32 = vrot.slane %v17411_v48, 1  ;;  %v3934_v63 = vld [vmem:[%s20892_s1 + $0x48] sm:$0xff] }
 0x170   : > { %3646 = vmatmul.mubr.bf16.gmra.mrb[124].mxu1 %v2431_v0  ;;  %v5541_v0 = vld [vmem:[#allocation3 + $0x50] sm:$0xff]  ;;  %v5511_v42 = vrot.slane %v17397_v35, 1  ;;  %4009 = vperm.xlu0 %15258, %v3935_v30   ;;  %v15575_v35 = vld [vmem:[%s20893_s2 + $0x88] sm:$0xff]  }
 0x171   : > { %6211 = vmatprep.mubr.bf16.mxu1 %v5532_v1  ;;  %15104 = vmatmul.mubr.bf16.vlgmr.msra.gmra.mrb[128].mxu0 %v2307_v29  ;;  %v17361_v55 = vadd.f32 %v13774_v51, %v13662_v31  ;;  %v3930_v1 = vld [vmem:[%s20892_s1 + $0x28] sm:$0xff]  ;;  %v15568_v31 = vld [vmem:[%s16302_s12 + $0x60] sm:$0xff]  }
 0x172   : > { %v13775_v57 = vpop.f32.mrb[32].mxu1  ;;  %15107 = vmatprep.mubr.bf16.mxu0 %v2316_v38  ;;  %3984 = vperm.xlu1 %15259, %v3930_v1   ;;  %v2242_v27 = vrot.slane %v15568_v31, 1  ;;  %v5512_v12 = vsel %vm1014_vm1, %v5509_v3, %v5511_v42  ;;  %v15582_v48 = vld [vmem:[%s20893_s2 + $0x108] sm:$0xff]  }
 0x173   : > { %v13663_v41 = vpop.f32.mrb[32].mxu0  ;;  %v13776_v6 = vpop.f32.mrb[33].mxu1 }
 0x174   : > { %v13664_v5 = vpop.f32.mrb[33].mxu0  ;;  %v13777_v26 = vadd.f32 %v13776_v6, %v13775_v57  ;;  %v13778_v14 = vpop.f32.mrb[34].mxu1 }
 0x175   : > { %v13665_v11 = vadd.f32 %v13664_v5, %v13663_v41  ;;  %v13666_v8 = vpop.f32.mrb[34].mxu0  ;;  %v13779_v19 = vpop.f32.mrb[35].mxu1  ;;  %v2240_v41 = vrot.slane %v15567_v44, 1  ;;  %v3938_v44 = vld [vmem:[%s20892_s1 + $0x68] sm:$0xff] }
 0x176   : > { %v13667_v15 = vpop.f32.mrb[35].mxu0  ;;  %v13780_v18 = vadd.f32 %v13779_v19, %v13778_v14  ;;  %3994 = vperm.xlu1 %15259, %v3932_v25   ;;  %v3936_v14 = vld [vmem:[%s20892_s1 + $0x58] sm:$0xff]  ;;  %v15572_v25 = vld [vmem:[%s20893_s2 + $0x80] sm:$0xff]  }
 0x177   : > { %v17387_v23 = vadd.f32 %v13777_v26, %v13665_v11  ;;  %v13668_v13 = vadd.f32 %v13667_v15, %v13666_v8  ;;  %v2241_v6 = vsel %vm1014_vm1, %v2238_v33, %v2240_v41  ;;  %v2243_v26 = vsel %vm1014_vm1, %v2240_v41, %v2242_v27  ;;  %v5559_v33 = vld [vmem:[#allocation3 + $0xe0] sm:$0xff]  ;;  %14136 = vmatpush3.bf16.msra.mxu0 %v15572_v25 }
 0x178   : > { %6212 = vmatmul.mubr.bf16.vlgmr.msra.gmra.mrb[128].mxu1 %v17313_v61  ;;  %v2237_v61 = vsel %vm1014_vm1, %v2234_v58, %v2236_v7  ;;  %v2334_v58 = vld [vmem:[#allocation3 + $0x160] sm:$0xff]  ;;  %v2245_v8 = vsel %vm1014_vm1, %v2242_v27, %v2244_v32  ;;  %2281 = vst.msk [vmem:[#allocation3 + $0x238] sm:$0xff] %vm600_vm0, %v2241_v6  ;;  %2282 = vst.msk [vmem:[#allocation3 + $0x280] sm:$0xff] %vm600_vm0, %v2243_v26 }
 0x179   : > { %6219 = vmatprep.mubr.bf16.mxu1 %v5541_v0  ;;  %2279 = vst.msk [vmem:[#allocation3 + $0x1a8] sm:$0xff] %vm600_vm0, %v2237_v61  ;;  %15108 = vmatmul.mubr.bf16.gmra.mrb[132].mxu0 %v2325_v16  ;;  %v17400_v39 = vadd.f32 %v13780_v18, %v13668_v13  ;;  %v3937_v0 = vld [vmem:[%s20892_s1 + $0x60] sm:$0xff]  ;;  %5527 = vst.msk [vmem:[#allocation3 + $0x160] sm:$0xff] %vm600_vm0, %v5508_v20  ;;  %v5549_v16 = vld [vmem:[#allocation3 + $0x90] sm:$0xff] }
 0x17a   : > { %v13781_v51 = vpop.f32.mrb[36].mxu1  ;;  %15111 = vmatprep.mubr.bf16.mxu0 %v2334_v58  ;;  %2283 = vst.msk [vmem:[#allocation3 + $0x2c8] sm:$0xff] %vm600_vm0, %v2245_v8  ;;  %4004 = vperm.xlu1 %15259, %v3934_v63   ;;  %v2352_v18 = vld [vmem:[#allocation3 + $0x1f0] sm:$0xff]  ;;  %v3941_v20 = vld [vmem:[%s20892_s1 + $0x80] sm:$0xff]  ;;  %v15573_v41 = vld [vmem:[%s20893_s2 + $0xc8] sm:$0xff]  }
 0x17b   : > { %v13669_v29 = vpop.f32.mrb[36].mxu0  ;;  %v13782_v5 = vpop.f32.mrb[37].mxu1  ;;  %4019 = vperm.xlu0 %15258, %v3937_v0   ;;  %5529 = vst.msk [vmem:[#allocation3 + $0x1f0] sm:$0xff] %vm600_vm0, %v5512_v12  ;;  %v15574_v58 = vld [vmem:[%s20893_s2 + $0x140] sm:$0xff]   ;;  %14137 = vmatprep.subr.bf16.mxu0 %v15573_v41 }
 0x17c   : > { %v13670_v52 = vpop.f32.mrb[37].mxu0  ;;  %v13783_v7 = vadd.f32 %v13782_v5, %v13781_v51  ;;  %v13784_v46 = vpop.f32.mrb[38].mxu1  ;;  %14199 = vmatprep.subr.bf16.mxu1 %v15574_v58  ;;  %v5558_v12 = vld [vmem:[#allocation3 + $0xd8] sm:$0xff]  ;;  %14138 = vmatpush3.bf16.msra.mxu0 %v15575_v35  ;;  %v5567_v35 = vld [vmem:[#allocation3 + $0x120] sm:$0xff] }
 0x17d   : > { %v13671_v57 = vadd.f32 %v13670_v52, %v13669_v29  ;;  %v13672_v1 = vpop.f32.mrb[38].mxu0  ;;  %v13785_v45 = vpop.f32.mrb[39].mxu1  ;;  %v5514_v52 = vsel %vm1014_vm1, %v5511_v42, %v5513_v9  ;;  %v3945_v41 = vld [vmem:[%s20892_s1 + $0xa0] sm:$0xff] }
 0x17e   : > { %v13673_v38 = vpop.f32.mrb[39].mxu0  ;;  %v13786_v3 = vadd.f32 %v13785_v45, %v13784_v46  ;;  %4014 = vperm.xlu1 %15259, %v3936_v14   ;;  %v3940_v46 = vld [vmem:[%s20892_s1 + $0x78] sm:$0xff] }
 0x17f   : > { %v17442_v15 = vadd.f32 %v13783_v7, %v13671_v57  ;;  %v13674_v19 = vadd.f32 %v13673_v38, %v13672_v1  ;;  %4029 = vperm.xlu0 %15258, %v3939_v4   ;;  %v2361_v63 = vld [vmem:[#allocation3 + $0x238] sm:$0xff]  ;;  %v2370_v6 = vld [vmem:[#allocation3 + $0x280] sm:$0xff] }
 0x180   : > { %6220 = vmatmul.mubr.bf16.gmra.mrb[132].mxu1 %v5540_v36  ;;  %v2343_v11 = vld [vmem:[#allocation3 + $0x1a8] sm:$0xff]  ;;  %5530 = vst.msk [vmem:[#allocation3 + $0x238] sm:$0xff] %vm600_vm0, %v5514_v52  ;;  %v15576_v1 = vld [vmem:[%s20893_s2 + $0x100] sm:$0xff]   ;;  %v17490_v4 = vld [vmem:[%s16302_s12 + $0x78] sm:$0xff]  }
 0x181   : > { %6227 = vmatprep.mubr.bf16.mxu1 %v5550_v37  ;;  %5528 = vst.msk [vmem:[#allocation3 + $0x1a8] sm:$0xff] %vm600_vm0, %v5510_v60  ;;  %15112 = vmatmul.mubr.bf16.gmra.mrb[136].mxu0 %v2343_v11  ;;  %v17454_v40 = vadd.f32 %v13786_v3, %v13674_v19  ;;  %v3943_v11 = vld [vmem:[%s20892_s1 + $0x90] sm:$0xff]  ;;  %v3942_v52 = vld [vmem:[%s20892_s1 + $0x88] sm:$0xff] }
 0x182   : > { %v13787_v30 = vpop.f32.mrb[40].mxu1  ;;  %15115 = vmatprep.mubr.bf16.mxu0 %v2352_v18  ;;  %4024 = vperm.xlu1 %15259, %v3938_v44   ;;  %v15577_v19 = vld [vmem:[%s16302_s12 + $0x70] sm:$0xff]  }
 0x183   : > { %v13675_v61 = vpop.f32.mrb[40].mxu0  ;;  %v13788_v36 = vpop.f32.mrb[41].mxu1  ;;  %4039 = vperm.xlu0 %15258, %v3941_v20   ;;  %14200 = vmatpush3.bf16.msra.mxu1 %v15576_v1  ;;  %v15581_v44 = vld [vmem:[%s20893_s2 + $0x90] sm:$0xff]   ;;  %v15585_v1 = vld [vmem:[%s20893_s2 + $0x98] sm:$0xff]  }
 0x184   : > { %v13676_v13 = vpop.f32.mrb[41].mxu0  ;;  %v13789_v31 = vadd.f32 %v13788_v36, %v13787_v30  ;;  %v13790_v51 = vpop.f32.mrb[42].mxu1  ;;  %v15580_v36 = vld [vmem:[%s20893_s2 + $0x148] sm:$0xff]  }
 0x185   : > { %v13677_v29 = vadd.f32 %v13676_v13, %v13675_v61  ;;  %v13678_v37 = vpop.f32.mrb[42].mxu0  ;;  %v13791_v27 = vpop.f32.mrb[43].mxu1  ;;  %v5568_v61 = vld [vmem:[#allocation3 + $0x128] sm:$0xff]  ;;  %v2246_v13 = vrot.slane %v15577_v19, 1  ;;  %14201 = vmatprep.subr.bf16.mxu1 %v15580_v36 }
 0x186   : > { %v13679_v54 = vpop.f32.mrb[43].mxu0  ;;  %v13792_v42 = vadd.f32 %v13791_v27, %v13790_v51  ;;  %4034 = vperm.xlu1 %15259, %v3940_v46  }
 0x187   : > { %v17468_v57 = vadd.f32 %v13789_v31, %v13677_v29  ;;  %v13680_v60 = vadd.f32 %v13679_v54, %v13678_v37  ;;  %4049 = vperm.xlu0 %15258, %v3943_v11   ;;  %v2248_v29 = vrot.slane %v17490_v4, 1  ;;  %v2247_v37 = vsel %vm1014_vm1, %v2244_v32, %v2246_v13  ;;  %14202 = vmatpush3.bf16.msra.mxu1 %v15582_v48  ;;  %v3946_v4 = vld [vmem:[%s20892_s1 + $0xa8] sm:$0xff] }
 0x188   : > { %6228 = vmatmul.mubr.bf16.gmra.mrb[136].mxu1 %v5549_v16  ;;  %v15579_v16 = vld [vmem:[%s20893_s2 + $0xd0] sm:$0xff]   ;;  %2284 = vst.msk [vmem:[#allocation3 + $0x310] sm:$0xff] %vm600_vm0, %v2247_v37 }
 0x189   : > { %6235 = vmatprep.mubr.bf16.mxu1 %v5559_v33  ;;  %v17486_v26 = vadd.f32 %v13792_v42, %v13680_v60  ;;  %15116 = vmatmul.mubr.bf16.gmra.mrb[140].mxu0 %v2361_v63  ;;  %v2379_v33 = vld [vmem:[#allocation3 + $0x2c8] sm:$0xff]  ;;  %v2249_v51 = vsel %vm1014_vm1, %v2246_v13, %v2248_v29  ;;  %v15583_v42 = vld [vmem:[%s20893_s2 + $0xd8] sm:$0xff]  }
 0x18a   : > { %v13793_v5 = vpop.f32.mrb[44].mxu1  ;;  %15119 = vmatprep.mubr.bf16.mxu0 %v2370_v6  ;;  %14139 = vmatprep.subr.bf16.mxu0 %v15579_v16  ;;  %2285 = vst.msk [vmem:[#allocation3 + $0x358] sm:$0xff] %vm600_vm0, %v2249_v51  ;;  %v15584_v6 = vld [vmem:[%s20893_s2 + $0x150] sm:$0xff]  }
 0x18b   : > { %v13681_v0 = vpop.f32.mrb[44].mxu0  ;;  %v13794_v7 = vpop.f32.mrb[45].mxu1  ;;  %14140 = vmatpush3.bf16.msra.mxu0 %v15581_v44  ;;  %4044 = vperm.xlu1 %15259, %v3942_v52   ;;  %v5576_v51 = vld [vmem:[#allocation3 + $0x168] sm:$0xff] }
 0x18c   : > { %v13682_v9 = vpop.f32.mrb[45].mxu0  ;;  %v13795_v14 = vadd.f32 %v13794_v7, %v13793_v5  ;;  %v13796_v45 = vpop.f32.mrb[46].mxu1  ;;  %4059 = vperm.xlu0 %15258, %v3945_v41   ;;  %v5577_v5 = vld [vmem:[#allocation3 + $0x170] sm:$0xff]  ;;  %14141 = vmatprep.subr.bf16.mxu0 %v15583_v42  ;;  %v5586_v42 = vld [vmem:[#allocation3 + $0x1b8] sm:$0xff] }
 0x18d   : > { %v13683_v8 = vadd.f32 %v13682_v9, %v13681_v0  ;;  %v13684_v38 = vpop.f32.mrb[46].mxu0  ;;  %v13797_v30 = vpop.f32.mrb[47].mxu1  ;;  %14203 = vmatprep.subr.bf16.mxu1 %v15584_v6 }
 0x18e   : > { %v13685_v21 = vpop.f32.mrb[47].mxu0  ;;  %v13798_v18 = vadd.f32 %v13797_v30, %v13796_v45 }
 0x18f   : > { %v17492_v3 = vadd.f32 %v13795_v14, %v13683_v8  ;;  %v13686_v25 = vadd.f32 %v13685_v21, %v13684_v38  ;;  %v15586_v8 = vld [vmem:[%s20893_s2 + $0x110] sm:$0xff]   ;;  %v3944_v14 = vld [vmem:[%s20892_s1 + $0x98] sm:$0xff]  ;;  %14142 = vmatpush3.bf16.msra.mxu0 %v15585_v1 }
 0x190   : > { %6236 = vmatmul.mubr.bf16.gmra.mrb[140].mxu1 %v5558_v12  ;;  %v3947_v38 = vld [vmem:[%s20892_s1 + $0xb0] sm:$0xff]  ;;  %4054 = vperm.xlu1 %15259, %v3944_v14   ;;  %v15595_v14 = vld [vmem:[%s20893_s2 + $0xa8] sm:$0xff]  }
 0x191   : > { %v17507_v20 = vadd.f32 %v13798_v18, %v13686_v25  ;;  %6243 = vmatprep.mubr.bf16.mxu1 %v5568_v61  ;;  %15120 = vmatmul.mubr.bf16.gmra.mrb[144].mxu0 %v2379_v33  ;;  %v2388_v19 = vld [vmem:[#allocation3 + $0x310] sm:$0xff]  ;;  %v2397_v61 = vld [vmem:[#allocation3 + $0x358] sm:$0xff]  ;;  %v17547_v18 = vld [vmem:[%s16302_s12 + $0x88] sm:$0xff]  }
 0x192   : > { %v13799_v32 = vpop.f32.mrb[48].mxu1  ;;  %15123 = vmatprep.mubr.bf16.mxu0 %v2388_v19  ;;  %v15587_v25 = vld [vmem:[%s16302_s12 + $0x80] sm:$0xff]   ;;  %14204 = vmatpush3.bf16.msra.mxu1 %v15586_v8  ;;  %v2252_v48 = vrot.slane %v17547_v18, 1  ;;  %v3950_v18 = vld [vmem:[%s20892_s1 + $0xc8] sm:$0xff] }
 0x193   : > { %v13687_v31 = vpop.f32.mrb[48].mxu0  ;;  %v13800_v58 = vpop.f32.mrb[49].mxu1  ;;  %4069 = vperm.xlu0 %15258, %v3947_v38   ;;  %v2250_v44 = vrot.slane %v15587_v25, 1  ;;  %v3948_v25 = vld [vmem:[%s20892_s1 + $0xb8] sm:$0xff] }
 0x194   : > { %v13688_v54 = vpop.f32.mrb[49].mxu0  ;;  %v13801_v27 = vadd.f32 %v13800_v58, %v13799_v32  ;;  %v13802_v0 = vpop.f32.mrb[50].mxu1  ;;  %v15590_v32 = vld [vmem:[%s20893_s2 + $0x158] sm:$0xff]   ;;  %4064 = vperm.xlu1 %15259, %v3946_v4  }
 0x195   : > { %v13689_v60 = vadd.f32 %v13688_v54, %v13687_v31  ;;  %v13690_v63 = vpop.f32.mrb[50].mxu0  ;;  %v13803_v11 = vpop.f32.mrb[51].mxu1  ;;  %v15589_v31 = vld [vmem:[%s20893_s2 + $0xe0] sm:$0xff]   ;;  %v2251_v41 = vsel %vm1014_vm1, %v2248_v29, %v2250_v44  ;;  %14205 = vmatprep.subr.bf16.mxu1 %v15590_v32 }
 0x196   : > { %v13691_v7 = vpop.f32.mrb[51].mxu0  ;;  %v13804_v45 = vadd.f32 %v13803_v11, %v13802_v0  ;;  %14143 = vmatprep.subr.bf16.mxu0 %v15589_v31  ;;  %v15591_v54 = vld [vmem:[%s20893_s2 + $0xa0] sm:$0xff]   ;;  %2286 = vst.msk [vmem:[#allocation3 + $0x3a0] sm:$0xff] %vm600_vm0, %v2251_v41 }
 0x197   : > { %v17529_v9 = vadd.f32 %v13801_v27, %v13689_v60  ;;  %v13692_v46 = vadd.f32 %v13691_v7, %v13690_v63  ;;  %v2253_v60 = vsel %vm1014_vm1, %v2250_v44, %v2252_v48  ;;  %v15592_v27 = vld [vmem:[%s20893_s2 + $0x118] sm:$0xff]   ;;  %14144 = vmatpush3.bf16.msra.mxu0 %v15591_v54  ;;  %v15593_v7 = vld [vmem:[%s20893_s2 + $0xe8] sm:$0xff]  }
 0x198   : > { %6244 = vmatmul.mubr.bf16.gmra.mrb[144].mxu1 %v5567_v35  ;;  %2287 = vst.msk [vmem:[#allocation3 + $0x3e8] sm:$0xff] %vm600_vm0, %v2253_v60  ;;  %v3949_v35 = vld [vmem:[%s20892_s1 + $0xc0] sm:$0xff]  ;;  %14145 = vmatprep.subr.bf16.mxu0 %v15593_v7  ;;  %v15598_v54 = vld [vmem:[%s16302_s12 + $0x98] ss:$0 sps:$4 sm:$0x11]  }
 0x199   : > { %v17544_v30 = vadd.f32 %v13804_v45, %v13692_v46  ;;  %6251 = vmatprep.mubr.bf16.mxu1 %v5577_v5  ;;  %15124 = vmatmul.mubr.bf16.gmra.mrb[148].mxu0 %v2397_v61  ;;  %v15594_v46 = vld [vmem:[%s20893_s2 + $0x160] sm:$0xff]   ;;  %v5585_v61 = vld [vmem:[#allocation3 + $0x1b0] sm:$0xff]  ;;  %v2256_v4 = vrot.slane %v15598_v54, 1 }
 0x19a   : > { %v13805_v21 = vpop.f32.mrb[52].mxu1  ;;  %14206 = vmatpush3.bf16.msra.mxu1 %v15592_v27  ;;  %4079 = vperm.xlu0 %15258, %v3949_v35   ;;  %v15599_v27 = vld [vmem:[%s20893_s2 + $0xf0] sm:$0xff]  }
 0x19b   : > { %v13693_v12 = vpop.f32.mrb[52].mxu0  ;;  %v13806_v16 = vpop.f32.mrb[53].mxu1  ;;  %14207 = vmatprep.subr.bf16.mxu1 %v15594_v46  ;;  %14146 = vmatpush3.bf16.msra.mxu0 %v15595_v14 }
 0x19c   : > { %v13694_v13 = vpop.f32.mrb[53].mxu0  ;;  %v13807_v36 = vadd.f32 %v13806_v16, %v13805_v21  ;;  %v13808_v58 = vpop.f32.mrb[54].mxu1  ;;  %4074 = vperm.xlu1 %15259, %v3948_v25   ;;  %14147 = vmatprep.subr.bf16.mxu0 %v15599_v27 }
 0x19d   : > { %v13695_v33 = vadd.f32 %v13694_v13, %v13693_v12  ;;  %v13696_v37 = vpop.f32.mrb[54].mxu0  ;;  %v13809_v63 = vpop.f32.mrb[55].mxu1  ;;  %v15596_v12 = vld [vmem:[%s20893_s2 + $0x120] sm:$0xff]   ;;  %v3951_v13 = vld [vmem:[%s20892_s1 + $0xd0] sm:$0xff] }
 0x19e   : > { %v13697_v29 = vpop.f32.mrb[55].mxu0  ;;  %v13810_v5 = vadd.f32 %v13809_v63, %v13808_v58  ;;  %14208 = vmatpush3.bf16.msra.mxu1 %v15596_v12  ;;  %4089 = vperm.xlu0 %15258, %v3951_v13  }
 0x19f   : > { %v17556_v52 = vadd.f32 %v13807_v36, %v13695_v33  ;;  %v13698_v0 = vadd.f32 %v13697_v29, %v13696_v37  ;;  %v2406_v36 = vld [vmem:[#allocation3 + $0x3a0] sm:$0xff]  ;;  %v15597_v37 = vld [vmem:[%s16302_s12 + $0x90] sm:$0xff]   ;;  %s20548_s12 = scalar_lea.vmem %s20899_s8, %s15248_s14 }
 0x1a0   : > { %6252 = vmatmul.mubr.bf16.gmra.mrb[148].mxu1 %v5576_v51  ;;  %15127 = vmatprep.mubr.bf16.mxu0 %v2406_v36  ;;  %v2415_v41 = vld [vmem:[#allocation3 + $0x3e8] sm:$0xff]  ;;  %v2254_v60 = vrot.slane %v15597_v37, 1 }
 0x1a1   : > { %v17584_v11 = vadd.f32 %v13810_v5, %v13698_v0  ;;  %6259 = vmatprep.mubr.bf16.mxu1 %v5586_v42  ;;  %15128 = vmatmul.mubr.bf16.gmra.mrb[152].mxu0 %v2415_v41  ;;  %v15600_v29 = vld [vmem:[%s20893_s2 + $0x168] sm:$0xff]   ;;  %v15601_v42 = vld [vmem:[%s20893_s2 + $0xb0] sm:$0xff]   ;;  %v5534_v41 = vld [vmem:[#allocation3 + $0x18] sm:$0xff] }
 0x1a2   : > { %v13811_v1 = vpop.f32.mrb[56].mxu1  ;;  %v2255_v35 = vsel %vm1014_vm1, %v2252_v48, %v2254_v60  ;;  %v2257_v5 = vsel %vm1014_vm1, %v2254_v60, %v2256_v4  ;;  %14209 = vmatprep.subr.bf16.mxu1 %v15600_v29  ;;  %14148 = vmatpush3.bf16.msra.mxu0 %v15601_v42  ;;  %v3953_v48 = vld [vmem:[%s20892_s1 + $0xe0] sm:$0xff]  ;;  %v15606_v37 = vld [vmem:[%s20893_s2 + $0x130] sm:$0xff]   ;;  %v15607_v4 = vld [vmem:[%s20893_s2 + $0x178] sm:$0xff]  }
 0x1a3   : > { %v13699_v6 = vpop.f32.mrb[56].mxu0  ;;  %v13812_v45 = vpop.f32.mrb[57].mxu1  ;;  %2288 = vst.msk [vmem:[#allocation3 + $0x430] sm:$0xff] %vm600_vm0, %v2255_v35  ;;  %2289 = vst.msk [vmem:[#allocation3 + $0x478] sm:$0xff] %vm600_vm0, %v2257_v5  ;;  %4084 = vperm.xlu1 %15259, %v3950_v18   ;;  %4099 = vperm.xlu0 %15258, %v3953_v48   ;;  %v15608_v42 = vld [vmem:[%s20893_s2 + $0x138] sm:$0xff]  }
 0x1a4   : > { %v13700_v8 = vpop.f32.mrb[57].mxu0  ;;  %v13813_v19 = vadd.f32 %v13812_v45, %v13811_v1  ;;  %v13814_v16 = vpop.f32.mrb[58].mxu1  ;;  %v5595_v1 = vld [vmem:[#allocation3 + $0x200] sm:$0xff] }
 0x1a5   : > { %v13701_v38 = vadd.f32 %v13700_v8, %v13699_v6  ;;  %v13702_v21 = vpop.f32.mrb[58].mxu0  ;;  %v13815_v51 = vpop.f32.mrb[59].mxu1  ;;  %v15602_v6 = vld [vmem:[%s20893_s2 + $0x128] sm:$0xff]  }
 0x1a6   : > { %v13703_v33 = vpop.f32.mrb[59].mxu0  ;;  %v13816_v58 = vadd.f32 %v13815_v51, %v13814_v16  ;;  %14210 = vmatpush3.bf16.msra.mxu1 %v15602_v6  ;;  %v6726_v6 = vld [vmem:[%s20892_s1 + $0x100] sm:$0xff] }
 0x1a7   : > { %v17599_v44 = vadd.f32 %v13813_v19, %v13701_v38  ;;  %v13704_v31 = vadd.f32 %v13703_v33, %v13702_v21  ;;  %v5594_v38 = vld [vmem:[#allocation3 + $0x1f8] sm:$0xff] }
 0x1a8   : > { %6260 = vmatmul.mubr.bf16.gmra.mrb[152].mxu1 %v5585_v61  ;;  %v15603_v19 = vld [vmem:[%s20893_s2 + $0xf8] sm:$0xff]   ;;  %v15604_v61 = vld [vmem:[%s20893_s2 + $0x170] sm:$0xff]  }
 0x1a9   : > { %v17608_v63 = vadd.f32 %v13816_v58, %v13704_v31  ;;  %6267 = vmatprep.mubr.bf16.mxu1 %v5595_v1  ;;  %14149 = vmatprep.subr.bf16.mxu0 %v15603_v19  ;;  %v15605_v33 = vld [vmem:[%s20893_s2 + $0xb8] sm:$0xff]   ;;  %v5535_v1 = vld [vmem:[#allocation3 + $0x20] sm:$0xff] }
 0x1aa   : > { %v13817_v0 = vpop.f32.mrb[60].mxu1  ;;  %14211 = vmatprep.subr.bf16.mxu1 %v15604_v61  ;;  %v3952_v31 = vld [vmem:[%s20892_s1 + $0xd8] sm:$0xff]  ;;  %14150 = vmatpush3.bf16.msra.mxu0 %v15605_v33 }
 0x1ab   : > { %v13705_v32 = vpop.f32.mrb[60].mxu0  ;;  %v13818_v8 = vpop.f32.mrb[61].mxu1  ;;  %v2424_v51 = vld [vmem:[#allocation3 + $0x430] sm:$0xff]  ;;  %v2433_v60 = vld [vmem:[#allocation3 + $0x478] sm:$0xff]  ;;  %14212 = vmatpush3.bf16.msra.mxu1 %v15606_v37  ;;  %4094 = vperm.xlu1 %15259, %v3952_v31   ;;  %v5544_v31 = vld [vmem:[#allocation3 + $0x68] sm:$0xff] }
 0x1ac   : > { %v13706_v7 = vpop.f32.mrb[61].mxu0  ;;  %v13819_v45 = vadd.f32 %v13818_v8, %v13817_v0  ;;  %v13820_v12 = vpop.f32.mrb[62].mxu1  ;;  %15131 = vmatprep.mubr.bf16.mxu0 %v2424_v51  ;;  %v3954_v0 = vld [vmem:[%s20892_s1 + $0xe8] sm:$0xff]  ;;  %14213 = vmatprep.subr.bf16.mxu1 %v15607_v4  ;;  %v5542_v37 = vld [vmem:[#allocation3 + $0x58] sm:$0xff] }
 0x1ad   : > { %v13707_v46 = vadd.f32 %v13706_v7, %v13705_v32  ;;  %v13708_v14 = vpop.f32.mrb[62].mxu0  ;;  %v13821_v16 = vpop.f32.mrb[63].mxu1  ;;  %v3955_v32 = vld [vmem:[%s20892_s1 + $0xf0] sm:$0xff]  ;;  %15132 = vmatmul.mubr.bf16.gmra.mrb[156].mxu0 %v2433_v60  ;;  %v6729_v51 = vld [vmem:[%s20892_s1 + $0x118] sm:$0xff]  ;;  %v15610_v4 = vld [vmem:[%s20893_s2 + $0x180] sm:$0xff]  }
 0x1ae   : > { %v13709_v21 = vpop.f32.mrb[63].mxu0  ;;  %v13822_v36 = vadd.f32 %v13821_v16, %v13820_v12  ;;  %4109 = vperm.xlu0 %15258, %v3955_v32   ;;  %6308 = vmatprep.mubr.bf16.mxu0 %v5534_v41  ;;  %v5536_v7 = vld [vmem:[#allocation3 + $0x28] sm:$0xff]  ;;  %v6730_v16 = vld [vmem:[%s20892_s1 + $0x120] sm:$0xff] }
 0x1af   : > { %v17634_v25 = vadd.f32 %v13819_v45, %v13707_v46  ;;  %v13710_v13 = vadd.f32 %v13709_v21, %v13708_v14  ;;  %14214 = vmatpush3.bf16.msra.mxu1 %v15608_v42  ;;  %4104 = vperm.xlu1 %15259, %v3954_v0   ;;  %v5545_v46 = vld [vmem:[#allocation3 + $0x70] sm:$0xff]  ;;  %v5554_v32 = vld [vmem:[#allocation3 + $0xb8] sm:$0xff] }
 0x1b0   : > { %6268 = vmatmul.mubr.bf16.gmra.mrb[156].mxu1 %v5594_v38  ;;  %v5533_v14 = vld [vmem:[#allocation3 + $0x10] sm:$0xff] }
 0x1b1   : > { %v17648_v54 = vadd.f32 %v13822_v36, %v13710_v13  ;;  %6405 = vmatprep.mubr.bf16.mxu1 %v5536_v7  ;;  %v3956_v38 = vld [vmem:[%s20892_s1 + $0xf8] sm:$0xff]  ;;  %v6728_v45 = vld [vmem:[%s20892_s1 + $0x110] sm:$0xff] }
 0x1b2   : > { %6744 = vperm.xlu0 %15258, %v6726_v6   ;;  %v13951_v12 = vpop.f32.mrb[64].mxu1 }
 0x1b3   : > { %v13839_v58 = vpop.f32.mrb[64].mxu0  ;;  %v13952_v19 = vpop.f32.mrb[65].mxu1  ;;  %4114 = vperm.xlu1 %15259, %v3956_v38   ;;  %v15612_v38 = vld [vmem:[%s20893_s2 + $0x200] sm:$0xff]  }
 0x1b4   : > { %v13840_v27 = vpop.f32.mrb[65].mxu0  ;;  %v13953_v21 = vadd.f32 %v13952_v19, %v13951_v12  ;;  %v13954_v61 = vpop.f32.mrb[66].mxu1  ;;  %v15613_v19 = vld [vmem:[%s20893_s2 + $0x188] sm:$0xff]   ;;  %15135 = vmatprep.subr.bf16.mxu1 %v15612_v38 }
 0x1b5   : > { %v13841_v29 = vadd.f32 %v13840_v27, %v13839_v58  ;;  %v13842_v35 = vpop.f32.mrb[66].mxu0  ;;  %6309 = vmatmul.mubr.bf16.vlgmr.msra.gmra.mrb[160].mxu0 %v5533_v14  ;;  %v13955_v13 = vpop.f32.mrb[67].mxu1  ;;  %v15609_v58 = vld [vmem:[%s20893_s2 + $0x1c0] sm:$0xff]  }
 0x1b6   : > { %v13843_v5 = vpop.f32.mrb[67].mxu0  ;;  %6754 = vperm.xlu0 %15258, %v6728_v45   ;;  %v13956_v33 = vadd.f32 %v13955_v13, %v13954_v61  ;;  %14263 = vmatprep.subr.bf16.mxu0 %v15609_v58  ;;  %v6734_v45 = vld [vmem:[%s20892_s1 + $0x140] sm:$0xff]  ;;  %v6733_v61 = vld [vmem:[%s20892_s1 + $0x138] sm:$0xff]  ;;  %v15616_v58 = vld [vmem:[%s20893_s2 + $0x190] sm:$0xff]  }
 0x1b7   : > { %v3367_v18 = vadd.f32 %v13841_v29, %v17122_v62  ;;  %v13844_v48 = vadd.f32 %v13843_v5, %v13842_v35  ;;  %v5543_v62 = vld [vmem:[#allocation3 + $0x60] sm:$0xff]  ;;  %v6732_v29 = vld [vmem:[%s20892_s1 + $0x130] sm:$0xff]  ;;  %14264 = vmatpush3.bf16.msra.mxu0 %v15610_v4 }
 0x1b8   : > { %6406 = vmatmul.mubr.bf16.vlgmr.msra.gmra.mrb[160].mxu1 %v5535_v1  ;;  %6316 = vmatprep.mubr.bf16.mxu0 %v5543_v62  ;;  %v5552_v35 = vld [vmem:[#allocation3 + $0xa8] sm:$0xff]  ;;  %v5553_v62 = vld [vmem:[#allocation3 + $0xb0] sm:$0xff] }
 0x1b9   : > { %v3370_v8 = vadd.f32 %v13844_v48, %v17133_v10  ;;  %6413 = vmatprep.mubr.bf16.mxu1 %v5545_v46  ;;  %v6727_v10 = vld [vmem:[%s20892_s1 + $0x108] sm:$0xff]  ;;  %v17676_v36 = vadd.f32 %v13953_v21, %v3367_v18  ;;  %15136 = vmatpush3.bf16.msra.mxu1 %v15612_v38 }
 0x1ba   : > { %6749 = vperm.xlu1 %15259, %v6727_v10   ;;  %6764 = vperm.xlu0 %15258, %v6730_v16   ;;  %v6731_v5 = vld [vmem:[%s20892_s1 + $0x128] sm:$0xff]  ;;  %v13957_v6 = vpop.f32.mrb[68].mxu1 }
 0x1bb   : > { %v13845_v41 = vpop.f32.mrb[68].mxu0  ;;  %v17684_v60 = vadd.f32 %v13956_v33, %v3370_v8  ;;  %v13958_v1 = vpop.f32.mrb[69].mxu1  ;;  %v15611_v46 = vld [vmem:[%s20893_s2 + $0x1c8] sm:$0xff]  }
 0x1bc   : > { %v13846_v27 = vpop.f32.mrb[69].mxu0  ;;  %v13959_v8 = vadd.f32 %v13958_v1, %v13957_v6  ;;  %v13960_v14 = vpop.f32.mrb[70].mxu1  ;;  %14265 = vmatprep.subr.bf16.mxu0 %v15611_v46  ;;  %v5551_v21 = vld [vmem:[#allocation3 + $0xa0] sm:$0xff]  ;;  %v15619_v1 = vld [vmem:[%s20893_s2 + $0x198] sm:$0xff]   ;;  %v5560_v46 = vld [vmem:[#allocation3 + $0xe8] sm:$0xff] }
 0x1bd   : > { %v13847_v42 = vadd.f32 %v13846_v27, %v13845_v41  ;;  %v13848_v0 = vpop.f32.mrb[70].mxu0  ;;  %6317 = vmatmul.mubr.bf16.gmra.mrb[164].mxu0 %v5542_v37  ;;  %v13961_v12 = vpop.f32.mrb[71].mxu1  ;;  %v5563_v10 = vld [vmem:[#allocation3 + $0x100] sm:$0xff] }
 0x1be   : > { %v13849_v7 = vpop.f32.mrb[71].mxu0  ;;  %6759 = vperm.xlu1 %15259, %v6729_v51   ;;  %6774 = vperm.xlu0 %15258, %v6732_v29   ;;  %v13962_v13 = vadd.f32 %v13961_v12, %v13960_v14  ;;  %v15615_v37 = vld [vmem:[%s20893_s2 + $0x208] sm:$0xff]   ;;  %v6736_v51 = vld [vmem:[%s20892_s1 + $0x150] sm:$0xff]  ;;  %v5570_v12 = vld [vmem:[#allocation3 + $0x138] sm:$0xff] }
 0x1bf   : > { %v3375_v18 = vadd.f32 %v13847_v42, %v17156_v47  ;;  %v13850_v48 = vadd.f32 %v13849_v7, %v13848_v0  ;;  %6324 = vmatprep.mubr.bf16.mxu0 %v5552_v35  ;;  %14266 = vmatpush3.bf16.msra.mxu0 %v15613_v19  ;;  %v6735_v27 = vld [vmem:[%s20892_s1 + $0x148] sm:$0xff]  ;;  %v15617_v35 = vld [vmem:[%s20893_s2 + $0x1d8] sm:$0xff]   ;;  %v15618_v0 = vld [vmem:[%s20893_s2 + $0x210] sm:$0xff]  }
 0x1c0   : > { %6414 = vmatmul.mubr.bf16.gmra.mrb[164].mxu1 %v5544_v31  ;;  %15137 = vmatprep.subr.bf16.mxu1 %v15615_v37 }
 0x1c1   : > { %6421 = vmatprep.mubr.bf16.mxu1 %v5554_v32  ;;  %v3378_v47 = vadd.f32 %v13850_v48, %v17166_v56  ;;  %v17712_v16 = vadd.f32 %v13959_v8, %v3375_v18  ;;  %v15614_v56 = vld [vmem:[%s20893_s2 + $0x1d0] sm:$0xff]   ;;  %v5562_v18 = vld [vmem:[#allocation3 + $0xf8] sm:$0xff]  ;;  %15138 = vmatpush3.bf16.msra.mxu1 %v15615_v37 }
 0x1c2   : > { %6769 = vperm.xlu1 %15259, %v6731_v5   ;;  %6784 = vperm.xlu0 %15258, %v6734_v45   ;;  %v5561_v32 = vld [vmem:[#allocation3 + $0xf0] sm:$0xff]  ;;  %v6738_v5 = vld [vmem:[%s20892_s1 + $0x160] sm:$0xff]  ;;  %v13963_v48 = vpop.f32.mrb[72].mxu1  ;;  %v5572_v45 = vld [vmem:[#allocation3 + $0x148] sm:$0xff] }
 0x1c3   : > { %v13851_v33 = vpop.f32.mrb[72].mxu0  ;;  %v17720_v31 = vadd.f32 %v13962_v13, %v3378_v47  ;;  %14267 = vmatprep.subr.bf16.mxu0 %v15614_v56  ;;  %v6737_v8 = vld [vmem:[%s20892_s1 + $0x158] sm:$0xff]  ;;  %v13964_v38 = vpop.f32.mrb[73].mxu1  ;;  %15139 = vmatprep.subr.bf16.mxu1 %v15618_v0  ;;  %v15622_v13 = vld [vmem:[%s20893_s2 + $0x1a0] sm:$0xff]  }
 0x1c4   : > { %v13852_v41 = vpop.f32.mrb[73].mxu0  ;;  %14268 = vmatpush3.bf16.msra.mxu0 %v15616_v58  ;;  %v13966_v47 = vpop.f32.mrb[74].mxu1  ;;  %v15624_v58 = vld [vmem:[%s20893_s2 + $0x220] sm:$0xff]  }
 0x1c5   : > { %v13853_v4 = vadd.f32 %v13852_v41, %v13851_v33  ;;  %v13854_v29 = vpop.f32.mrb[74].mxu0  ;;  %6325 = vmatmul.mubr.bf16.gmra.mrb[168].mxu0 %v5551_v21  ;;  %14269 = vmatprep.subr.bf16.mxu0 %v15617_v35  ;;  %v13967_v19 = vpop.f32.mrb[75].mxu1  ;;  %v15620_v21 = vld [vmem:[%s20893_s2 + $0x1e0] sm:$0xff]   ;;  %v15623_v33 = vld [vmem:[%s20893_s2 + $0x1e8] sm:$0xff]   ;;  %v5569_v35 = vld [vmem:[#allocation3 + $0x130] sm:$0xff] }
 0x1c6   : > { %6779 = vperm.xlu1 %15259, %v6733_v61   ;;  %v13855_v42 = vpop.f32.mrb[75].mxu0  ;;  %6794 = vperm.xlu0 %15258, %v6736_v51   ;;  %v15621_v61 = vld [vmem:[%s20893_s2 + $0x218] sm:$0xff]   ;;  %v6739_v51 = vld [vmem:[%s20892_s1 + $0x168] sm:$0xff] }
 0x1c7   : > { %6332 = vmatprep.mubr.bf16.mxu0 %v5561_v32  ;;  %v3383_v6 = vadd.f32 %v13853_v4, %v17188_v22  ;;  %v13856_v7 = vadd.f32 %v13855_v42, %v13854_v29  ;;  %v6740_v22 = vld [vmem:[%s20892_s1 + $0x170] sm:$0xff]  ;;  %15140 = vmatpush3.bf16.msra.mxu1 %v15618_v0  ;;  %v5571_v32 = vld [vmem:[#allocation3 + $0x140] sm:$0xff] }
 0x1c8   : > { %6422 = vmatmul.mubr.bf16.gmra.mrb[168].mxu1 %v5553_v62  ;;  %v13965_v62 = vadd.f32 %v13964_v38, %v13963_v48  ;;  %14270 = vmatpush3.bf16.msra.mxu0 %v15619_v1  ;;  %v15625_v29 = vld [vmem:[%s20893_s2 + $0x1a8] sm:$0xff]   ;;  %v6741_v48 = vld [vmem:[%s20892_s1 + $0x178] sm:$0xff] }
 0x1c9   : > { %6429 = vmatprep.mubr.bf16.mxu1 %v5563_v10  ;;  %v3386_v14 = vadd.f32 %v13856_v7, %v17195_v34  ;;  %v13968_v34 = vadd.f32 %v13967_v19, %v13966_v47  ;;  %14271 = vmatprep.subr.bf16.mxu0 %v15620_v21  ;;  %v5579_v1 = vld [vmem:[#allocation3 + $0x180] sm:$0xff]  ;;  %v15630_v21 = vld [vmem:[%s20893_s2 + $0x230] sm:$0xff]  }
 0x1ca   : > { %6789 = vperm.xlu1 %15259, %v6735_v27   ;;  %6804 = vperm.xlu0 %15258, %v6738_v5   ;;  %v17757_v10 = vadd.f32 %v13965_v62, %v3383_v6  ;;  %v13969_v42 = vpop.f32.mrb[76].mxu1  ;;  %v5581_v5 = vld [vmem:[#allocation3 + $0x190] sm:$0xff] }
 0x1cb   : > { %v13857_v56 = vpop.f32.mrb[76].mxu0  ;;  %v17765_v37 = vadd.f32 %v13968_v34, %v3386_v14  ;;  %15141 = vmatprep.subr.bf16.mxu1 %v15621_v61  ;;  %v15626_v14 = vld [vmem:[%s20893_s2 + $0x1f0] sm:$0xff]  }
 0x1cc   : > { %v13858_v41 = vpop.f32.mrb[77].mxu0  ;;  %14272 = vmatpush3.bf16.msra.mxu0 %v15622_v13  ;;  %15142 = vmatpush3.bf16.msra.mxu1 %v15621_v61  ;;  %v15628_v62 = vld [vmem:[%s20893_s2 + $0x1b0] sm:$0xff]   ;;  %v15631_v13 = vld [vmem:[%s20893_s2 + $0x1b8] sm:$0xff]  }
 0x1cd   : > { %6333 = vmatmul.mubr.bf16.gmra.mrb[172].mxu0 %v5560_v46  ;;  %v13859_v27 = vadd.f32 %v13858_v41, %v13857_v56  ;;  %v13860_v4 = vpop.f32.mrb[78].mxu0  ;;  %14273 = vmatprep.subr.bf16.mxu0 %v15623_v33  ;;  %v5580_v34 = vld [vmem:[#allocation3 + $0x188] sm:$0xff]  ;;  %v5590_v56 = vld [vmem:[#allocation3 + $0x1d8] sm:$0xff] }
 0x1ce   : > { %6799 = vperm.xlu1 %15259, %v6737_v8   ;;  %6814 = vperm.xlu0 %15258, %v6740_v22   ;;  %v13861_v0 = vpop.f32.mrb[79].mxu0 }
 0x1cf   : > { %6340 = vmatprep.mubr.bf16.mxu0 %v5570_v12  ;;  %v3391_v6 = vadd.f32 %v13859_v27, %v17221_v2  ;;  %v13862_v7 = vadd.f32 %v13861_v0, %v13860_v4  ;;  %15143 = vmatprep.subr.bf16.mxu1 %v15624_v58  ;;  %v15627_v2 = vld [vmem:[%s20893_s2 + $0x228] sm:$0xff]  }
 0x1d0   : > { %6430 = vmatmul.mubr.bf16.gmra.mrb[172].mxu1 %v5562_v18  ;;  %v13970_v18 = vpop.f32.mrb[77].mxu1  ;;  %14274 = vmatpush3.bf16.msra.mxu0 %v15625_v29 }
 0x1d1   : > { %6437 = vmatprep.mubr.bf16.mxu1 %v5572_v45  ;;  %v13971_v46 = vadd.f32 %v13970_v18, %v13969_v42  ;;  %v13972_v8 = vpop.f32.mrb[78].mxu1  ;;  %v3394_v38 = vadd.f32 %v13862_v7, %v17228_v59  ;;  %v15629_v59 = vld [vmem:[%s20893_s2 + $0x1f8] sm:$0xff]   ;;  %15144 = vmatpush3.bf16.msra.mxu1 %v15624_v58  ;;  %v5588_v58 = vld [vmem:[#allocation3 + $0x1c8] sm:$0xff] }
 0x1d2   : > { %6809 = vperm.xlu1 %15259, %v6739_v51   ;;  %v13973_v22 = vpop.f32.mrb[79].mxu1  ;;  %14275 = vmatprep.subr.bf16.mxu0 %v15626_v14  ;;  %v5589_v7 = vld [vmem:[#allocation3 + $0x1d0] sm:$0xff]  ;;  %v458_v14 = vld [vmem:[#allocation2 + $0xc] sm:$0x1] }
 0x1d3   : > { %v13974_v45 = vadd.f32 %v13973_v22, %v13972_v8  ;;  %v17790_v47 = vadd.f32 %v13971_v46, %v3391_v6  ;;  %v13863_v19 = vpop.f32.mrb[80].mxu0  ;;  %15145 = vmatprep.subr.bf16.mxu1 %v15627_v2  ;;  %v13975_v4 = vpop.f32.mrb[80].mxu1  ;;  %v5587_v8 = vld [vmem:[#allocation3 + $0x1c0] sm:$0xff]  ;;  %v459_v22 = vsel %vm17809_vm7, 0, %v458_v14  ;;  %v5548_v14 = vld [vmem:[#allocation3 + $0x88] sm:$0xff] }
 0x1d4   : > { %v13864_v61 = vpop.f32.mrb[81].mxu0  ;;  %14276 = vmatpush3.bf16.msra.mxu0 %v15628_v62  ;;  %v13976_v42 = vpop.f32.mrb[81].mxu1  ;;  %460 = vst [vmem:[#allocation2 + $0xc] sm:$0x1] %v459_v22 }
 0x1d5   : > { %6341 = vmatmul.mubr.bf16.gmra.mrb[176].mxu0 %v5569_v35  ;;  %v17795_v12 = vadd.f32 %v13974_v45, %v3394_v38  ;;  %v13865_v33 = vadd.f32 %v13864_v61, %v13863_v19  ;;  %v13866_v51 = vpop.f32.mrb[82].mxu0  ;;  %14277 = vmatprep.subr.bf16.mxu0 %v15629_v59  ;;  %v15632_v35 = vld [vmem:[%s20893_s2 + $0x238] sm:$0xff]   ;;  %v13978_v6 = vpop.f32.mrb[82].mxu1  ;;  %v464_v38 = vld [vmem:[#allocation2 + $0xcc] sm:$0xf]  ;;  %v15633_v59 = vld [vmem:[%s20896_s5 + $0xc0] sm:$0xff]  }
 0x1d6   : > { %6819 = vperm.xlu1 %15259, %v6741_v48   ;;  %6348 = vmatprep.mubr.bf16.mxu0 %v5579_v1  ;;  %v13867_v41 = vpop.f32.mrb[83].mxu0  ;;  %v5599_v48 = vld [vmem:[#allocation3 + $0x220] sm:$0xff]  ;;  %v20908_v1 = vmov 0  ;;  %v5597_v19 = vld [vmem:[#allocation3 + $0x210] sm:$0xff] }
 0x1d7   : > { %15146 = vmatpush3.bf16.msra.mxu1 %v15627_v2  ;;  %v3399_v27 = vadd.f32 %v13865_v33, %v17256_v43  ;;  %v13868_v29 = vadd.f32 %v13867_v41, %v13866_v51  ;;  %v13979_v43 = vpop.f32.mrb[83].mxu1  ;;  %v20909_v1 = vsel %vm17809_vm7, 4294967295, %v20908_v1  ;;  %v465_v2 = vsel %vm17816_vm8, 0, %v464_v38 }
 0x1d8   : > { %6438 = vmatmul.mubr.bf16.gmra.mrb[176].mxu1 %v5571_v32  ;;  %v5578_v32 = vld [vmem:[#allocation3 + $0x178] sm:$0xff]  ;;  %15147 = vmatprep.subr.bf16.mxu1 %v15630_v21  ;;  %v13980_v18 = vadd.f32 %v13979_v43, %v13978_v6  ;;  %20910 = vst [vmem:[#allocation4_spill] sm:$0xff] %v20909_v1  ;;  %466 = vst [vmem:[#allocation2 + $0xcc] sm:$0xf] %v465_v2  ;;  %v5596_v6 = vld [vmem:[#allocation3 + $0x208] sm:$0xff] }
 0x1d9   : > { %6445 = vmatprep.mubr.bf16.mxu1 %v5581_v5  ;;  %14278 = vmatpush3.bf16.msra.mxu0 %v15631_v13  ;;  %v3402_v0 = vadd.f32 %v13868_v29, %v17262_v53  ;;  %v13977_v5 = vadd.f32 %v13976_v42, %v13975_v4  ;;  %v20911_v53 = vmov 0  ;;  %v15635_v13 = vld [vmem:[%s20896_s5 + $0x40] sm:$0xff]  }
 0x1da   : > { %v20912_v53 = vsel %vm17816_vm8, 4294967295, %v20911_v53  ;;  %14455 = vmatprep.subr.bf16.mxu0 %v15633_v59  ;;  %v5598_v4 = vld [vmem:[#allocation3 + $0x218] sm:$0xff]  ;;  %v5537_v59 = vld [vmem:[#allocation3 + $0x30] sm:$0xff] }
 0x1db   : > { %15148 = vmatpush3.bf16.msra.mxu1 %v15630_v21  ;;  %v17813_v46 = vadd.f32 %v13977_v5, %v3399_v27  ;;  %20913 = vst [vmem:[#allocation5_spill] sm:$0xff] %v20912_v53  ;;  %v17824_v45 = vadd.f32 %v13980_v18, %v3402_v0  ;;  %v13869_v62 = vpop.f32.mrb[84].mxu0  ;;  %v5539_v0 = vld [vmem:[#allocation3 + $0x40] sm:$0xff]  ;;  %v5538_v43 = vld [vmem:[#allocation3 + $0x38] sm:$0xff] }
 0x1dc   : > { %15149 = vmatprep.subr.bf16.mxu1 %v15632_v35  ;;  %v13870_v21 = vpop.f32.mrb[85].mxu0 }
 0x1dd   : > { %6349 = vmatmul.mubr.bf16.gmra.mrb[180].mxu0 %v5578_v32  ;;  %v13872_v61 = vpop.f32.mrb[86].mxu0 }
 0x1de   : > { %6356 = vmatprep.mubr.bf16.mxu0 %v5588_v58  ;;  %v13873_v33 = vpop.f32.mrb[87].mxu0 }
 0x1df   : > { %15150 = vmatpush3.bf16.msra.mxu1 %v15632_v35  ;;  %v13874_v32 = vadd.f32 %v13873_v33, %v13872_v61  ;;  %v15639_v33 = vld [vmem:[%s20896_s5 + $0x48] sm:$0xff]  }
 0x1e0   : > { %6446 = vmatmul.mubr.bf16.gmra.mrb[180].mxu1 %v5580_v34  ;;  %v13871_v34 = vadd.f32 %v13870_v21, %v13869_v62  ;;  %14343 = vmatprep.subr.bf16.mxu1 %v15635_v13  ;;  %v5557_v62 = vld [vmem:[#allocation3 + $0xd0] sm:$0xff]  ;;  %v15636_v21 = vld [vmem:[%s20896_s5] sm:$0xff]  }
 0x1e1   : > { %6453 = vmatprep.mubr.bf16.mxu1 %v5590_v56  ;;  %v13981_v56 = vpop.f32.mrb[84].mxu1  ;;  %v3410_v29 = vadd.f32 %v13874_v32, %v17291_v28 }
 0x1e2   : > { %v3407_v51 = vadd.f32 %v13871_v34, %v17286_v24  ;;  %v13982_v41 = vpop.f32.mrb[85].mxu1 }
 0x1e3   : > { %v13983_v58 = vadd.f32 %v13982_v41, %v13981_v56  ;;  %v13984_v27 = vpop.f32.mrb[86].mxu1  ;;  %v5547_v56 = vld [vmem:[#allocation3 + $0x80] sm:$0xff] }
 0x1e4   : > { %v13985_v35 = vpop.f32.mrb[87].mxu1  ;;  %v15637_v41 = vld [vmem:[%s20896_s5 + $0xc8] sm:$0xff]  }
 0x1e5   : > { %6357 = vmatmul.mubr.bf16.gmra.mrb[184].mxu0 %v5587_v8  ;;  %v13986_v42 = vadd.f32 %v13985_v35, %v13984_v27  ;;  %v17834_v5 = vadd.f32 %v13983_v58, %v3407_v51  ;;  %v13987_v22 = vpop.f32.mrb[88].mxu1  ;;  %v15643_v27 = vld [vmem:[%s20896_s5 + $0x50] sm:$0xff]   ;;  %v15638_v35 = vld [vmem:[%s20896_s5 + $0x88] sm:$0xff]  }
 0x1e6   : > { %6364 = vmatprep.mubr.bf16.mxu0 %v5597_v19  ;;  %v13988_v19 = vpop.f32.mrb[89].mxu1 }
 0x1e7   : > { %v17836_v18 = vadd.f32 %v13986_v42, %v3410_v29  ;;  %v13989_v61 = vadd.f32 %v13988_v19, %v13987_v22  ;;  %v13990_v13 = vpop.f32.mrb[90].mxu1  ;;  %v5566_v29 = vld [vmem:[#allocation3 + $0x118] sm:$0xff]  ;;  %v15642_v22 = vld [vmem:[%s20896_s5 + $0x90] sm:$0xff]  }
 0x1e8   : > { %6454 = vmatmul.mubr.bf16.gmra.mrb[184].mxu1 %v5589_v7  ;;  %v13875_v7 = vpop.f32.mrb[88].mxu0  ;;  %v13991_v51 = vpop.f32.mrb[91].mxu1  ;;  %v15646_v19 = vld [vmem:[%s20896_s5 + $0x98] sm:$0xff]  }
 0x1e9   : > { %6461 = vmatprep.mubr.bf16.mxu1 %v5599_v48  ;;  %v13876_v24 = vpop.f32.mrb[89].mxu0  ;;  %v13992_v32 = vadd.f32 %v13991_v51, %v13990_v13  ;;  %v5584_v13 = vld [vmem:[#allocation3 + $0x1a8] sm:$0xff] }
 0x1ea   : > { %v13877_v48 = vadd.f32 %v13876_v24, %v13875_v7  ;;  %v13878_v8 = vpop.f32.mrb[90].mxu0  ;;  %v15644_v24 = vld [vmem:[%s20896_s5 + $0x10] sm:$0xff]  }
 0x1eb   : > { %v13879_v38 = vpop.f32.mrb[91].mxu0 }
 0x1ec   : > { %v3415_v28 = vadd.f32 %v13877_v48, %v17319_v50  ;;  %v13880_v2 = vadd.f32 %v13879_v38, %v13878_v8  ;;  %v15634_v50 = vld [vmem:[%s20896_s5 + $0x80] sm:$0xff]   ;;  %v13881_v42 = vpop.f32.mrb[92].mxu0  ;;  %v15647_v38 = vld [vmem:[%s20896_s5 + $0x58] sm:$0xff]  }
 0x1ed   : > { %6365 = vmatmul.mubr.bf16.gmra.mrb[188].mxu0 %v5596_v6  ;;  %v15641_v6 = vld [vmem:[%s20896_s5 + $0xd0] sm:$0xff]   ;;  %v13882_v7 = vpop.f32.mrb[93].mxu0 }
 0x1ee   : > { %6502 = vmatprep.mubr.bf16.mxu0 %v5538_v43  ;;  %v3418_v34 = vadd.f32 %v13880_v2, %v17327_v17  ;;  %v17852_v58 = vadd.f32 %v13989_v61, %v3415_v28  ;;  %v15640_v17 = vld [vmem:[%s20896_s5 + $0x8] sm:$0xff]   ;;  %v5546_v43 = vld [vmem:[#allocation3 + $0x78] sm:$0xff]  ;;  %v13883_v48 = vadd.f32 %v13882_v7, %v13881_v42  ;;  %v13884_v8 = vpop.f32.mrb[94].mxu0  ;;  %v13993_v61 = vpop.f32.mrb[92].mxu1 }
 0x1ef   : > { %v13885_v28 = vpop.f32.mrb[95].mxu0 }
 0x1f0   : > { %6462 = vmatmul.mubr.bf16.gmra.mrb[188].mxu1 %v5598_v4  ;;  %v17860_v4 = vadd.f32 %v13992_v32, %v3418_v34  ;;  %v3423_v2 = vadd.f32 %v13883_v48, %v17355_v49  ;;  %v15651_v34 = vld [vmem:[%s20896_s5 + $0x60] sm:$0xff]   ;;  %v15655_v32 = vld [vmem:[%s20896_s5 + $0x68] sm:$0xff]  }
 0x1f1   : > { %15151 = vmatprep.mubr.bf16.mxu1 %v5539_v0  ;;  %v5575_v0 = vld [vmem:[#allocation3 + $0x160] sm:$0xff] }
 0x1f2   : > { %v15650_v48 = vld [vmem:[%s20896_s5 + $0xa0] sm:$0xff]  }
 0x1f3   : > { %v13887_v51 = vpop.f32.mrb[96].mxu0 }
 0x1f5   : > { %6503 = vmatmul.mubr.bf16.vlgmr.msra.gmra.mrb[192].mxu0 %v5537_v59  ;;  %v15645_v59 = vld [vmem:[%s20896_s5 + $0xd8] sm:$0xff]  }
 0x1f6   : > { %6510 = vmatprep.mubr.bf16.mxu0 %v5547_v56  ;;  %14456 = vmatpush3.bf16.msra.mxu0 %v15634_v50  ;;  %v15649_v56 = vld [vmem:[%s20896_s5 + $0xe0] sm:$0xff]   ;;  %v5593_v50 = vld [vmem:[#allocation3 + $0x1f0] sm:$0xff] }
 0x1f7   : > { %14457 = vmatprep.subr.bf16.mxu0 %v15637_v41 }
 0x1f8   : > { %15152 = vmatmul.mubr.bf16.vlgmr.msra.gmra.mrb[192].mxu1 %v5548_v14  ;;  %v5556_v14 = vld [vmem:[#allocation3 + $0xc8] sm:$0xff] }
 0x1f9   : > { %15155 = vmatprep.mubr.bf16.mxu1 %v5557_v62  ;;  %14344 = vmatpush3.bf16.msra.mxu1 %v15636_v21  ;;  %v13886_v62 = vadd.f32 %v13885_v28, %v13884_v8  ;;  %v15648_v21 = vld [vmem:[%s20896_s5 + $0x18] sm:$0xff]  }
 0x1fa   : > { %14345 = vmatprep.subr.bf16.mxu1 %v15639_v33  ;;  %14458 = vmatpush3.bf16.msra.mxu0 %v15638_v35  ;;  %v13994_v33 = vpop.f32.mrb[93].mxu1 }
 0x1fb   : > { %14459 = vmatprep.subr.bf16.mxu0 %v15641_v6  ;;  %v3426_v49 = vadd.f32 %v13886_v62, %v17361_v55  ;;  %v15652_v55 = vld [vmem:[%s20896_s5 + $0x20] sm:$0xff]   ;;  %v13995_v41 = vadd.f32 %v13994_v33, %v13993_v61  ;;  %v5565_v6 = vld [vmem:[#allocation3 + $0x110] sm:$0xff] }
 0x1fc   : > { %v15658_v33 = vld [vmem:[%s20896_s5 + $0xb0] sm:$0xff]  }
 0x1fd   : > { %14346 = vmatpush3.bf16.msra.mxu1 %v15640_v17  ;;  %6511 = vmatmul.mubr.bf16.gmra.mrb[196].mxu0 %v5546_v43  ;;  %v13996_v17 = vpop.f32.mrb[94].mxu1 }
 0x1fe   : > { %14347 = vmatprep.subr.bf16.mxu1 %v15643_v27  ;;  %6518 = vmatprep.mubr.bf16.mxu0 %v5556_v14  ;;  %v5555_v27 = vld [vmem:[#allocation3 + $0xc0] sm:$0xff]  ;;  %v13997_v35 = vpop.f32.mrb[95].mxu1 }
 0x1ff   : > { %14460 = vmatpush3.bf16.msra.mxu0 %v15642_v22  ;;  %v13998_v43 = vadd.f32 %v13997_v35, %v13996_v17  ;;  %v15656_v22 = vld [vmem:[%s20896_s5 + $0x28] sm:$0xff]   ;;  %v5574_v17 = vld [vmem:[#allocation3 + $0x158] sm:$0xff] }
 0x200   : > { %15156 = vmatmul.mubr.bf16.gmra.mrb[196].mxu1 %v5566_v29  ;;  %14461 = vmatprep.subr.bf16.mxu0 %v15645_v59  ;;  %v13888_v29 = vpop.f32.mrb[97].mxu0  ;;  %v5602_v59 = vld [vmem:[#allocation3 + $0x238] sm:$0xff] }
 0x201   : > { %15159 = vmatprep.mubr.bf16.mxu1 %v5575_v0  ;;  %14348 = vmatpush3.bf16.msra.mxu1 %v15644_v24  ;;  %v13889_v42 = vadd.f32 %v13888_v29, %v13887_v51  ;;  %v13890_v0 = vpop.f32.mrb[98].mxu0  ;;  %v17900_v24 = vadd.f32 %v13995_v41, %v3423_v2  ;;  %v17909_v28 = vadd.f32 %v13998_v43, %v3426_v49  ;;  %v15660_v51 = vld [vmem:[%s20896_s5 + $0x30] sm:$0xff]  }
 0x202   : > { %14349 = vmatprep.subr.bf16.mxu1 %v15647_v38  ;;  %v13891_v7 = vpop.f32.mrb[99].mxu0  ;;  %v15653_v38 = vld [vmem:[%s20896_s5 + $0xe8] sm:$0xff]  }
 0x203   : > { %14462 = vmatpush3.bf16.msra.mxu0 %v15646_v19  ;;  %v3431_v8 = vadd.f32 %v13889_v42, %v17387_v23  ;;  %v13892_v14 = vadd.f32 %v13891_v7, %v13890_v0  ;;  %v15659_v23 = vld [vmem:[%s20896_s5 + $0x70] sm:$0xff]   ;;  %v15654_v19 = vld [vmem:[%s20896_s5 + $0xa8] sm:$0xff]   ;;  %v15665_v0 = vld [vmem:[%s20896_s5 + $0x38] sm:$0xff]  }
 0x204   : > { %14463 = vmatprep.subr.bf16.mxu0 %v15649_v56 }
 0x205   : > { %14350 = vmatpush3.bf16.msra.mxu1 %v15648_v21  ;;  %6519 = vmatmul.mubr.bf16.gmra.mrb[200].mxu0 %v5555_v27  ;;  %v3434_v2 = vadd.f32 %v13892_v14, %v17400_v39  ;;  %v15657_v21 = vld [vmem:[%s20896_s5 + $0xf0] sm:$0xff]   ;;  %v15661_v27 = vld [vmem:[%s20896_s5 + $0xf8] sm:$0xff]  }
 0x206   : > { %14351 = vmatprep.subr.bf16.mxu1 %v15651_v34  ;;  %6526 = vmatprep.mubr.bf16.mxu0 %v5565_v6  ;;  %v13893_v34 = vpop.f32.mrb[100].mxu0 }
 0x207   : > { %14464 = vmatpush3.bf16.msra.mxu0 %v15650_v48  ;;  %v13894_v56 = vpop.f32.mrb[101].mxu0 }
 0x208   : > { %15160 = vmatmul.mubr.bf16.gmra.mrb[200].mxu1 %v5584_v13  ;;  %14465 = vmatprep.subr.bf16.mxu0 %v15653_v38  ;;  %v5564_v13 = vld [vmem:[#allocation3 + $0x108] sm:$0xff]  ;;  %v13896_v41 = vpop.f32.mrb[102].mxu0 }
 0x209   : > { %15163 = vmatprep.mubr.bf16.mxu1 %v5593_v50  ;;  %14352 = vmatpush3.bf16.msra.mxu1 %v15652_v55  ;;  %v15663_v50 = vld [vmem:[%s20896_s5 + $0x78] sm:$0xff]   ;;  %v13897_v35 = vpop.f32.mrb[103].mxu0 }
 0x20a   : > { %14353 = vmatprep.subr.bf16.mxu1 %v15655_v32  ;;  %v13895_v32 = vadd.f32 %v13894_v56, %v13893_v34  ;;  %v13898_v43 = vadd.f32 %v13897_v35, %v13896_v41 }
 0x20b   : > { %v13999_v62 = vpop.f32.mrb[96].mxu1  ;;  %14466 = vmatpush3.bf16.msra.mxu0 %v15654_v19 }
 0x20c   : > { %v14000_v49 = vpop.f32.mrb[97].mxu1  ;;  %v3439_v6 = vadd.f32 %v13895_v32, %v17442_v15  ;;  %14467 = vmatprep.subr.bf16.mxu0 %v15657_v21  ;;  %v3442_v48 = vadd.f32 %v13898_v43, %v17454_v40  ;;  %v5573_v40 = vld [vmem:[#allocation3 + $0x150] sm:$0xff] }
 0x20d   : > { %v14001_v39 = vadd.f32 %v14000_v49, %v13999_v62  ;;  %v14002_v61 = vpop.f32.mrb[98].mxu1  ;;  %14354 = vmatpush3.bf16.msra.mxu1 %v15656_v22  ;;  %6527 = vmatmul.mubr.bf16.gmra.mrb[204].mxu0 %v5564_v13  ;;  %v5583_v13 = vld [vmem:[#allocation3 + $0x1a0] sm:$0xff] }
 0x20e   : > { %v14003_v55 = vpop.f32.mrb[99].mxu1  ;;  %14355 = vmatprep.subr.bf16.mxu1 %v15659_v23  ;;  %6534 = vmatprep.mubr.bf16.mxu0 %v5574_v17 }
 0x20f   : > { %v14004_v29 = vadd.f32 %v14003_v55, %v14002_v61  ;;  %v17936_v42 = vadd.f32 %v14001_v39, %v3431_v8  ;;  %14468 = vmatpush3.bf16.msra.mxu0 %v15658_v33  ;;  %v15662_v8 = vld [vmem:[%s20896_s5 + $0xb8] sm:$0xff]  }
 0x210   : > { %15164 = vmatmul.mubr.bf16.gmra.mrb[204].mxu1 %v5602_v59  ;;  %14469 = vmatprep.subr.bf16.mxu0 %v15661_v27 }
 0x211   : > { %v17942_v7 = vadd.f32 %v14004_v29, %v3434_v2  ;;  %14356 = vmatpush3.bf16.msra.mxu1 %v15660_v51 }
 0x212   : > { %14357 = vmatprep.subr.bf16.mxu1 %v15663_v50 }
 0x213   : > { %v14005_v14 = vpop.f32.mrb[100].mxu1  ;;  %14470 = vmatpush3.bf16.msra.mxu0 %v15662_v8 }
 0x214   : > { %v14006_v38 = vpop.f32.mrb[101].mxu1  ;;  %v13899_v22 = vpop.f32.mrb[104].mxu0 }
 0x215   : > { %v14007_v15 = vadd.f32 %v14006_v38, %v14005_v14  ;;  %v14008_v23 = vpop.f32.mrb[102].mxu1  ;;  %v13900_v62 = vpop.f32.mrb[105].mxu0  ;;  %14358 = vmatpush3.bf16.msra.mxu1 %v15665_v0  ;;  %6535 = vmatmul.mubr.bf16.gmra.mrb[208].mxu0 %v5573_v40  ;;  %v5582_v0 = vld [vmem:[#allocation3 + $0x198] sm:$0xff]  ;;  %v5592_v14 = vld [vmem:[#allocation3 + $0x1e8] sm:$0xff] }
 0x216   : > { %v14009_v2 = vpop.f32.mrb[103].mxu1  ;;  %v13901_v59 = vadd.f32 %v13900_v62, %v13899_v22  ;;  %v13902_v19 = vpop.f32.mrb[106].mxu0  ;;  %6542 = vmatprep.mubr.bf16.mxu0 %v5583_v13 }
 0x217   : > { %v14010_v21 = vadd.f32 %v14009_v2, %v14008_v23  ;;  %v13903_v49 = vpop.f32.mrb[107].mxu0  ;;  %v17948_v34 = vadd.f32 %v14007_v15, %v3439_v6 }
 0x218   : > { %v3447_v39 = vadd.f32 %v13901_v59, %v17468_v57  ;;  %v13904_v61 = vadd.f32 %v13903_v49, %v13902_v19  ;;  %v15671_v19 = vld [vmem:[%s20896_s5 + $0x140] sm:$0xff]  }
 0x219   : > { %v17951_v56 = vadd.f32 %v14010_v21, %v3442_v48  ;;  %v5591_v49 = vld [vmem:[#allocation3 + $0x1e0] sm:$0xff]  ;;  %14567 = vmatprep.subr.bf16.mxu1 %v15671_v19 }
 0x21a   : > { %v3450_v33 = vadd.f32 %v13904_v61, %v17486_v26 }
 0x21b   : > { %v14011_v51 = vpop.f32.mrb[104].mxu1 }
 0x21c   : > { %v14012_v50 = vpop.f32.mrb[105].mxu1  ;;  %v13905_v55 = vpop.f32.mrb[108].mxu0 }
 0x21d   : > { %v14013_v32 = vadd.f32 %v14012_v50, %v14011_v51  ;;  %v14014_v41 = vpop.f32.mrb[106].mxu1  ;;  %v13906_v17 = vpop.f32.mrb[109].mxu0  ;;  %6543 = vmatmul.mubr.bf16.gmra.mrb[212].mxu0 %v5582_v0 }
 0x21e   : > { %v14015_v27 = vpop.f32.mrb[107].mxu1  ;;  %v13907_v29 = vadd.f32 %v13906_v17, %v13905_v55  ;;  %v13908_v6 = vpop.f32.mrb[110].mxu0  ;;  %6550 = vmatprep.mubr.bf16.mxu0 %v5592_v14 }
 0x21f   : > { %v14016_v35 = vadd.f32 %v14015_v27, %v14014_v41  ;;  %v17954_v57 = vadd.f32 %v14013_v32, %v3447_v39  ;;  %v13909_v48 = vpop.f32.mrb[111].mxu0 }
 0x220   : > { %v3455_v43 = vadd.f32 %v13907_v29, %v17492_v3  ;;  %v13910_v8 = vadd.f32 %v13909_v48, %v13908_v6 }
 0x221   : > { %v17957_v26 = vadd.f32 %v14016_v35, %v3450_v33  ;;  %v5601_v33 = vld [vmem:[#allocation3 + $0x230] sm:$0xff] }
 0x222   : > { %v3458_v22 = vadd.f32 %v13910_v8, %v17507_v20 }
 0x223   : > { %v14017_v38 = vpop.f32.mrb[108].mxu1 }
 0x224   : > { %v14018_v15 = vpop.f32.mrb[109].mxu1  ;;  %v13911_v23 = vpop.f32.mrb[112].mxu0 }
 0x225   : > { %v14019_v62 = vadd.f32 %v14018_v15, %v14017_v38  ;;  %v14020_v2 = vpop.f32.mrb[110].mxu1  ;;  %v13912_v59 = vpop.f32.mrb[113].mxu0  ;;  %6551 = vmatmul.mubr.bf16.gmra.mrb[216].mxu0 %v5591_v49 }
 0x226   : > { %v14021_v3 = vpop.f32.mrb[111].mxu1  ;;  %v13913_v21 = vadd.f32 %v13912_v59, %v13911_v23  ;;  %v13914_v39 = vpop.f32.mrb[114].mxu0  ;;  %6558 = vmatprep.mubr.bf16.mxu0 %v5601_v33 }
 0x227   : > { %v14022_v40 = vadd.f32 %v14021_v3, %v14020_v2  ;;  %v17963_v61 = vadd.f32 %v14019_v62, %v3455_v43  ;;  %v13915_v13 = vpop.f32.mrb[115].mxu0 }
 0x228   : > { %v3463_v20 = vadd.f32 %v13913_v21, %v17529_v9  ;;  %v13916_v51 = vadd.f32 %v13915_v13, %v13914_v39  ;;  %v5600_v9 = vld [vmem:[#allocation3 + $0x228] sm:$0xff] }
 0x229   : > { %v17966_v50 = vadd.f32 %v14022_v40, %v3458_v22 }
 0x22a   : > { %v3466_v32 = vadd.f32 %v13916_v51, %v17544_v30 }
 0x22b   : > { %v14023_v55 = vpop.f32.mrb[112].mxu1 }
 0x22c   : > { %v14024_v41 = vpop.f32.mrb[113].mxu1  ;;  %v13917_v17 = vpop.f32.mrb[116].mxu0 }
 0x22d   : > { %v14025_v27 = vadd.f32 %v14024_v41, %v14023_v55  ;;  %v14026_v29 = vpop.f32.mrb[114].mxu1  ;;  %v13918_v35 = vpop.f32.mrb[117].mxu0  ;;  %6559 = vmatmul.mubr.bf16.gmra.mrb[220].mxu0 %v5600_v9 }
 0x22e   : > { %v14027_v0 = vpop.f32.mrb[115].mxu1  ;;  %v13919_v6 = vadd.f32 %v13918_v35, %v13917_v17  ;;  %v13920_v43 = vpop.f32.mrb[118].mxu0 }
 0x22f   : > { %v14028_v48 = vadd.f32 %v14027_v0, %v14026_v29  ;;  %v13921_v14 = vpop.f32.mrb[119].mxu0  ;;  %v17969_v8 = vadd.f32 %v14025_v27, %v3463_v20  ;;  %v17981_v35 = vpop.permute.xlu0 %3959 }
 0x230   : > { %v3471_v38 = vadd.f32 %v13919_v6, %v17556_v52  ;;  %v13922_v22 = vadd.f32 %v13921_v14, %v13920_v43 }
 0x231   : > { %v17972_v15 = vadd.f32 %v14028_v48, %v3466_v32 }
 0x232   : > { %v3474_v30 = vadd.f32 %v13922_v22, %v17584_v11 }
 0x233   : > { %v14029_v23 = vpop.f32.mrb[116].mxu1 }
 0x234   : > { %v14030_v62 = vpop.f32.mrb[117].mxu1  ;;  %v13923_v2 = vpop.f32.mrb[120].mxu0 }
 0x235   : > { %v14031_v59 = vadd.f32 %v14030_v62, %v14029_v23  ;;  %v14032_v19 = vpop.f32.mrb[118].mxu1  ;;  %v13924_v40 = vpop.f32.mrb[121].mxu0 }
 0x236   : > { %v14033_v3 = vpop.f32.mrb[119].mxu1  ;;  %v13925_v39 = vadd.f32 %v13924_v40, %v13923_v2  ;;  %v13926_v20 = vpop.f32.mrb[122].mxu0 }
 0x237   : > { %v14034_v21 = vadd.f32 %v14033_v3, %v14032_v19  ;;  %v17975_v49 = vadd.f32 %v14031_v59, %v3471_v38  ;;  %v13927_v13 = vpop.f32.mrb[123].mxu0  ;;  %v17989_v2 = vpop.permute.xlu0 %3964 }
 0x238   : > { %v3479_v33 = vadd.f32 %v13925_v39, %v17599_v44  ;;  %v13928_v51 = vadd.f32 %v13927_v13, %v13926_v20  ;;  %v3970_v40 = vpop.permute.xlu1 %3969 }
 0x239   : > { %v17977_v52 = vadd.f32 %v14034_v21, %v3474_v30  ;;  %v15669_v30 = vld [vmem:[#allocation2] sm:$0xff]  }
 0x23a   : > { %v3482_v11 = vadd.f32 %v13928_v51, %v17608_v63  ;;  %v17994_v21 = vld [vmem:[%s20894_s3] ss:$0 sm:$0xff] }
 0x23b   : > { %v14035_v55 = vpop.f32.mrb[120].mxu1 }
 0x23c   : > { %v14036_v32 = vpop.f32.mrb[121].mxu1  ;;  %v13929_v41 = vpop.f32.mrb[124].mxu0 }
 0x23d   : > { %v14037_v17 = vadd.f32 %v14036_v32, %v14035_v55  ;;  %v14038_v27 = vpop.f32.mrb[122].mxu1  ;;  %v13930_v6 = vpop.f32.mrb[125].mxu0  ;;  %v18004_v55 = vld [vmem:[#allocation2] sm:$0xfe]  }
 0x23e   : > { %v14039_v29 = vpop.f32.mrb[123].mxu1  ;;  %v13931_v48 = vadd.f32 %v13930_v6, %v13929_v41  ;;  %v13932_v9 = vpop.f32.mrb[126].mxu0  ;;  %v7328_v6 = vshrl.u32 %v15669_v30, 16 }
 0x23f   : > { %v14040_v0 = vadd.f32 %v14039_v29, %v14038_v27  ;;  %v17983_v43 = vadd.f32 %v14037_v17, %v3479_v33  ;;  %v13933_v14 = vpop.f32.mrb[127].mxu0 }
 0x240   : > { %v3487_v44 = vadd.f32 %v13931_v48, %v17634_v25  ;;  %v13934_v22 = vadd.f32 %v13933_v14, %v13932_v9  ;;  %v17999_v25 = vld [vmem:[%s20895_s4] ss:$0 sm:$0xff] }
 0x241   : > { %v17985_v38 = vadd.f32 %v14040_v0, %v3482_v11  ;;  %v15697_v11 = vld [vmem:[%s20896_s5 + $0x1c0] sm:$0xff]  }
 0x242   : > { %v3490_v23 = vadd.f32 %v13934_v22, %v17648_v54  ;;  %v7330_v54 = vshll.u32 %v15669_v30, 16  ;;  %14679 = vmatprep.subr.bf16.mxu0 %v15697_v11 }
 0x243   : > { %v14041_v63 = vpop.f32.mrb[124].mxu1 }
 0x244   : > { %v14042_v62 = vpop.f32.mrb[125].mxu1  ;;  %v15105_v20 = vpop.f32.mrb[128].mxu0  ;;  %v7332_v14 = vrot.slane %v7330_v54, 1 }
 0x245   : > { %v14043_v59 = vadd.f32 %v14042_v62, %v14041_v63  ;;  %v14044_v19 = vpop.f32.mrb[126].mxu1  ;;  %v3697_v33 = vadd.f32 %v15105_v20, %v17712_v16  ;;  %v3688_v51 = vpop.f32.mrb[129].mxu0 }
 0x246   : > { %v14045_v3 = vpop.f32.mrb[127].mxu1  ;;  %v3689_v32 = vadd.f32 %v3688_v51, %v17676_v36  ;;  %v15106_v41 = vpop.f32.mrb[130].mxu0  ;;  %v18028_v11 = vor.u32 %v7332_v14, %v7328_v6 }
 0x247   : > { %v14046_v39 = vadd.f32 %v14045_v3, %v14044_v19  ;;  %v18001_v13 = vadd.f32 %v14043_v59, %v3487_v44  ;;  %v3824_v27 = vmul.f32 %v17994_v21, %v3697_v33  ;;  %v3700_v29 = vadd.f32 %v15106_v41, %v17720_v31  ;;  %v3691_v0 = vpop.f32.mrb[131].mxu0  ;;  %v18014_v16 = vpop.permute.xlu0 %3979 }
 0x248   : > { %v3822_v48 = vmul.f32 %v17994_v21, %v3689_v32  ;;  %v3692_v9 = vadd.f32 %v3691_v0, %v17684_v60 }
 0x249   : > { %v18010_v17 = vadd.f32 %v14046_v39, %v3490_v23  ;;  %v3863_v36 = vadd.f32 %v17999_v25, %v3824_v27  ;;  %v3825_v22 = vmul.f32 %v17994_v21, %v3700_v29  ;;  %v3975_v23 = vpop.permute.xlu1 %3974 }
 0x24a   : > { %v3861_v62 = vadd.f32 %v17999_v25, %v3822_v48  ;;  %v3823_v31 = vmul.f32 %v17994_v21, %v3692_v9 }
 0x24b   : > { %v14087_v44 = vpop.f32.mrb[128].mxu1  ;;  %v3895_v19 = vmax.f32 %v3863_v36, 0.0  ;;  %v3864_v3 = vadd.f32 %v17999_v25, %v3825_v22  ;;  %v3990_v9 = vpop.permute.xlu0 %3989 }
 0x24c   : > { %v14088_v63 = vpop.f32.mrb[129].mxu1  ;;  %v15109_v60 = vpop.f32.mrb[132].mxu0  ;;  %v3893_v20 = vmax.f32 %v3861_v62, 0.0  ;;  %v3862_v54 = vadd.f32 %v17999_v25, %v3823_v31 }
 0x24d   : > { %v18022_v30 = vadd.f32 %v14088_v63, %v14087_v44  ;;  %v14090_v59 = vpop.f32.mrb[130].mxu1  ;;  %v3713_v33 = vadd.f32 %v15109_v60, %v17790_v47  ;;  %v3704_v51 = vpop.f32.mrb[133].mxu0  ;;  %v4119_v41 = vmul.f32 %v3970_v40, %v3895_v19  ;;  %v3896_v27 = vmax.f32 %v3864_v3, 0.0 }
 0x24e   : > { %v14091_v32 = vpop.f32.mrb[131].mxu1  ;;  %v3705_v29 = vadd.f32 %v3704_v51, %v17757_v10  ;;  %v15110_v0 = vpop.f32.mrb[134].mxu0  ;;  %v4117_v44 = vmul.f32 %v17981_v35, %v3893_v20  ;;  %v3894_v36 = vmax.f32 %v3862_v54, 0.0 }
 0x24f   : > { %20914 = vst [vmem:[#allocation6_spill] sm:$0xff] %v18022_v30  ;;  %v18031_v48 = vadd.f32 %v14091_v32, %v14090_v59  ;;  %v3828_v22 = vmul.f32 %v17994_v21, %v3713_v33  ;;  %v3716_v63 = vadd.f32 %v15110_v0, %v17795_v12  ;;  %v3707_v47 = vpop.f32.mrb[135].mxu0  ;;  %v13553_v62 = vpack.c.bf16 %v4119_v41, %v4119_v41  ;;  %v18040_v10 = vpop.permute.xlu1 %3984 }
 0x250   : > { %v4120_v6 = vmul.f32 %v3975_v23, %v3896_v27  ;;  %v3826_v14 = vmul.f32 %v17994_v21, %v3705_v29  ;;  %v18038_v40 = vadd.f32 %v3707_v47, %v17765_v37  ;;  %v13551_v31 = vpack.c.bf16 %v4117_v44, %v4117_v44 }
 0x251   : > { %20915 = vst [vmem:[#allocation7_spill] sm:$0xff] %v18031_v48  ;;  %v4118_v59 = vmul.f32 %v17989_v2, %v3894_v36  ;;  %v3867_v35 = vadd.f32 %v17999_v25, %v3828_v22  ;;  %v3829_v19 = vmul.f32 %v17994_v21, %v3716_v63  ;;  %v4265_v12 = vshrl.u32 %v13553_v62, 16  ;;  %v18054_v22 = vpop.permute.xlu0 %3999 }
 0x252   : > { %v4268_v60 = vshll.u32 %v13553_v62, 16  ;;  %v13554_v20 = vpack.c.bf16 %v4120_v6, %v4120_v6  ;;  %v3865_v23 = vadd.f32 %v17999_v25, %v3826_v14  ;;  %v4248_v37 = vshrl.u32 %v13551_v31, 16 }
 0x253   : > { %v18045_v3 = vpop.f32.mrb[132].mxu1  ;;  %v4251_v33 = vshll.u32 %v13551_v31, 16  ;;  %v13552_v51 = vpack.c.bf16 %v4118_v59, %v4118_v59  ;;  %v3899_v32 = vmax.f32 %v3867_v35, 0.0  ;;  %v4267_v2 = vrot.slane %v4265_v12, 7  ;;  %v4567_v59 = vld [vmem:[#allocation2 + $0xc] sm:$0xf]  ;;  %v3995_v30 = vpop.permute.xlu1 %3994 }
 0x254   : > { %v18048_v54 = vpop.f32.mrb[133].mxu1  ;;  %v4274_v27 = vshrl.u32 %v13554_v20, 16  ;;  %v4277_v29 = vshll.u32 %v13554_v20, 16  ;;  %v3897_v0 = vmax.f32 %v3865_v23, 0.0  ;;  %v15113_v44 = vpop.f32.mrb[136].mxu0  ;;  %v4250_v63 = vrot.slane %v4248_v37, 7 }
 0x255   : > { %20916 = vst [vmem:[#allocation8_spill] sm:$0xff] %v18048_v54  ;;  %v18050_v41 = vpop.f32.mrb[134].mxu1  ;;  %v4256_v47 = vshrl.u32 %v13552_v51, 16  ;;  %v4259_v62 = vshll.u32 %v13552_v51, 16  ;;  %v4123_v6 = vmul.f32 %v3990_v9, %v3899_v32  ;;  %v3720_v14 = vpop.f32.mrb[137].mxu0  ;;  %v4270_v39 = vor.u32 %v4268_v60, %v4267_v2 }
 0x256   : > { %20917 = vst [vmem:[#allocation9_spill] sm:$0xff] %v18050_v41  ;;  %v18052_v36 = vpop.f32.mrb[135].mxu1  ;;  %v4272_v31 = vrot.slane %v4267_v2, 4  ;;  %v4276_v35 = vrot.slane %v4274_v27, 7  ;;  %v4121_v48 = vmul.f32 %v18014_v16, %v3897_v0  ;;  %v15114_v12 = vpop.f32.mrb[138].mxu0  ;;  %v20919_v20 = vmov 0 }
 0x257   : > { %20918 = vst [vmem:[#allocation10_spill] sm:$0xff] %v18052_v36  ;;  %v20920_v20 = vsel %vm18059_vm10, 4294967295, %v20919_v20  ;;  %v4253_v23 = vor.u32 %v4251_v33, %v4250_v63  ;;  %v4254_v37 = vrot.slane %v4250_v63, 4  ;;  %v4258_v1 = vrot.slane %v4256_v47, 7  ;;  %v3723_v9 = vpop.f32.mrb[139].mxu0 }
 0x258   : > { %20921 = vst [vmem:[#allocation11_spill] sm:$0xff] %v20920_v20  ;;  %v13557_v51 = vpack.c.bf16 %v4123_v6, %v4123_v6  ;;  %v4279_v32 = vor.u32 %v4277_v29, %v4276_v35  ;;  %v4281_v60 = vrot.slane %v4276_v35, 4  ;;  %v13555_v2 = vpack.c.bf16 %v4121_v48, %v4121_v48  ;;  %v4010_v48 = vpop.permute.xlu0 %4009 }
 0x259   : > { %v3868_v27 = vadd.f32 %v17999_v25, %v3829_v19  ;;  %v4568_v16 = vsel %vm17816_vm8, %v4253_v23, %v4567_v59  ;;  %v4261_v0 = vor.u32 %v4259_v62, %v4258_v1  ;;  %v4263_v36 = vrot.slane %v4258_v1, 4 }
 0x25a   : > { %v4301_v41 = vshrl.u32 %v13557_v51, 16  ;;  %4569 = vst [vmem:[#allocation2 + $0xc] sm:$0xf] %v4568_v16  ;;  %v4280_v33 = vsel %vm18059_vm10, %v4272_v31, %v4279_v32  ;;  %v4304_v63 = vshll.u32 %v13557_v51, 16  ;;  %v4283_v47 = vshrl.u32 %v13555_v2, 16 }
 0x25b   : > { %v18066_v54 = vpop.f32.mrb[136].mxu1  ;;  %v4286_v6 = vshll.u32 %v13555_v2, 16  ;;  %4572 = vst.msk [vmem:[#allocation2 + $0x18] sm:$0xf] %vm451_vm3, %v4280_v33  ;;  %v4262_v19 = vsel %vm18059_vm10, %v4254_v37, %v4261_v0  ;;  %v4271_v1 = vsel %vm18059_vm10, %v4263_v36, %v4270_v39  ;;  %v3900_v59 = vmax.f32 %v3868_v27, 0.0 }
 0x25c   : > { %v18070_v29 = vpop.f32.mrb[137].mxu1  ;;  %v18077_v62 = vrot.slane %v4301_v41, 7  ;;  %4570 = vst.msk [vmem:[#allocation2 + $0x10] sm:$0xf] %vm451_vm3, %v4262_v19  ;;  %4571 = vst.msk [vmem:[#allocation2 + $0x14] sm:$0xf] %vm451_vm3, %v4271_v1  ;;  %v3827_v23 = vmul.f32 %v17994_v21, %v18038_v40  ;;  %v3729_v51 = vadd.f32 %v15113_v44, %v17834_v5  ;;  %v3721_v37 = vadd.f32 %v3720_v14, %v17813_v46  ;;  %v18091_v41 = vpop.permute.xlu1 %4004 }
 0x25d   : > { %v18079_v35 = vpop.f32.mrb[138].mxu1  ;;  %v18083_v31 = vrot.slane %v4283_v47, 7  ;;  %v15117_v32 = vpop.f32.mrb[140].mxu0  ;;  %v4124_v27 = vmul.f32 %v3995_v30, %v3900_v59  ;;  %v3732_v16 = vadd.f32 %v15114_v12, %v17836_v18  ;;  %v3724_v30 = vadd.f32 %v3723_v9, %v17824_v45 }
 0x25e   : > { %v18089_v39 = vpop.f32.mrb[139].mxu1  ;;  %v18094_v36 = vor.u32 %v4304_v63, %v18077_v62  ;;  %v4308_v2 = vrot.slane %v18077_v62, 4  ;;  %v3736_v0 = vpop.f32.mrb[141].mxu0  ;;  %v3866_v46 = vadd.f32 %v17999_v25, %v3827_v23  ;;  %v3832_v44 = vmul.f32 %v17994_v21, %v3729_v51 }
 0x25f   : > { %v4288_v40 = vor.u32 %v4286_v6, %v18083_v31  ;;  %v18102_v14 = vpop.f32.mrb[142].mxu0  ;;  %v13558_v33 = vpack.c.bf16 %v4124_v27, %v4124_v27  ;;  %v3830_v63 = vmul.f32 %v17994_v21, %v3721_v37  ;;  %v3833_v47 = vmul.f32 %v17994_v21, %v3732_v16  ;;  %v18119_v27 = vpop.permute.xlu0 %4019 }
 0x260   : > { %v18107_v19 = vpop.f32.mrb[143].mxu0  ;;  %v3898_v12 = vmax.f32 %v3866_v46, 0.0  ;;  %v3871_v6 = vadd.f32 %v17999_v25, %v3832_v44  ;;  %v3745_v1 = vadd.f32 %v15117_v32, %v17900_v24  ;;  %v3831_v37 = vmul.f32 %v17994_v21, %v3724_v30  ;;  %v4015_v16 = vpop.permute.xlu1 %4014 }
 0x261   : > { %v4289_v18 = vsel %vm18059_vm10, %v4281_v60, %v4288_v40  ;;  %v4310_v62 = vshrl.u32 %v13558_v33, 16  ;;  %v4313_v59 = vshll.u32 %v13558_v33, 16  ;;  %v3869_v23 = vadd.f32 %v17999_v25, %v3830_v63 }
 0x262   : > { %4573 = vst.msk [vmem:[#allocation2 + $0x1c] sm:$0xf] %vm451_vm3, %v4289_v18  ;;  %v3872_v51 = vadd.f32 %v17999_v25, %v3833_v47  ;;  %v4122_v45 = vmul.f32 %v18040_v10, %v3898_v12  ;;  %v3903_v9 = vmax.f32 %v3871_v6, 0.0  ;;  %v3836_v60 = vmul.f32 %v17994_v21, %v3745_v1 }
 0x263   : > { %v18121_v40 = vrot.slane %v4310_v62, 7  ;;  %v3901_v24 = vmax.f32 %v3869_v23, 0.0  ;;  %v3737_v46 = vadd.f32 %v3736_v0, %v17852_v58  ;;  %v15664_v44 = vld [vmem:[#allocation2 + $0xc] sm:$0xff]   ;;  %v3870_v47 = vadd.f32 %v17999_v25, %v3831_v37  ;;  %v15668_v30 = vld [vmem:[#allocation2 + $0x14] sm:$0xff]   ;;  %v18128_v12 = vpop.f32.mrb[140].mxu1  ;;  %v4030_v53 = vpop.permute.xlu0 %4029 }
 0x264   : > { %v3904_v32 = vmax.f32 %v3872_v51, 0.0  ;;  %v13556_v33 = vpack.c.bf16 %v4122_v45, %v4122_v45  ;;  %v4127_v63 = vmul.f32 %v4010_v48, %v3903_v9  ;;  %v3875_v10 = vadd.f32 %v17999_v25, %v3836_v60  ;;  %v18126_v18 = vpop.f32.mrb[144].mxu0  ;;  %20922 = vst [vmem:[#allocation12_spill] sm:$0xff] %v18128_v12  ;;  %7800 = vst.msk [vmem:[#allocation3 + $0x18] sm:$0xff] %vm600_vm0, %v15664_v44  ;;  %v18145_v12 = vpop.permute.xlu1 %4024 }
 0x265   : > { %v4315_v6 = vor.u32 %v4313_v59, %v18121_v40  ;;  %v4317_v1 = vrot.slane %v18121_v40, 4  ;;  %v4125_v62 = vmul.f32 %v18054_v22, %v3901_v24  ;;  %v18133_v58 = vpop.f32.mrb[145].mxu0  ;;  %v3902_v45 = vmax.f32 %v3870_v47, 0.0  ;;  %7801 = vst.msk [vmem:[#allocation3 + $0x60] sm:$0xff] %vm600_vm0, %v15668_v30 }
 0x266   : > { %v4128_v23 = vmul.f32 %v4015_v16, %v3904_v32  ;;  %v4292_v48 = vshrl.u32 %v13556_v33, 16  ;;  %v4295_v0 = vshll.u32 %v13556_v33, 16  ;;  %v13561_v51 = vpack.c.bf16 %v4127_v63, %v4127_v63  ;;  %v18136_v9 = vpop.f32.mrb[146].mxu0  ;;  %v15676_v33 = vld [vmem:[#allocation2 + $0x8] sm:$0xff]  }
 0x267   : > { %v4316_v59 = vsel %vm18059_vm10, %v4308_v2, %v4315_v6  ;;  %v13559_v37 = vpack.c.bf16 %v4125_v62, %v4125_v62  ;;  %v3907_v40 = vmax.f32 %v3875_v10, 0.0  ;;  %v18141_v22 = vpop.f32.mrb[147].mxu0  ;;  %v4126_v44 = vmul.f32 %v18091_v41, %v3902_v45  ;;  %7196 = vst.msk [vmem:[#allocation3 + $0x48] sm:$0xff] %vm600_vm0, %v15676_v33 }
 0x268   : > { %v13562_v60 = vpack.c.bf16 %v4128_v23, %v4128_v23  ;;  %4576 = vst.msk [vmem:[#allocation2 + $0x28] sm:$0xf] %vm451_vm3, %v4316_v59  ;;  %v4294_v16 = vrot.slane %v4292_v48, 7  ;;  %v4337_v24 = vshrl.u32 %v13561_v51, 16  ;;  %v4340_v32 = vshll.u32 %v13561_v51, 16 }
 0x269   : > { %v4319_v63 = vshrl.u32 %v13559_v37, 16  ;;  %v4322_v47 = vshll.u32 %v13559_v37, 16  ;;  %v13560_v62 = vpack.c.bf16 %v4126_v44, %v4126_v44  ;;  %v4131_v51 = vmul.f32 %v4030_v53, %v3907_v40  ;;  %v15683_v44 = vld [vmem:[#allocation2 + $0x10] sm:$0xff]  }
 0x26a   : > { %v4346_v5 = vshrl.u32 %v13562_v60, 16  ;;  %v4349_v30 = vshll.u32 %v13562_v60, 16  ;;  %v4297_v2 = vor.u32 %v4295_v0, %v4294_v16  ;;  %v4299_v6 = vrot.slane %v4294_v16, 4  ;;  %7197 = vst.msk [vmem:[#allocation3 + $0x90] sm:$0xff] %vm600_vm0, %v15683_v44 }
 0x26b   : > { %v4339_v10 = vrot.slane %v4337_v24, 7  ;;  %v4321_v23 = vrot.slane %v4319_v63, 7  ;;  %v3834_v41 = vmul.f32 %v17994_v21, %v3737_v46  ;;  %v20923_v45 = vrot.slane %v18083_v31, 4  ;;  %v8885_v24 = vld [vmem:[#allocation3 + $0x18] sm:$0xff] }
 0x26c   : > { %v18148_v48 = vrot.slane %v4346_v5, 7  ;;  %v4307_v0 = vsel %vm18059_vm10, %v4299_v6, %v18094_v36  ;;  %v18158_v16 = vpop.f32.mrb[148].mxu0  ;;  %9795 = vmatprep.mubr.bf16.mxu0 %v8885_v24  ;;  %v4328_v36 = vshrl.u32 %v13560_v62, 16  ;;  %v13565_v33 = vpack.c.bf16 %v4131_v51, %v4131_v51  ;;  %v15689_v6 = vld [vmem:[#allocation2 + $0x18] sm:$0xff]   ;;  %v18180_v51 = vpop.f32.mrb[141].mxu1 }
 0x26d   : > { %v4298_v59 = vsel %vm18059_vm10, %v20923_v45, %v4297_v2  ;;  %v4342_v37 = vor.u32 %v4340_v32, %v4339_v10  ;;  %v4344_v60 = vrot.slane %v4339_v10, 4  ;;  %4575 = vst.msk [vmem:[#allocation2 + $0x24] sm:$0xf] %vm451_vm3, %v4307_v0  ;;  %v4324_v53 = vor.u32 %v4322_v47, %v4321_v23  ;;  %v18164_v40 = vpop.f32.mrb[149].mxu0 }
 0x26e   : > { %4574 = vst.msk [vmem:[#allocation2 + $0x20] sm:$0xf] %vm451_vm3, %v4298_v59  ;;  %v4326_v5 = vrot.slane %v4321_v23, 4  ;;  %v4351_v31 = vor.u32 %v4349_v30, %v18148_v48  ;;  %v4353_v46 = vrot.slane %v18148_v48, 4  ;;  %v4331_v32 = vshll.u32 %v13560_v62, 16  ;;  %v18167_v2 = vpop.f32.mrb[150].mxu0 }
 0x26f   : > { %v3873_v63 = vadd.f32 %v17999_v25, %v3834_v41  ;;  %v4325_v47 = vsel %vm18059_vm10, %v4317_v1, %v4324_v53  ;;  %v3748_v10 = vadd.f32 %v18102_v14, %v17909_v28  ;;  %v3740_v62 = vadd.f32 %v18107_v19, %v17860_v4  ;;  %v18178_v23 = vpop.f32.mrb[151].mxu0  ;;  %v4035_v41 = vpop.permute.xlu1 %4034  ;;  %7198 = vst.msk [vmem:[#allocation3 + $0xd8] sm:$0xff] %vm600_vm0, %v15689_v6 }
 0x270   : > { %v4352_v30 = vsel %vm18059_vm10, %v4344_v60, %v4351_v31  ;;  %4577 = vst.msk [vmem:[#allocation2 + $0x2c] sm:$0xf] %vm451_vm3, %v4325_v47  ;;  %v4330_v45 = vrot.slane %v4328_v36, 7  ;;  %v4373_v1 = vshrl.u32 %v13565_v33, 16  ;;  %v4376_v59 = vshll.u32 %v13565_v33, 16  ;;  %v18191_v60 = vpop.f32.mrb[142].mxu1  ;;  %v4040_v33 = vpop.permute.xlu0 %4039 }
 0x271   : > { %4580 = vst.msk [vmem:[#allocation2 + $0x38] sm:$0xf] %vm451_vm3, %v4352_v30  ;;  %v3905_v0 = vmax.f32 %v3873_v63, 0.0  ;;  %v3837_v28 = vmul.f32 %v17994_v21, %v3748_v10  ;;  %v3835_v14 = vmul.f32 %v17994_v21, %v3740_v62  ;;  %v3761_v4 = vadd.f32 %v18126_v18, %v17948_v34  ;;  %v18196_v36 = vpop.f32.mrb[143].mxu1 }
 0x272   : > { %v3753_v19 = vadd.f32 %v18133_v58, %v17936_v42  ;;  %v4333_v24 = vor.u32 %v4331_v32, %v4330_v45  ;;  %v4335_v44 = vrot.slane %v4330_v45, 4  ;;  %v18193_v53 = vrot.slane %v4373_v1, 7  ;;  %v18202_v42 = vpop.f32.mrb[144].mxu1 }
 0x273   : > { %v4129_v31 = vmul.f32 %v18119_v27, %v3905_v0  ;;  %v3876_v63 = vadd.f32 %v17999_v25, %v3837_v28  ;;  %v3874_v6 = vadd.f32 %v17999_v25, %v3835_v14  ;;  %v3840_v34 = vmul.f32 %v17994_v21, %v3761_v4  ;;  %v18225_v4 = vpop.f32.mrb[145].mxu1 }
 0x274   : > { %v3838_v18 = vmul.f32 %v17994_v21, %v3753_v19  ;;  %v4334_v58 = vsel %vm18059_vm10, %v4326_v5, %v4333_v24  ;;  %v4343_v32 = vsel %vm18059_vm10, %v4335_v44, %v4342_v37  ;;  %v18209_v27 = vor.u32 %v4376_v59, %v18193_v53  ;;  %v15682_v0 = vld [vmem:[#allocation2 + $0x24] sm:$0xff]   ;;  %v18215_v5 = vpop.permute.xlu1 %4044 }
 0x275   : > { %v15675_v30 = vld [vmem:[#allocation2 + $0x1c] sm:$0xff]   ;;  %4578 = vst.msk [vmem:[#allocation2 + $0x30] sm:$0xf] %vm451_vm3, %v4334_v58  ;;  %4579 = vst.msk [vmem:[#allocation2 + $0x34] sm:$0xf] %vm451_vm3, %v4343_v32  ;;  %v13563_v10 = vpack.c.bf16 %v4129_v31, %v4129_v31  ;;  %v3908_v62 = vmax.f32 %v3876_v63, 0.0  ;;  %v3879_v1 = vadd.f32 %v17999_v25, %v3840_v34  ;;  %v3764_v59 = vadd.f32 %v18136_v9, %v17951_v56 }
 0x276   : > { %v3906_v45 = vmax.f32 %v3874_v6, 0.0  ;;  %v3877_v37 = vadd.f32 %v17999_v25, %v3838_v18  ;;  %v3756_v28 = vadd.f32 %v18141_v22, %v17942_v7  ;;  %v3777_v14 = vadd.f32 %v18158_v16, %v17963_v61  ;;  %7802 = vst.msk [vmem:[#allocation3 + $0xa8] sm:$0xff] %vm600_vm0, %v15675_v30  ;;  %v18228_v63 = vpop.f32.mrb[152].mxu0  ;;  %7803 = vst.msk [vmem:[#allocation3 + $0xf0] sm:$0xff] %vm600_vm0, %v15682_v0  ;;  %v4050_v16 = vpop.permute.xlu0 %4049 }
 0x277   : > { %v4355_v19 = vshrl.u32 %v13563_v10, 16  ;;  %v4358_v24 = vshll.u32 %v13563_v10, 16  ;;  %v4132_v44 = vmul.f32 %v4035_v41, %v3908_v62  ;;  %v3911_v56 = vmax.f32 %v3879_v1, 0.0  ;;  %v18233_v61 = vpop.f32.mrb[153].mxu0 }
 0x278   : > { %v4130_v31 = vmul.f32 %v18145_v12, %v3906_v45  ;;  %v3909_v9 = vmax.f32 %v3877_v37, 0.0  ;;  %v3841_v7 = vmul.f32 %v17994_v21, %v3764_v59  ;;  %v3839_v22 = vmul.f32 %v17994_v21, %v3756_v28  ;;  %v18236_v58 = vpop.f32.mrb[154].mxu0  ;;  %v15693_v45 = vld [vmem:[#allocation2 + $0x20] sm:$0xff]   ;;  %v18242_v28 = vpop.f32.mrb[146].mxu1 }
 0x279   : > { %v4357_v6 = vrot.slane %v4355_v19, 7  ;;  %v13566_v34 = vpack.c.bf16 %v4132_v44, %v4132_v44  ;;  %v3844_v41 = vmul.f32 %v17994_v21, %v3777_v14  ;;  %v4135_v12 = vmul.f32 %v4050_v16, %v3911_v56  ;;  %v18240_v62 = vpop.f32.mrb[155].mxu0  ;;  %20924 = vst [vmem:[#allocation13_spill] sm:$0xff] %v18242_v28  ;;  %v4055_v19 = vpop.permute.xlu1 %4054  ;;  %7199 = vst.msk [vmem:[#allocation3 + $0x120] sm:$0xff] %vm600_vm0, %v15693_v45 }
 0x27a   : > { %v13564_v18 = vpack.c.bf16 %v4130_v31, %v4130_v31  ;;  %v4133_v32 = vmul.f32 %v4040_v33, %v3909_v9  ;;  %v3880_v30 = vadd.f32 %v17999_v25, %v3841_v7  ;;  %v3878_v10 = vadd.f32 %v17999_v25, %v3839_v22 }
 0x27b   : > { %v4360_v1 = vor.u32 %v4358_v24, %v4357_v6  ;;  %v4362_v0 = vrot.slane %v4357_v6, 4  ;;  %v4382_v37 = vshrl.u32 %v13566_v34, 16  ;;  %v4385_v59 = vshll.u32 %v13566_v34, 16 }
 0x27c   : > { %v4364_v44 = vshrl.u32 %v13564_v18, 16  ;;  %v4367_v14 = vshll.u32 %v13564_v18, 16  ;;  %v13569_v31 = vpack.c.bf16 %v4135_v12, %v4135_v12  ;;  %v13567_v47 = vpack.c.bf16 %v4133_v32, %v4133_v32  ;;  %v15688_v56 = vld [vmem:[#allocation2 + $0x2c] sm:$0xff]   ;;  %v15692_v33 = vld [vmem:[#allocation2 + $0x34] sm:$0xff]   ;;  %v18252_v12 = vpop.permute.xlu0 %4059 }
 0x27d   : > { %v4361_v9 = vsel %vm18059_vm10, %v4353_v46, %v4360_v1  ;;  %v4384_v24 = vrot.slane %v4382_v37, 7  ;;  %v3912_v7 = vmax.f32 %v3880_v30, 0.0  ;;  %v3910_v22 = vmax.f32 %v3878_v10, 0.0  ;;  %7804 = vst.msk [vmem:[#allocation3 + $0x138] sm:$0xff] %vm600_vm0, %v15688_v56  ;;  %7805 = vst.msk [vmem:[#allocation3 + $0x180] sm:$0xff] %vm600_vm0, %v15692_v33  ;;  %v18258_v37 = vld [vmem:[#allocation2 + $0x8] sm:$0xff]  }
 0x27e   : > { %4581 = vst.msk [vmem:[#allocation2 + $0x3c] sm:$0xf] %vm451_vm3, %v4361_v9  ;;  %v4366_v16 = vrot.slane %v4364_v44, 7  ;;  %v4409_v6 = vshrl.u32 %v13569_v31, 16  ;;  %v4412_v34 = vshll.u32 %v13569_v31, 16  ;;  %v4391_v18 = vshrl.u32 %v13567_v47, 16 }
 0x27f   : > { %v4387_v32 = vor.u32 %v4385_v59, %v4384_v24  ;;  %v4389_v48 = vrot.slane %v4384_v24, 4  ;;  %v4394_v45 = vshll.u32 %v13567_v47, 16  ;;  %v4136_v28 = vmul.f32 %v4055_v19, %v3912_v7  ;;  %v18266_v47 = vpop.f32.mrb[147].mxu1  ;;  %v15701_v19 = vld [vmem:[#allocation2 + $0x28] sm:$0xff]  }
 0x280   : > { %v4369_v46 = vor.u32 %v4367_v14, %v4366_v16  ;;  %v4371_v1 = vrot.slane %v4366_v16, 4  ;;  %v18254_v30 = vrot.slane %v4409_v6, 7  ;;  %v18256_v10 = vrot.slane %v4391_v18, 7  ;;  %v18268_v14 = vpop.permute.xlu1 %4064  ;;  %v18286_v16 = vpop.f32.mrb[156].mxu0  ;;  %7200 = vst.msk [vmem:[#allocation3 + $0x168] sm:$0xff] %vm600_vm0, %v15701_v19 }
 0x281   : > { %v20925_v44 = vrot.slane %v18193_v53, 4  ;;  %v13570_v56 = vpack.c.bf16 %v4136_v28, %v4136_v28  ;;  %v4134_v33 = vmul.f32 %v18215_v5, %v3910_v22  ;;  %v3883_v59 = vadd.f32 %v17999_v25, %v3844_v41  ;;  %v18280_v41 = vpop.f32.mrb[148].mxu1 }
 0x282   : > { %v4370_v9 = vsel %vm18059_vm10, %v4362_v0, %v4369_v46  ;;  %v4379_v53 = vsel %vm18059_vm10, %v4371_v1, %v18209_v27  ;;  %v18277_v28 = vor.u32 %v4412_v34, %v18254_v30  ;;  %v4416_v5 = vrot.slane %v18254_v30, 4  ;;  %v18288_v27 = vpop.f32.mrb[149].mxu1  ;;  %v18295_v46 = vpop.f32.mrb[157].mxu0  ;;  %v15705_v1 = vld [vmem:[#allocation2 + $0x30] sm:$0xff]  }
 0x283   : > { %v4388_v31 = vsel %vm18059_vm10, %v20925_v44, %v4387_v32  ;;  %4582 = vst.msk [vmem:[#allocation2 + $0x40] sm:$0xf] %vm451_vm3, %v4370_v9  ;;  %4583 = vst.msk [vmem:[#allocation2 + $0x44] sm:$0xf] %vm451_vm3, %v4379_v53  ;;  %v4396_v24 = vor.u32 %v4394_v45, %v18256_v10  ;;  %v4398_v7 = vrot.slane %v18256_v10, 4  ;;  %v4418_v0 = vshrl.u32 %v13570_v56, 16  ;;  %v4070_v30 = vpop.permute.xlu0 %4069 }
 0x284   : > { %4584 = vst.msk [vmem:[#allocation2 + $0x48] sm:$0xf] %vm451_vm3, %v4388_v31  ;;  %v4421_v22 = vshll.u32 %v13570_v56, 16  ;;  %20926 = vst [vmem:[#allocation14_spill] sm:$0xff] %v18288_v27  ;;  %v13568_v6 = vpack.c.bf16 %v4134_v33, %v4134_v33  ;;  %v3915_v34 = vmax.f32 %v3883_v59, 0.0  ;;  %v3769_v18 = vadd.f32 %v18164_v40, %v17954_v57  ;;  %v18297_v45 = vpop.f32.mrb[150].mxu1 }
 0x285   : > { %v3780_v32 = vadd.f32 %v18167_v2, %v17966_v50  ;;  %20927 = vst [vmem:[#allocation15_spill] sm:$0xff] %v18297_v45  ;;  %v4397_v10 = vsel %vm18059_vm10, %v4389_v48, %v4396_v24  ;;  %v18301_v44 = vrot.slane %v4418_v0, 7  ;;  %v20903_v31 = vrot.slane %v18258_v37, 1  ;;  %v15670_v57 = vld [vmem:[#allocation2 + $0x8] sm:$0xff]   ;;  %v18306_v40 = vpop.f32.mrb[158].mxu0  ;;  %v18312_v48 = vpop.f32.mrb[151].mxu1 }
 0x286   : > { %v3772_v56 = vadd.f32 %v18178_v23, %v17957_v26  ;;  %4585 = vst.msk [vmem:[#allocation2 + $0x4c] sm:$0xf] %vm451_vm3, %v4397_v10  ;;  %v4400_v50 = vshrl.u32 %v13568_v6, 16  ;;  %v4403_v2 = vshll.u32 %v13568_v6, 16  ;;  %v4139_v33 = vmul.f32 %v4070_v30, %v3915_v34  ;;  %v18310_v19 = vpop.f32.mrb[159].mxu0  ;;  %20928 = vst [vmem:[#allocation16_spill] sm:$0xff] %v18312_v48  ;;  %v4075_v10 = vpop.permute.xlu1 %4074 }
 0x287   : > { %v3842_v59 = vmul.f32 %v17994_v21, %v3769_v18  ;;  %7201 = vst.msk [vmem:[#allocation3 + $0x1b0] sm:$0xff] %vm600_vm0, %v15705_v1  ;;  %v4423_v9 = vor.u32 %v4421_v22, %v18301_v44  ;;  %v3845_v23 = vmul.f32 %v17994_v21, %v3780_v32  ;;  %v20929_v53 = vrot.slane %v18004_v55, 1  ;;  %v18323_v0 = vpop.f32.mrb[152].mxu1  ;;  %v18328_v1 = vld [vmem:[#allocation2 + $0x10] sm:$0xff]   ;;  %v15713_v32 = vld [vmem:[#allocation2 + $0x38] sm:$0xff]  }
 0x288   : > { %20930 = vst [vmem:[#allocation17_spill] sm:$0xff] %v18323_v0  ;;  %v4402_v6 = vrot.slane %v4400_v50, 7  ;;  %v13573_v34 = vpack.c.bf16 %v4139_v33, %v4139_v33  ;;  %v3843_v22 = vmul.f32 %v17994_v21, %v3772_v56  ;;  %v18330_v30 = vpop.f32.mrb[153].mxu1  ;;  %v7335_v26 = vshll.u32 %v15670_v57, 16  ;;  %7202 = vst.msk [vmem:[#allocation3 + $0x1f8] sm:$0xff] %vm600_vm0, %v15713_v32 }
 0x289   : > { %v7609_v24 = vsel %vm1014_vm1, %v20929_v53, %v20903_v31  ;;  %v3881_v18 = vadd.f32 %v17999_v25, %v3842_v59  ;;  %20931 = vst [vmem:[#allocation18_spill] sm:$0xff] %v18330_v30  ;;  %v4424_v55 = vsel %vm18059_vm10, %v4416_v5, %v4423_v9  ;;  %v3884_v53 = vadd.f32 %v17999_v25, %v3845_v23  ;;  %v18335_v33 = vpop.f32.mrb[154].mxu1  ;;  %v18340_v9 = vld [vmem:[#allocation2 + $0x10] sm:$0xff]  }
 0x28a   : > { %7656 = vst.msk [vmem:[#allocation3 + $0x10] sm:$0xff] %vm600_vm0, %v7609_v24  ;;  %v7339_v50 = vshrl.u32 %v15670_v57, 16  ;;  %20932 = vst [vmem:[#allocation19_spill] sm:$0xff] %v18335_v33  ;;  %v4405_v59 = vor.u32 %v4403_v2, %v4402_v6  ;;  %v4407_v24 = vrot.slane %v4402_v6, 4  ;;  %v4445_v21 = vshrl.u32 %v13573_v34, 16  ;;  %v15700_v31 = vld [vmem:[#allocation2 + $0x3c] sm:$0xff]  }
 0x28b   : > { %4588 = vst.msk [vmem:[#allocation2 + $0x58] sm:$0xf] %vm451_vm3, %v4424_v55  ;;  %v4448_v56 = vshll.u32 %v13573_v34, 16  ;;  %v3913_v30 = vmax.f32 %v3881_v18, 0.0  ;;  %v3916_v0 = vmax.f32 %v3884_v53, 0.0  ;;  %v3882_v48 = vadd.f32 %v17999_v25, %v3843_v22  ;;  %v18342_v23 = vpop.f32.mrb[155].mxu1  ;;  %v18353_v25 = vpop.permute.xlu0 %4079 }
 0x28c   : > { %v7337_v5 = vrot.slane %v7335_v26, 1  ;;  %20933 = vst [vmem:[#allocation20_spill] sm:$0xff] %v18342_v23  ;;  %v15704_v57 = vld [vmem:[#allocation2 + $0x44] sm:$0xff]   ;;  %v4406_v55 = vsel %vm18059_vm10, %v4398_v7, %v4405_v59  ;;  %v4415_v2 = vsel %vm18059_vm10, %v4407_v24, %v18277_v28  ;;  %v18349_v6 = vrot.slane %v4445_v21, 7  ;;  %7806 = vst.msk [vmem:[#allocation3 + $0x1c8] sm:$0xff] %vm600_vm0, %v15700_v31  ;;  %v18364_v31 = vpop.f32.mrb[156].mxu1 }
 0x28d   : > { %v7343_v34 = vshll.u32 %v18328_v1, 16  ;;  %4586 = vst.msk [vmem:[#allocation2 + $0x50] sm:$0xf] %vm451_vm3, %v4406_v55  ;;  %4587 = vst.msk [vmem:[#allocation2 + $0x54] sm:$0xf] %vm451_vm3, %v4415_v2  ;;  %v4137_v26 = vmul.f32 %v18252_v12, %v3913_v30  ;;  %v4140_v18 = vmul.f32 %v4075_v10, %v3916_v0  ;;  %v3914_v7 = vmax.f32 %v3882_v48, 0.0  ;;  %v18380_v10 = vpop.permute.xlu1 %4084 }
 0x28e   : > { %v7338_v22 = vsel %vm733_vm2, %v18028_v11, %v7337_v5  ;;  %v15699_v28 = vld [vmem:[%s20896_s5 + $0x180] sm:$0xff]   ;;  %7807 = vst.msk [vmem:[#allocation3 + $0x210] sm:$0xff] %vm600_vm0, %v15704_v57  ;;  %20934 = vst [vmem:[#allocation21_spill] sm:$0xff] %v18364_v31  ;;  %v18367_v32 = vor.u32 %v4448_v56, %v18349_v6  ;;  %v7341_v12 = vor.u32 %v7339_v50, %v7337_v5  ;;  %v18373_v0 = vpop.f32.mrb[157].mxu1  ;;  %v18375_v11 = vpop.f32.mrb[160].mxu0  ;;  %v15709_v30 = vld [vmem:[%s20896_s5 + $0x1c8] sm:$0xff]  }
 0x28f   : > { %7475 = vst.msk [vmem:[#allocation3 + $0x8] sm:$0xff] %vm600_vm0, %v7338_v22  ;;  %v18371_v48 = vrot.slane %v7343_v34, 1  ;;  %20935 = vst [vmem:[#allocation22_spill] sm:$0xff] %v18373_v0  ;;  %v13571_v59 = vpack.c.bf16 %v4137_v26, %v4137_v26  ;;  %v13574_v24 = vpack.c.bf16 %v4140_v18, %v4140_v18  ;;  %v4138_v56 = vmul.f32 %v18268_v14, %v3914_v7  ;;  %v18385_v5 = vpop.f32.mrb[158].mxu1  ;;  %v8894_v57 = vld [vmem:[#allocation3 + $0x60] sm:$0xff]  ;;  %v18396_v14 = vpop.f32.mrb[161].mxu0 }
 0x290   : > { %20936 = vst [vmem:[#allocation23_spill] sm:$0xff] %v18375_v11  ;;  %v3793_v50 = vadd.f32 %v18228_v63, %v17975_v49  ;;  %20937 = vst [vmem:[#allocation24_spill] sm:$0xff] %v18385_v5  ;;  %v3785_v2 = vadd.f32 %v18233_v61, %v17969_v8  ;;  %v3796_v34 = vadd.f32 %v18236_v58, %v17977_v52  ;;  %v18394_v18 = vpop.f32.mrb[159].mxu1  ;;  %v18402_v22 = vld [vmem:[%s20894_s3] ss:$0 sm:$0xff]  ;;  %v15711_v52 = vld [vmem:[%s20896_s5 + $0x188] sm:$0xff]  }
 0x291   : > { %v8884_v21 = vld [vmem:[#allocation3 + $0x10] sm:$0xff]  ;;  %v7346_v55 = vsel %vm733_vm2, %v7341_v12, %v18371_v48  ;;  %20938 = vst [vmem:[#allocation25_spill] sm:$0xff] %v18394_v18  ;;  %20939 = vst [vmem:[#allocation26_spill] sm:$0xff] %v18396_v14  ;;  %v4427_v49 = vshrl.u32 %v13571_v59, 16  ;;  %v4430_v63 = vshll.u32 %v13571_v59, 16  ;;  %v13572_v7 = vpack.c.bf16 %v4138_v56, %v4138_v56  ;;  %v8882_v59 = vld [vmem:[#allocation3] sm:$0xff] }
 0x292   : > { %9796 = vmatmul.mubr.bf16.vlgmr.msra.gmra.mrb[224].mxu0 %v8884_v21  ;;  %7476 = vst.msk [vmem:[#allocation3 + $0x50] sm:$0xff] %vm600_vm0, %v7346_v55  ;;  %v3848_v8 = vmul.f32 %v18402_v22, %v3793_v50  ;;  %v15720_v61 = vld [vmem:[%s20896_s5 + $0x1d0] sm:$0xff]   ;;  %v4454_v58 = vshrl.u32 %v13574_v24, 16  ;;  %v4457_v12 = vshll.u32 %v13574_v24, 16  ;;  %v15673_v21 = vld [vmem:[%s20896_s5 + $0x100] sm:$0xff]   ;;  %v3846_v56 = vmul.f32 %v18402_v22, %v3785_v2  ;;  %v15684_v2 = vld [vmem:[%s20896_s5 + $0x148] sm:$0xff]  }
 0x293   : > { %9803 = vmatprep.mubr.bf16.mxu0 %v8894_v57  ;;  %14680 = vmatpush3.bf16.msra.mxu0 %v15699_v28  ;;  %v3849_v50 = vmul.f32 %v18402_v22, %v3796_v34  ;;  %v18416_v28 = vpop.f32.mrb[162].mxu0  ;;  %v18418_v57 = vpop.f32.mrb[160].mxu1  ;;  %v4429_v55 = vrot.slane %v4427_v49, 7  ;;  %v4436_v53 = vshrl.u32 %v13572_v7, 16  ;;  %v4439_v26 = vshll.u32 %v13572_v7, 16  ;;  %v18442_v5 = vld [vmem:[#allocation2 + $0x18] sm:$0xff]  }
 0x294   : > { %20940 = vst [vmem:[#allocation27_spill] sm:$0xff] %v18416_v28  ;;  %20941 = vst [vmem:[#allocation28_spill] sm:$0xff] %v18418_v57  ;;  %14681 = vmatprep.subr.bf16.mxu0 %v15709_v30  ;;  %v18423_v24 = vld [vmem:[%s20895_s4] ss:$0 sm:$0xff]  ;;  %v18429_v34 = vpop.f32.mrb[163].mxu0  ;;  %v18431_v28 = vpop.f32.mrb[161].mxu1 }
 0x295   : > { %v3887_v14 = vadd.f32 %v18423_v24, %v3848_v8  ;;  %20942 = vst [vmem:[#allocation29_spill] sm:$0xff] %v18429_v34  ;;  %20943 = vst [vmem:[#allocation30_spill] sm:$0xff] %v18431_v28  ;;  %v4090_v57 = vpop.permute.xlu0 %4089  ;;  %v18433_v30 = vrot.slane %v4454_v58, 7  ;;  %v3885_v49 = vadd.f32 %v18423_v24, %v3846_v56  ;;  %v3888_v7 = vadd.f32 %v18423_v24, %v3849_v50  ;;  %v18444_v0 = vpop.f32.mrb[162].mxu1  ;;  %v15721_v28 = vld [vmem:[%s20896_s5 + $0x190] sm:$0xff]  }
 0x296   : > { %v20944_v11 = vrot.slane %v18340_v9, 1  ;;  %v20945_v18 = vrot.slane %v18258_v37, 1  ;;  %20946 = vst [vmem:[#allocation31_spill] sm:$0xff] %v18444_v0  ;;  %v4432_v58 = vor.u32 %v4430_v63, %v4429_v55  ;;  %v4434_v34 = vrot.slane %v4429_v55, 4  ;;  %v8883_v56 = vld [vmem:[#allocation3 + $0x8] sm:$0xff]  ;;  %v18450_v50 = vpop.f32.mrb[163].mxu1 }
 0x297   : > { %v4438_v31 = vrot.slane %v4436_v53, 7  ;;  %v3919_v23 = vmax.f32 %v3887_v14, 0.0  ;;  %14682 = vmatpush3.bf16.msra.mxu0 %v15711_v52  ;;  %v15712_v37 = vld [vmem:[#allocation2 + $0x4c] sm:$0xff]   ;;  %9634 = vmatprep.mubr.bf16.mxu1 %v8883_v56  ;;  %v3917_v33 = vmax.f32 %v3885_v49, 0.0  ;;  %v3920_v45 = vmax.f32 %v3888_v7, 0.0  ;;  %v18454_v27 = vpop.f32.mrb[164].mxu0 }
 0x298   : > { %v7611_v8 = vsel %vm1014_vm1, %v20945_v18, %v20944_v11  ;;  %v4095_v11 = vpop.permute.xlu1 %4094  ;;  %v4459_v18 = vor.u32 %v4457_v12, %v18433_v30  ;;  %14683 = vmatprep.subr.bf16.mxu0 %v15720_v61  ;;  %v20947_v53 = vrot.slane %v18301_v44, 4  ;;  %9635 = vmatmul.mubr.bf16.vlgmr.msra.gmra.mrb[208].mxu1 %v8882_v59  ;;  %7808 = vst.msk [vmem:[#allocation3 + $0x258] sm:$0xff] %vm600_vm0, %v15712_v37  ;;  %v18461_v12 = vpop.f32.mrb[165].mxu0  ;;  %v20948_v49 = vrot.slane %v18349_v6, 4 }
 0x299   : > { %7657 = vst.msk [vmem:[#allocation3 + $0x58] sm:$0xff] %vm600_vm0, %v7611_v8  ;;  %v4441_v63 = vor.u32 %v4439_v26, %v4438_v31  ;;  %v4443_v52 = vrot.slane %v4438_v31, 4  ;;  %v4143_v55 = vmul.f32 %v4090_v57, %v3919_v23  ;;  %v8892_v7 = vld [vmem:[#allocation3 + $0x50] sm:$0xff]  ;;  %14568 = vmatpush3.bf16.msra.mxu1 %v15673_v21  ;;  %v4141_v44 = vmul.f32 %v18353_v25, %v3917_v33  ;;  %v15686_v23 = vld [vmem:[%s20896_s5 + $0x108] sm:$0xff]   ;;  %v18474_v26 = vpop.f32.mrb[166].mxu0  ;;  %v18476_v59 = vpop.f32.mrb[164].mxu1 }
 0x29a   : > { %v4433_v14 = vsel %vm18059_vm10, %v20947_v53, %v4432_v58  ;;  %v4460_v61 = vsel %vm18059_vm10, %v20948_v49, %v4459_v18  ;;  %v4144_v8 = vmul.f32 %v4095_v11, %v3920_v45  ;;  %v3788_v31 = vadd.f32 %v18240_v62, %v17972_v15  ;;  %9642 = vmatprep.mubr.bf16.mxu1 %v8892_v7  ;;  %v15694_v62 = vld [vmem:[%s20896_s5 + $0x150] sm:$0xff]   ;;  %v18490_v25 = vpop.f32.mrb[167].mxu0  ;;  %v18492_v21 = vpop.f32.mrb[165].mxu1 }
 0x29b   : > { %4589 = vst.msk [vmem:[#allocation2 + $0x5c] sm:$0xf] %vm451_vm3, %v4433_v14  ;;  %4592 = vst.msk [vmem:[#allocation2 + $0x68] sm:$0xf] %vm451_vm3, %v4460_v61  ;;  %v4442_v6 = vsel %vm18059_vm10, %v4434_v34, %v4441_v63  ;;  %v4451_v45 = vsel %vm18059_vm10, %v4443_v52, %v18367_v32  ;;  %v18484_v33 = vpack.c.bf16 %v4143_v55, %v4143_v55  ;;  %v7347_v15 = vshrl.u32 %v18328_v1, 16  ;;  %v18494_v57 = vpop.permute.xlu0 %4099  ;;  %v15696_v1 = vld [vmem:[%s20896_s5 + $0x110] sm:$0xff]  }
 0x29c   : > { %14569 = vmatprep.subr.bf16.mxu1 %v15684_v2  ;;  %4590 = vst.msk [vmem:[#allocation2 + $0x60] sm:$0xf] %vm451_vm3, %v4442_v6  ;;  %4591 = vst.msk [vmem:[#allocation2 + $0x64] sm:$0xf] %vm451_vm3, %v4451_v45  ;;  %v13575_v32 = vpack.c.bf16 %v4141_v44, %v4141_v44  ;;  %v13578_v34 = vpack.c.bf16 %v4144_v8, %v4144_v8  ;;  %v7351_v58 = vshll.u32 %v18442_v5, 16  ;;  %v18502_v2 = vpop.f32.mrb[166].mxu1  ;;  %14684 = vmatpush3.bf16.msra.mxu0 %v15721_v28  ;;  %v18516_v49 = vpop.permute.xlu1 %4104 }
 0x29d   : > { %v4481_v56 = vshrl.u32 %v18484_v33, 16  ;;  %v4484_v37 = vshll.u32 %v18484_v33, 16  ;;  %v3847_v11 = vmul.f32 %v18402_v22, %v3788_v31  ;;  %v8903_v18 = vld [vmem:[#allocation3 + $0xa8] sm:$0xff]  ;;  %v3809_v53 = vadd.f32 %v18286_v16, %v18001_v13  ;;  %v15706_v14 = vld [vmem:[%s20896_s5 + $0x158] sm:$0xff]   ;;  %v18512_v63 = vpop.f32.mrb[168].mxu0  ;;  %v18514_v52 = vpop.f32.mrb[167].mxu1  ;;  %14570 = vmatpush3.bf16.msra.mxu1 %v15686_v23 }
 0x29e   : > { %v15715_v55 = vld [vmem:[#allocation2 + $0x54] sm:$0xff]   ;;  %v15716_v28 = vld [vmem:[#allocation2 + $0x40] sm:$0xff]   ;;  %v4463_v61 = vshrl.u32 %v13575_v32, 16  ;;  %v4466_v7 = vshll.u32 %v13575_v32, 16  ;;  %v4490_v44 = vshrl.u32 %v13578_v34, 16  ;;  %v4493_v8 = vshll.u32 %v13578_v34, 16  ;;  %14571 = vmatprep.subr.bf16.mxu1 %v15694_v62 }
 0x29f   : > { %v18518_v6 = vpop.f32.mrb[169].mxu0  ;;  %v4483_v13 = vrot.slane %v4481_v56, 7  ;;  %v7349_v16 = vor.u32 %v7347_v15, %v18371_v48  ;;  %v18521_v45 = vrot.slane %v7351_v58, 1  ;;  %v3852_v33 = vmul.f32 %v18402_v22, %v3809_v53  ;;  %7809 = vst.msk [vmem:[#allocation3 + $0x2a0] sm:$0xff] %vm600_vm0, %v15715_v55  ;;  %v18527_v32 = vpop.f32.mrb[168].mxu1  ;;  %7203 = vst.msk [vmem:[#allocation3 + $0x240] sm:$0xff] %vm600_vm0, %v15716_v28 }
 0x2a0   : > { %v8893_v31 = vld [vmem:[#allocation3 + $0x58] sm:$0xff]  ;;  %v18524_v0 = vpop.f32.mrb[170].mxu0  ;;  %v18530_v23 = vrot.slane %v4463_v61, 7  ;;  %v18532_v34 = vrot.slane %v4490_v44, 7  ;;  %v8891_v56 = vld [vmem:[#allocation3 + $0x48] sm:$0xff]  ;;  %v3801_v48 = vadd.f32 %v18295_v46, %v17983_v43  ;;  %v3812_v15 = vadd.f32 %v18306_v40, %v18010_v17  ;;  %v18540_v58 = vpop.f32.mrb[169].mxu1 }
 0x2a1   : > { %9804 = vmatmul.mubr.bf16.gmra.mrb[228].mxu0 %v8893_v31  ;;  %v18538_v62 = vpop.f32.mrb[171].mxu0  ;;  %v3886_v53 = vadd.f32 %v18423_v24, %v3847_v11  ;;  %9643 = vmatmul.mubr.bf16.gmra.mrb[212].mxu1 %v8891_v56  ;;  %v7354_v55 = vsel %vm733_vm2, %v7349_v16, %v18521_v45  ;;  %v3891_v28 = vadd.f32 %v18423_v24, %v3852_v33  ;;  %v18553_v11 = vld [vmem:[#allocation2 + $0x18] sm:$0xff]   ;;  %v4488_v44 = vrot.slane %v4483_v13, 4  ;;  %v4110_v16 = vpop.permute.xlu0 %4109 }
 0x2a2   : > { %9811 = vmatprep.mubr.bf16.mxu0 %v8903_v18  ;;  %v3804_v18 = vadd.f32 %v18310_v19, %v17985_v38  ;;  %v4468_v43 = vor.u32 %v4466_v7, %v18530_v23  ;;  %v4495_v46 = vor.u32 %v4493_v8, %v18532_v34  ;;  %7477 = vst.msk [vmem:[#allocation3 + $0x98] sm:$0xff] %vm600_vm0, %v7354_v55  ;;  %v15708_v61 = vld [vmem:[%s20896_s5 + $0x118] sm:$0xff]   ;;  %v18560_v7 = vld [vmem:[#allocation2 + $0x20] sm:$0xff]   ;;  %v20950_v33 = vrot.slane %v18433_v30, 4 }
 0x2a3   : > { %v3850_v17 = vmul.f32 %v18402_v22, %v3801_v48  ;;  %v3853_v40 = vmul.f32 %v18402_v22, %v3812_v15  ;;  %14572 = vmatpush3.bf16.msra.mxu1 %v15696_v1  ;;  %v20949_v8 = vld [vmem:[#allocation8_spill] sm:$0xff]  ;;  %v3918_v55 = vmax.f32 %v3886_v53, 0.0  ;;  %v7612_v48 = vrot.slane %v18553_v11, 1 }
 0x2a4   : > { %v3851_v19 = vmul.f32 %v18402_v22, %v3804_v18  ;;  %v18564_v31 = vadd.f32 %v20949_v8, %v18045_v3  ;;  %14573 = vmatprep.subr.bf16.mxu1 %v15706_v14  ;;  %v15717_v1 = vld [vmem:[%s20896_s5 + $0x160] sm:$0xff]   ;;  %v4469_v56 = vsel %vm18059_vm10, %v20950_v33, %v4468_v43  ;;  %v18579_v14 = vor.u32 %v4484_v37, %v4483_v13  ;;  %v18584_v43 = vpop.f32.mrb[172].mxu0  ;;  %v18586_v8 = vpop.f32.mrb[170].mxu1  ;;  %v15727_v53 = vld [vmem:[%s20896_s5 + $0x168] sm:$0xff]  }
 0x2a5   : > { %v3889_v22 = vadd.f32 %v18423_v24, %v3850_v17  ;;  %v3892_v15 = vadd.f32 %v18423_v24, %v3853_v40  ;;  %v15719_v3 = vld [vmem:[%s20896_s5 + $0x120] sm:$0xff]   ;;  %4593 = vst.msk [vmem:[#allocation2 + $0x6c] sm:$0xf] %vm451_vm3, %v4469_v56  ;;  %v4496_v30 = vsel %vm18059_vm10, %v4488_v44, %v4495_v46  ;;  %v3923_v18 = vmax.f32 %v3891_v28, 0.0  ;;  %20951 = vst [vmem:[#allocation8_spill] sm:$0xff] %v18586_v8  ;;  %v4115_v17 = vpop.permute.xlu1 %4114  ;;  %v18593_v56 = vpop.f32.mrb[173].mxu0 }
 0x2a6   : > { %4596 = vst.msk [vmem:[#allocation2 + $0x78] sm:$0xf] %vm451_vm3, %v4496_v30  ;;  %v3890_v37 = vadd.f32 %v18423_v24, %v3851_v19  ;;  %v18591_v13 = vld [vmem:[#allocation2 + $0x20] sm:$0xff]   ;;  %v4142_v28 = vmul.f32 %v18380_v10, %v3918_v55  ;;  %v7355_v44 = vshrl.u32 %v18442_v5, 16  ;;  %v18601_v11 = vpop.f32.mrb[174].mxu0  ;;  %v18603_v24 = vpop.f32.mrb[171].mxu1 }
 0x2a7   : > { %v3921_v40 = vmax.f32 %v3889_v22, 0.0  ;;  %v3924_v33 = vmax.f32 %v3892_v15, 0.0  ;;  %14574 = vmatpush3.bf16.msra.mxu1 %v15708_v61  ;;  %v4147_v46 = vmul.f32 %v4110_v16, %v3923_v18  ;;  %v7359_v22 = vshll.u32 %v18560_v7, 16  ;;  %20952 = vst [vmem:[#allocation32_spill] sm:$0xff] %v18603_v24  ;;  %v8900_v8 = vld [vmem:[#allocation3 + $0x90] sm:$0xff]  ;;  %v18609_v10 = vpop.f32.mrb[175].mxu0 }
 0x2a8   : > { %14575 = vmatprep.subr.bf16.mxu1 %v15717_v1  ;;  %v20953_v15 = vrot.slane %v18340_v9, 1  ;;  %v3922_v38 = vmax.f32 %v3890_v37, 0.0  ;;  %v18611_v16 = vpop.f32.mrb[172].mxu1  ;;  %v15722_v5 = vld [vmem:[#allocation2 + $0x5c] sm:$0xff]   ;;  %v13576_v55 = vpack.c.bf16 %v4142_v28, %v4142_v28  ;;  %v7357_v24 = vor.u32 %v7355_v44, %v18521_v45  ;;  %v15723_v9 = vld [vmem:[#allocation2 + $0x48] sm:$0xff]  }
 0x2a9   : > { %v4145_v61 = vmul.f32 %v18494_v57, %v3921_v40  ;;  %v4148_v19 = vmul.f32 %v4115_v17, %v3924_v33  ;;  %v8901_v1 = vld [vmem:[#allocation3 + $0x98] sm:$0xff]  ;;  %v13581_v18 = vpack.c.bf16 %v4147_v46, %v4147_v46  ;;  %v18615_v57 = vrot.slane %v7359_v22, 1  ;;  %v18617_v17 = vpop.f32.mrb[173].mxu1  ;;  %7810 = vst.msk [vmem:[#allocation3 + $0x2e8] sm:$0xff] %vm600_vm0, %v15722_v5  ;;  %7204 = vst.msk [vmem:[#allocation3 + $0x288] sm:$0xff] %vm600_vm0, %v15723_v9 }
 0x2aa   : > { %v7613_v30 = vsel %vm1014_vm1, %v20953_v15, %v7612_v48  ;;  %9650 = vmatprep.mubr.bf16.mxu1 %v8901_v1  ;;  %v4146_v37 = vmul.f32 %v18516_v49, %v3922_v38  ;;  %v20904_v28 = vrot.slane %v18591_v13, 1  ;;  %v18625_v46 = vpop.f32.mrb[174].mxu1  ;;  %v4472_v45 = vshrl.u32 %v13576_v55, 16  ;;  %v18660_v1 = vld [vmem:[#allocation2 + $0x28] sm:$0xff]   ;;  %v20965_v9 = vld [vmem:[#allocation15_spill] sm:$0xff] }
 0x2ab   : > { %7658 = vst.msk [vmem:[#allocation3 + $0xa0] sm:$0xff] %vm600_vm0, %v7613_v30  ;;  %v18619_v40 = vpack.c.bf16 %v4145_v61, %v4145_v61  ;;  %v18621_v33 = vpack.c.bf16 %v4148_v19, %v4148_v19  ;;  %14576 = vmatpush3.bf16.msra.mxu1 %v15719_v3  ;;  %20954 = vst [vmem:[#allocation33_spill] sm:$0xff] %v18625_v46  ;;  %v4475_v44 = vshll.u32 %v13576_v55, 16  ;;  %v4517_v22 = vshrl.u32 %v13581_v18, 16  ;;  %v18628_v30 = vpop.f32.mrb[175].mxu1  ;;  %v20956_v3 = vld [vmem:[#allocation9_spill] sm:$0xff] }
 0x2ac   : > { %v4520_v15 = vshll.u32 %v13581_v18, 16  ;;  %9651 = vmatmul.mubr.bf16.gmra.mrb[216].mxu1 %v8900_v8  ;;  %20955 = vst [vmem:[#allocation34_spill] sm:$0xff] %v18628_v30  ;;  %14577 = vmatprep.subr.bf16.mxu1 %v15727_v53  ;;  %v18631_v61 = vpack.c.bf16 %v4146_v37, %v4146_v37  ;;  %v7362_v49 = vsel %vm733_vm2, %v7357_v24, %v18615_v57  ;;  %v20957_v19 = vld [vmem:[#allocation10_spill] sm:$0xff]  ;;  %v20958_v24 = vld [vmem:[#allocation12_spill] sm:$0xff] }
 0x2ad   : > { %v7615_v38 = vsel %vm1014_vm1, %v7612_v48, %v20904_v28  ;;  %v18640_v5 = vadd.f32 %v20957_v19, %v20956_v3  ;;  %7478 = vst.msk [vmem:[#allocation3 + $0xe0] sm:$0xff] %vm600_vm0, %v7362_v49  ;;  %v18646_v8 = vadd.f32 %v18070_v29, %v18066_v54  ;;  %v18650_v53 = vadd.f32 %v18089_v39, %v18079_v35  ;;  %v18662_v18 = vld [vmem:[#allocation2 + $0x28] sm:$0xff]   ;;  %v20963_v39 = vld [vmem:[#allocation14_spill] sm:$0xff] }
 0x2ae   : > { %7659 = vst.msk [vmem:[#allocation3 + $0xe8] sm:$0xff] %vm600_vm0, %v7615_v38  ;;  %v18654_v55 = vadd.f32 %v18180_v51, %v20958_v24  ;;  %v18658_v48 = vadd.f32 %v18196_v36, %v18191_v60  ;;  %v18666_v54 = vadd.f32 %v18225_v4, %v18202_v42  ;;  %v20961_v29 = vld [vmem:[#allocation13_spill] sm:$0xff]  ;;  %v18674_v51 = vadd.f32 %v20963_v39, %v18280_v41  ;;  %v20966_v37 = vld [vmem:[#allocation16_spill] sm:$0xff]  ;;  %v18682_v42 = vpop.f32.mrb[176].mxu0  ;;  %v18684_v4 = vpop.f32.mrb[176].mxu1  ;;  %v8912_v28 = vld [vmem:[#allocation3 + $0xf0] sm:$0xff] }
 0x2af   : > { %v18670_v35 = vadd.f32 %v18266_v47, %v20961_v29  ;;  %v18678_v60 = vadd.f32 %v20966_v37, %v20965_v9  ;;  %v4474_v36 = vrot.slane %v4472_v45, 7  ;;  %v4519_v49 = vrot.slane %v4517_v22, 7  ;;  %20968 = vst [vmem:[#allocation15_spill] sm:$0xff] %v18684_v4  ;;  %v18690_v39 = vpop.f32.mrb[177].mxu0  ;;  %v18697_v46 = vld [vmem:[#allocation2 + $0x30] sm:$0xff]  }
 0x2b0   : > { %20959 = vst [vmem:[#allocation9_spill] sm:$0xff] %v18658_v48  ;;  %20960 = vst [vmem:[#allocation10_spill] sm:$0xff] %v18666_v54  ;;  %v4499_v38 = vshrl.u32 %v18619_v40, 16  ;;  %v4502_v3 = vshll.u32 %v18619_v40, 16  ;;  %v4526_v47 = vshrl.u32 %v18621_v33, 16  ;;  %v4529_v19 = vshll.u32 %v18621_v33, 16 }
 0x2b1   : > { %20962 = vst [vmem:[#allocation12_spill] sm:$0xff] %v18670_v35  ;;  %20964 = vst [vmem:[#allocation13_spill] sm:$0xff] %v18674_v51  ;;  %v4508_v24 = vshrl.u32 %v18631_v61, 16  ;;  %v4511_v29 = vshll.u32 %v18631_v61, 16  ;;  %v4477_v45 = vor.u32 %v4475_v44, %v4474_v36  ;;  %v4479_v22 = vrot.slane %v4474_v36, 4  ;;  %v18694_v51 = vpop.f32.mrb[177].mxu1 }
 0x2b2   : > { %20967 = vst [vmem:[#allocation14_spill] sm:$0xff] %v18678_v60  ;;  %v8902_v41 = vld [vmem:[#allocation3 + $0xa0] sm:$0xff]  ;;  %v4522_v9 = vor.u32 %v4520_v15, %v4519_v49  ;;  %v4524_v37 = vrot.slane %v4519_v49, 4  ;;  %v4601_v40 = vld [vmem:[#allocation2 + $0x8c] sm:$0x1]  ;;  %v18692_v60 = vpop.f32.mrb[178].mxu0 }
 0x2b3   : > { %9812 = vmatmul.mubr.bf16.gmra.mrb[232].mxu0 %v8902_v41  ;;  %20969 = vst [vmem:[#allocation16_spill] sm:$0xff] %v18692_v60  ;;  %20970 = vst [vmem:[#allocation35_spill] sm:$0xff] %v18694_v51  ;;  %v15725_v35 = vld [vmem:[#allocation2 + $0x64] sm:$0xff]   ;;  %v4501_v33 = vrot.slane %v4499_v38, 7  ;;  %v4528_v4 = vrot.slane %v4526_v47, 7  ;;  %v4510_v30 = vrot.slane %v4508_v24, 7  ;;  %v4487_v38 = vsel %vm18059_vm10, %v4479_v22, %v18579_v14 }
 0x2b4   : > { %9819 = vmatprep.mubr.bf16.mxu0 %v8912_v28  ;;  %v7363_v61 = vshrl.u32 %v18560_v7, 16  ;;  %v18699_v44 = vld [vmem:[#allocation2 + $0x30] sm:$0xff]   ;;  %v18701_v15 = vld [vmem:[#allocation2 + $0x38] sm:$0xff]   ;;  %v18703_v36 = vpop.f32.mrb[179].mxu0  ;;  %v20972_v49 = vrot.slane %v18530_v23, 4  ;;  %v7367_v7 = vshll.u32 %v18660_v1, 16 }
 0x2b5   : > { %20971 = vst [vmem:[#allocation36_spill] sm:$0xff] %v18703_v36  ;;  %v8909_v28 = vld [vmem:[#allocation3 + $0xd8] sm:$0xff]  ;;  %v7616_v47 = vrot.slane %v18662_v18, 1  ;;  %v18714_v24 = vpop.f32.mrb[178].mxu1  ;;  %7811 = vst.msk [vmem:[#allocation3 + $0x330] sm:$0xff] %vm600_vm0, %v15725_v35  ;;  %v15726_v51 = vld [vmem:[#allocation2 + $0x50] sm:$0xff]   ;;  %v4504_v23 = vor.u32 %v4502_v3, %v4501_v33  ;;  %v4513_v22 = vor.u32 %v4511_v29, %v4510_v30 }
 0x2b6   : > { %v4478_v41 = vsel %vm18059_vm10, %v20972_v49, %v4477_v45  ;;  %20973 = vst [vmem:[#allocation37_spill] sm:$0xff] %v18714_v24  ;;  %4595 = vst.msk [vmem:[#allocation2 + $0x74] sm:$0xf] %vm451_vm3, %v4487_v38  ;;  %v4506_v45 = vrot.slane %v4501_v33, 4  ;;  %v4531_v49 = vor.u32 %v4529_v19, %v4528_v4  ;;  %v4533_v36 = vrot.slane %v4528_v4, 4  ;;  %v8910_v60 = vld [vmem:[#allocation3 + $0xe0] sm:$0xff] }
 0x2b7   : > { %4594 = vst.msk [vmem:[#allocation2 + $0x70] sm:$0xf] %vm451_vm3, %v4478_v41  ;;  %v18719_v14 = vld [vmem:[#allocation2 + $0x38] sm:$0xff]   ;;  %v4515_v54 = vrot.slane %v4510_v30, 4  ;;  %9658 = vmatprep.mubr.bf16.mxu1 %v8910_v60  ;;  %v7365_v18 = vor.u32 %v7363_v61, %v18615_v57  ;;  %v7369_v24 = vrot.slane %v7367_v7, 1  ;;  %v18722_v48 = vld [vmem:[#allocation2 + $0x40] sm:$0xff]  }
 0x2b8   : > { %v18724_v35 = vpop.f32.mrb[180].mxu0  ;;  %v18726_v41 = vpop.f32.mrb[179].mxu1  ;;  %7205 = vst.msk [vmem:[#allocation3 + $0x2d0] sm:$0xff] %vm600_vm0, %v15726_v51  ;;  %v20974_v3 = vrot.slane %v18532_v34, 4  ;;  %v4532_v30 = vsel %vm18059_vm10, %v4524_v37, %v4531_v49  ;;  %v4602_v57 = vsel %vm17809_vm7, %v4533_v36, %v4601_v40  ;;  %9659 = vmatmul.mubr.bf16.gmra.mrb[220].mxu1 %v8909_v28  ;;  %v20976_v19 = vrot.slane %v18591_v13, 1  ;;  %v8911_v37 = vld [vmem:[#allocation3 + $0xe8] sm:$0xff] }
 0x2b9   : > { %v18740_v33 = vpop.f32.mrb[181].mxu0  ;;  %v18742_v61 = vpop.f32.mrb[180].mxu1  ;;  %4600 = vst.msk [vmem:[#allocation2 + $0x88] sm:$0xf] %vm451_vm3, %v4532_v30  ;;  %4603 = vst [vmem:[#allocation2 + $0x8c] sm:$0x1] %v4602_v57  ;;  %v4514_v34 = vsel %vm18059_vm10, %v4506_v45, %v4513_v22  ;;  %v4523_v51 = vsel %vm18059_vm10, %v4515_v54, %v4522_v9  ;;  %v7370_v13 = vsel %vm733_vm2, %v7365_v18, %v7369_v24 }
 0x2ba   : > { %v4505_v4 = vsel %vm18059_vm10, %v20974_v3, %v4504_v23  ;;  %v7617_v29 = vsel %vm1014_vm1, %v20976_v19, %v7616_v47  ;;  %v8921_v40 = vld [vmem:[#allocation3 + $0x138] sm:$0xff]  ;;  %v7371_v36 = vshrl.u32 %v18660_v1, 16  ;;  %v18753_v38 = vpop.f32.mrb[182].mxu0  ;;  %v18755_v28 = vpop.f32.mrb[181].mxu1  ;;  %4598 = vst.msk [vmem:[#allocation2 + $0x80] sm:$0xf] %vm451_vm3, %v4514_v34 }
 0x2bb   : > { %4597 = vst.msk [vmem:[#allocation2 + $0x7c] sm:$0xf] %vm451_vm3, %v4505_v4  ;;  %4599 = vst.msk [vmem:[#allocation2 + $0x84] sm:$0xf] %vm451_vm3, %v4523_v51  ;;  %v7375_v54 = vshll.u32 %v18697_v46, 16  ;;  %v7618_v9 = vrot.slane %v18699_v44, 1  ;;  %9820 = vmatmul.mubr.bf16.gmra.mrb[236].mxu0 %v8911_v37 }
 0x2bc   : > { %7660 = vst.msk [vmem:[#allocation3 + $0x130] sm:$0xff] %vm600_vm0, %v7617_v29  ;;  %7479 = vst.msk [vmem:[#allocation3 + $0x128] sm:$0xff] %vm600_vm0, %v7370_v13  ;;  %v7379_v7 = vshrl.u32 %v18697_v46, 16  ;;  %v7383_v23 = vshll.u32 %v18701_v15, 16  ;;  %v18764_v45 = vpop.f32.mrb[183].mxu0  ;;  %v18766_v1 = vpop.f32.mrb[182].mxu1  ;;  %v7373_v49 = vor.u32 %v7371_v36, %v7369_v24  ;;  %9827 = vmatprep.mubr.bf16.mxu0 %v8921_v40 }
 0x2bd   : > { %v20977_v22 = vld [vmem:[#allocation17_spill] sm:$0xff]  ;;  %v20978_v18 = vld [vmem:[#allocation18_spill] sm:$0xff]  ;;  %v20907_v4 = vrot.slane %v18719_v14, 1  ;;  %v20979_v30 = vld [vmem:[#allocation19_spill] sm:$0xff]  ;;  %v18777_v44 = vpop.f32.mrb[183].mxu1  ;;  %v7377_v46 = vrot.slane %v7375_v54, 1  ;;  %v7619_v29 = vsel %vm1014_vm1, %v7616_v47, %v7618_v9 }
 0x2be   : > { %v18770_v3 = vadd.f32 %v20978_v18, %v20977_v22  ;;  %v20980_v57 = vld [vmem:[#allocation20_spill] sm:$0xff]  ;;  %v7385_v34 = vrot.slane %v7383_v23, 1  ;;  %v20982_v51 = vld [vmem:[#allocation21_spill] sm:$0xff]  ;;  %v20983_v37 = vld [vmem:[#allocation22_spill] sm:$0xff]  ;;  %7661 = vst.msk [vmem:[#allocation3 + $0x178] sm:$0xff] %vm600_vm0, %v7619_v29  ;;  %v7387_v40 = vshrl.u32 %v18701_v15, 16 }
 0x2bf   : > { %v18775_v19 = vadd.f32 %v20980_v57, %v20979_v30  ;;  %v18782_v24 = vadd.f32 %v20983_v37, %v20982_v51  ;;  %v15729_v13 = vld [vmem:[%s20896_s5 + $0x128] sm:$0xff]   ;;  %v7621_v22 = vsel %vm1014_vm1, %v7618_v9, %v20907_v4  ;;  %v7391_v47 = vshll.u32 %v18722_v48, 16  ;;  %v20988_v37 = vld [vmem:[#allocation23_spill] sm:$0xff]  ;;  %v20989_v29 = vld [vmem:[#allocation26_spill] sm:$0xff]  ;;  %v18801_v20 = vpop.f32.mrb[184].mxu1 }
 0x2c0   : > { %v7510_v36 = vld [vmem:[#allocation2 + $0x4c] sm:$0xf]  ;;  %v20985_v54 = vld [vmem:[#allocation24_spill] sm:$0xff]  ;;  %v7378_v57 = vsel %vm733_vm2, %v7373_v49, %v7377_v46  ;;  %v7381_v51 = vor.u32 %v7379_v7, %v7377_v46  ;;  %7662 = vst.msk [vmem:[#allocation3 + $0x1c0] sm:$0xff] %vm600_vm0, %v7621_v22  ;;  %v14153_v60 = vadd.f32 %v20989_v29, %v20988_v37  ;;  %20990 = vst [vmem:[#allocation20_spill] sm:$0xff] %v18801_v20  ;;  %14578 = vmatpush3.bf16.msra.mxu1 %v15729_v13  ;;  %v18810_v49 = vpop.f32.mrb[185].mxu1 }
 0x2c1   : > { %20981 = vst [vmem:[#allocation17_spill] sm:$0xff] %v18775_v19  ;;  %20984 = vst [vmem:[#allocation18_spill] sm:$0xff] %v18782_v24  ;;  %v20986_v23 = vld [vmem:[#allocation25_spill] sm:$0xff]  ;;  %v7509_v30 = vld [vmem:[#allocation2 + $0x48] sm:$0xf]  ;;  %v7389_v15 = vor.u32 %v7387_v40, %v7385_v34  ;;  %v18804_v9 = vrot.slane %v7391_v47, 1 }
 0x2c2   : > { %v18795_v18 = vadd.f32 %v20986_v23, %v20985_v54  ;;  %7480 = vst.msk [vmem:[#allocation3 + $0x170] sm:$0xff] %vm600_vm0, %v7378_v57  ;;  %v20991_v4 = vld [vmem:[#allocation27_spill] sm:$0xff]  ;;  %v20992_v54 = vld [vmem:[#allocation29_spill] sm:$0xff]  ;;  %20993 = vst [vmem:[#allocation21_spill] sm:$0xff] %v18810_v49  ;;  %v7386_v22 = vsel %vm733_vm2, %v7381_v51, %v7385_v34  ;;  %v13215_v29 = vcombine.low %v7509_v30, %v7510_v36 }
 0x2c3   : > { %v14156_v23 = vadd.f32 %v20992_v54, %v20991_v4  ;;  %v15730_v7 = vld [vmem:[%s20896_s5 + $0x1d8] sm:$0xff]   ;;  %v15732_v13 = vld [vmem:[#allocation2 + $0x6c] sm:$0xff]   ;;  %v20995_v57 = vld [vmem:[#allocation28_spill] sm:$0xff]  ;;  %7481 = vst.msk [vmem:[#allocation3 + $0x1b8] sm:$0xff] %vm600_vm0, %v7386_v22  ;;  %v7394_v54 = vsel %vm733_vm2, %v7389_v15, %v18804_v9  ;;  %v14162_v36 = vadd.f32 %v18490_v25, %v18474_v26  ;;  %v18846_v30 = vadd.f32 %v18492_v21, %v18476_v59 }
 0x2c4   : > { %20987 = vst [vmem:[#allocation19_spill] sm:$0xff] %v18795_v18  ;;  %v18808_v18 = vpop.f32.mrb[184].mxu0  ;;  %v15731_v46 = vld [vmem:[%s20896_s5 + $0x198] sm:$0xff]   ;;  %v15710_v20 = vld [vmem:[#allocation2 + $0x40] sm:$0xff]   ;;  %14685 = vmatprep.subr.bf16.mxu0 %v15730_v7  ;;  %7812 = vst.msk [vmem:[#allocation3 + $0x378] sm:$0xff] %vm600_vm0, %v15732_v13  ;;  %v18857_v26 = vadd.f32 %v18514_v52, %v18502_v2  ;;  %v14171_v25 = vadd.f32 %v18593_v56, %v18584_v43  ;;  %v18863_v59 = vadd.f32 %v18540_v58, %v18527_v32 }
 0x2c5   : > { %v20994_v40 = vld [vmem:[#allocation6_spill] sm:$0xff]  ;;  %v20997_v24 = vld [vmem:[#allocation7_spill] sm:$0xff]  ;;  %7482 = vst.msk [vmem:[#allocation3 + $0x200] sm:$0xff] %vm600_vm0, %v7394_v54  ;;  %14686 = vmatpush3.bf16.msra.mxu0 %v15731_v46  ;;  %v7622_v52 = vrot.slane %v15710_v20, 1  ;;  %v14174_v32 = vadd.f32 %v18609_v10, %v18601_v11  ;;  %v20999_v58 = vld [vmem:[#allocation8_spill] sm:$0xff]  ;;  %v14177_v56 = vadd.f32 %v18690_v39, %v18682_v42  ;;  %v7624_v11 = vrot.slane %v13215_v29, 1 }
 0x2c6   : > { %v18820_v47 = vadd.f32 %v14153_v60, %v20994_v40  ;;  %v20996_v4 = vld [vmem:[#allocation30_spill] sm:$0xff]  ;;  %v18830_v49 = vadd.f32 %v14156_v23, %v20997_v24  ;;  %v20998_v19 = vld [vmem:[#allocation31_spill] sm:$0xff]  ;;  %v14159_v60 = vadd.f32 %v18461_v12, %v18454_v27  ;;  %v14165_v24 = vadd.f32 %v18518_v6, %v18512_v63  ;;  %v8919_v20 = vld [vmem:[#allocation3 + $0x128] sm:$0xff] }
 0x2c7   : > { %v18824_v37 = vadd.f32 %v20996_v4, %v20995_v57  ;;  %v18834_v34 = vadd.f32 %v18450_v50, %v20998_v19  ;;  %v14168_v50 = vadd.f32 %v18538_v62, %v18524_v0  ;;  %v18850_v27 = vld [vmem:[#allocation2 + $0x50] sm:$0xff]   ;;  %v15714_v19 = vld [vmem:[#allocation2 + $0x48] sm:$0xff]   ;;  %v18866_v0 = vadd.f32 %v14162_v36, %v18640_v5  ;;  %v15680_v2 = vld [vmem:[#allocation2 + $0x80] sm:$0xff]   ;;  %9666 = vmatprep.mubr.bf16.mxu1 %v8919_v20  ;;  %v14188_v57 = vpop.f32.mrb[185].mxu0  ;;  %v18906_v4 = vpop.f32.mrb[186].mxu1 }
 0x2c8   : > { %v18853_v12 = vadd.f32 %v14159_v60, %v18564_v31  ;;  %v18869_v21 = vadd.f32 %v14165_v24, %v18646_v8  ;;  %v18874_v6 = vld [vmem:[#allocation2 + $0x50] sm:$0xff]   ;;  %v18877_v62 = vadd.f32 %v14171_v25, %v18654_v55  ;;  %v21000_v31 = vld [vmem:[#allocation32_spill] sm:$0xff]  ;;  %v18889_v5 = vadd.f32 %v18617_v17, %v18611_v16  ;;  %10613 = vst.msk [vmem:[#allocation3] sm:$0xff] %vm600_vm0, %v15680_v2  ;;  %v18901_v7 = vld [vmem:[#allocation2 + $0x58] sm:$0xff]   ;;  %v18916_v2 = vpop.f32.mrb[187].mxu1 }
 0x2c9   : > { %v18872_v63 = vadd.f32 %v14168_v50, %v18650_v53  ;;  %v18883_v43 = vadd.f32 %v21000_v31, %v20999_v58  ;;  %v8920_v8 = vld [vmem:[#allocation3 + $0x130] sm:$0xff]  ;;  %v21001_v53 = vrot.slane %v18719_v14, 1  ;;  %v7395_v10 = vshrl.u32 %v18722_v48, 16  ;;  %v8930_v15 = vld [vmem:[#allocation3 + $0x180] sm:$0xff]  ;;  %v21002_v39 = vld [vmem:[#allocation9_spill] sm:$0xff] }
 0x2ca   : > { %v7399_v51 = vshll.u32 %v15714_v19, 16  ;;  %9828 = vmatmul.mubr.bf16.gmra.mrb[240].mxu0 %v8920_v8  ;;  %v8918_v42 = vld [vmem:[#allocation3 + $0x120] sm:$0xff]  ;;  %v7403_v16 = vshrl.u32 %v15714_v19, 16  ;;  %v7407_v17 = vshll.u32 %v18874_v6, 16  ;;  %v18899_v23 = vadd.f32 %v14174_v32, %v21002_v39  ;;  %v8928_v14 = vld [vmem:[#allocation3 + $0x170] sm:$0xff]  ;;  %v21006_v50 = vld [vmem:[#allocation33_spill] sm:$0xff] }
 0x2cb   : > { %v7623_v55 = vsel %vm1014_vm1, %v21001_v53, %v7622_v52  ;;  %9835 = vmatprep.mubr.bf16.mxu0 %v8930_v15  ;;  %9667 = vmatmul.mubr.bf16.gmra.mrb[224].mxu1 %v8918_v42  ;;  %v7625_v48 = vsel %vm1014_vm1, %v7622_v52, %v7624_v11  ;;  %v7397_v46 = vor.u32 %v7395_v10, %v18804_v9  ;;  %v21003_v22 = vld [vmem:[#allocation10_spill] sm:$0xff]  ;;  %v7626_v54 = vrot.slane %v18850_v27, 1  ;;  %v21004_v60 = vld [vmem:[#allocation16_spill] sm:$0xff]  ;;  %v14190_v9 = vpop.f32.mrb[186].mxu0  ;;  %v21008_v31 = vld [vmem:[#allocation15_spill] sm:$0xff]  ;;  %v18923_v53 = vpop.f32.mrb[188].mxu1 }
 0x2cc   : > { %7663 = vst.msk [vmem:[#allocation3 + $0x208] sm:$0xff] %vm600_vm0, %v7623_v55  ;;  %v7401_v13 = vrot.slane %v7399_v51, 1  ;;  %v6343_v40 = vadd.f32 %v14177_v56, %v21003_v22  ;;  %9674 = vmatprep.mubr.bf16.mxu1 %v8928_v14  ;;  %7664 = vst.msk [vmem:[#allocation3 + $0x250] sm:$0xff] %vm600_vm0, %v7625_v48  ;;  %v7409_v29 = vrot.slane %v7407_v17, 1  ;;  %v21005_v36 = vld [vmem:[#allocation36_spill] sm:$0xff]  ;;  %v21007_v19 = vld [vmem:[#allocation34_spill] sm:$0xff]  ;;  %v14183_v58 = vadd.f32 %v18740_v33, %v18724_v35 }
 0x2cd   : > { %v14180_v24 = vadd.f32 %v21005_v36, %v21004_v60  ;;  %v18914_v25 = vadd.f32 %v21007_v19, %v21006_v50  ;;  %v21009_v56 = vld [vmem:[#allocation35_spill] sm:$0xff]  ;;  %v14191_v8 = vpop.f32.mrb[187].mxu0  ;;  %v7627_v51 = vsel %vm1014_vm1, %v7624_v11, %v7626_v54  ;;  %v21010_v15 = vld [vmem:[#allocation12_spill] sm:$0xff]  ;;  %v7415_v35 = vshll.u32 %v18901_v7, 16  ;;  %v18932_v17 = vpop.f32.mrb[189].mxu1  ;;  %v21011_v48 = vld [vmem:[#allocation13_spill] sm:$0xff] }
 0x2ce   : > { %v7402_v52 = vsel %vm733_vm2, %v7397_v46, %v7401_v13  ;;  %v7405_v32 = vor.u32 %v7403_v16, %v7401_v13  ;;  %v14241_v20 = vadd.f32 %v21009_v56, %v21008_v31  ;;  %v15734_v55 = vld [vmem:[#allocation2 + $0x58] sm:$0xff]   ;;  %v7411_v16 = vshrl.u32 %v18874_v6, 16  ;;  %v14193_v33 = vpop.f32.mrb[188].mxu0  ;;  %7665 = vst.msk [vmem:[#allocation3 + $0x298] sm:$0xff] %vm600_vm0, %v7627_v51  ;;  %v18941_v60 = vpop.f32.mrb[190].mxu1  ;;  %v8939_v6 = vld [vmem:[#allocation3 + $0x1c8] sm:$0xff] }
 0x2cf   : > { %v7514_v10 = vld [vmem:[#allocation2 + $0x5c] sm:$0xf]  ;;  %7483 = vst.msk [vmem:[#allocation3 + $0x248] sm:$0xff] %vm600_vm0, %v7402_v52  ;;  %v6346_v42 = vadd.f32 %v14180_v24, %v21010_v15  ;;  %v7513_v39 = vld [vmem:[#allocation2 + $0x58] sm:$0xf]  ;;  %v6351_v46 = vadd.f32 %v14183_v58, %v21011_v48  ;;  %v14186_v11 = vadd.f32 %v18764_v45, %v18753_v38  ;;  %v14194_v22 = vpop.f32.mrb[189].mxu0  ;;  %v14192_v51 = vadd.f32 %v14191_v8, %v14190_v9 }
 0x2d0   : > { %v7410_v14 = vsel %vm733_vm2, %v7405_v32, %v7409_v29  ;;  %v18937_v13 = vadd.f32 %v14241_v20, %v6343_v40  ;;  %7206 = vst.msk [vmem:[#allocation3 + $0x318] sm:$0xff] %vm600_vm0, %v15734_v55  ;;  %v8927_v36 = vld [vmem:[#allocation3 + $0x168] sm:$0xff]  ;;  %v7413_v24 = vor.u32 %v7411_v16, %v7409_v29  ;;  %v7417_v50 = vrot.slane %v7415_v35, 1  ;;  %v14196_v32 = vpop.f32.mrb[190].mxu0  ;;  %v18948_v58 = vld [vmem:[#allocation2 + $0x60] sm:$0xff]   ;;  %v14261_v38 = vpop.f32.mrb[191].mxu1 }
 0x2d1   : > { %7484 = vst.msk [vmem:[#allocation3 + $0x290] sm:$0xff] %vm600_vm0, %v7410_v14  ;;  %v21012_v19 = vld [vmem:[#allocation37_spill] sm:$0xff]  ;;  %v14189_v40 = vadd.f32 %v14188_v57, %v18808_v18  ;;  %v8929_v45 = vld [vmem:[#allocation3 + $0x178] sm:$0xff]  ;;  %v21013_v31 = vld [vmem:[#allocation14_spill] sm:$0xff]  ;;  %v14247_v20 = vadd.f32 %v18755_v28, %v18742_v61  ;;  %v13217_v55 = vcombine.low %v7513_v39, %v7514_v10  ;;  %v14197_v15 = vpop.f32.mrb[191].mxu0  ;;  %v18953_v29 = vpop.f32.mrb[192].mxu1  ;;  %v14250_v35 = vadd.f32 %v18777_v44, %v18766_v1 }
 0x2d2   : > { %v14244_v52 = vadd.f32 %v18726_v41, %v21012_v19  ;;  %v6354_v56 = vadd.f32 %v14186_v11, %v21013_v31  ;;  %v15736_v16 = vld [vmem:[#allocation2 + $0x74] sm:$0xff]   ;;  %9836 = vmatmul.mubr.bf16.gmra.mrb[244].mxu0 %v8929_v45  ;;  %v7418_v41 = vsel %vm733_vm2, %v7413_v24, %v7417_v50  ;;  %v14279_v14 = vpop.f32.mrb[192].mxu0  ;;  %v18961_v48 = vpop.f32.mrb[193].mxu1  ;;  %v8937_v61 = vld [vmem:[#allocation3 + $0x1b8] sm:$0xff]  ;;  %v21014_v8 = vld [vmem:[#allocation17_spill] sm:$0xff]  ;;  %v7423_v24 = vshll.u32 %v18948_v58, 16 }
 0x2d3   : > { %v6359_v57 = vadd.f32 %v14189_v40, %v18770_v3  ;;  %9843 = vmatprep.mubr.bf16.mxu0 %v8939_v6  ;;  %9675 = vmatmul.mubr.bf16.gmra.mrb[228].mxu1 %v8927_v36  ;;  %7485 = vst.msk [vmem:[#allocation3 + $0x2d8] sm:$0xff] %vm600_vm0, %v7418_v41  ;;  %v18964_v28 = vadd.f32 %v14247_v20, %v6351_v46  ;;  %v18966_v9 = vrot.slane %v13217_v55, 1  ;;  %v14280_v39 = vpop.f32.mrb[193].mxu0  ;;  %v18969_v3 = vpop.f32.mrb[194].mxu1  ;;  %7813 = vst.msk [vmem:[#allocation3 + $0x3c0] sm:$0xff] %vm600_vm0, %v15736_v16  ;;  %v18972_v1 = vld [vmem:[#allocation2 + $0x60] sm:$0xff]  }
 0x2d4   : > { %v18956_v18 = vadd.f32 %v14244_v52, %v6346_v42  ;;  %v6362_v10 = vadd.f32 %v14192_v51, %v21014_v8  ;;  %v14195_v42 = vadd.f32 %v14194_v22, %v14193_v33  ;;  %9682 = vmatprep.mubr.bf16.mxu1 %v8937_v61  ;;  %v18974_v44 = vadd.f32 %v14250_v35, %v6354_v56  ;;  %v21015_v11 = vld [vmem:[#allocation20_spill] sm:$0xff]  ;;  %v21016_v6 = vld [vmem:[#allocation21_spill] sm:$0xff]  ;;  %v14282_v19 = vpop.f32.mrb[194].mxu0  ;;  %v18980_v52 = vpop.f32.mrb[195].mxu1  ;;  %v21017_v40 = vld [vmem:[#allocation18_spill] sm:$0xff] }
 0x2d5   : > { %v14253_v36 = vadd.f32 %v21016_v6, %v21015_v11  ;;  %v7419_v46 = vshrl.u32 %v18901_v7, 16  ;;  %v15737_v33 = vld [vmem:[%s20896_s5 + $0x170] sm:$0xff]   ;;  %v7629_v22 = vsel %vm1014_vm1, %v7626_v54, %v18966_v9  ;;  %v14198_v31 = vadd.f32 %v14197_v15, %v14196_v32  ;;  %v14283_v56 = vpop.f32.mrb[195].mxu0  ;;  %v18992_v20 = vld [vmem:[#allocation2 + $0x68] sm:$0xff]  }
 0x2d6   : > { %v6367_v45 = vadd.f32 %v14195_v42, %v21017_v40  ;;  %v14256_v7 = vadd.f32 %v18916_v2, %v18906_v4  ;;  %7666 = vst.msk [vmem:[#allocation3 + $0x2e0] sm:$0xff] %vm600_vm0, %v7629_v22  ;;  %v7425_v16 = vrot.slane %v7423_v24, 1  ;;  %v14259_v27 = vadd.f32 %v18932_v17, %v18923_v53  ;;  %14579 = vmatprep.subr.bf16.mxu1 %v15737_v33  ;;  %v15739_v54 = vld [vmem:[%s20896_s5 + $0x130] sm:$0xff]   ;;  %v7517_v32 = vld [vmem:[#allocation2 + $0x68] sm:$0xf]  ;;  %v21018_v4 = vld [vmem:[#allocation19_spill] sm:$0xff] }
 0x2d7   : > { %v18995_v55 = vadd.f32 %v14253_v36, %v6359_v57  ;;  %v7421_v51 = vor.u32 %v7419_v46, %v7417_v50  ;;  %v7518_v15 = vld [vmem:[#allocation2 + $0x6c] sm:$0xf]  ;;  %v6370_v2 = vadd.f32 %v14198_v31, %v21018_v4  ;;  %v14281_v35 = vadd.f32 %v14280_v39, %v14279_v14  ;;  %v15740_v50 = vld [vmem:[%s20896_s5 + $0x1e0] sm:$0xff]   ;;  %v19011_v17 = vpop.f32.mrb[196].mxu1  ;;  %v8948_v61 = vld [vmem:[#allocation3 + $0x210] sm:$0xff]  ;;  %14580 = vmatpush3.bf16.msra.mxu1 %v15739_v54  ;;  %v14285_v40 = vpop.f32.mrb[196].mxu0 }
 0x2d8   : > { %v19003_v41 = vadd.f32 %v14256_v7, %v6362_v10  ;;  %v15741_v53 = vld [vmem:[%s20896_s5 + $0x1a0] sm:$0xff]   ;;  %v8936_v8 = vld [vmem:[#allocation3 + $0x1b0] sm:$0xff]  ;;  %v19016_v11 = vadd.f32 %v14259_v27, %v6367_v45  ;;  %v14262_v14 = vadd.f32 %v14261_v38, %v18941_v60  ;;  %v14284_v10 = vadd.f32 %v14283_v56, %v14282_v19  ;;  %v19019_v6 = vpop.f32.mrb[197].mxu1  ;;  %14687 = vmatprep.subr.bf16.mxu0 %v15740_v50 }
 0x2d9   : > { %v19013_v57 = vld [vmem:[#allocation2 + $0x60] sm:$0xff]   ;;  %v7426_v42 = vsel %vm733_vm2, %v7421_v51, %v7425_v16  ;;  %v7630_v46 = vrot.slane %v18972_v1, 1  ;;  %v6408_v24 = vadd.f32 %v18824_v37, %v18820_v47  ;;  %v7427_v33 = vshrl.u32 %v18948_v58, 16  ;;  %v19027_v60 = vpop.f32.mrb[198].mxu1  ;;  %v19029_v38 = vld [vmem:[#allocation2 + $0x70] sm:$0xff]   ;;  %v14286_v58 = vpop.f32.mrb[197].mxu0  ;;  %14688 = vmatpush3.bf16.msra.mxu0 %v15741_v53 }
 0x2da   : > { %v15742_v39 = vld [vmem:[#allocation2 + $0x7c] sm:$0xff]   ;;  %v8938_v36 = vld [vmem:[#allocation3 + $0x1c0] sm:$0xff]  ;;  %7486 = vst.msk [vmem:[#allocation3 + $0x320] sm:$0xff] %vm600_vm0, %v7426_v42  ;;  %v7431_v22 = vshll.u32 %v18992_v20, 16  ;;  %v19031_v45 = vadd.f32 %v14262_v14, %v6370_v2  ;;  %v6411_v47 = vadd.f32 %v18834_v34, %v18830_v49  ;;  %v6416_v37 = vadd.f32 %v18846_v30, %v18853_v12  ;;  %v19042_v7 = vld [vmem:[#allocation2 + $0x70] sm:$0xff]   ;;  %v19045_v56 = vpop.f32.mrb[199].mxu1 }
 0x2db   : > { %9844 = vmatmul.mubr.bf16.gmra.mrb[248].mxu0 %v8938_v36  ;;  %v8946_v19 = vld [vmem:[#allocation3 + $0x200] sm:$0xff]  ;;  %v19036_v1 = vld [vmem:[%s20894_s3] ss:$0 sm:$0xff]  ;;  %v13219_v31 = vcombine.low %v7517_v32, %v7518_v15  ;;  %7814 = vst.msk [vmem:[#allocation3 + $0x408] sm:$0xff] %vm600_vm0, %v15742_v39  ;;  %9683 = vmatmul.mubr.bf16.gmra.mrb[232].mxu1 %v8936_v8  ;;  %v7631_v51 = vsel %vm1014_vm1, %v18966_v9, %v7630_v46  ;;  %v14288_v49 = vpop.f32.mrb[198].mxu0  ;;  %v15747_v9 = vld [vmem:[%s20896_s5 + $0x178] sm:$0xff]  }
 0x2dc   : > { %9851 = vmatprep.mubr.bf16.mxu0 %v8948_v61  ;;  %v6505_v27 = vadd.f32 %v14281_v35, %v6408_v24  ;;  %v7429_v54 = vor.u32 %v7427_v33, %v7425_v16  ;;  %v7433_v4 = vrot.slane %v7431_v22, 1  ;;  %9690 = vmatprep.mubr.bf16.mxu1 %v8946_v19  ;;  %7667 = vst.msk [vmem:[#allocation3 + $0x328] sm:$0xff] %vm600_vm0, %v7631_v51  ;;  %v14289_v15 = vpop.f32.mrb[199].mxu0  ;;  %v15746_v2 = vld [vmem:[#allocation2 + $0x84] sm:$0xff]   ;;  %v19057_v16 = vld [vmem:[#allocation2 + $0x6c] sm:$0xf]  ;;  %v6745_v24 = vpop.permute.xlu0 %6744 }
 0x2dd   : > { %v6508_v34 = vadd.f32 %v14284_v10, %v6411_v47  ;;  %v14287_v30 = vadd.f32 %v14286_v58, %v14285_v40  ;;  %v19050_v12 = vrot.slane %v13219_v31, 1  ;;  %v6419_v32 = vadd.f32 %v18857_v26, %v18866_v0  ;;  %v19064_v8 = vld [vmem:[%s20895_s4] ss:$0 sm:$0xff]  ;;  %7815 = vst.msk [vmem:[#allocation3 + $0x450] sm:$0xff] %vm600_vm0, %v15746_v2  ;;  %14581 = vmatprep.subr.bf16.mxu1 %v15747_v9  ;;  %v15750_v14 = vld [vmem:[%s20896_s5 + $0x1e8] sm:$0xff]  }
 0x2de   : > { %v6602_v35 = vadd.f32 %v18961_v48, %v6505_v27  ;;  %v7434_v50 = vsel %vm733_vm2, %v7429_v54, %v7433_v4  ;;  %v14290_v61 = vadd.f32 %v14289_v15, %v14288_v49  ;;  %v7435_v42 = vshrl.u32 %v18992_v20, 16  ;;  %v15749_v48 = vld [vmem:[%s20896_s5 + $0x138] sm:$0xff]   ;;  %v7093_v10 = vld [vmem:[#allocation2 + $0x68] sm:$0xf]  ;;  %v8947_v39 = vld [vmem:[#allocation3 + $0x208] sm:$0xff]  ;;  %7207 = vst.msk [vmem:[#allocation3 + $0x360] sm:$0xff] %vm600_vm0, %v19013_v57  ;;  %v6750_v57 = vpop.permute.xlu1 %6749  ;;  %14689 = vmatprep.subr.bf16.mxu0 %v15750_v14 }
 0x2df   : > { %7487 = vst.msk [vmem:[#allocation3 + $0x368] sm:$0xff] %vm600_vm0, %v7434_v50  ;;  %v6605_v26 = vadd.f32 %v18980_v52, %v6508_v34  ;;  %v6513_v0 = vadd.f32 %v14287_v30, %v6416_v37  ;;  %v7633_v53 = vsel %vm1014_vm1, %v7630_v46, %v19050_v12  ;;  %v7439_v20 = vshll.u32 %v19042_v7, 16  ;;  %v19083_v46 = vpop.f32.mrb[200].mxu1  ;;  %14582 = vmatpush3.bf16.msra.mxu1 %v15749_v48  ;;  %v15751_v47 = vld [vmem:[%s20896_s5 + $0x1a8] sm:$0xff]   ;;  %v14291_v27 = vpop.f32.mrb[200].mxu0  ;;  %v8945_v54 = vld [vmem:[#allocation3 + $0x1f8] sm:$0xff] }
 0x2e0   : > { %v6671_v52 = vmul.f32 %v19036_v1, %v6602_v35  ;;  %7668 = vst.msk [vmem:[#allocation3 + $0x370] sm:$0xff] %vm600_vm0, %v7633_v53  ;;  %v6516_v36 = vadd.f32 %v14290_v61, %v6419_v32  ;;  %v7437_v40 = vor.u32 %v7435_v42, %v7433_v4  ;;  %v6424_v19 = vadd.f32 %v18863_v59, %v18869_v21  ;;  %v19092_v37 = vpop.f32.mrb[201].mxu1  ;;  %v15752_v59 = vld [vmem:[%s20896_s5 + $0x1f0] sm:$0xff]   ;;  %v8957_v21 = vld [vmem:[#allocation3 + $0x258] sm:$0xff]  ;;  %v14292_v34 = vpop.f32.mrb[201].mxu0 }
 0x2e1   : > { %v6672_v33 = vmul.f32 %v19036_v1, %v6605_v26  ;;  %v6610_v22 = vadd.f32 %v18953_v29, %v6513_v0  ;;  %v7441_v51 = vrot.slane %v7439_v20, 1  ;;  %v7634_v29 = vrot.slane %v19029_v38, 1  ;;  %v19106_v15 = vpop.f32.mrb[202].mxu1  ;;  %v8955_v2 = vld [vmem:[#allocation3 + $0x248] sm:$0xff]  ;;  %v14294_v26 = vpop.f32.mrb[202].mxu0  ;;  %14690 = vmatpush3.bf16.msra.mxu0 %v15751_v47  ;;  %v8984_v38 = vld [vmem:[#allocation3 + $0x330] sm:$0xff] }
 0x2e2   : > { %v6694_v58 = vadd.f32 %v19064_v8, %v6671_v52  ;;  %v6613_v31 = vadd.f32 %v18969_v3, %v6516_v36  ;;  %v13186_v30 = vcombine.low %v7093_v10, %v19057_v16  ;;  %v19103_v3 = vld [vmem:[#allocation2 + $0x78] sm:$0xff]   ;;  %v7443_v32 = vshrl.u32 %v19042_v7, 16  ;;  %v15753_v16 = vld [vmem:[%s20896_s5 + $0x1b0] sm:$0xff]   ;;  %v14295_v42 = vpop.f32.mrb[203].mxu0  ;;  %14691 = vmatprep.subr.bf16.mxu0 %v15752_v59  ;;  %v19125_v20 = vpop.f32.mrb[203].mxu1 }
 0x2e3   : > { %9852 = vmatmul.mubr.bf16.gmra.mrb[252].mxu0 %v8947_v39  ;;  %v6695_v4 = vadd.f32 %v19064_v8, %v6672_v33  ;;  %v6673_v49 = vmul.f32 %v19036_v1, %v6610_v22  ;;  %9691 = vmatmul.mubr.bf16.gmra.mrb[236].mxu1 %v8945_v54  ;;  %v7442_v50 = vsel %vm733_vm2, %v7437_v40, %v7441_v51  ;;  %v15764_v36 = vld [vmem:[%s20896_s5 + $0x1f8] sm:$0xff]   ;;  %v7447_v22 = vshll.u32 %v19103_v3, 16  ;;  %v6755_v40 = vpop.permute.xlu0 %6754 }
 0x2e4   : > { %9859 = vmatprep.mubr.bf16.mxu0 %v8957_v21  ;;  %v6710_v9 = vmax.f32 %v6694_v58, 0.0  ;;  %v6674_v35 = vmul.f32 %v19036_v1, %v6613_v31  ;;  %v14293_v61 = vadd.f32 %v14292_v34, %v14291_v27  ;;  %9698 = vmatprep.mubr.bf16.mxu1 %v8955_v2  ;;  %7488 = vst.msk [vmem:[#allocation3 + $0x3b0] sm:$0xff] %vm600_vm0, %v7442_v50  ;;  %7208 = vst.msk [vmem:[#allocation3 + $0x3a8] sm:$0xff] %vm600_vm0, %v13186_v30  ;;  %v6760_v27 = vpop.permute.xlu1 %6759  ;;  %v14297_v30 = vpop.f32.mrb[204].mxu0  ;;  %v8964_v50 = vld [vmem:[#allocation3 + $0x290] sm:$0xff] }
 0x2e5   : > { %v6711_v0 = vmax.f32 %v6695_v4, 0.0  ;;  %v6696_v7 = vadd.f32 %v19064_v8, %v6673_v49  ;;  %v7635_v53 = vsel %vm1014_vm1, %v19050_v12, %v7634_v29  ;;  %v7445_v48 = vor.u32 %v7443_v32, %v7441_v51  ;;  %v15765_v51 = vld [vmem:[%s20896_s5 + $0x1b8] sm:$0xff]   ;;  %14692 = vmatpush3.bf16.msra.mxu0 %v15753_v16  ;;  %v8966_v4 = vld [vmem:[#allocation3 + $0x2a0] sm:$0xff] }
 0x2e6   : > { %v6822_v14 = vmul.f32 %v6745_v24, %v6710_v9  ;;  %v6697_v10 = vadd.f32 %v19064_v8, %v6674_v35  ;;  %7669 = vst.msk [vmem:[#allocation3 + $0x3b8] sm:$0xff] %vm600_vm0, %v7635_v53  ;;  %v14296_v39 = vadd.f32 %v14295_v42, %v14294_v26  ;;  %v6521_v52 = vadd.f32 %v14293_v61, %v6424_v19  ;;  %v14298_v35 = vpop.f32.mrb[205].mxu0  ;;  %v7046_v53 = vld [vmem:[#allocation2 + $0x8c] sm:$0xf] }
 0x2e7   : > { %v6823_v12 = vmul.f32 %v6750_v57, %v6711_v0  ;;  %v6712_v33 = vmax.f32 %v6696_v7, 0.0  ;;  %v6427_v24 = vadd.f32 %v18883_v43, %v18872_v63  ;;  %v6432_v19 = vadd.f32 %v18889_v5, %v18877_v62  ;;  %v15766_v63 = vld [vmem:[#allocation2 + $0x18] sm:$0xff]   ;;  %14693 = vmatprep.subr.bf16.mxu0 %v15764_v36  ;;  %v8954_v62 = vld [vmem:[#allocation3 + $0x240] sm:$0xff]  ;;  %v14300_v7 = vpop.f32.mrb[206].mxu0 }
 0x2e8   : > { %v13583_v47 = vpack.c.bf16 %v6822_v14, %v6822_v14  ;;  %v6713_v58 = vmax.f32 %v6697_v10, 0.0  ;;  %v6618_v31 = vadd.f32 %v19019_v6, %v6521_v52  ;;  %v19136_v21 = vrot.slane %v7447_v22, 1  ;;  %v8956_v43 = vld [vmem:[#allocation3 + $0x250] sm:$0xff]  ;;  %8405 = vst.msk [vmem:[#allocation3 + $0x30] sm:$0xff] %vm600_vm0, %v15766_v63  ;;  %v7522_v52 = vld [vmem:[#allocation2 + $0x7c] sm:$0xf] }
 0x2e9   : > { %v13584_v57 = vpack.c.bf16 %v6823_v12, %v6823_v12  ;;  %v6824_v59 = vmul.f32 %v6755_v40, %v6712_v33  ;;  %v6524_v54 = vadd.f32 %v14296_v39, %v6427_v24  ;;  %v14299_v10 = vadd.f32 %v14298_v35, %v14297_v30  ;;  %v14301_v39 = vpop.f32.mrb[207].mxu0  ;;  %14694 = vmatpush3.bf16.msra.mxu0 %v15765_v51  ;;  %v15774_v24 = vld [vmem:[%s20896_s5 + $0x200] sm:$0xff]  }
 0x2ea   : > { %v6887_v49 = vshrl.u32 %v13583_v47, 16  ;;  %v6825_v34 = vmul.f32 %v6760_v27, %v6713_v58  ;;  %v6675_v6 = vmul.f32 %v19036_v1, %v6618_v31  ;;  %v6890_v5 = vshll.u32 %v13583_v47, 16  ;;  %v6765_v31 = vpop.permute.xlu0 %6764  ;;  %v7521_v27 = vld [vmem:[#allocation2 + $0x78] sm:$0xf]  ;;  %15167 = vmatprep.subr.bf16.mxu1 %v15774_v24 }
 0x2eb   : > { %9860 = vmatmul.mubr.bf16.gmra.mrb[0].mxu0 %v8956_v43  ;;  %v6895_v32 = vshrl.u32 %v13584_v57, 16  ;;  %v13585_v2 = vpack.c.bf16 %v6824_v59, %v6824_v59  ;;  %v7450_v9 = vsel %vm733_vm2, %v7445_v48, %v19136_v21  ;;  %9699 = vmatmul.mubr.bf16.gmra.mrb[240].mxu1 %v8954_v62  ;;  %v6621_v0 = vadd.f32 %v19045_v56, %v6524_v54  ;;  %v15777_v43 = vld [vmem:[#allocation2 + $0x20] sm:$0xff]  }
 0x2ec   : > { %9867 = vmatprep.mubr.bf16.mxu0 %v8966_v4  ;;  %v6889_v61 = vrot.slane %v6887_v49, 7  ;;  %v13586_v26 = vpack.c.bf16 %v6825_v34, %v6825_v34  ;;  %v6698_v16 = vadd.f32 %v19064_v8, %v6675_v6  ;;  %7489 = vst.msk [vmem:[#allocation3 + $0x3f8] sm:$0xff] %vm600_vm0, %v7450_v9  ;;  %9706 = vmatprep.mubr.bf16.mxu1 %v8964_v50  ;;  %v6898_v14 = vshll.u32 %v13584_v57, 16  ;;  %v7095_v4 = vld [vmem:[#allocation2 + $0x70] sm:$0xff]   ;;  %v14303_v50 = vpop.f32.mrb[208].mxu0 }
 0x2ed   : > { %v6897_v42 = vrot.slane %v6895_v32, 7  ;;  %v6904_v48 = vshrl.u32 %v13585_v2, 16  ;;  %v6907_v33 = vshll.u32 %v13585_v2, 16  ;;  %v6676_v51 = vmul.f32 %v19036_v1, %v6621_v0  ;;  %v19159_v35 = vld [vmem:[#allocation2 + $0x80] ss:$0 sps:$4 sm:$0x11]  }
 0x2ee   : > { %v6892_v36 = vor.u32 %v6890_v5, %v6889_v61  ;;  %v6893_v12 = vrot.slane %v6889_v61, 4  ;;  %v6913_v22 = vshrl.u32 %v13586_v26, 16  ;;  %v6916_v47 = vshll.u32 %v13586_v26, 16  ;;  %v8965_v5 = vld [vmem:[#allocation3 + $0x298] sm:$0xff]  ;;  %8406 = vst.msk [vmem:[#allocation3 + $0x78] sm:$0xff] %vm600_vm0, %v15777_v43  ;;  %v19162_v61 = vpop.f32.mrb[204].mxu1 }
 0x2ef   : > { %v6900_v40 = vor.u32 %v6898_v14, %v6897_v42  ;;  %v6906_v56 = vrot.slane %v6904_v48, 7  ;;  %v6714_v58 = vmax.f32 %v6698_v16, 0.0  ;;  %v6529_v63 = vadd.f32 %v14299_v10, %v6432_v19  ;;  %v8975_v26 = vld [vmem:[#allocation3 + $0x2e8] sm:$0xff]  ;;  %v14304_v48 = vpop.f32.mrb[209].mxu0  ;;  %v7098_v10 = vld [vmem:[#allocation2 + $0x7c] sm:$0xf] }
 0x2f0   : > { %v7047_v59 = vsel %vm17816_vm8, %v6892_v36, %v7046_v53  ;;  %v19150_v54 = vrot.slane %v6913_v22, 7  ;;  %v6902_v6 = vrot.slane %v6897_v42, 4  ;;  %v6699_v9 = vadd.f32 %v19064_v8, %v6676_v51  ;;  %v8963_v16 = vld [vmem:[#allocation3 + $0x288] sm:$0xff]  ;;  %v8973_v36 = vld [vmem:[#allocation3 + $0x2d8] sm:$0xff]  ;;  %7209 = vst.msk [vmem:[#allocation3 + $0x3f0] sm:$0xff] %vm600_vm0, %v7095_v4 }
 0x2f1   : > { %7048 = vst [vmem:[#allocation2 + $0x8c] sm:$0xf] %v7047_v59  ;;  %v6901_v34 = vsel %vm18059_vm10, %v6893_v12, %v6900_v40  ;;  %v6909_v30 = vor.u32 %v6907_v33, %v6906_v56  ;;  %v6826_v62 = vmul.f32 %v6765_v31, %v6714_v58  ;;  %v6911_v32 = vrot.slane %v6906_v56, 4  ;;  %v19197_v4 = vld [vmem:[#allocation2 + $0x18] sm:$0xff]  }
 0x2f2   : > { %7049 = vst.msk [vmem:[#allocation2 + $0x90] sm:$0xf] %vm451_vm3, %v6901_v34  ;;  %v6918_v2 = vor.u32 %v6916_v47, %v19150_v54  ;;  %v6626_v19 = vadd.f32 %v19011_v17, %v6529_v63  ;;  %v13221_v42 = vcombine.low %v7521_v27, %v7522_v52  ;;  %v6435_v14 = vadd.f32 %v18914_v25, %v18899_v23  ;;  %v19168_v17 = vpop.f32.mrb[205].mxu1  ;;  %v14306_v52 = vpop.f32.mrb[210].mxu0  ;;  %v8294_v25 = vld [vmem:[#allocation2 + $0x5c] sm:$0xf] }
 0x2f3   : > { %9868 = vmatmul.mubr.bf16.gmra.mrb[4].mxu0 %v8965_v5  ;;  %v6910_v0 = vsel %vm18059_vm10, %v6902_v6, %v6909_v30  ;;  %v13587_v53 = vpack.c.bf16 %v6826_v62, %v6826_v62  ;;  %9707 = vmatmul.mubr.bf16.gmra.mrb[244].mxu1 %v8963_v16  ;;  %v6715_v33 = vmax.f32 %v6699_v9, 0.0  ;;  %v14302_v24 = vadd.f32 %v14301_v39, %v14300_v7  ;;  %v19174_v40 = vpop.f32.mrb[206].mxu1  ;;  %v6770_v23 = vpop.permute.xlu1 %6769  ;;  %v8293_v39 = vld [vmem:[#allocation2 + $0x58] sm:$0xf]  ;;  %v15788_v6 = vld [vmem:[#allocation2 + $0x28] sm:$0xff]  }
 0x2f4   : > { %9875 = vmatprep.mubr.bf16.mxu0 %v8975_v26  ;;  %7050 = vst.msk [vmem:[#allocation2 + $0x94] sm:$0xf] %vm451_vm3, %v6910_v0  ;;  %v6919_v12 = vsel %vm18059_vm10, %v6911_v32, %v6918_v2  ;;  %v6677_v22 = vmul.f32 %v19036_v1, %v6626_v19  ;;  %9714 = vmatprep.mubr.bf16.mxu1 %v8973_v36  ;;  %v6920_v56 = vrot.slane %v19150_v54, 4  ;;  %v19178_v58 = vrot.slane %v13221_v42, 1  ;;  %v14307_v31 = vpop.f32.mrb[211].mxu0  ;;  %v19181_v7 = vpop.f32.mrb[207].mxu1 }
 0x2f5   : > { %7051 = vst.msk [vmem:[#allocation2 + $0x98] sm:$0xf] %vm451_vm3, %v6919_v12  ;;  %v6922_v47 = vshrl.u32 %v13587_v53, 16  ;;  %v6925_v27 = vshll.u32 %v13587_v53, 16  ;;  %v6827_v57 = vmul.f32 %v6770_v23, %v6715_v33  ;;  %v6532_v51 = vadd.f32 %v14302_v24, %v6435_v14  ;;  %v7097_v30 = vld [vmem:[#allocation2 + $0x78] sm:$0xf]  ;;  %v6775_v9 = vpop.permute.xlu0 %6774 }
 0x2f6   : > { %v6700_v59 = vadd.f32 %v19064_v8, %v6677_v22  ;;  %v7637_v54 = vsel %vm1014_vm1, %v7634_v29, %v19178_v58  ;;  %v7451_v43 = vshrl.u32 %v19103_v3, 16  ;;  %v14305_v34 = vadd.f32 %v14304_v48, %v14303_v50  ;;  %v15679_v19 = vld [vmem:[#allocation2 + $0x80] ss:$0 sps:$4 sm:$0x11]   ;;  %8407 = vst.msk [vmem:[#allocation3 + $0xc0] sm:$0xff] %vm600_vm0, %v15788_v6  ;;  %v8974_v16 = vld [vmem:[#allocation3 + $0x2e0] sm:$0xff] }
 0x2f7   : > { %v19183_v63 = vrot.slane %v6922_v47, 7  ;;  %v13588_v62 = vpack.c.bf16 %v6827_v57, %v6827_v57  ;;  %7670 = vst.msk [vmem:[#allocation3 + $0x400] sm:$0xff] %vm600_vm0, %v7637_v54  ;;  %v6629_v32 = vadd.f32 %v19027_v60, %v6532_v51  ;;  %v7455_v2 = vshll.u32 %v19159_v35, 16  ;;  %v8972_v0 = vld [vmem:[#allocation3 + $0x2d0] sm:$0xff]  ;;  %v8982_v53 = vld [vmem:[#allocation3 + $0x320] sm:$0xff] }
 0x2f8   : > { %v6716_v5 = vmax.f32 %v6700_v59, 0.0  ;;  %v19195_v26 = vadd.f32 %v14307_v31, %v14306_v52  ;;  %v6537_v3 = vadd.f32 %v14305_v34, %v18937_v13  ;;  %v13188_v50 = vcombine.low %v7097_v30, %v7098_v10  ;;  %v19205_v12 = vld [vmem:[#allocation2 + $0x20] sm:$0xff]   ;;  %v15760_v13 = vld [vmem:[#allocation2 + $0xc] sm:$0xfe]   ;;  %v19208_v10 = vld [vmem:[#allocation2 + $0x14] sm:$0xff]   ;;  %v6780_v59 = vpop.permute.xlu1 %6779 }
 0x2f9   : > { %v6927_v29 = vor.u32 %v6925_v27, %v19183_v63  ;;  %v6678_v35 = vmul.f32 %v19036_v1, %v6629_v32  ;;  %v7453_v42 = vor.u32 %v7451_v43, %v19136_v21  ;;  %v13281_v14 = vcombine.low %v8293_v39, %v8294_v25  ;;  %v8981_v32 = vld [vmem:[#allocation3 + $0x318] sm:$0xff] }
 0x2fa   : > { %v6828_v60 = vmul.f32 %v6775_v9, %v6716_v5  ;;  %v6931_v36 = vshrl.u32 %v13588_v62, 16  ;;  %7210 = vst.msk [vmem:[#allocation3 + $0x438] sm:$0xff] %vm600_vm0, %v13188_v50  ;;  %v6929_v33 = vrot.slane %v19183_v63, 4  ;;  %v7457_v24 = vrot.slane %v7455_v2, 1  ;;  %v8993_v5 = vld [vmem:[#allocation3 + $0x378] sm:$0xff] }
 0x2fb   : > { %9876 = vmatmul.mubr.bf16.gmra.mrb[8].mxu0 %v8974_v16  ;;  %v6928_v48 = vsel %vm18059_vm10, %v6920_v56, %v6927_v29  ;;  %9715 = vmatmul.mubr.bf16.gmra.mrb[248].mxu1 %v8972_v0  ;;  %v6701_v22 = vadd.f32 %v19064_v8, %v6678_v35  ;;  %8413 = vst.msk [vmem:[#allocation3 + $0x270] sm:$0xff] %vm600_vm0, %v13281_v14  ;;  %v6934_v23 = vshll.u32 %v13588_v62, 16  ;;  %v7638_v25 = vrot.slane %v15679_v19, 1  ;;  %v8983_v62 = vld [vmem:[#allocation3 + $0x328] sm:$0xff]  ;;  %v14309_v29 = vpop.f32.mrb[212].mxu0 }
 0x2fc   : > { %9883 = vmatprep.mubr.bf16.mxu0 %v8984_v38  ;;  %7052 = vst.msk [vmem:[#allocation2 + $0x9c] sm:$0xf] %vm451_vm3, %v6928_v48  ;;  %v13589_v21 = vpack.c.bf16 %v6828_v60, %v6828_v60  ;;  %9722 = vmatprep.mubr.bf16.mxu1 %v8982_v53  ;;  %v6933_v52 = vrot.slane %v6931_v36, 7  ;;  %v8538_v56 = vshrl.u32 %v19197_v4, 16  ;;  %v7458_v57 = vsel %vm733_vm2, %v7453_v42, %v7457_v24  ;;  %v19228_v38 = vld [vmem:[#allocation2 + $0x94] sm:$0xff]   ;;  %v8295_v42 = vld [vmem:[#allocation2 + $0x60] sm:$0xff]  }
 0x2fd   : > { %v6717_v27 = vmax.f32 %v6701_v22, 0.0  ;;  %7490 = vst.msk [vmem:[#allocation3 + $0x440] sm:$0xff] %vm600_vm0, %v7458_v57  ;;  %v7639_v63 = vsel %vm1014_vm1, %v19178_v58, %v7638_v25  ;;  %v8540_v54 = vshll.u32 %v19197_v4, 16  ;;  %v8545_v6 = vshll.u32 %v19205_v12, 16  ;;  %v8991_v14 = vld [vmem:[#allocation3 + $0x368] sm:$0xff]  ;;  %v19255_v57 = vld [vmem:[#allocation3 + $0x30] sm:$0xff] }
 0x2fe   : > { %v6940_v47 = vshrl.u32 %v13589_v21, 16  ;;  %v6943_v31 = vshll.u32 %v13589_v21, 16  ;;  %v6936_v51 = vor.u32 %v6934_v23, %v6933_v52  ;;  %v6938_v39 = vrot.slane %v6933_v52, 4  ;;  %7671 = vst.msk [vmem:[#allocation3 + $0x448] sm:$0xff] %vm600_vm0, %v7639_v63  ;;  %8414 = vst.msk [vmem:[#allocation3 + $0x2b8] sm:$0xff] %vm600_vm0, %v8295_v42 }
 0x2ff   : > { %v6829_v34 = vmul.f32 %v6780_v59, %v6717_v27  ;;  %v6634_v30 = vadd.f32 %v19092_v37, %v6537_v3  ;;  %v8542_v9 = vrot.slane %v8540_v54, 1  ;;  %v8212_v19 = vrot.slane %v15760_v13, 1  ;;  %v15762_v37 = vld [vmem:[#allocation2 + $0x8c] sm:$0xfe]   ;;  %v14310_v3 = vpop.f32.mrb[213].mxu0 }
 0x300   : > { %v19220_v43 = vrot.slane %v6940_v47, 7  ;;  %v6937_v2 = vsel %vm18059_vm10, %v6929_v33, %v6936_v51  ;;  %v8213_v58 = vrot.slane %v19208_v10, 1  ;;  %v19232_v16 = vrot.slane %v8545_v6, 1  ;;  %v14312_v25 = vpop.f32.mrb[214].mxu0  ;;  %v19250_v47 = vld [vmem:[#allocation2 + $0x28] sm:$0xff]  }
 0x301   : > { %7053 = vst.msk [vmem:[#allocation2 + $0xa0] sm:$0xf] %vm451_vm3, %v6937_v2  ;;  %v13590_v50 = vpack.c.bf16 %v6829_v34, %v6829_v34  ;;  %v8543_v53 = vor.u32 %v8542_v9, %v8538_v56  ;;  %v6679_v60 = vmul.f32 %v19036_v1, %v6634_v30  ;;  %v6540_v21 = vadd.f32 %v19195_v26, %v18956_v18  ;;  %v14313_v59 = vpop.f32.mrb[215].mxu0  ;;  %v8298_v51 = vld [vmem:[#allocation2 + $0x6c] sm:$0xf]  ;;  %v6785_v34 = vpop.permute.xlu0 %6784  ;;  %v9002_v2 = vld [vmem:[#allocation3 + $0x3c0] sm:$0xff] }
 0x302   : > { %v6945_v4 = vor.u32 %v6943_v31, %v19220_v43  ;;  %v8214_v35 = vsel %vm1014_vm1, %v8212_v19, %v8213_v58  ;;  %v6947_v36 = vrot.slane %v19220_v43, 4  ;;  %v11135_v52 = vrot.slane %v19228_v38, 1 }
 0x303   : > { %9884 = vmatmul.mubr.bf16.gmra.mrb[12].mxu0 %v8983_v62  ;;  %v15743_v0 = vld [vmem:[#allocation2 + $0x98] sm:$0xff]   ;;  %9723 = vmatmul.mubr.bf16.gmra.mrb[252].mxu1 %v8981_v32  ;;  %v6949_v13 = vshrl.u32 %v13590_v50, 16  ;;  %8261 = vst.msk [vmem:[#allocation3 + $0x28] sm:$0xff] %vm600_vm0, %v8214_v35  ;;  %v8548_v22 = vsel %vm733_vm2, %v8543_v53, %v19232_v16  ;;  %v6702_v24 = vadd.f32 %v19064_v8, %v6679_v60  ;;  %v6952_v18 = vshll.u32 %v13590_v50, 16  ;;  %v8297_v32 = vld [vmem:[#allocation2 + $0x68] sm:$0xf] }
 0x304   : > { %9891 = vmatprep.mubr.bf16.mxu0 %v8993_v5  ;;  %v6946_v48 = vsel %vm18059_vm10, %v6938_v39, %v6945_v4  ;;  %v15756_v33 = vld [vmem:[#allocation2 + $0x98] sm:$0xff]   ;;  %9730 = vmatprep.mubr.bf16.mxu1 %v8991_v14  ;;  %10616 = vst.msk [vmem:[#allocation3 + $0xd8] sm:$0xff] %vm600_vm0, %v15743_v0  ;;  %v14311_v23 = vadd.f32 %v14310_v3, %v14309_v29  ;;  %8685 = vst.msk [vmem:[#allocation3 + $0x38] sm:$0xff] %vm600_vm0, %v8548_v22  ;;  %v11134_v27 = vrot.slane %v15762_v37, 1  ;;  %v19266_v29 = vld [vmem:[#allocation2 + $0xc] sm:$0xff]  }
 0x305   : > { %7054 = vst.msk [vmem:[#allocation2 + $0xa4] sm:$0xf] %vm451_vm3, %v6946_v48  ;;  %v15767_v56 = vld [vmem:[#allocation2 + $0x98] sm:$0xff]   ;;  %v19252_v31 = vrot.slane %v6949_v13, 7  ;;  %v11302_v26 = vshll.u32 %v15756_v33, 16  ;;  %v11300_v39 = vshrl.u32 %v15756_v33, 16  ;;  %v6637_v54 = vadd.f32 %v19125_v20, %v6540_v21 }
 0x306   : > { %v6718_v63 = vmax.f32 %v6702_v24, 0.0  ;;  %v6545_v43 = vadd.f32 %v14311_v23, %v18964_v28  ;;  %11231 = vst.msk [vmem:[#allocation3 + $0x30] sm:$0xff] %vm600_vm0, %v15767_v56  ;;  %v11136_v62 = vsel %vm1014_vm1, %v11134_v27, %v11135_v52  ;;  %v14314_v5 = vadd.f32 %v14313_v59, %v14312_v25  ;;  %v8992_v28 = vld [vmem:[#allocation3 + $0x370] sm:$0xff]  ;;  %v8990_v0 = vld [vmem:[#allocation3 + $0x360] sm:$0xff]  ;;  %v6790_v24 = vpop.permute.xlu1 %6789 }
 0x307   : > { %v6954_v6 = vor.u32 %v6952_v18, %v19252_v31  ;;  %v11304_v30 = vrot.slane %v11302_v26, 1  ;;  %v6680_v19 = vmul.f32 %v19036_v1, %v6637_v54  ;;  %v8549_v3 = vshrl.u32 %v19205_v12, 16  ;;  %v9000_v53 = vld [vmem:[#allocation3 + $0x3b0] sm:$0xff]  ;;  %v19295_v18 = vld [vmem:[#allocation3 + $0x78] sm:$0xff] }
 0x308   : > { %v6830_v9 = vmul.f32 %v6785_v34, %v6718_v63  ;;  %v6642_v20 = vadd.f32 %v19083_v46, %v6545_v43  ;;  %v6548_v37 = vadd.f32 %v14314_v5, %v18974_v44  ;;  %v8553_v48 = vshll.u32 %v19250_v47, 16  ;;  %v19289_v21 = vld [vmem:[#allocation2 + $0x14] sm:$0xff]   ;;  %v19307_v34 = vld [vmem:[#allocation2 + $0x8c] sm:$0xff]  }
 0x309   : > { %v6955_v4 = vsel %vm18059_vm10, %v6947_v36, %v6954_v6  ;;  %v19270_v50 = vor.u32 %v11304_v30, %v11300_v39  ;;  %v6703_v46 = vadd.f32 %v19064_v8, %v6680_v19  ;;  %v19280_v36 = vpop.f32.mrb[216].mxu0  ;;  %v6956_v44 = vrot.slane %v19252_v31, 4  ;;  %v6795_v30 = vpop.permute.xlu0 %6794  ;;  %v9011_v19 = vld [vmem:[#allocation3 + $0x408] sm:$0xff] }
 0x30a   : > { %7055 = vst.msk [vmem:[#allocation2 + $0xa8] sm:$0xf] %vm451_vm3, %v6955_v4  ;;  %v13591_v60 = vpack.c.bf16 %v6830_v9, %v6830_v9  ;;  %v19275_v35 = vld [vmem:[#allocation3 + $0x28] sm:$0xff]  ;;  %v6681_v14 = vmul.f32 %v19036_v1, %v6642_v20  ;;  %v6645_v13 = vadd.f32 %v19106_v15, %v6548_v37  ;;  %v8551_v33 = vor.u32 %v8549_v3, %v19232_v16  ;;  %v19293_v31 = vpop.f32.mrb[217].mxu0  ;;  %v19318_v9 = vld [vmem:[#allocation2 + $0x1c] sm:$0xff]  }
 0x30b   : > { %9892 = vmatmul.mubr.bf16.gmra.mrb[16].mxu0 %v8992_v28  ;;  %9731 = vmatmul.mubr.bf16.gmra.mrb[0].mxu1 %v8990_v0  ;;  %11159 = vst.msk [vmem:[#allocation3 + $0x28] sm:$0xff] %vm600_vm0, %v11136_v62  ;;  %v13283_v22 = vcombine.low %v8297_v32, %v8298_v51  ;;  %v6719_v25 = vmax.f32 %v6703_v46, 0.0  ;;  %v7933_v56 = vshrl.u32 %v19266_v29, 16  ;;  %v19299_v59 = vrot.slane %v8553_v48, 1  ;;  %v19301_v51 = vpop.f32.mrb[218].mxu0  ;;  %v8999_v20 = vld [vmem:[#allocation3 + $0x3a8] sm:$0xff] }
 0x30c   : > { %9899 = vmatprep.mubr.bf16.mxu0 %v9002_v2  ;;  %v19284_v12 = vld [vmem:[#allocation2 + $0xa0] sm:$0xff]   ;;  %9738 = vmatprep.mubr.bf16.mxu1 %v9000_v53  ;;  %v6958_v23 = vshrl.u32 %v13591_v60, 16  ;;  %v6704_v42 = vadd.f32 %v19064_v8, %v6681_v14  ;;  %v6961_v27 = vshll.u32 %v13591_v60, 16  ;;  %v6682_v16 = vmul.f32 %v19036_v1, %v6645_v13  ;;  %v19310_v6 = vpop.f32.mrb[219].mxu0  ;;  %v6800_v14 = vpop.permute.xlu1 %6799 }
 0x30d   : > { %v15778_v26 = vld [vmem:[#allocation2 + $0xa0] sm:$0xff]   ;;  %v11307_v15 = vshll.u32 %v19284_v12, 16  ;;  %8415 = vst.msk [vmem:[#allocation3 + $0x300] sm:$0xff] %vm600_vm0, %v13283_v22  ;;  %v6831_v63 = vmul.f32 %v6790_v24, %v6719_v25  ;;  %v7935_v43 = vshll.u32 %v19266_v29, 16  ;;  %v8556_v32 = vsel %vm733_vm2, %v8551_v33, %v19299_v59  ;;  %v19327_v0 = vpop.f32.mrb[220].mxu0 }
 0x30e   : > { %v19304_v39 = vrot.slane %v6958_v23, 7  ;;  %v6720_v54 = vmax.f32 %v6704_v42, 0.0  ;;  %11232 = vst.msk [vmem:[#allocation3 + $0x78] sm:$0xff] %vm600_vm0, %v15778_v26  ;;  %v9001_v1 = vld [vmem:[#allocation3 + $0x3b8] sm:$0xff]  ;;  %v6705_v5 = vadd.f32 %v19064_v8, %v6682_v16  ;;  %v7940_v2 = vshll.u32 %v19289_v21, 16  ;;  %8686 = vst.msk [vmem:[#allocation3 + $0x80] sm:$0xff] %vm600_vm0, %v8556_v32 }
 0x30f   : > { %v19312_v62 = vrot.slane %v11307_v15, 1  ;;  %v19320_v29 = vld [vmem:[#allocation3 + $0x38] sm:$0xff]  ;;  %v13592_v4 = vpack.c.bf16 %v6831_v63, %v6831_v63  ;;  %v11311_v3 = vshrl.u32 %v19284_v12, 16  ;;  %v19325_v8 = vld [vmem:[#allocation2 + $0x94] sm:$0xff]   ;;  %v7937_v46 = vrot.slane %v7935_v43, 1  ;;  %v14322_v26 = vpop.f32.mrb[221].mxu0 }
 0x310   : > { %v6963_v28 = vor.u32 %v6961_v27, %v19304_v39  ;;  %v6832_v37 = vmul.f32 %v6795_v30, %v6720_v54  ;;  %v6721_v60 = vmax.f32 %v6705_v5, 0.0  ;;  %v6965_v13 = vrot.slane %v19304_v39, 4  ;;  %v9009_v24 = vld [vmem:[#allocation3 + $0x3f8] sm:$0xff]  ;;  %v19341_v39 = vpop.f32.mrb[222].mxu0  ;;  %v19390_v12 = vld [vmem:[#allocation3 + $0xc0] sm:$0xff] }
 0x311   : > { %v11310_v53 = vsel %vm733_vm2, %v19270_v50, %v19312_v62  ;;  %v6967_v33 = vshrl.u32 %v13592_v4, 16  ;;  %v6970_v23 = vshll.u32 %v13592_v4, 16  ;;  %v7938_v25 = vor.u32 %v7937_v46, %v7933_v56  ;;  %v19347_v30 = vld [vmem:[#allocation2 + $0x9c] sm:$0xff]   ;;  %v9020_v46 = vld [vmem:[#allocation3 + $0x450] sm:$0xff] }
 0x312   : > { %11375 = vst.msk [vmem:[#allocation3 + $0x38] sm:$0xff] %vm600_vm0, %v11310_v53  ;;  %v6964_v48 = vsel %vm18059_vm10, %v6956_v44, %v6963_v28  ;;  %v13593_v22 = vpack.c.bf16 %v6832_v37, %v6832_v37  ;;  %v6833_v50 = vmul.f32 %v6800_v14, %v6721_v60  ;;  %v19337_v42 = vrot.slane %v7940_v2, 1  ;;  %v19361_v53 = vld [vmem:[#allocation2 + $0x1c] sm:$0xff]   ;;  %v9010_v60 = vld [vmem:[#allocation3 + $0x400] sm:$0xff]  ;;  %v9008_v14 = vld [vmem:[#allocation3 + $0x3f0] sm:$0xff] }
 0x313   : > { %9900 = vmatmul.mubr.bf16.gmra.mrb[20].mxu0 %v9001_v1  ;;  %9739 = vmatmul.mubr.bf16.gmra.mrb[4].mxu1 %v8999_v20  ;;  %7056 = vst.msk [vmem:[#allocation2 + $0xac] sm:$0xf] %vm451_vm3, %v6964_v48  ;;  %v6969_v15 = vrot.slane %v6967_v33, 7  ;;  %v10991_v44 = vshrl.u32 %v19307_v34, 16  ;;  %v10993_v16 = vshll.u32 %v19307_v34, 16  ;;  %v10998_v43 = vshll.u32 %v19325_v8, 16 }
 0x314   : > { %9907 = vmatprep.mubr.bf16.mxu0 %v9011_v19  ;;  %9746 = vmatprep.mubr.bf16.mxu1 %v9009_v24  ;;  %v6976_v27 = vshrl.u32 %v13593_v22, 16  ;;  %v13594_v63 = vpack.c.bf16 %v6833_v50, %v6833_v50  ;;  %v7943_v54 = vsel %vm733_vm2, %v7938_v25, %v19337_v42  ;;  %v8215_v56 = vrot.slane %v19318_v9, 1  ;;  %v19349_v1 = vpop.f32.mrb[223].mxu0  ;;  %v19352_v19 = vld [vmem:[#allocation2 + $0x30] sm:$0xff]   ;;  %v19475_v9 = vld [vmem:[#allocation2 + $0x24] sm:$0xff]  }
 0x315   : > { %v6972_v5 = vor.u32 %v6970_v23, %v6969_v15  ;;  %v6979_v2 = vshll.u32 %v13593_v22, 16  ;;  %8080 = vst.msk [vmem:[#allocation3 + $0x20] sm:$0xff] %vm600_vm0, %v7943_v54  ;;  %v10995_v34 = vrot.slane %v10993_v16, 1  ;;  %v6974_v20 = vrot.slane %v6969_v15, 4  ;;  %v9018_v23 = vld [vmem:[#allocation3 + $0x440] sm:$0xff]  ;;  %v19374_v15 = vld [vmem:[#allocation2 + $0x9c] sm:$0xff]  }
 0x316   : > { %v6978_v32 = vrot.slane %v6976_v27, 7  ;;  %v6985_v28 = vshrl.u32 %v13594_v63, 16  ;;  %v19354_v4 = vrot.slane %v10998_v43, 1  ;;  %v8216_v37 = vsel %vm1014_vm1, %v8213_v58, %v8215_v56 }
 0x317   : > { %v6973_v48 = vsel %vm18059_vm10, %v6965_v13, %v6972_v5  ;;  %v6988_v22 = vshll.u32 %v13594_v63, 16  ;;  %v10996_v24 = vor.u32 %v10995_v34, %v10991_v44  ;;  %8262 = vst.msk [vmem:[#allocation3 + $0x70] sm:$0xff] %vm600_vm0, %v8216_v37  ;;  %v11137_v10 = vrot.slane %v19347_v30, 1  ;;  %v15797_v5 = vld [vmem:[#allocation2 + $0x30] sm:$0xff]  }
 0x318   : > { %v6981_v33 = vor.u32 %v6979_v2, %v6978_v32  ;;  %7057 = vst.msk [vmem:[#allocation2 + $0xb0] sm:$0xf] %vm451_vm3, %v6973_v48  ;;  %v19367_v50 = vrot.slane %v6985_v28, 7  ;;  %v14317_v58 = vadd.f32 %v19293_v31, %v19280_v36  ;;  %v14320_v25 = vadd.f32 %v19310_v6, %v19301_v51 }
 0x319   : > { %v11313_v44 = vor.u32 %v11311_v3, %v19312_v62  ;;  %v8557_v16 = vshrl.u32 %v19250_v47, 16  ;;  %v14323_v63 = vadd.f32 %v14322_v26, %v19327_v0  ;;  %v6983_v36 = vrot.slane %v6978_v32, 4  ;;  %v19397_v26 = vld [vmem:[#allocation2 + $0x24] sm:$0xff]   ;;  %8408 = vst.msk [vmem:[#allocation3 + $0x108] sm:$0xff] %vm600_vm0, %v15797_v5 }
 0x31a   : > { %v15758_v13 = vld [vmem:[#allocation2 + $0xa8] sm:$0xff]   ;;  %v6982_v27 = vsel %vm18059_vm10, %v6974_v20, %v6981_v33  ;;  %v6990_v31 = vor.u32 %v6988_v22, %v19367_v50  ;;  %v11001_v6 = vsel %vm733_vm2, %v10996_v24, %v19354_v4  ;;  %v8561_v54 = vshll.u32 %v19352_v19, 16 }
 0x31b   : > { %9908 = vmatmul.mubr.bf16.gmra.mrb[24].mxu0 %v9010_v60  ;;  %9747 = vmatmul.mubr.bf16.gmra.mrb[8].mxu1 %v9008_v14  ;;  %7058 = vst.msk [vmem:[#allocation2 + $0xb4] sm:$0xf] %vm451_vm3, %v6982_v27  ;;  %v19385_v51 = vld [vmem:[#allocation2 + $0xa8] sm:$0xff]   ;;  %v8559_v47 = vor.u32 %v8557_v16, %v19299_v59  ;;  %v6553_v62 = vadd.f32 %v14317_v58, %v18995_v55  ;;  %v7944_v3 = vshrl.u32 %v19289_v21, 16  ;;  %v7948_v0 = vshll.u32 %v19361_v53, 16 }
 0x31c   : > { %9915 = vmatprep.mubr.bf16.mxu0 %v9020_v46  ;;  %9754 = vmatprep.mubr.bf16.mxu1 %v9018_v23  ;;  %10618 = vst.msk [vmem:[#allocation3 + $0x168] sm:$0xff] %vm600_vm0, %v15758_v13  ;;  %v15789_v43 = vld [vmem:[#allocation2 + $0xa8] sm:$0xff]   ;;  %v6991_v32 = vsel %vm18059_vm10, %v6983_v36, %v6990_v31  ;;  %v11315_v2 = vshll.u32 %v19385_v51, 16  ;;  %v11138_v55 = vsel %vm1014_vm1, %v11135_v52, %v11137_v10  ;;  %v19409_v21 = vrot.slane %v8561_v54, 1  ;;  %v19439_v13 = vld [vmem:[#allocation2 + $0x38] sm:$0xff]  }
 0x31d   : > { %v19402_v34 = vld [vmem:[#allocation3 + $0x20] sm:$0xff]  ;;  %v6992_v20 = vrot.slane %v19367_v50, 4  ;;  %7059 = vst.msk [vmem:[#allocation2 + $0xb8] sm:$0xf] %vm451_vm3, %v6991_v32  ;;  %v6650_v28 = vadd.f32 %v19168_v17, %v6553_v62  ;;  %v7946_v37 = vor.u32 %v7944_v3, %v19337_v42  ;;  %v19418_v60 = vrot.slane %v7948_v0, 1  ;;  %v9019_v33 = vld [vmem:[#allocation3 + $0x448] sm:$0xff]  ;;  %v6805_v62 = vpop.permute.xlu0 %6804 }
 0x31e   : > { %v19411_v59 = vld [vmem:[#allocation2 + $0xa4] sm:$0xff]   ;;  %11066 = vst.msk [vmem:[#allocation3 + $0x20] sm:$0xff] %vm600_vm0, %v11001_v6  ;;  %11233 = vst.msk [vmem:[#allocation3 + $0xc0] sm:$0xff] %vm600_vm0, %v15789_v43  ;;  %v11317_v38 = vrot.slane %v11315_v2, 1  ;;  %v19422_v52 = vld [vmem:[#allocation3 + $0x70] sm:$0xff]  ;;  %v8564_v46 = vsel %vm733_vm2, %v8559_v47, %v19409_v21  ;;  %v11319_v14 = vshrl.u32 %v19385_v51, 16  ;;  %v6556_v23 = vadd.f32 %v14320_v25, %v19003_v41 }
 0x31f   : > { %v11006_v48 = vshll.u32 %v19374_v15, 16  ;;  %v19428_v17 = vld [vmem:[#allocation3 + $0x80] sm:$0xff]  ;;  %11160 = vst.msk [vmem:[#allocation3 + $0x70] sm:$0xff] %vm600_vm0, %v11138_v55  ;;  %8687 = vst.msk [vmem:[#allocation3 + $0xc8] sm:$0xff] %vm600_vm0, %v8564_v46  ;;  %v15980_v42 = vld [vmem:[%s20894_s3] ss:$0 sm:$0xff]  ;;  %v7951_v24 = vsel %vm733_vm2, %v7946_v37, %v19418_v60  ;;  %v6561_v58 = vadd.f32 %v14323_v63, %v19016_v11  ;;  %v14326_v54 = vadd.f32 %v19349_v1, %v19341_v39  ;;  %v6810_v46 = vpop.permute.xlu1 %6809 }
 0x320   : > { %v6683_v22 = vmul.f32 %v15980_v42, %v6650_v28  ;;  %v11318_v27 = vsel %vm733_vm2, %v11313_v44, %v11317_v38  ;;  %8081 = vst.msk [vmem:[#allocation3 + $0x68] sm:$0xff] %vm600_vm0, %v7951_v24  ;;  %v11002_v16 = vshrl.u32 %v19325_v8, 16  ;;  %v9017_v31 = vld [vmem:[#allocation3 + $0x438] sm:$0xff]  ;;  %v8217_v25 = vrot.slane %v19397_v26, 1 }
 0x321   : > { %v19444_v36 = vrot.slane %v11006_v48, 1  ;;  %11376 = vst.msk [vmem:[#allocation3 + $0x80] sm:$0xff] %vm600_vm0, %v11318_v27  ;;  %v15981_v41 = vld [vmem:[%s20895_s4] ss:$0 sm:$0xff]  ;;  %v6653_v44 = vadd.f32 %v19181_v7, %v6556_v23  ;;  %v6658_v63 = vadd.f32 %v19162_v61, %v6561_v58  ;;  %v11139_v6 = vrot.slane %v19411_v59, 1  ;;  %v15794_v27 = vld [vmem:[%s20896_s5 + $0x208] sm:$0xff]  }
 0x322   : > { %v19447_v51 = vld [vmem:[#allocation2 + $0xb0] sm:$0xff]   ;;  %v6706_v11 = vadd.f32 %v15981_v41, %v6683_v22  ;;  %v11004_v8 = vor.u32 %v11002_v16, %v19354_v4  ;;  %v8565_v47 = vshrl.u32 %v19352_v19, 16  ;;  %v8218_v61 = vsel %vm1014_vm1, %v8215_v56, %v8217_v25  ;;  %v6815_v16 = vpop.permute.xlu0 %6814 }
 0x323   : > { %9916 = vmatmul.mubr.bf16.gmra.mrb[28].mxu0 %v9019_v33  ;;  %9755 = vmatmul.mubr.bf16.gmra.mrb[12].mxu1 %v9017_v31  ;;  %v11323_v3 = vshll.u32 %v19447_v51, 16  ;;  %v15798_v4 = vld [vmem:[#allocation2 + $0xb0] sm:$0xff]   ;;  %v11321_v0 = vor.u32 %v11319_v14, %v11317_v38  ;;  %8263 = vst.msk [vmem:[#allocation3 + $0xb8] sm:$0xff] %vm600_vm0, %v8218_v61  ;;  %v6685_v1 = vmul.f32 %v15980_v42, %v6658_v63  ;;  %v8569_v32 = vshll.u32 %v19439_v13, 16  ;;  %v19482_v38 = vld [vmem:[#allocation2 + $0xa4] sm:$0xff]  }
 0x324   : > { %10117 = vmatprep.mubr.bf16.mxu0 %v19320_v29  ;;  %9956 = vmatprep.mubr.bf16.mxu1 %v19275_v35  ;;  %v6722_v7 = vmax.f32 %v6706_v11, 0.0  ;;  %v6684_v29 = vmul.f32 %v15980_v42, %v6653_v44  ;;  %v11009_v39 = vsel %vm733_vm2, %v11004_v8, %v19444_v36  ;;  %v6564_v35 = vadd.f32 %v14326_v54, %v19031_v45  ;;  %v19477_v56 = vld [vmem:[#allocation3 + $0x108] sm:$0xff] }
 0x325   : > { %v19472_v19 = vrot.slane %v11323_v3, 1  ;;  %v6708_v2 = vadd.f32 %v15981_v41, %v6685_v1  ;;  %v8567_v28 = vor.u32 %v8565_v47, %v19409_v21  ;;  %v7952_v37 = vshrl.u32 %v19361_v53, 16  ;;  %v19484_v45 = vld [vmem:[#allocation2 + $0x2c] sm:$0xff]   ;;  %11234 = vst.msk [vmem:[#allocation3 + $0x108] sm:$0xff] %vm600_vm0, %v15798_v4 }
 0x326   : > { %v6834_v43 = vmul.f32 %v6805_v62, %v6722_v7  ;;  %v6707_v5 = vadd.f32 %v15981_v41, %v6684_v29  ;;  %v6661_v55 = vadd.f32 %v19174_v40, %v6564_v35  ;;  %v19487_v14 = vld [vmem:[#allocation3 + $0xc8] sm:$0xff]  ;;  %v19493_v24 = vrot.slane %v8569_v32, 1  ;;  %v6820_v7 = vpop.permute.xlu1 %6819 }
 0x327   : > { %v11326_v48 = vsel %vm733_vm2, %v11321_v0, %v19472_v19  ;;  %v19491_v22 = vld [vmem:[#allocation3 + $0x68] sm:$0xff]  ;;  %v11140_v53 = vsel %vm1014_vm1, %v11137_v10, %v11139_v6  ;;  %v6724_v21 = vmax.f32 %v6708_v2, 0.0  ;;  %v7954_v58 = vor.u32 %v7952_v37, %v19418_v60 }
 0x328   : > { %v13595_v33 = vpack.c.bf16 %v6834_v43, %v6834_v43  ;;  %v6723_v40 = vmax.f32 %v6707_v5, 0.0  ;;  %11377 = vst.msk [vmem:[#allocation3 + $0xc8] sm:$0xff] %vm600_vm0, %v11326_v48  ;;  %11067 = vst.msk [vmem:[#allocation3 + $0x68] sm:$0xff] %vm600_vm0, %v11009_v39  ;;  %v6686_v23 = vmul.f32 %v15980_v42, %v6661_v55  ;;  %v8572_v63 = vsel %vm733_vm2, %v8567_v28, %v19493_v24  ;;  %v19526_v39 = vld [vmem:[#allocation2 + $0x40] sm:$0xff]   ;;  %v19530_v32 = vld [vmem:[#allocation2 + $0x2c] sm:$0xff]  }
 0x329   : > { %v6836_v30 = vmul.f32 %v6815_v16, %v6724_v21  ;;  %8688 = vst.msk [vmem:[#allocation3 + $0x110] sm:$0xff] %vm600_vm0, %v8572_v63  ;;  %v7956_v60 = vshll.u32 %v19475_v9, 16  ;;  %v11010_v42 = vshrl.u32 %v19374_v15, 16  ;;  %v19523_v15 = vld [vmem:[#allocation2 + $0xac] sm:$0xff]  }
 0x32a   : > { %v6994_v31 = vshrl.u32 %v13595_v33, 16  ;;  %v6997_v11 = vshll.u32 %v13595_v33, 16  ;;  %v6835_v44 = vmul.f32 %v6810_v46, %v6723_v40  ;;  %v6709_v10 = vadd.f32 %v15981_v41, %v6686_v23  ;;  %v8905_v54 = vld [vmem:[#allocation3 + $0xb8] sm:$0xff]  ;;  %v19545_v37 = vld [vmem:[#allocation2 + $0xac] sm:$0xff]   ;;  %v19552_v33 = vld [vmem:[#allocation2 + $0x34] sm:$0xff]  }
 0x32b   : > { %10118 = vmatmul.mubr.bf16.vlgmr.msra.gmra.mrb[32].mxu0 %v19255_v57  ;;  %9957 = vmatmul.mubr.bf16.vlgmr.msra.gmra.mrb[16].mxu1 %v19402_v34  ;;  %v15982_v57 = vld [vmem:[%s20896_s5 + $0x200] sm:$0xff]   ;;  %v11014_v34 = vshll.u32 %v19482_v38, 16  ;;  %v8219_v41 = vrot.slane %v19484_v45, 1  ;;  %11161 = vst.msk [vmem:[#allocation3 + $0xb8] sm:$0xff] %vm600_vm0, %v11140_v53  ;;  %v13597_v47 = vpack.c.bf16 %v6836_v30, %v6836_v30  ;;  %v19521_v3 = vrot.slane %v7956_v60, 1  ;;  %v15811_v21 = vld [vmem:[%s20896_s5 + $0x210] sm:$0xff]  }
 0x32c   : > { %10125 = vmatprep.mubr.bf16.mxu0 %v19428_v17  ;;  %9964 = vmatprep.mubr.bf16.mxu1 %v19422_v52  ;;  %v6996_v8 = vrot.slane %v6994_v31, 7  ;;  %v13596_v17 = vpack.c.bf16 %v6835_v44, %v6835_v44  ;;  %v6725_v62 = vmax.f32 %v6709_v10, 0.0  ;;  %v15805_v52 = vld [vmem:[#allocation2 + $0x38] sm:$0xff]   ;;  %v11012_v0 = vor.u32 %v11010_v42, %v19444_v36  ;;  %v19560_v23 = vld [vmem:[#allocation2 + $0x70] sm:$0xff]  }
 0x32d   : > { %15168 = vmatpush3.bf16.msra.mxu1 %v15982_v57  ;;  %v7012_v35 = vshrl.u32 %v13597_v47, 16  ;;  %v7959_v5 = vsel %vm733_vm2, %v7954_v58, %v19521_v3  ;;  %8409 = vst.msk [vmem:[#allocation3 + $0x150] sm:$0xff] %vm600_vm0, %v15805_v52  ;;  %v19538_v36 = vrot.slane %v11014_v34, 1  ;;  %v8220_v28 = vsel %vm1014_vm1, %v8217_v25, %v8219_v41  ;;  %v19566_v31 = vld [vmem:[#allocation2 + $0xb4] sm:$0xff]   ;;  %v19578_v30 = vld [vmem:[#allocation2 + $0x7c] sm:$0xf] }
 0x32e   : > { %15169 = vmatprep.subr.bf16.mxu1 %v15794_v27  ;;  %v6999_v61 = vor.u32 %v6997_v11, %v6996_v8  ;;  %v7001_v29 = vrot.slane %v6996_v8, 4  ;;  %v7003_v4 = vshrl.u32 %v13596_v17, 16  ;;  %v7006_v1 = vshll.u32 %v13596_v17, 16  ;;  %8082 = vst.msk [vmem:[#allocation3 + $0xb0] sm:$0xff] %vm600_vm0, %v7959_v5  ;;  %8264 = vst.msk [vmem:[#allocation3 + $0x100] sm:$0xff] %vm600_vm0, %v8220_v28  ;;  %v8303_v52 = vld [vmem:[#allocation2 + $0x80] sm:$0xff]  }
 0x32f   : > { %v6837_v43 = vmul.f32 %v6820_v7, %v6725_v62  ;;  %v19548_v50 = vrot.slane %v7012_v35, 7  ;;  %v7015_v46 = vshll.u32 %v13597_v47, 16  ;;  %v11141_v48 = vrot.slane %v19523_v15, 1  ;;  %v7064_v11 = vld [vmem:[#allocation2 + $0xcc] sm:$0x1]  ;;  %8416 = vst.msk [vmem:[#allocation3 + $0x348] sm:$0xff] %vm600_vm0, %v19560_v23 }
 0x330   : > { %v7000_v2 = vsel %vm18059_vm10, %v6992_v20, %v6999_v61  ;;  %v7005_v55 = vrot.slane %v7003_v4, 7  ;;  %v8573_v25 = vshrl.u32 %v19439_v13, 16  ;;  %v8577_v53 = vshll.u32 %v19526_v39, 16  ;;  %v19591_v47 = vld [vmem:[#allocation2 + $0x48] sm:$0xff]   ;;  %v8301_v62 = vld [vmem:[#allocation2 + $0x78] sm:$0xf] }
 0x331   : > { %15170 = vmatpush3.bf16.msra.mxu1 %v15794_v27  ;;  %7060 = vst.msk [vmem:[#allocation2 + $0xbc] sm:$0xf] %vm451_vm3, %v7000_v2  ;;  %v13598_v20 = vpack.c.bf16 %v6837_v43, %v6837_v43  ;;  %v7017_v58 = vor.u32 %v7015_v46, %v19548_v50  ;;  %v11017_v44 = vsel %vm733_vm2, %v11012_v0, %v19538_v36  ;;  %v7960_v42 = vshrl.u32 %v19475_v9, 16  ;;  %v15817_v9 = vld [vmem:[%s20896_s5] sm:$0xff]   ;;  %v19596_v7 = vld [vmem:[#allocation2 + $0x8c] sm:$0xf] }
 0x332   : > { %v7008_v26 = vor.u32 %v7006_v1, %v7005_v55  ;;  %v7010_v40 = vrot.slane %v7005_v55, 4  ;;  %v19573_v63 = vrot.slane %v8577_v53, 1  ;;  %15171 = vmatprep.subr.bf16.mxu1 %v15811_v21  ;;  %v7964_v57 = vshll.u32 %v19530_v32, 16  ;;  %v19603_v1 = vld [vmem:[#allocation2 + $0x8c] sm:$0xf]  ;;  %v19618_v2 = vld [vmem:[#allocation2 + $0x34] sm:$0xff]  }
 0x333   : > { %10126 = vmatmul.mubr.bf16.gmra.mrb[36].mxu0 %v19295_v18  ;;  %9965 = vmatmul.mubr.bf16.gmra.mrb[20].mxu1 %v19491_v22  ;;  %v7019_v18 = vrot.slane %v19548_v50, 4  ;;  %v7021_v27 = vshrl.u32 %v13598_v20, 16  ;;  %v7024_v16 = vshll.u32 %v13598_v20, 16  ;;  %v15814_v22 = vld [vmem:[%s20896_s5 + $0x40] sm:$0xff]   ;;  %v11022_v17 = vshll.u32 %v19545_v37, 16  ;;  %v8916_v46 = vld [vmem:[#allocation3 + $0x110] sm:$0xff] }
 0x334   : > { %10133 = vmatprep.mubr.bf16.mxu0 %v19487_v14  ;;  %9972 = vmatprep.mubr.bf16.mxu1 %v8905_v54  ;;  %v7009_v13 = vsel %vm18059_vm10, %v7001_v29, %v7008_v26  ;;  %v8575_v14 = vor.u32 %v8573_v25, %v19493_v24  ;;  %v7018_v10 = vsel %vm18059_vm10, %v7010_v40, %v7017_v58  ;;  %v15815_v24 = vld [vmem:[#allocation2 + $0x40] sm:$0xff]   ;;  %v11018_v54 = vshrl.u32 %v19482_v38, 16  ;;  %v8305_v55 = vld [vmem:[#allocation2 + $0x88] sm:$0xf]  ;;  %v19640_v58 = vld [vmem:[#allocation3 + $0x150] sm:$0xff] }
 0x335   : > { %7061 = vst.msk [vmem:[#allocation2 + $0xc0] sm:$0xf] %vm451_vm3, %v7009_v13  ;;  %v7023_v60 = vrot.slane %v7021_v27, 7  ;;  %15172 = vmatpush3.bf16.msra.mxu1 %v15811_v21  ;;  %7062 = vst.msk [vmem:[#allocation2 + $0xc4] sm:$0xf] %vm451_vm3, %v7018_v10  ;;  %v8221_v34 = vrot.slane %v19552_v33, 1  ;;  %14815 = vmatprep.subr.bf16.mxu0 %v15814_v22  ;;  %v7962_v38 = vor.u32 %v7960_v42, %v19521_v3 }
 0x336   : > { %v8580_v8 = vsel %vm733_vm2, %v8575_v14, %v19573_v63  ;;  %v8904_v4 = vld [vmem:[#allocation3 + $0xb0] sm:$0xff]  ;;  %v19600_v0 = vrot.slane %v7964_v57, 1  ;;  %8410 = vst.msk [vmem:[#allocation3 + $0x198] sm:$0xff] %vm600_vm0, %v15815_v24  ;;  %v11142_v43 = vsel %vm1014_vm1, %v11139_v6, %v11141_v48  ;;  %v19611_v5 = vrot.slane %v11022_v17, 1  ;;  %14816 = vmatpush3.bf16.msra.mxu0 %v15817_v9  ;;  %v8914_v49 = vld [vmem:[#allocation3 + $0x100] sm:$0xff]  ;;  %8418 = vst.msk [vmem:[#allocation3 + $0x3d8] sm:$0xff] %vm600_vm0, %v8303_v52 }
 0x337   : > { %v7026_v61 = vor.u32 %v7024_v16, %v7023_v60  ;;  %v7028_v29 = vrot.slane %v7023_v60, 4  ;;  %8689 = vst.msk [vmem:[#allocation3 + $0x158] sm:$0xff] %vm600_vm0, %v8580_v8  ;;  %11068 = vst.msk [vmem:[#allocation3 + $0xb0] sm:$0xff] %vm600_vm0, %v11017_v44  ;;  %v8222_v3 = vsel %vm1014_vm1, %v8219_v41, %v8221_v34  ;;  %v11143_v45 = vrot.slane %v19566_v31, 1  ;;  %v19644_v27 = vld [vmem:[#allocation2 + $0xb4] sm:$0xff]   ;;  %v19677_v52 = vld [vmem:[#allocation2 + $0x3c] sm:$0xff]  }
 0x338   : > { %v15781_v35 = vld [vmem:[#allocation2 + $0xb8] sm:$0xff]   ;;  %v7967_v20 = vsel %vm733_vm2, %v7962_v38, %v19600_v0  ;;  %8265 = vst.msk [vmem:[#allocation3 + $0x148] sm:$0xff] %vm600_vm0, %v8222_v3  ;;  %v8581_v26 = vshrl.u32 %v19526_v39, 16  ;;  %v8585_v40 = vshll.u32 %v19591_v47, 16  ;;  %v13285_v25 = vcombine.low %v8301_v62, %v19578_v30  ;;  %11162 = vst.msk [vmem:[#allocation3 + $0x100] sm:$0xff] %vm600_vm0, %v11142_v43  ;;  %v19662_v10 = vld [vmem:[#allocation2 + $0x50] sm:$0xff]  }
 0x339   : > { %v7027_v28 = vsel %vm18059_vm10, %v7019_v18, %v7026_v61  ;;  %v7065_v59 = vsel %vm17809_vm7, %v7028_v29, %v7064_v11  ;;  %v15791_v6 = vld [vmem:[#allocation2 + $0xb8] sm:$0xff]   ;;  %10620 = vst.msk [vmem:[#allocation3 + $0x1f8] sm:$0xff] %vm600_vm0, %v15781_v35  ;;  %8083 = vst.msk [vmem:[#allocation3 + $0xf8] sm:$0xff] %vm600_vm0, %v7967_v20  ;;  %v11327_v53 = vshrl.u32 %v19447_v51, 16  ;;  %v11020_v21 = vor.u32 %v11018_v54, %v19538_v36  ;;  %v10551_v18 = vld [vmem:[#allocation2 + $0x88] sm:$0xf] }
 0x33a   : > { %7063 = vst.msk [vmem:[#allocation2 + $0xc8] sm:$0xf] %vm451_vm3, %v7027_v28  ;;  %7066 = vst [vmem:[#allocation2 + $0xcc] sm:$0x1] %v7065_v59  ;;  %v15806_v41 = vld [vmem:[#allocation2 + $0xb8] sm:$0xff]   ;;  %v8583_v39 = vor.u32 %v8581_v26, %v19573_v63  ;;  %v8587_v23 = vrot.slane %v8585_v40, 1  ;;  %v13287_v51 = vcombine.low %v8305_v55, %v19596_v7  ;;  %v13398_v44 = vcombine.low %v10551_v18, %v19603_v1 }
 0x33b   : > { %10134 = vmatmul.mubr.bf16.gmra.mrb[40].mxu0 %v19390_v12  ;;  %v11331_v12 = vshll.u32 %v15791_v6, 16  ;;  %9973 = vmatmul.mubr.bf16.gmra.mrb[24].mxu1 %v8904_v4  ;;  %11235 = vst.msk [vmem:[#allocation3 + $0x150] sm:$0xff] %vm600_vm0, %v15806_v41  ;;  %8417 = vst.msk [vmem:[#allocation3 + $0x390] sm:$0xff] %vm600_vm0, %v13285_v25  ;;  %v11329_v16 = vor.u32 %v11327_v53, %v19472_v19  ;;  %v11025_v36 = vsel %vm733_vm2, %v11020_v21, %v19611_v5  ;;  %v19660_v19 = vld [vmem:[#allocation2 + $0x3c] sm:$0xff]   ;;  %v19703_v41 = vld [vmem:[#allocation2 + $0x44] sm:$0xff]  }
 0x33c   : > { %10141 = vmatprep.mubr.bf16.mxu0 %v8916_v46  ;;  %9980 = vmatprep.mubr.bf16.mxu1 %v8914_v49  ;;  %v15800_v11 = vld [vmem:[#allocation2 + $0xc0] sm:$0xff]   ;;  %v11144_v14 = vsel %vm1014_vm1, %v11141_v48, %v11143_v45  ;;  %v8588_v63 = vsel %vm733_vm2, %v8583_v39, %v8587_v23  ;;  %v7968_v22 = vshrl.u32 %v19530_v32, 16  ;;  %v7972_v30 = vshll.u32 %v19618_v2, 16  ;;  %8419 = vst.msk [vmem:[#allocation3 + $0x420] sm:$0xff] %vm600_vm0, %v13287_v51  ;;  %v19670_v32 = vld [vmem:[#allocation2 + $0xd0] sm:$0xff]  }
 0x33d   : > { %v11333_v13 = vrot.slane %v11331_v12, 1  ;;  %v11335_v42 = vshrl.u32 %v15791_v6, 16  ;;  %v11339_v15 = vshll.u32 %v15800_v11, 16  ;;  %8690 = vst.msk [vmem:[#allocation3 + $0x1a0] sm:$0xff] %vm600_vm0, %v8588_v63  ;;  %v11343_v48 = vshrl.u32 %v15800_v11, 16  ;;  %v19668_v57 = vld [vmem:[#allocation2 + $0xbc] sm:$0xff]  }
 0x33e   : > { %10614 = vst.msk [vmem:[#allocation3 + $0x48] sm:$0xff] %vm600_vm0, %v13398_v44  ;;  %v8925_v24 = vld [vmem:[#allocation3 + $0x158] sm:$0xff]  ;;  %v7970_v54 = vor.u32 %v7968_v22, %v19600_v0  ;;  %v7974_v17 = vrot.slane %v7972_v30, 1  ;;  %v11026_v9 = vshrl.u32 %v19545_v37, 16  ;;  %v11030_v62 = vshll.u32 %v19644_v27, 16  ;;  %v15824_v11 = vld [vmem:[#allocation2 + $0x48] sm:$0xff]  }
 0x33f   : > { %v11334_v60 = vsel %vm733_vm2, %v11329_v16, %v11333_v13  ;;  %v8923_v8 = vld [vmem:[#allocation3 + $0x148] sm:$0xff]  ;;  %v11337_v7 = vor.u32 %v11335_v42, %v11333_v13  ;;  %v11341_v61 = vrot.slane %v11339_v15, 1  ;;  %v19680_v4 = vld [vmem:[#allocation3 + $0x198] sm:$0xff]  ;;  %v8223_v37 = vrot.slane %v19660_v19, 1  ;;  %8411 = vst.msk [vmem:[#allocation3 + $0x1e0] sm:$0xff] %vm600_vm0, %v15824_v11 }
 0x340   : > { %11378 = vst.msk [vmem:[#allocation3 + $0x110] sm:$0xff] %vm600_vm0, %v11334_v60  ;;  %v8913_v29 = vld [vmem:[#allocation3 + $0xf8] sm:$0xff]  ;;  %11163 = vst.msk [vmem:[#allocation3 + $0x148] sm:$0xff] %vm600_vm0, %v11144_v14  ;;  %v7975_v0 = vsel %vm733_vm2, %v7970_v54, %v7974_v17  ;;  %v19685_v1 = vrot.slane %v11030_v62, 1  ;;  %v11145_v3 = vrot.slane %v19668_v57, 1  ;;  %v8593_v59 = vshll.u32 %v19662_v10, 16 }
 0x341   : > { %11069 = vst.msk [vmem:[#allocation3 + $0xf8] sm:$0xff] %vm600_vm0, %v11025_v36  ;;  %v15808_v38 = vld [vmem:[#allocation2 + $0xc8] sm:$0xff]   ;;  %v15816_v35 = vld [vmem:[#allocation2 + $0xc0] sm:$0xff]   ;;  %v11342_v43 = vsel %vm733_vm2, %v11337_v7, %v11341_v61  ;;  %8084 = vst.msk [vmem:[#allocation3 + $0x140] sm:$0xff] %vm600_vm0, %v7975_v0  ;;  %v11345_v55 = vor.u32 %v11343_v48, %v11341_v61  ;;  %v8224_v50 = vsel %vm1014_vm1, %v8221_v34, %v8223_v37  ;;  %v7976_v34 = vshrl.u32 %v19618_v2, 16 }
 0x342   : > { %11379 = vst.msk [vmem:[#allocation3 + $0x158] sm:$0xff] %vm600_vm0, %v11342_v43  ;;  %v11347_v28 = vshll.u32 %v15808_v38, 16  ;;  %11236 = vst.msk [vmem:[#allocation3 + $0x198] sm:$0xff] %vm600_vm0, %v15816_v35  ;;  %v11028_v46 = vor.u32 %v11026_v9, %v19611_v5  ;;  %v11351_v20 = vshrl.u32 %v15808_v38, 16  ;;  %v19701_v49 = vld [vmem:[#allocation2 + $0xbc] sm:$0xff]   ;;  %v8595_v40 = vrot.slane %v8593_v59, 1 }
 0x343   : > { %10142 = vmatmul.mubr.bf16.gmra.mrb[44].mxu0 %v19477_v56  ;;  %9981 = vmatmul.mubr.bf16.gmra.mrb[28].mxu1 %v8913_v29  ;;  %v8589_v56 = vshrl.u32 %v19591_v47, 16  ;;  %8266 = vst.msk [vmem:[#allocation3 + $0x190] sm:$0xff] %vm600_vm0, %v8224_v50  ;;  %v11355_v47 = vshll.u32 %v19670_v32, 16  ;;  %v7980_v25 = vshll.u32 %v19677_v52, 16  ;;  %v19707_v53 = vld [vmem:[#allocation2 + $0xc4] sm:$0xff]   ;;  %v11034_v12 = vshrl.u32 %v19644_v27, 16 }
 0x344   : > { %10149 = vmatprep.mubr.bf16.mxu0 %v8925_v24  ;;  %9988 = vmatprep.mubr.bf16.mxu1 %v8923_v8  ;;  %v8934_v26 = vld [vmem:[#allocation3 + $0x1a0] sm:$0xff]  ;;  %v11349_v33 = vrot.slane %v11347_v28, 1  ;;  %v11038_v21 = vshll.u32 %v19701_v49, 16  ;;  %v8225_v18 = vrot.slane %v19703_v41, 1  ;;  %v7978_v2 = vor.u32 %v7976_v34, %v7974_v17  ;;  %v7837_v8 = vld [vmem:[#allocation2 + $0x60] sm:$0xf] }
 0x345   : > { %v8591_v6 = vor.u32 %v8589_v56, %v8587_v23  ;;  %v19709_v5 = vrot.slane %v11355_v47, 1  ;;  %v11033_v23 = vsel %vm733_vm2, %v11028_v46, %v19685_v1  ;;  %v7982_v16 = vrot.slane %v7980_v25, 1  ;;  %v15827_v19 = vld [vmem:[#allocation2 + $0x60] sm:$0xff]   ;;  %v15829_v24 = vld [vmem:[#allocation2 + $0xd8] ss:$0 sps:$4 sm:$0x11]  }
 0x346   : > { %v11350_v39 = vsel %vm733_vm2, %v11345_v55, %v11349_v33  ;;  %v19720_v13 = vrot.slane %v11038_v21, 1  ;;  %v8226_v27 = vsel %vm1014_vm1, %v8223_v37, %v8225_v18  ;;  %v11146_v44 = vsel %vm1014_vm1, %v11143_v45, %v11145_v3  ;;  %v15825_v45 = vld [vmem:[#allocation2 + $0xc8] sm:$0xff]   ;;  %v7836_v29 = vld [vmem:[#allocation2 + $0x5c] sm:$0xf] }
 0x347   : > { %v8596_v51 = vsel %vm733_vm2, %v8591_v6, %v8595_v40  ;;  %11380 = vst.msk [vmem:[#allocation3 + $0x1a0] sm:$0xff] %vm600_vm0, %v11350_v39  ;;  %v11353_v14 = vor.u32 %v11351_v20, %v11349_v33  ;;  %8267 = vst.msk [vmem:[#allocation3 + $0x1d8] sm:$0xff] %vm600_vm0, %v8226_v27  ;;  %v11147_v63 = vrot.slane %v19707_v53, 1  ;;  %v7983_v22 = vsel %vm733_vm2, %v7978_v2, %v7982_v16  ;;  %v19748_v61 = vld [vmem:[#allocation2 + $0x44] sm:$0xff]   ;;  %v15832_v59 = vld [vmem:[%s20896_s5 + $0x218] sm:$0xff]  }
 0x348   : > { %8691 = vst.msk [vmem:[#allocation3 + $0x1e8] sm:$0xff] %vm600_vm0, %v8596_v51  ;;  %v8922_v36 = vld [vmem:[#allocation3 + $0x140] sm:$0xff]  ;;  %8085 = vst.msk [vmem:[#allocation3 + $0x188] sm:$0xff] %vm600_vm0, %v7983_v22  ;;  %v8597_v31 = vshrl.u32 %v19662_v10, 16  ;;  %v11359_v60 = vshrl.u32 %v19670_v32, 16  ;;  %v7984_v42 = vshrl.u32 %v19677_v52, 16  ;;  %v11036_v48 = vor.u32 %v11034_v12, %v19685_v1  ;;  %15173 = vmatprep.subr.bf16.mxu1 %v15832_v59 }
 0x349   : > { %11070 = vst.msk [vmem:[#allocation3 + $0x140] sm:$0xff] %vm600_vm0, %v11033_v23  ;;  %v11358_v15 = vsel %vm733_vm2, %v11353_v14, %v19709_v5  ;;  %v11148_v57 = vsel %vm1014_vm1, %v11145_v3, %v11147_v63  ;;  %v19745_v10 = vld [vmem:[#allocation2 + $0x68] sm:$0xff]   ;;  %v8609_v9 = vshll.u32 %v15827_v19, 16  ;;  %v8613_v62 = vshrl.u32 %v15827_v19, 16  ;;  %v15834_v39 = vld [vmem:[#allocation2 + $0x54] sm:$0xff]   ;;  %15174 = vmatpush3.bf16.msra.mxu1 %v15832_v59  ;;  %v19780_v27 = vld [vmem:[#allocation2 + $0x5c] sm:$0xff]  }
 0x34a   : > { %v8932_v30 = vld [vmem:[#allocation3 + $0x190] sm:$0xff]  ;;  %v8617_v52 = vshll.u32 %v19745_v10, 16  ;;  %v11363_v7 = vshll.u32 %v15829_v24, 16  ;;  %v11041_v38 = vsel %vm733_vm2, %v11036_v48, %v19720_v13  ;;  %v8599_v1 = vor.u32 %v8597_v31, %v8595_v40  ;;  %v19753_v43 = vld [vmem:[#allocation2 + $0xc4] sm:$0xff]   ;;  %v15833_v33 = vld [vmem:[#allocation2 + $0x4c] sm:$0xff]  }
 0x34b   : > { %10150 = vmatmul.mubr.bf16.gmra.mrb[48].mxu0 %v19640_v58  ;;  %9989 = vmatmul.mubr.bf16.gmra.mrb[32].mxu1 %v8922_v36  ;;  %11164 = vst.msk [vmem:[#allocation3 + $0x190] sm:$0xff] %vm600_vm0, %v11146_v44  ;;  %v15826_v58 = vld [vmem:[#allocation2 + $0x58] sm:$0xff]   ;;  %v8611_v35 = vrot.slane %v8609_v9, 1  ;;  %v8942_v3 = vld [vmem:[#allocation3 + $0x1e0] sm:$0xff]  ;;  %v7986_v28 = vor.u32 %v7984_v42, %v7982_v16  ;;  %v7988_v50 = vshll.u32 %v19748_v61, 16  ;;  %v11046_v47 = vshll.u32 %v19753_v43, 16 }
 0x34c   : > { %10157 = vmatprep.mubr.bf16.mxu0 %v8934_v26  ;;  %9996 = vmatprep.mubr.bf16.mxu1 %v8932_v30  ;;  %v8601_v54 = vshll.u32 %v15826_v58, 16  ;;  %v8605_v17 = vshrl.u32 %v15826_v58, 16  ;;  %v19757_v56 = vrot.slane %v8617_v52, 1  ;;  %v11365_v55 = vrot.slane %v11363_v7, 1  ;;  %11237 = vst.msk [vmem:[#allocation3 + $0x1e0] sm:$0xff] %vm600_vm0, %v15825_v45  ;;  %v15838_v22 = vld [vmem:[#allocation2 + $0x50] sm:$0xff]  }
 0x34d   : > { %v8615_v20 = vor.u32 %v8613_v62, %v8611_v35  ;;  %v7990_v26 = vrot.slane %v7988_v50, 1  ;;  %v19768_v40 = vcombine.low %v7836_v29, %v7837_v8  ;;  %v11361_v12 = vor.u32 %v11359_v60, %v19709_v5  ;;  %v7839_v23 = vld [vmem:[#allocation2 + $0x68] sm:$0xf]  ;;  %v7838_v51 = vld [vmem:[#allocation2 + $0x64] sm:$0xf]  ;;  %8412 = vst.msk [vmem:[#allocation3 + $0x228] sm:$0xff] %vm600_vm0, %v15838_v22 }
 0x34e   : > { %v8941_v0 = vld [vmem:[#allocation3 + $0x1d8] sm:$0xff]  ;;  %v8603_v37 = vrot.slane %v8601_v54, 1  ;;  %v11042_v21 = vshrl.u32 %v19701_v49, 16  ;;  %v19778_v16 = vrot.slane %v11046_v47, 1  ;;  %v8227_v11 = vrot.slane %v15833_v33, 1  ;;  %v15837_v5 = vld [vmem:[%s20896_s5 + $0x48] sm:$0xff]  }
 0x34f   : > { %v8943_v32 = vld [vmem:[#allocation3 + $0x1e8] sm:$0xff]  ;;  %11165 = vst.msk [vmem:[#allocation3 + $0x1d8] sm:$0xff] %vm600_vm0, %v11148_v57  ;;  %v8620_v25 = vsel %vm733_vm2, %v8615_v20, %v19757_v56  ;;  %v7991_v2 = vsel %vm733_vm2, %v7986_v28, %v7990_v26  ;;  %v8229_v49 = vrot.slane %v15834_v39, 1  ;;  %v8231_v14 = vrot.slane %v19780_v27, 1  ;;  %14817 = vmatprep.subr.bf16.mxu0 %v15837_v5  ;;  %v15842_v24 = vld [vmem:[#allocation2 + $0x54] sm:$0xff]   ;;  %v15844_v29 = vld [vmem:[%s20896_s5 + $0x220] sm:$0xff]  }
 0x350   : > { %11381 = vst.msk [vmem:[#allocation3 + $0x1e8] sm:$0xff] %vm600_vm0, %v11358_v15  ;;  %v8931_v46 = vld [vmem:[#allocation3 + $0x188] sm:$0xff]  ;;  %v8604_v6 = vsel %vm733_vm2, %v8599_v1, %v8603_v37  ;;  %8694 = vst.msk [vmem:[#allocation3 + $0x2c0] sm:$0xff] %vm600_vm0, %v8620_v25  ;;  %v8228_v44 = vsel %vm1014_vm1, %v8225_v18, %v8227_v11  ;;  %v8012_v30 = vshll.u32 %v19768_v40, 16  ;;  %v11366_v31 = vsel %vm733_vm2, %v11361_v12, %v11365_v55  ;;  %v19798_v18 = vld [vmem:[#allocation2 + $0x80] sm:$0xfe]  }
 0x351   : > { %11071 = vst.msk [vmem:[#allocation3 + $0x188] sm:$0xff] %vm600_vm0, %v11041_v38  ;;  %8692 = vst.msk [vmem:[#allocation3 + $0x230] sm:$0xff] %vm600_vm0, %v8604_v6  ;;  %v15836_v36 = vld [vmem:[#allocation2 + $0xcc] ss:$0 sps:$4 sm:$0x11]   ;;  %v11044_v45 = vor.u32 %v11042_v21, %v19720_v13  ;;  %v8230_v58 = vsel %vm1014_vm1, %v8227_v11, %v8229_v49  ;;  %v8232_v60 = vsel %vm1014_vm1, %v8229_v49, %v8231_v14  ;;  %v7992_v42 = vshrl.u32 %v19748_v61, 16 }
 0x352   : > { %8086 = vst.msk [vmem:[#allocation3 + $0x1d0] sm:$0xff] %vm600_vm0, %v7991_v2  ;;  %8268 = vst.msk [vmem:[#allocation3 + $0x220] sm:$0xff] %vm600_vm0, %v8228_v44  ;;  %v11149_v19 = vrot.slane %v15836_v36, 1  ;;  %v15840_v41 = vld [vmem:[%s20896_s5 + $0x8] sm:$0xff]   ;;  %v19806_v15 = vcombine.low %v7838_v51, %v7839_v23  ;;  %v8014_v9 = vrot.slane %v8012_v30, 1  ;;  %v8004_v7 = vshll.u32 %v15842_v24, 16  ;;  %15175 = vmatprep.subr.bf16.mxu1 %v15844_v29 }
 0x353   : > { %10158 = vmatmul.mubr.bf16.gmra.mrb[52].mxu0 %v19680_v4  ;;  %v8607_v4 = vor.u32 %v8605_v17, %v8603_v37  ;;  %9997 = vmatmul.mubr.bf16.gmra.mrb[36].mxu1 %v8931_v46  ;;  %8269 = vst.msk [vmem:[#allocation3 + $0x268] sm:$0xff] %vm600_vm0, %v8230_v58  ;;  %v15841_v13 = vld [vmem:[#allocation2 + $0x4c] sm:$0xff]   ;;  %v11049_v57 = vsel %vm733_vm2, %v11044_v45, %v19778_v16  ;;  %8270 = vst.msk [vmem:[#allocation3 + $0x2b0] sm:$0xff] %vm600_vm0, %v8232_v60  ;;  %v11050_v61 = vshrl.u32 %v19753_v43, 16  ;;  %v7843_v55 = vld [vmem:[#allocation2 + $0x78] sm:$0xf] }
 0x354   : > { %10165 = vmatprep.mubr.bf16.mxu0 %v8943_v32  ;;  %10004 = vmatprep.mubr.bf16.mxu1 %v8941_v0  ;;  %v11150_v8 = vsel %vm1014_vm1, %v11147_v63, %v11149_v19  ;;  %v7994_v54 = vor.u32 %v7992_v42, %v7990_v26  ;;  %v7996_v17 = vshll.u32 %v15841_v13, 16  ;;  %v15843_v62 = vld [vmem:[#allocation2 + $0xcc] ss:$0 sps:$4 sm:$0x11]   ;;  %v15839_v32 = vld [vmem:[#allocation2 + $0xd0] sm:$0xff]   ;;  %v8000_v52 = vshrl.u32 %v15841_v13, 16 }
 0x355   : > { %v8612_v34 = vsel %vm733_vm2, %v8607_v4, %v8611_v35  ;;  %14818 = vmatpush3.bf16.msra.mxu0 %v15840_v41  ;;  %v8621_v38 = vshrl.u32 %v19745_v10, 16  ;;  %v7841_v0 = vld [vmem:[#allocation2 + $0x70] sm:$0xf]  ;;  %v8008_v37 = vshrl.u32 %v15842_v24, 16  ;;  %v11054_v63 = vshll.u32 %v15843_v62, 16  ;;  %15176 = vmatpush3.bf16.msra.mxu1 %v15844_v29  ;;  %v15850_v45 = vld [vmem:[%s20896_s5 + $0x228] sm:$0xff]  }
 0x356   : > { %8693 = vst.msk [vmem:[#allocation3 + $0x278] sm:$0xff] %vm600_vm0, %v8612_v34  ;;  %v7998_v53 = vrot.slane %v7996_v17, 1  ;;  %v15845_v35 = vld [vmem:[%s20896_s5 + $0x50] sm:$0xff]   ;;  %v8006_v43 = vrot.slane %v8004_v7, 1  ;;  %v7840_v50 = vld [vmem:[#allocation2 + $0x6c] sm:$0xf]  ;;  %v11052_v20 = vor.u32 %v11050_v61, %v19778_v16  ;;  %15177 = vmatprep.subr.bf16.mxu1 %v15850_v45 }
 0x357   : > { %v7842_v28 = vld [vmem:[#allocation2 + $0x74] sm:$0xf]  ;;  %v10825_v59 = vrot.slane %v19798_v18, 1  ;;  %14819 = vmatprep.subr.bf16.mxu0 %v15845_v35  ;;  %v10767_v26 = vld [vmem:[#allocation2 + $0x88] sm:$0xf]  ;;  %v8623_v25 = vor.u32 %v8621_v38, %v19757_v56  ;;  %v8020_v21 = vshll.u32 %v19806_v15, 16  ;;  %v19838_v5 = vcombine.low %v7840_v50, %v7841_v0 }
 0x358   : > { %v8952_v48 = vld [vmem:[#allocation3 + $0x230] sm:$0xff]  ;;  %v7999_v6 = vsel %vm733_vm2, %v7994_v54, %v7998_v53  ;;  %v8002_v4 = vor.u32 %v8000_v52, %v7998_v53  ;;  %v10768_v33 = vld [vmem:[#allocation2 + $0x8c] sm:$0xf]  ;;  %v8010_v34 = vor.u32 %v8008_v37, %v8006_v43  ;;  %v11056_v51 = vrot.slane %v11054_v63, 1  ;;  %v15848_v16 = vld [vmem:[#allocation2 + $0x64] sm:$0xff]  }
 0x359   : > { %11382 = vst.msk [vmem:[#allocation3 + $0x230] sm:$0xff] %vm600_vm0, %v11366_v31  ;;  %v8940_v1 = vld [vmem:[#allocation3 + $0x1d0] sm:$0xff]  ;;  %v8950_v46 = vld [vmem:[#allocation3 + $0x220] sm:$0xff]  ;;  %8087 = vst.msk [vmem:[#allocation3 + $0x218] sm:$0xff] %vm600_vm0, %v7999_v6  ;;  %v8024_v11 = vshrl.u32 %v19806_v15, 16  ;;  %v8022_v36 = vrot.slane %v8020_v21, 1  ;;  %v19842_v44 = vcombine.low %v7842_v28, %v7843_v55  ;;  %v13415_v22 = vcombine.low %v10767_v26, %v10768_v33  ;;  %15178 = vmatpush3.bf16.msra.mxu1 %v15850_v45 }
 0x35a   : > { %11072 = vst.msk [vmem:[#allocation3 + $0x1d0] sm:$0xff] %vm600_vm0, %v11049_v57  ;;  %v15846_v10 = vld [vmem:[%s20896_s5 + $0x10] sm:$0xff]   ;;  %11166 = vst.msk [vmem:[#allocation3 + $0x220] sm:$0xff] %vm600_vm0, %v11150_v8  ;;  %v8007_v23 = vsel %vm733_vm2, %v8002_v4, %v8006_v43  ;;  %v8015_v49 = vsel %vm733_vm2, %v8010_v34, %v8014_v9  ;;  %v15849_v56 = vld [vmem:[#allocation2 + $0x78] sm:$0xff]   ;;  %v8233_v31 = vrot.slane %v15848_v16, 1  ;;  %v8032_v6 = vshrl.u32 %v19838_v5, 16 }
 0x35b   : > { %10166 = vmatmul.mubr.bf16.gmra.mrb[56].mxu0 %v8942_v3  ;;  %v8016_v3 = vshrl.u32 %v19768_v40, 16  ;;  %10005 = vmatmul.mubr.bf16.gmra.mrb[40].mxu1 %v8940_v1  ;;  %v15847_v47 = vld [vmem:[#allocation2 + $0x70] sm:$0xff]   ;;  %8088 = vst.msk [vmem:[#allocation3 + $0x260] sm:$0xff] %vm600_vm0, %v8007_v23  ;;  %8089 = vst.msk [vmem:[#allocation3 + $0x2a8] sm:$0xff] %vm600_vm0, %v8015_v49  ;;  %v7845_v19 = vld [vmem:[#allocation2 + $0x80] sm:$0xf]  ;;  %v8026_v1 = vor.u32 %v8024_v11, %v8022_v36 }
 0x35c   : > { %10173 = vmatprep.mubr.bf16.mxu0 %v8952_v48  ;;  %10012 = vmatprep.mubr.bf16.mxu1 %v8950_v46  ;;  %v8951_v40 = vld [vmem:[#allocation3 + $0x228] sm:$0xff]  ;;  %v8625_v2 = vshll.u32 %v15847_v47, 16  ;;  %v8629_v41 = vshrl.u32 %v15847_v47, 16  ;;  %v8633_v60 = vshll.u32 %v15849_v56, 16  ;;  %v15852_v42 = vld [vmem:[%s20896_s5 + $0x58] sm:$0xff]   ;;  %v8637_v15 = vshrl.u32 %v15849_v56, 16 }
 0x35d   : > { %14820 = vmatpush3.bf16.msra.mxu0 %v15846_v10  ;;  %v8018_v12 = vor.u32 %v8016_v3, %v8014_v9  ;;  %11238 = vst.msk [vmem:[#allocation3 + $0x228] sm:$0xff] %vm600_vm0, %v15839_v32  ;;  %v8961_v39 = vld [vmem:[#allocation3 + $0x278] sm:$0xff]  ;;  %v15851_v58 = vld [vmem:[#allocation2 + $0x6c] sm:$0xff]   ;;  %v11057_v48 = vsel %vm733_vm2, %v11052_v20, %v11056_v51  ;;  %v8234_v24 = vsel %vm1014_vm1, %v8231_v14, %v8233_v31  ;;  %v8960_v9 = vld [vmem:[#allocation3 + $0x270] sm:$0xff]  ;;  %v8028_v14 = vshll.u32 %v19838_v5, 16 }
 0x35e   : > { %v8627_v30 = vrot.slane %v8625_v2, 1  ;;  %v8235_v8 = vrot.slane %v15851_v58, 1  ;;  %v15853_v54 = vld [vmem:[%s20896_s5 + $0x18] sm:$0xff]   ;;  %8271 = vst.msk [vmem:[#allocation3 + $0x2f8] sm:$0xff] %vm600_vm0, %v8234_v24  ;;  %v8635_v32 = vrot.slane %v8633_v60, 1  ;;  %14821 = vmatprep.subr.bf16.mxu0 %v15852_v42  ;;  %v15854_v27 = vld [vmem:[#allocation2 + $0x80] sm:$0xff]  }
 0x35f   : > { %v8023_v13 = vsel %vm733_vm2, %v8018_v12, %v8022_v36  ;;  %v7844_v17 = vld [vmem:[#allocation2 + $0x7c] sm:$0xf]  ;;  %v19864_v52 = vld [vmem:[#allocation2 + $0x74] sm:$0xff]   ;;  %v19866_v7 = vrot.slane %v13415_v22, 1  ;;  %v8959_v29 = vld [vmem:[#allocation3 + $0x268] sm:$0xff]  ;;  %v8036_v53 = vshll.u32 %v19842_v44, 16 }
 0x360   : > { %v8628_v57 = vsel %vm733_vm2, %v8623_v25, %v8627_v30  ;;  %8090 = vst.msk [vmem:[#allocation3 + $0x2f0] sm:$0xff] %vm600_vm0, %v8023_v13  ;;  %v8631_v62 = vor.u32 %v8629_v41, %v8627_v30  ;;  %v8949_v61 = vld [vmem:[#allocation3 + $0x218] sm:$0xff]  ;;  %v8970_v38 = vld [vmem:[#allocation3 + $0x2c0] sm:$0xff]  ;;  %v8236_v0 = vsel %vm1014_vm1, %v8233_v31, %v8235_v8  ;;  %v8639_v35 = vor.u32 %v8637_v15, %v8635_v32 }
 0x361   : > { %8695 = vst.msk [vmem:[#allocation3 + $0x308] sm:$0xff] %vm600_vm0, %v8628_v57  ;;  %14822 = vmatpush3.bf16.msra.mxu0 %v15853_v54  ;;  %11073 = vst.msk [vmem:[#allocation3 + $0x218] sm:$0xff] %vm600_vm0, %v11057_v48  ;;  %v8641_v3 = vshll.u32 %v15854_v27, 16  ;;  %v8030_v55 = vrot.slane %v8028_v14, 1  ;;  %v19873_v28 = vld [vmem:[#allocation2 + $0x88] sm:$0xff]   ;;  %v19875_v43 = vcombine.low %v7844_v17, %v7845_v19  ;;  %v8237_v50 = vrot.slane %v19864_v52, 1 }
 0x362   : > { %v8636_v37 = vsel %vm733_vm2, %v8631_v62, %v8635_v32  ;;  %8272 = vst.msk [vmem:[#allocation3 + $0x340] sm:$0xff] %vm600_vm0, %v8236_v0  ;;  %v8645_v46 = vshrl.u32 %v15854_v27, 16  ;;  %v8649_v33 = vshll.u32 %v19873_v28, 16  ;;  %v19887_v34 = vld [vmem:[#allocation2 + $0x7c] sm:$0xff]   ;;  %v7847_v23 = vld [vmem:[#allocation2 + $0x88] sm:$0xf]  ;;  %v10827_v60 = vsel %vm1014_vm1, %v10825_v59, %v19866_v7 }
 0x363   : > { %10174 = vmatmul.mubr.bf16.gmra.mrb[60].mxu0 %v8951_v40  ;;  %10013 = vmatmul.mubr.bf16.gmra.mrb[44].mxu1 %v8949_v61  ;;  %8696 = vst.msk [vmem:[#allocation3 + $0x350] sm:$0xff] %vm600_vm0, %v8636_v37  ;;  %v8643_v47 = vrot.slane %v8641_v3, 1  ;;  %v8031_v26 = vsel %vm733_vm2, %v8026_v1, %v8030_v55  ;;  %v15857_v40 = vld [vmem:[%s20896_s5 + $0x230] sm:$0xff]   ;;  %v8238_v12 = vsel %vm1014_vm1, %v8235_v8, %v8237_v50  ;;  %v15859_v5 = vld [vmem:[%s20896_s5 + $0x60] sm:$0xff]   ;;  %v8239_v22 = vrot.slane %v19887_v34, 1 }
 0x364   : > { %10181 = vmatprep.mubr.bf16.mxu0 %v8961_v39  ;;  %10020 = vmatprep.mubr.bf16.mxu1 %v8959_v29  ;;  %8091 = vst.msk [vmem:[#allocation3 + $0x338] sm:$0xff] %vm600_vm0, %v8031_v26  ;;  %v8034_v21 = vor.u32 %v8032_v6, %v8030_v55  ;;  %v8038_v39 = vrot.slane %v8036_v53, 1  ;;  %8273 = vst.msk [vmem:[#allocation3 + $0x388] sm:$0xff] %vm600_vm0, %v8238_v12  ;;  %v8651_v11 = vrot.slane %v8649_v33, 1  ;;  %v7846_v49 = vld [vmem:[#allocation2 + $0x84] sm:$0xf] }
 0x365   : > { %v14471_v63 = vpop.f32.mrb[224].mxu0  ;;  %v8644_v2 = vsel %vm733_vm2, %v8639_v35, %v8643_v47  ;;  %v8647_v16 = vor.u32 %v8645_v46, %v8643_v47  ;;  %15179 = vmatprep.subr.bf16.mxu1 %v15857_v40  ;;  %v8958_v56 = vld [vmem:[#allocation3 + $0x260] sm:$0xff]  ;;  %v8040_v31 = vshrl.u32 %v19842_v44, 16  ;;  %v8969_v45 = vld [vmem:[#allocation3 + $0x2b8] sm:$0xff]  ;;  %14823 = vmatprep.subr.bf16.mxu0 %v15859_v5  ;;  %v15861_v19 = vld [vmem:[#allocation2 + $0x90] sm:$0xff]   ;;  %v8044_v41 = vshll.u32 %v19875_v43, 16 }
 0x366   : > { %v14472_v10 = vpop.f32.mrb[225].mxu0  ;;  %8697 = vst.msk [vmem:[#allocation3 + $0x398] sm:$0xff] %vm600_vm0, %v8644_v2  ;;  %v8039_v36 = vsel %vm733_vm2, %v8034_v21, %v8038_v39  ;;  %15180 = vmatpush3.bf16.msra.mxu1 %v15857_v40  ;;  %v15860_v30 = vld [vmem:[%s20896_s5 + $0x20] sm:$0xff]   ;;  %v8240_v42 = vsel %vm1014_vm1, %v8237_v50, %v8239_v22  ;;  %v8653_v44 = vshrl.u32 %v19873_v28, 16  ;;  %10850 = vst.msk [vmem:[#allocation3 + $0x10] sm:$0xff] %vm600_vm0, %v10827_v60  ;;  %v8968_v48 = vld [vmem:[#allocation3 + $0x2b0] sm:$0xff] }
 0x367   : > { %v19880_v4 = vadd.f32 %v14472_v10, %v14471_v63  ;;  %v14474_v20 = vpop.f32.mrb[226].mxu0  ;;  %v8652_v58 = vsel %vm733_vm2, %v8647_v16, %v8651_v11  ;;  %8092 = vst.msk [vmem:[#allocation3 + $0x380] sm:$0xff] %vm600_vm0, %v8039_v36  ;;  %14824 = vmatpush3.bf16.msra.mxu0 %v15860_v30  ;;  %v19916_v15 = vcombine.low %v7846_v49, %v7847_v23  ;;  %8274 = vst.msk [vmem:[#allocation3 + $0x3d0] sm:$0xff] %vm600_vm0, %v8240_v42  ;;  %v15862_v54 = vld [vmem:[#allocation2 + $0x84] sm:$0xff]   ;;  %v8307_v0 = vld [vmem:[#allocation2 + $0x90] sm:$0xf] }
 0x368   : > { %v14475_v25 = vpop.f32.mrb[227].mxu0  ;;  %8698 = vst.msk [vmem:[#allocation3 + $0x3e0] sm:$0xff] %vm600_vm0, %v8652_v58  ;;  %v8979_v57 = vld [vmem:[#allocation3 + $0x308] sm:$0xff]  ;;  %v8657_v18 = vshll.u32 %v15861_v19, 16  ;;  %v8042_v59 = vor.u32 %v8040_v31, %v8038_v39  ;;  %v8046_v8 = vrot.slane %v8044_v41, 1  ;;  %v8655_v62 = vor.u32 %v8653_v44, %v8651_v11  ;;  %v8978_v34 = vld [vmem:[#allocation3 + $0x300] sm:$0xff] }
 0x369   : > { %v19891_v51 = vadd.f32 %v14475_v25, %v14474_v20  ;;  %v15863_v32 = vld [vmem:[#allocation2 + $0x98] ss:$0 sps:$4 sm:$0x11]   ;;  %v8241_v61 = vrot.slane %v15862_v54, 1  ;;  %v8661_v29 = vshrl.u32 %v15861_v19, 16  ;;  %v8048_v63 = vshrl.u32 %v19875_v43, 16 }
 0x36a   : > { %v8659_v14 = vrot.slane %v8657_v18, 1  ;;  %v8047_v52 = vsel %vm733_vm2, %v8042_v59, %v8046_v8  ;;  %v8665_v37 = vshll.u32 %v15863_v32, 16  ;;  %v15866_v35 = vld [vmem:[%s20896_s5 + $0x68] sm:$0xff]   ;;  %v8052_v50 = vshll.u32 %v19916_v15, 16  ;;  %v8308_v26 = vld [vmem:[#allocation2 + $0x94] sm:$0xf] }
 0x36b   : > { %10182 = vmatmul.mubr.bf16.gmra.mrb[64].mxu0 %v8960_v9  ;;  %v14359_v13 = vpop.f32.mrb[208].mxu1  ;;  %10021 = vmatmul.mubr.bf16.gmra.mrb[48].mxu1 %v8958_v56  ;;  %8093 = vst.msk [vmem:[#allocation3 + $0x3c8] sm:$0xff] %vm600_vm0, %v8047_v52  ;;  %v19931_v3 = vld [vmem:[#allocation2 + $0x8c] ss:$0 sps:$4 sm:$0x11]   ;;  %v8242_v28 = vsel %vm1014_vm1, %v8239_v22, %v8241_v61  ;;  %v8050_v47 = vor.u32 %v8048_v63, %v8046_v8  ;;  %v15868_v33 = vld [vmem:[%s20896_s5 + $0x70] sm:$0xff]  }
 0x36c   : > { %10189 = vmatprep.mubr.bf16.mxu0 %v8970_v38  ;;  %v14360_v24 = vpop.f32.mrb[209].mxu1  ;;  %10028 = vmatprep.mubr.bf16.mxu1 %v8968_v48  ;;  %v15864_v38 = vld [vmem:[%s20896_s5 + $0x238] sm:$0xff]   ;;  %v8660_v55 = vsel %vm733_vm2, %v8655_v62, %v8659_v14  ;;  %v8663_v10 = vor.u32 %v8661_v29, %v8659_v14  ;;  %v15865_v46 = vld [vmem:[#allocation2 + $0x8c] ss:$0 sps:$4 sm:$0x11]   ;;  %8275 = vst.msk [vmem:[#allocation3 + $0x418] sm:$0xff] %vm600_vm0, %v8242_v28 }
 0x36d   : > { %v14361_v17 = vadd.f32 %v14360_v24, %v14359_v13  ;;  %v14362_v9 = vpop.f32.mrb[210].mxu1  ;;  %15181 = vmatprep.subr.bf16.mxu1 %v15864_v38  ;;  %v15867_v6 = vld [vmem:[%s20896_s5 + $0x28] sm:$0xff]   ;;  %8699 = vst.msk [vmem:[#allocation3 + $0x428] sm:$0xff] %vm600_vm0, %v8660_v55  ;;  %v8667_v20 = vrot.slane %v8665_v37, 1  ;;  %14825 = vmatprep.subr.bf16.mxu0 %v15866_v35  ;;  %v8054_v12 = vrot.slane %v8052_v50, 1  ;;  %v8243_v21 = vrot.slane %v15865_v46, 1 }
 0x36e   : > { %v14363_v27 = vpop.f32.mrb[211].mxu1  ;;  %15182 = vmatpush3.bf16.msra.mxu1 %v15864_v38  ;;  %v8967_v40 = vld [vmem:[#allocation3 + $0x2a8] sm:$0xff]  ;;  %14826 = vmatpush3.bf16.msra.mxu0 %v15867_v6  ;;  %v13288_v39 = vcombine.low %v8307_v0, %v8308_v26  ;;  %v8977_v2 = vld [vmem:[#allocation3 + $0x2f8] sm:$0xff]  ;;  %v8056_v44 = vshrl.u32 %v19916_v15, 16  ;;  %v8060_v48 = vshll.u32 %v19931_v3, 16  ;;  %v8976_v38 = vld [vmem:[#allocation3 + $0x2f0] sm:$0xff] }
 0x36f   : > { %v19924_v1 = vadd.f32 %v19880_v4, %v14361_v17  ;;  %v14364_v53 = vadd.f32 %v14363_v27, %v14362_v9  ;;  %v15869_v23 = vld [vmem:[%s20896_s5 + $0x30] sm:$0xff]   ;;  %v8668_v49 = vsel %vm733_vm2, %v8663_v10, %v8667_v20  ;;  %14827 = vmatprep.subr.bf16.mxu0 %v15868_v33  ;;  %v19951_v56 = vld [vmem:[#allocation2 + $0x88] sm:$0xff]   ;;  %v8055_v30 = vsel %vm733_vm2, %v8050_v47, %v8054_v12  ;;  %v19966_v17 = vld [vmem:[#allocation2 + $0x98] sm:$0xff]  }
 0x370   : > { %8700 = vst.msk [vmem:[#allocation3 + $0x470] sm:$0xff] %vm600_vm0, %v8668_v49  ;;  %v8244_v31 = vsel %vm1014_vm1, %v8241_v61, %v8243_v21  ;;  %8420 = vst.msk [vmem:[#allocation3 + $0x468] sm:$0xff] %vm600_vm0, %v13288_v39  ;;  %v10689_v42 = vshll.u32 %v19951_v56, 16  ;;  %v19962_v24 = vld [vmem:[#allocation2 + $0x28] sm:$0xff]   ;;  %v8058_v62 = vor.u32 %v8056_v44, %v8054_v12  ;;  %v8062_v32 = vrot.slane %v8060_v48, 1  ;;  %v8997_v10 = vld [vmem:[#allocation3 + $0x398] sm:$0xff] }
 0x371   : > { %v19940_v43 = vadd.f32 %v19891_v51, %v14364_v53  ;;  %v15870_v51 = vld [vmem:[#allocation2 + $0x80] sm:$0xff]   ;;  %8094 = vst.msk [vmem:[#allocation3 + $0x410] sm:$0xff] %vm600_vm0, %v8055_v30  ;;  %8276 = vst.msk [vmem:[#allocation3 + $0x460] sm:$0xff] %vm600_vm0, %v8244_v31  ;;  %v15872_v52 = vld [vmem:[#allocation2 + $0x18] sm:$0xfe]   ;;  %v8820_v29 = vrot.slane %v19962_v24, 1 }
 0x372   : > { %v10684_v60 = vshll.u32 %v15870_v51, 16  ;;  %14828 = vmatpush3.bf16.msra.mxu0 %v15869_v23  ;;  %v10682_v8 = vshrl.u32 %v15870_v51, 16  ;;  %v10691_v9 = vrot.slane %v10689_v42, 1  ;;  %v8063_v15 = vsel %vm733_vm2, %v8058_v62, %v8062_v32  ;;  %v19974_v53 = vld [vmem:[#allocation2 + $0xa0] sm:$0xff]   ;;  %v19976_v37 = vld [vmem:[#allocation2 + $0x94] sm:$0xf] }
 0x373   : > { %10190 = vmatmul.mubr.bf16.gmra.mrb[68].mxu0 %v8969_v45  ;;  %10029 = vmatmul.mubr.bf16.gmra.mrb[52].mxu1 %v8967_v40  ;;  %v8988_v45 = vld [vmem:[#allocation3 + $0x350] sm:$0xff]  ;;  %8095 = vst.msk [vmem:[#allocation3 + $0x458] sm:$0xff] %vm600_vm0, %v8063_v15  ;;  %v10830_v63 = vrot.slane %v19966_v17, 1  ;;  %v8986_v35 = vld [vmem:[#allocation3 + $0x340] sm:$0xff]  ;;  %v8987_v3 = vld [vmem:[#allocation3 + $0x348] sm:$0xff]  ;;  %v8817_v55 = vrot.slane %v15872_v52, 1 }
 0x374   : > { %10197 = vmatprep.mubr.bf16.mxu0 %v8979_v57  ;;  %v14477_v4 = vpop.f32.mrb[228].mxu0  ;;  %v14365_v5 = vpop.f32.mrb[212].mxu1  ;;  %10036 = vmatprep.mubr.bf16.mxu1 %v8977_v2  ;;  %v15873_v57 = vld [vmem:[#allocation2 + $0x20] sm:$0xff]   ;;  %v10686_v54 = vrot.slane %v10684_v60, 1  ;;  %v15877_v46 = vld [vmem:[%s20896_s5 + $0x78] sm:$0xff]   ;;  %v10693_v6 = vshrl.u32 %v19951_v56, 16 }
 0x375   : > { %v14478_v25 = vpop.f32.mrb[229].mxu0  ;;  %v14366_v22 = vpop.f32.mrb[213].mxu1  ;;  %v8818_v61 = vrot.slane %v15873_v57, 1  ;;  %v15875_v26 = vld [vmem:[#allocation2 + $0x98] sm:$0xfe]   ;;  %14829 = vmatprep.subr.bf16.mxu0 %v15877_v46  ;;  %v19992_v12 = vld [vmem:[#allocation2 + $0x90] sm:$0xff]  }
 0x376   : > { %v14479_v16 = vadd.f32 %v14478_v25, %v14477_v4  ;;  %v14480_v11 = vpop.f32.mrb[230].mxu0  ;;  %v14367_v19 = vadd.f32 %v14366_v22, %v14365_v5  ;;  %v14368_v41 = vpop.f32.mrb[214].mxu1  ;;  %v10687_v14 = vor.u32 %v10686_v54, %v10682_v8  ;;  %v10769_v4 = vld [vmem:[#allocation2 + $0x90] sm:$0xf]  ;;  %v15878_v33 = vld [vmem:[%s20896_s5 + $0x38] sm:$0xff]   ;;  %v11444_v25 = vrot.slane %v19974_v53, 1 }
 0x377   : > { %v14481_v36 = vpop.f32.mrb[231].mxu0  ;;  %v14369_v13 = vpop.f32.mrb[215].mxu1  ;;  %v8821_v28 = vsel %vm1014_vm1, %v8818_v61, %v8820_v29  ;;  %v8819_v47 = vsel %vm1014_vm1, %v8817_v55, %v8818_v61  ;;  %v15880_v21 = vld [vmem:[%s20896_s5 + $0xc0] sm:$0xff]   ;;  %14830 = vmatpush3.bf16.msra.mxu0 %v15878_v33  ;;  %v15881_v23 = vld [vmem:[#allocation2 + $0x30] sm:$0xff]   ;;  %v10697_v2 = vshll.u32 %v19992_v12, 16  ;;  %v11443_v49 = vrot.slane %v15875_v26, 1 }
 0x378   : > { %v14482_v58 = vadd.f32 %v14481_v36, %v14480_v11  ;;  %v19964_v18 = vadd.f32 %v14479_v16, %v14367_v19  ;;  %v14370_v59 = vadd.f32 %v14369_v13, %v14368_v41  ;;  %v10692_v0 = vsel %vm733_vm2, %v10687_v14, %v10691_v9  ;;  %8867 = vst.msk [vmem:[#allocation3 + $0x88] sm:$0xff] %vm600_vm0, %v8821_v28  ;;  %v19998_v16 = vld [vmem:[#allocation2 + $0x38] sm:$0xff]   ;;  %v20001_v36 = vld [vmem:[#allocation2 + $0xa4] sm:$0xf]  ;;  %v8995_v19 = vld [vmem:[#allocation3 + $0x388] sm:$0xff] }
 0x379   : > { %10757 = vst.msk [vmem:[#allocation3 + $0x8] sm:$0xff] %vm600_vm0, %v10692_v0  ;;  %8866 = vst.msk [vmem:[#allocation3 + $0x40] sm:$0xff] %vm600_vm0, %v8819_v47  ;;  %14879 = vmatprep.subr.bf16.mxu1 %v15880_v21  ;;  %v13416_v11 = vcombine.low %v10769_v4, %v19976_v37  ;;  %v8996_v5 = vld [vmem:[#allocation3 + $0x390] sm:$0xff]  ;;  %v8822_v56 = vrot.slane %v15881_v23, 1  ;;  %v8985_v22 = vld [vmem:[#allocation3 + $0x338] sm:$0xff]  ;;  %v10695_v31 = vor.u32 %v10693_v6, %v10691_v9  ;;  %v10701_v44 = vshrl.u32 %v19992_v12, 16 }
 0x37a   : > { %v19968_v27 = vadd.f32 %v14482_v58, %v14370_v59  ;;  %v8824_v58 = vrot.slane %v19998_v16, 1  ;;  %v11445_v60 = vsel %vm1014_vm1, %v11443_v49, %v11444_v25  ;;  %v15883_v42 = vld [vmem:[#allocation2 + $0xa8] sm:$0xff]   ;;  %v10773_v48 = vld [vmem:[#allocation2 + $0xa0] sm:$0xf]  ;;  %v20014_v62 = vld [vmem:[#allocation2 + $0xb0] sm:$0xff]  }
 0x37b   : > { %10198 = vmatmul.mubr.bf16.gmra.mrb[72].mxu0 %v8978_v34  ;;  %10037 = vmatmul.mubr.bf16.gmra.mrb[56].mxu1 %v8976_v38  ;;  %v8823_v13 = vsel %vm1014_vm1, %v8820_v29, %v8822_v56  ;;  %v20007_v57 = vld [vmem:[#allocation2 + $0xa8] sm:$0xff]   ;;  %v10828_v32 = vrot.slane %v13416_v11, 1  ;;  %v11446_v52 = vrot.slane %v15883_v42, 1  ;;  %v20020_v61 = vld [vmem:[#allocation2 + $0x98] sm:$0xff]   ;;  %v11448_v53 = vrot.slane %v20014_v62, 1 }
 0x37c   : > { %10205 = vmatprep.mubr.bf16.mxu0 %v8988_v45  ;;  %10044 = vmatprep.mubr.bf16.mxu1 %v8986_v35  ;;  %v10699_v45 = vrot.slane %v10697_v2, 1  ;;  %v9006_v24 = vld [vmem:[#allocation3 + $0x3e0] sm:$0xff]  ;;  %v8825_v9 = vsel %vm1014_vm1, %v8822_v56, %v8824_v58  ;;  %8868 = vst.msk [vmem:[#allocation3 + $0xd0] sm:$0xff] %vm600_vm0, %v8823_v13  ;;  %v10705_v55 = vshll.u32 %v20020_v61, 16  ;;  %v9004_v47 = vld [vmem:[#allocation3 + $0x3d0] sm:$0xff]  ;;  %v9005_v26 = vld [vmem:[#allocation3 + $0x3d8] sm:$0xff] }
 0x37d   : > { %8869 = vst.msk [vmem:[#allocation3 + $0x118] sm:$0xff] %vm600_vm0, %v8825_v9  ;;  %v10829_v37 = vsel %vm1014_vm1, %v19866_v7, %v10828_v32  ;;  %v10831_v28 = vsel %vm1014_vm1, %v10828_v32, %v10830_v63  ;;  %v8994_v46 = vld [vmem:[#allocation3 + $0x380] sm:$0xff]  ;;  %v10553_v2 = vld [vmem:[#allocation2 + $0x90] sm:$0xf]  ;;  %v10709_v16 = vshrl.u32 %v20020_v61, 16 }
 0x37e   : > { %v10700_v54 = vsel %vm733_vm2, %v10695_v31, %v10699_v45  ;;  %10851 = vst.msk [vmem:[#allocation3 + $0x58] sm:$0xff] %vm600_vm0, %v10829_v37  ;;  %v15888_v7 = vld [vmem:[#allocation2 + $0x40] sm:$0xff]   ;;  %10852 = vst.msk [vmem:[#allocation3 + $0xa0] sm:$0xff] %vm600_vm0, %v10831_v28  ;;  %v10707_v12 = vrot.slane %v10705_v55, 1  ;;  %v20053_v31 = vld [vmem:[#allocation2 + $0xb4] sm:$0xf] }
 0x37f   : > { %v14371_v50 = vpop.f32.mrb[216].mxu1  ;;  %10758 = vst.msk [vmem:[#allocation3 + $0x50] sm:$0xff] %vm600_vm0, %v10700_v54  ;;  %v20025_v0 = vld [vmem:[#allocation3 + $0x88] sm:$0xff]  ;;  %v8826_v23 = vrot.slane %v15888_v7, 1  ;;  %v8725_v9 = vld [vmem:[#allocation2 + $0x78] sm:$0xf] }
 0x380   : > { %v14372_v20 = vpop.f32.mrb[217].mxu1  ;;  %v20016_v15 = vld [vmem:[#allocation3 + $0x40] sm:$0xff]  ;;  %v10777_v32 = vld [vmem:[#allocation2 + $0xb0] sm:$0xf] }
 0x381   : > { %v14373_v40 = vadd.f32 %v14372_v20, %v14371_v50  ;;  %v14374_v34 = vpop.f32.mrb[218].mxu1  ;;  %11468 = vst.msk [vmem:[#allocation3 + $0x40] sm:$0xff] %vm600_vm0, %v11445_v60  ;;  %v10834_v50 = vrot.slane %v20007_v57, 1  ;;  %v20041_v20 = vld [vmem:[#allocation2 + $0x48] sm:$0xff]   ;;  %v8827_v13 = vsel %vm1014_vm1, %v8824_v58, %v8826_v23  ;;  %v15895_v61 = vld [vmem:[#allocation2 + $0x50] sm:$0xff]   ;;  %v13420_v62 = vcombine.low %v10777_v32, %v20053_v31 }
 0x382   : > { %v14375_v39 = vpop.f32.mrb[219].mxu1  ;;  %8870 = vst.msk [vmem:[#allocation3 + $0x160] sm:$0xff] %vm600_vm0, %v8827_v13  ;;  %v9014_v28 = vld [vmem:[#allocation3 + $0x420] sm:$0xff] }
 0x383   : > { %10206 = vmatmul.mubr.bf16.gmra.mrb[76].mxu0 %v8987_v3  ;;  %v14376_v51 = vadd.f32 %v14375_v39, %v14374_v34  ;;  %10045 = vmatmul.mubr.bf16.gmra.mrb[60].mxu1 %v8985_v22  ;;  %v11447_v3 = vsel %vm1014_vm1, %v11444_v25, %v11446_v52  ;;  %v11449_v34 = vsel %vm1014_vm1, %v11446_v52, %v11448_v53  ;;  %v20048_v49 = vld [vmem:[#allocation3 + $0xd0] sm:$0xff] }
 0x384   : > { %10213 = vmatprep.mubr.bf16.mxu0 %v8997_v10  ;;  %10052 = vmatprep.mubr.bf16.mxu1 %v8995_v19  ;;  %v13418_v10 = vcombine.low %v10773_v48, %v20001_v36  ;;  %11469 = vst.msk [vmem:[#allocation3 + $0x88] sm:$0xff] %vm600_vm0, %v11447_v3  ;;  %v10703_v25 = vor.u32 %v10701_v44, %v10699_v45  ;;  %v15890_v36 = vld [vmem:[#allocation2 + $0xb8] sm:$0xff]   ;;  %v9015_v19 = vld [vmem:[#allocation3 + $0x428] sm:$0xff]  ;;  %11470 = vst.msk [vmem:[#allocation3 + $0xd0] sm:$0xff] %vm600_vm0, %v11449_v34 }
 0x385   : > { %v20055_v45 = vld [vmem:[#allocation2 + $0xb8] sm:$0xff]   ;;  %v20065_v44 = vld [vmem:[#allocation2 + $0xc0] sm:$0xff]   ;;  %v9003_v3 = vld [vmem:[#allocation3 + $0x3c8] sm:$0xff] }
 0x386   : > { %v14483_v30 = vpop.f32.mrb[232].mxu0  ;;  %v10708_v56 = vsel %vm733_vm2, %v10703_v25, %v10707_v12  ;;  %v10832_v22 = vrot.slane %v13418_v10, 1  ;;  %v11452_v37 = vrot.slane %v20065_v44, 1  ;;  %v10711_v10 = vor.u32 %v10709_v16, %v10707_v12  ;;  %v9013_v34 = vld [vmem:[#allocation3 + $0x418] sm:$0xff]  ;;  %v20145_v44 = vld [vmem:[#allocation2 + $0xb0] sm:$0xff]  }
 0x387   : > { %v14484_v41 = vpop.f32.mrb[233].mxu0  ;;  %10759 = vst.msk [vmem:[#allocation3 + $0x98] sm:$0xff] %vm600_vm0, %v10708_v56  ;;  %v15899_v56 = vld [vmem:[#allocation2 + $0xc8] sm:$0xff]  }
 0x388   : > { %v14485_v59 = vadd.f32 %v14484_v41, %v14483_v30  ;;  %v14486_v8 = vpop.f32.mrb[234].mxu0  ;;  %v20051_v30 = vld [vmem:[#allocation2 + $0x7c] sm:$0xf]  ;;  %v10833_v58 = vsel %vm1014_vm1, %v10830_v63, %v10832_v22  ;;  %v10835_v54 = vsel %vm1014_vm1, %v10832_v22, %v10834_v50  ;;  %v15900_v22 = vld [vmem:[#allocation2 + $0xd0] sm:$0xff]   ;;  %v11454_v13 = vrot.slane %v15899_v56, 1 }
 0x389   : > { %v14487_v14 = vpop.f32.mrb[235].mxu0  ;;  %10853 = vst.msk [vmem:[#allocation3 + $0xe8] sm:$0xff] %vm600_vm0, %v10833_v58  ;;  %10854 = vst.msk [vmem:[#allocation3 + $0x130] sm:$0xff] %vm600_vm0, %v10835_v54  ;;  %v13318_v7 = vcombine.low %v8725_v9, %v20051_v30  ;;  %v15901_v30 = vld [vmem:[#allocation2 + $0xd8] ss:$0 sps:$4 sm:$0x11]  }
 0x38a   : > { %v14488_v29 = vadd.f32 %v14487_v14, %v14486_v8  ;;  %v20022_v38 = vadd.f32 %v14485_v59, %v14373_v40  ;;  %v10554_v59 = vld [vmem:[#allocation2 + $0x94] sm:$0xf]  ;;  %v20069_v8 = vld [vmem:[#allocation2 + $0xa0] sm:$0xff]   ;;  %v11458_v16 = vrot.slane %v15901_v30, 1  ;;  %v15903_v58 = vld [vmem:[#allocation2 + $0xa8] sm:$0xff]   ;;  %v10729_v56 = vshll.u32 %v20145_v44, 16 }
 0x38b   : > { %10214 = vmatmul.mubr.bf16.gmra.mrb[80].mxu0 %v8996_v5  ;;  %v14377_v35 = vpop.f32.mrb[220].mxu1  ;;  %10053 = vmatmul.mubr.bf16.gmra.mrb[64].mxu1 %v8994_v46  ;;  %v10713_v63 = vshll.u32 %v20069_v8, 16  ;;  %v20114_v31 = vrot.slane %v13318_v7, 1  ;;  %v9022_v7 = vld [vmem:[#allocation3 + $0x460] sm:$0xff] }
 0x38c   : > { %10221 = vmatprep.mubr.bf16.mxu0 %v9006_v24  ;;  %v20038_v6 = vadd.f32 %v14488_v29, %v14376_v51  ;;  %v14378_v4 = vpop.f32.mrb[221].mxu1  ;;  %v8828_v51 = vrot.slane %v20041_v20, 1  ;;  %10060 = vmatprep.mubr.bf16.mxu1 %v9004_v47  ;;  %v11450_v24 = vrot.slane %v15890_v36, 1  ;;  %v20080_v29 = vld [vmem:[#allocation3 + $0x118] sm:$0xff] }
 0x38d   : > { %v14379_v33 = vadd.f32 %v14378_v4, %v14377_v35  ;;  %v14380_v40 = vpop.f32.mrb[222].mxu1  ;;  %v13399_v35 = vcombine.low %v10553_v2, %v10554_v59  ;;  %v10715_v46 = vrot.slane %v10713_v63, 1  ;;  %v15896_v4 = vld [vmem:[#allocation2 + $0x58] sm:$0xff]   ;;  %v20118_v20 = vld [vmem:[#allocation2 + $0xc0] ss:$0 sps:$4 sm:$0x11]  }
 0x38e   : > { %v14489_v21 = vpop.f32.mrb[236].mxu0  ;;  %v14381_v39 = vpop.f32.mrb[223].mxu1  ;;  %v8829_v42 = vsel %vm1014_vm1, %v8826_v23, %v8828_v51  ;;  %v11451_v17 = vsel %vm1014_vm1, %v11448_v53, %v11450_v24  ;;  %v10838_v53 = vrot.slane %v20055_v45, 1  ;;  %v11453_v47 = vsel %vm1014_vm1, %v11450_v24, %v11452_v37  ;;  %v20104_v23 = vld [vmem:[#allocation3 + $0x160] sm:$0xff] }
 0x38f   : > { %v14490_v11 = vpop.f32.mrb[237].mxu0  ;;  %v14382_v5 = vadd.f32 %v14381_v39, %v14380_v40  ;;  %8871 = vst.msk [vmem:[#allocation3 + $0x1a8] sm:$0xff] %vm600_vm0, %v8829_v42  ;;  %11471 = vst.msk [vmem:[#allocation3 + $0x118] sm:$0xff] %vm600_vm0, %v11451_v17  ;;  %v8830_v40 = vrot.slane %v15895_v61, 1  ;;  %v10716_v25 = vsel %vm733_vm2, %v10711_v10, %v10715_v46  ;;  %v8832_v12 = vrot.slane %v15896_v4, 1  ;;  %v9024_v39 = vld [vmem:[#allocation3 + $0x470] sm:$0xff] }
 0x390   : > { %v14491_v41 = vadd.f32 %v14490_v11, %v14489_v21  ;;  %v14492_v60 = vpop.f32.mrb[238].mxu0  ;;  %10615 = vst.msk [vmem:[#allocation3 + $0x90] sm:$0xff] %vm600_vm0, %v13399_v35  ;;  %v20102_v21 = vld [vmem:[#allocation2 + $0x8c] sm:$0xf]  ;;  %10760 = vst.msk [vmem:[#allocation3 + $0xe0] sm:$0xff] %vm600_vm0, %v10716_v25  ;;  %v10717_v42 = vshrl.u32 %v20069_v8, 16  ;;  %v11455_v35 = vsel %vm1014_vm1, %v11452_v37, %v11454_v13 }
 0x391   : > { %v14493_v48 = vpop.f32.mrb[239].mxu0  ;;  %v8831_v2 = vsel %vm1014_vm1, %v8828_v51, %v8830_v40  ;;  %11472 = vst.msk [vmem:[#allocation3 + $0x160] sm:$0xff] %vm600_vm0, %v11453_v47  ;;  %v8833_v36 = vsel %vm1014_vm1, %v8830_v40, %v8832_v12  ;;  %v11456_v59 = vrot.slane %v15900_v22, 1  ;;  %v10558_v17 = vld [vmem:[#allocation2 + $0xa4] sm:$0xf]  ;;  %v10721_v10 = vshll.u32 %v15903_v58, 16 }
 0x392   : > { %v14494_v14 = vadd.f32 %v14493_v48, %v14492_v60  ;;  %v20078_v52 = vadd.f32 %v14491_v41, %v14379_v33  ;;  %v20099_v33 = vld [vmem:[#allocation2 + $0x68] sm:$0xff]   ;;  %8872 = vst.msk [vmem:[#allocation3 + $0x1f0] sm:$0xff] %vm600_vm0, %v8831_v2  ;;  %8873 = vst.msk [vmem:[#allocation3 + $0x238] sm:$0xff] %vm600_vm0, %v8833_v36  ;;  %v10557_v48 = vld [vmem:[#allocation2 + $0xa0] sm:$0xf]  ;;  %v10840_v36 = vrot.slane %v20118_v20, 1 }
 0x393   : > { %10222 = vmatmul.mubr.bf16.gmra.mrb[84].mxu0 %v9005_v26  ;;  %v15897_v26 = vld [vmem:[#allocation2 + $0x60] sm:$0xff]   ;;  %10061 = vmatmul.mubr.bf16.gmra.mrb[68].mxu1 %v9003_v3  ;;  %v20116_v41 = vld [vmem:[#allocation2 + $0x88] sm:$0xf]  ;;  %v9023_v3 = vld [vmem:[#allocation3 + $0x468] sm:$0xff]  ;;  %v11457_v40 = vsel %vm1014_vm1, %v11454_v13, %v11456_v59  ;;  %v13401_v25 = vcombine.low %v10557_v48, %v10558_v17  ;;  %v10723_v2 = vrot.slane %v10721_v10, 1  ;;  %v10731_v13 = vrot.slane %v10729_v56, 1 }
 0x394   : > { %10229 = vmatprep.mubr.bf16.mxu0 %v9015_v19  ;;  %v20089_v55 = vadd.f32 %v14494_v14, %v14382_v5  ;;  %10068 = vmatprep.mubr.bf16.mxu1 %v9013_v34  ;;  %v8834_v11 = vrot.slane %v15897_v26, 1  ;;  %v8836_v5 = vrot.slane %v20099_v33, 1  ;;  %v10836_v19 = vrot.slane %v13420_v62, 1  ;;  %v15906_v63 = vld [vmem:[%s20896_s5 + $0x140] sm:$0xff]   ;;  %v9012_v4 = vld [vmem:[#allocation3 + $0x410] sm:$0xff]  ;;  %v15912_v10 = vld [vmem:[%s20896_s5 + $0x148] sm:$0xff]  }
 0x395   : > { %v13320_v37 = vcombine.low %v20116_v41, %v20102_v21  ;;  %v11459_v34 = vsel %vm1014_vm1, %v11456_v59, %v11458_v16  ;;  %14943 = vmatprep.subr.bf16.mxu0 %v15906_v63  ;;  %v15910_v21 = vld [vmem:[#allocation2 + $0x70] sm:$0xff]   ;;  %10617 = vst.msk [vmem:[#allocation3 + $0x120] sm:$0xff] %vm600_vm0, %v13401_v25  ;;  %v15915_v33 = vld [vmem:[#allocation2 + $0xb8] sm:$0xff]  }
 0x396   : > { %v8835_v51 = vsel %vm1014_vm1, %v8832_v12, %v8834_v11  ;;  %v8837_v60 = vsel %vm1014_vm1, %v8834_v11, %v8836_v5  ;;  %v10837_v54 = vsel %vm1014_vm1, %v10834_v50, %v10836_v19  ;;  %v10839_v9 = vsel %vm1014_vm1, %v10836_v19, %v10838_v53  ;;  %v20134_v8 = vld [vmem:[#allocation3 + $0x1a8] sm:$0xff]  ;;  %v10562_v25 = vld [vmem:[#allocation2 + $0xb4] sm:$0xf] }
 0x397   : > { %8874 = vst.msk [vmem:[#allocation3 + $0x280] sm:$0xff] %vm600_vm0, %v8835_v51  ;;  %8875 = vst.msk [vmem:[#allocation3 + $0x2c8] sm:$0xff] %vm600_vm0, %v8837_v60  ;;  %v10725_v11 = vshrl.u32 %v15903_v58, 16  ;;  %v20172_v58 = vrot.slane %v13320_v37, 1  ;;  %v10737_v37 = vshll.u32 %v15915_v33, 16 }
 0x398   : > { %10855 = vst.msk [vmem:[#allocation3 + $0x178] sm:$0xff] %vm600_vm0, %v10837_v54  ;;  %10856 = vst.msk [vmem:[#allocation3 + $0x1c0] sm:$0xff] %vm600_vm0, %v10839_v9  ;;  %v9021_v54 = vld [vmem:[#allocation3 + $0x458] sm:$0xff] }
 0x399   : > { %11473 = vst.msk [vmem:[#allocation3 + $0x1a8] sm:$0xff] %vm600_vm0, %v11455_v35  ;;  %v20155_v19 = vld [vmem:[#allocation3 + $0x1f0] sm:$0xff]  ;;  %v20160_v51 = vld [vmem:[#allocation3 + $0x238] sm:$0xff]  ;;  %v10727_v60 = vor.u32 %v10725_v11, %v10723_v2  ;;  %v10741_v11 = vshrl.u32 %v15915_v33, 16 }
 0x39a   : > { %11474 = vst.msk [vmem:[#allocation3 + $0x1f0] sm:$0xff] %vm600_vm0, %v11457_v40  ;;  %11475 = vst.msk [vmem:[#allocation3 + $0x238] sm:$0xff] %vm600_vm0, %v11459_v34  ;;  %v10739_v34 = vrot.slane %v10737_v37, 1 }
 0x39b   : > { %10230 = vmatmul.mubr.bf16.gmra.mrb[88].mxu0 %v9014_v28  ;;  %v10719_v28 = vor.u32 %v10717_v42, %v10715_v46  ;;  %10069 = vmatmul.mubr.bf16.gmra.mrb[72].mxu1 %v9012_v4  ;;  %v8838_v42 = vrot.slane %v15910_v21, 1  ;;  %v10561_v4 = vld [vmem:[#allocation2 + $0xb0] sm:$0xf] }
 0x39c   : > { %10237 = vmatprep.mubr.bf16.mxu0 %v9024_v39  ;;  %v11477_v39 = vld [vmem:[#allocation3 + $0x8] sm:$0xff]  ;;  %10076 = vmatprep.mubr.bf16.mxu1 %v9022_v7 }
 0x39d   : > { %v14495_v24 = vpop.f32.mrb[240].mxu0  ;;  %v10724_v41 = vsel %vm733_vm2, %v10719_v28, %v10723_v2  ;;  %v8839_v59 = vsel %vm1014_vm1, %v8836_v5, %v8838_v42  ;;  %v8841_v16 = vsel %vm1014_vm1, %v8838_v42, %v20114_v31  ;;  %v10841_v5 = vsel %vm1014_vm1, %v10838_v53, %v10840_v36  ;;  %v11476_v53 = vld [vmem:[#allocation3] sm:$0xff]  ;;  %v15923_v2 = vld [vmem:[#allocation2 + $0xc0] ss:$0 sps:$4 sm:$0x11]   ;;  %v15914_v21 = vld [vmem:[%s20896_s5 + $0x150] sm:$0xff]  }
 0x39e   : > { %v14496_v32 = vpop.f32.mrb[241].mxu0  ;;  %v14383_v14 = vpop.f32.mrb[224].mxu1  ;;  %10761 = vst.msk [vmem:[#allocation3 + $0x128] sm:$0xff] %vm600_vm0, %v10724_v41  ;;  %8876 = vst.msk [vmem:[#allocation3 + $0x310] sm:$0xff] %vm600_vm0, %v8839_v59  ;;  %v10743_v41 = vor.u32 %v10741_v11, %v10739_v34 }
 0x39f   : > { %v14497_v57 = vadd.f32 %v14496_v32, %v14495_v24  ;;  %v14498_v50 = vpop.f32.mrb[242].mxu0  ;;  %v14384_v61 = vpop.f32.mrb[225].mxu1  ;;  %v10732_v24 = vsel %vm733_vm2, %v10727_v60, %v10731_v13  ;;  %8877 = vst.msk [vmem:[#allocation3 + $0x358] sm:$0xff] %vm600_vm0, %v8841_v16  ;;  %10857 = vst.msk [vmem:[#allocation3 + $0x208] sm:$0xff] %vm600_vm0, %v10841_v5  ;;  %v10745_v60 = vshll.u32 %v15923_v2, 16 }
 0x3a0   : > { %v14499_v62 = vpop.f32.mrb[243].mxu0  ;;  %v14385_v47 = vadd.f32 %v14384_v61, %v14383_v14  ;;  %v14386_v26 = vpop.f32.mrb[226].mxu1  ;;  %10762 = vst.msk [vmem:[#allocation3 + $0x170] sm:$0xff] %vm600_vm0, %v10732_v24  ;;  %v15908_v14 = vld [vmem:[%s20896_s5 + $0x100] sm:$0xff]   ;;  %v15926_v24 = vld [vmem:[#allocation2 + $0x90] sm:$0xff]  }
 0x3a1   : > { %v14500_v12 = vadd.f32 %v14499_v62, %v14498_v50  ;;  %v14387_v46 = vpop.f32.mrb[227].mxu1  ;;  %v15918_v50 = vld [vmem:[#allocation2 + $0x80] sm:$0xff]  }
 0x3a2   : > { %v20153_v22 = vadd.f32 %v14497_v57, %v14385_v47  ;;  %v14388_v30 = vadd.f32 %v14387_v46, %v14386_v26  ;;  %v10733_v57 = vshrl.u32 %v20145_v44, 16  ;;  %v8842_v62 = vrot.slane %v15918_v50, 1  ;;  %v11486_v26 = vld [vmem:[#allocation3 + $0x50] sm:$0xff] }
 0x3a3   : > { %10238 = vmatmul.mubr.bf16.gmra.mrb[92].mxu0 %v9023_v3  ;;  %10077 = vmatmul.mubr.bf16.gmra.mrb[76].mxu1 %v9021_v54 }
 0x3a4   : > { %12156 = vmatprep.mubr.bf16.mxu0 %v11477_v39  ;;  %v20162_v20 = vadd.f32 %v14500_v12, %v14388_v30  ;;  %15183 = vmatprep.mubr.bf16.mxu1 %v20016_v15  ;;  %v10735_v40 = vor.u32 %v10733_v57, %v10731_v13  ;;  %v15913_v12 = vld [vmem:[%s20896_s5 + $0x108] sm:$0xff]   ;;  %v8843_v46 = vsel %vm1014_vm1, %v20114_v31, %v8842_v62  ;;  %v15885_v30 = vld [vmem:[%s20896_s5 + $0x80] sm:$0xff]  }
 0x3a5   : > { %v14501_v48 = vpop.f32.mrb[244].mxu0  ;;  %v8845_v15 = vsel %vm1014_vm1, %v8842_v62, %v20172_v58  ;;  %v13403_v39 = vcombine.low %v10561_v4, %v10562_v25  ;;  %8878 = vst.msk [vmem:[#allocation3 + $0x3a0] sm:$0xff] %vm600_vm0, %v8843_v46  ;;  %v11485_v57 = vld [vmem:[#allocation3 + $0x48] sm:$0xff]  ;;  %v15921_v62 = vld [vmem:[%s20896_s5 + $0x118] sm:$0xff]  }
 0x3a6   : > { %v14502_v9 = vpop.f32.mrb[245].mxu0  ;;  %v14389_v32 = vpop.f32.mrb[228].mxu1  ;;  %v10740_v36 = vsel %vm733_vm2, %v10735_v40, %v10739_v34  ;;  %8879 = vst.msk [vmem:[#allocation3 + $0x3e8] sm:$0xff] %vm600_vm0, %v8845_v15  ;;  %v15902_v34 = vld [vmem:[%s20896_s5 + $0x90] sm:$0xff]   ;;  %v15904_v25 = vld [vmem:[%s20896_s5 + $0xd8] sm:$0xff]  }
 0x3a7   : > { %v14503_v35 = vadd.f32 %v14502_v9, %v14501_v48  ;;  %v14504_v17 = vpop.f32.mrb[246].mxu0  ;;  %v14390_v63 = vpop.f32.mrb[229].mxu1  ;;  %10763 = vst.msk [vmem:[#allocation3 + $0x1b8] sm:$0xff] %vm600_vm0, %v10740_v36  ;;  %10619 = vst.msk [vmem:[#allocation3 + $0x1b0] sm:$0xff] %vm600_vm0, %v13403_v39  ;;  %v15887_v48 = vld [vmem:[%s20896_s5 + $0xc8] sm:$0xff]   ;;  %v10747_v9 = vrot.slane %v10745_v60, 1 }
 0x3a8   : > { %v14505_v61 = vpop.f32.mrb[247].mxu0  ;;  %v14391_v3 = vadd.f32 %v14390_v63, %v14389_v32  ;;  %v14392_v28 = vpop.f32.mrb[230].mxu1  ;;  %v15927_v32 = vld [vmem:[#allocation2 + $0x98] ss:$0 sps:$4 sm:$0x11]   ;;  %v15924_v36 = vld [vmem:[%s20896_s5 + $0x120] sm:$0xff]  }
 0x3a9   : > { %v14506_v45 = vadd.f32 %v14505_v61, %v14504_v17  ;;  %v14393_v7 = vpop.f32.mrb[231].mxu1  ;;  %v8846_v17 = vrot.slane %v15926_v24, 1  ;;  %v15920_v61 = vld [vmem:[%s20896_s5 + $0x158] sm:$0xff]   ;;  %v15929_v60 = vld [vmem:[%s20896_s5 + $0x168] sm:$0xff]   ;;  %v15909_v24 = vld [vmem:[%s20896_s5 + $0xe0] sm:$0xff]  }
 0x3aa   : > { %v20189_v44 = vadd.f32 %v14503_v35, %v14391_v3  ;;  %v14394_v47 = vadd.f32 %v14393_v7, %v14392_v28  ;;  %v15916_v35 = vld [vmem:[%s20896_s5 + $0x110] sm:$0xff]   ;;  %v10748_v3 = vsel %vm733_vm2, %v10743_v41, %v10747_v9  ;;  %v8848_v28 = vrot.slane %v15927_v32, 1 }
 0x3ab   : > { %12157 = vmatmul.mubr.bf16.vlgmr.msra.gmra.mrb[96].mxu0 %v11476_v53  ;;  %15184 = vmatmul.mubr.bf16.vlgmr.msra.gmra.mrb[80].mxu1 %v20025_v0  ;;  %v15892_v0 = vld [vmem:[%s20896_s5 + $0x88] sm:$0xff]   ;;  %10764 = vst.msk [vmem:[#allocation3 + $0x200] sm:$0xff] %vm600_vm0, %v10748_v3  ;;  %v8847_v4 = vsel %vm1014_vm1, %v20172_v58, %v8846_v17  ;;  %v15931_v9 = vld [vmem:[%s20896_s5 + $0x170] sm:$0xff]   ;;  %v11503_v3 = vld [vmem:[#allocation3 + $0xd8] sm:$0xff] }
 0x3ac   : > { %12164 = vmatprep.mubr.bf16.mxu0 %v11486_v26  ;;  %14944 = vmatpush3.bf16.msra.mxu0 %v15908_v14  ;;  %v20198_v56 = vadd.f32 %v14506_v45, %v14394_v47  ;;  %v11495_v45 = vld [vmem:[#allocation3 + $0x98] sm:$0xff]  ;;  %v8849_v53 = vsel %vm1014_vm1, %v8846_v17, %v8848_v28  ;;  %8880 = vst.msk [vmem:[#allocation3 + $0x430] sm:$0xff] %vm600_vm0, %v8847_v4  ;;  %v15919_v28 = vld [vmem:[%s20896_s5 + $0xa8] sm:$0xff]  }
 0x3ad   : > { %14945 = vmatprep.subr.bf16.mxu0 %v15912_v10  ;;  %15187 = vmatprep.mubr.bf16.mxu1 %v20048_v49  ;;  %v15894_v49 = vld [vmem:[%s20896_s5 + $0xd0] sm:$0xff]   ;;  %8881 = vst.msk [vmem:[#allocation3 + $0x478] sm:$0xff] %vm600_vm0, %v8849_v53  ;;  %v15922_v47 = vld [vmem:[%s20896_s5 + $0x160] sm:$0xff]  }
 0x3ae   : > { %v14507_v31 = vpop.f32.mrb[248].mxu0  ;;  %v14395_v42 = vpop.f32.mrb[232].mxu1  ;;  %14880 = vmatpush3.bf16.msra.mxu1 %v15885_v30 }
 0x3af   : > { %v14508_v13 = vpop.f32.mrb[249].mxu0  ;;  %v14396_v54 = vpop.f32.mrb[233].mxu1  ;;  %14881 = vmatprep.subr.bf16.mxu1 %v15887_v48  ;;  %v15905_v48 = vld [vmem:[%s20896_s5 + $0x98] sm:$0xff]  }
 0x3b0   : > { %v14509_v59 = vadd.f32 %v14508_v13, %v14507_v31  ;;  %v14510_v16 = vpop.f32.mrb[250].mxu0  ;;  %14946 = vmatpush3.bf16.msra.mxu0 %v15913_v12  ;;  %v14397_v33 = vadd.f32 %v14396_v54, %v14395_v42  ;;  %v14398_v5 = vpop.f32.mrb[234].mxu1  ;;  %v15935_v31 = vld [vmem:[#allocation2 + $0x8c] sm:$0xff]  }
 0x3b1   : > { %v14511_v14 = vpop.f32.mrb[251].mxu0  ;;  %14947 = vmatprep.subr.bf16.mxu0 %v15914_v21  ;;  %v14399_v50 = vpop.f32.mrb[235].mxu1  ;;  %v11494_v21 = vld [vmem:[#allocation3 + $0x90] sm:$0xff]  ;;  %10922 = vst.msk [vmem:[#allocation3 + $0x18] sm:$0xff] %vm600_vm0, %v15935_v31 }
 0x3b2   : > { %v14512_v63 = vadd.f32 %v14511_v14, %v14510_v16  ;;  %v20223_v10 = vadd.f32 %v14509_v59, %v14397_v33  ;;  %v14400_v37 = vadd.f32 %v14399_v50, %v14398_v5  ;;  %14882 = vmatpush3.bf16.msra.mxu1 %v15892_v0  ;;  %v15930_v16 = vld [vmem:[%s20896_s5 + $0x128] sm:$0xff]   ;;  %v15939_v5 = vld [vmem:[#allocation2 + $0x94] sm:$0xff]  }
 0x3b3   : > { %12165 = vmatmul.mubr.bf16.gmra.mrb[100].mxu0 %v11485_v57  ;;  %14883 = vmatprep.subr.bf16.mxu1 %v15894_v49  ;;  %v15917_v33 = vld [vmem:[%s20896_s5 + $0xe8] sm:$0xff]   ;;  %10923 = vst.msk [vmem:[#allocation3 + $0x60] sm:$0xff] %vm600_vm0, %v15939_v5  ;;  %v15936_v49 = vld [vmem:[%s20896_s5 + $0x178] sm:$0xff]  }
 0x3b4   : > { %v20236_v7 = vadd.f32 %v14512_v63, %v14400_v37  ;;  %12172 = vmatprep.mubr.bf16.mxu0 %v11495_v45  ;;  %14948 = vmatpush3.bf16.msra.mxu0 %v15916_v35  ;;  %v15932_v37 = vld [vmem:[%s20896_s5 + $0x130] sm:$0xff]  }
 0x3b5   : > { %14949 = vmatprep.subr.bf16.mxu0 %v15920_v61  ;;  %15188 = vmatmul.mubr.bf16.gmra.mrb[84].mxu1 %v20080_v29  ;;  %v11504_v29 = vld [vmem:[#allocation3 + $0xe0] sm:$0xff]  ;;  %v11513_v45 = vld [vmem:[#allocation3 + $0x128] sm:$0xff] }
 0x3b6   : > { %v14513_v58 = vpop.f32.mrb[252].mxu0  ;;  %v14401_v40 = vpop.f32.mrb[236].mxu1  ;;  %15191 = vmatprep.mubr.bf16.mxu1 %v20104_v23  ;;  %14884 = vmatpush3.bf16.msra.mxu1 %v15902_v34  ;;  %v15911_v23 = vld [vmem:[%s20896_s5 + $0xa0] sm:$0xff]  }
 0x3b7   : > { %v14514_v26 = vpop.f32.mrb[253].mxu0  ;;  %v14402_v15 = vpop.f32.mrb[237].mxu1  ;;  %14885 = vmatprep.subr.bf16.mxu1 %v15904_v25  ;;  %v15928_v25 = vld [vmem:[%s20896_s5 + $0xb0] sm:$0xff]  }
 0x3b8   : > { %v14515_v12 = vadd.f32 %v14514_v26, %v14513_v58  ;;  %v14516_v46 = vpop.f32.mrb[254].mxu0  ;;  %v14403_v2 = vadd.f32 %v14402_v15, %v14401_v40  ;;  %v14404_v11 = vpop.f32.mrb[238].mxu1  ;;  %14950 = vmatpush3.bf16.msra.mxu0 %v15921_v62  ;;  %v15925_v58 = vld [vmem:[%s20896_s5 + $0xf0] sm:$0xff]   ;;  %v15937_v26 = vld [vmem:[%s20896_s5 + $0x138] sm:$0xff]   ;;  %v8962_v15 = vld [vmem:[#allocation3 + $0x280] sm:$0xff] }
 0x3b9   : > { %v14517_v39 = vpop.f32.mrb[255].mxu0  ;;  %v14405_v41 = vpop.f32.mrb[239].mxu1  ;;  %14951 = vmatprep.subr.bf16.mxu0 %v15922_v47 }
 0x3ba   : > { %v14518_v30 = vadd.f32 %v14517_v39, %v14516_v46  ;;  %v20259_v13 = vadd.f32 %v14515_v12, %v14403_v2  ;;  %v14406_v42 = vadd.f32 %v14405_v41, %v14404_v11  ;;  %14886 = vmatpush3.bf16.msra.mxu1 %v15905_v48  ;;  %v15945_v12 = vld [vmem:[#allocation2 + $0xa4] sm:$0xff]   ;;  %v15933_v11 = vld [vmem:[%s20896_s5 + $0xf8] sm:$0xff]  }
 0x3bb   : > { %12173 = vmatmul.mubr.bf16.gmra.mrb[104].mxu0 %v11494_v21  ;;  %14887 = vmatprep.subr.bf16.mxu1 %v15909_v24  ;;  %10925 = vst.msk [vmem:[#allocation3 + $0xf0] sm:$0xff] %vm600_vm0, %v15945_v12  ;;  %v11512_v41 = vld [vmem:[#allocation3 + $0x120] sm:$0xff]  ;;  %v15934_v48 = vld [vmem:[%s20896_s5 + $0xb8] sm:$0xff]  }
 0x3bc   : > { %v20268_v59 = vadd.f32 %v14518_v30, %v14406_v42  ;;  %12180 = vmatprep.mubr.bf16.mxu0 %v11504_v29  ;;  %14952 = vmatpush3.bf16.msra.mxu0 %v15924_v36  ;;  %v11522_v42 = vld [vmem:[#allocation3 + $0x170] sm:$0xff]  ;;  %v15957_v12 = vld [vmem:[#allocation2 + $0xbc] sm:$0xff]  }
 0x3bd   : > { %14953 = vmatprep.subr.bf16.mxu0 %v15929_v60  ;;  %15192 = vmatmul.mubr.bf16.gmra.mrb[88].mxu1 %v20134_v8  ;;  %v15942_v8 = vld [vmem:[#allocation2 + $0x9c] sm:$0xff]   ;;  %10928 = vst.msk [vmem:[#allocation3 + $0x1c8] sm:$0xff] %vm600_vm0, %v15957_v12 }
 0x3be   : > { %v14519_v54 = vpop.f32.mrb[0].mxu0  ;;  %v14407_v14 = vpop.f32.mrb[240].mxu1  ;;  %15195 = vmatprep.mubr.bf16.mxu1 %v20155_v19  ;;  %14888 = vmatpush3.bf16.msra.mxu1 %v15911_v23  ;;  %10924 = vst.msk [vmem:[#allocation3 + $0xa8] sm:$0xff] %vm600_vm0, %v15942_v8  ;;  %v15938_v23 = vld [vmem:[%s20896_s5 + $0x1c0] sm:$0xff]  }
 0x3bf   : > { %v14520_v32 = vpop.f32.mrb[1].mxu0  ;;  %v14408_v63 = vpop.f32.mrb[241].mxu1  ;;  %14889 = vmatprep.subr.bf16.mxu1 %v15917_v33  ;;  %v8971_v33 = vld [vmem:[#allocation3 + $0x2c8] sm:$0xff]  ;;  %v11479_v12 = vld [vmem:[#allocation3 + $0x18] sm:$0xff] }
 0x3c0   : > { %v14521_v35 = vadd.f32 %v14520_v32, %v14519_v54  ;;  %v14522_v17 = vpop.f32.mrb[2].mxu0  ;;  %v14409_v50 = vadd.f32 %v14408_v63, %v14407_v14  ;;  %v14410_v61 = vpop.f32.mrb[242].mxu1  ;;  %14954 = vmatpush3.bf16.msra.mxu0 %v15930_v16  ;;  %v20327_v14 = vld [vmem:[%s20896_s5 + $0x200] sm:$0xff]  }
 0x3c1   : > { %v14523_v57 = vpop.f32.mrb[3].mxu0  ;;  %v14411_v4 = vpop.f32.mrb[243].mxu1  ;;  %14955 = vmatprep.subr.bf16.mxu0 %v15931_v9 }
 0x3c2   : > { %v14524_v0 = vadd.f32 %v14523_v57, %v14522_v17  ;;  %v20294_v53 = vadd.f32 %v14521_v35, %v14409_v50  ;;  %v14412_v62 = vadd.f32 %v14411_v4, %v14410_v61  ;;  %14890 = vmatpush3.bf16.msra.mxu1 %v15919_v28  ;;  %v11521_v61 = vld [vmem:[#allocation3 + $0x168] sm:$0xff]  ;;  %v8980_v28 = vld [vmem:[#allocation3 + $0x310] sm:$0xff] }
 0x3c3   : > { %12181 = vmatmul.mubr.bf16.gmra.mrb[108].mxu0 %v11503_v3  ;;  %14891 = vmatprep.subr.bf16.mxu1 %v15925_v58  ;;  %v15952_v3 = vld [vmem:[#allocation2 + $0xb4] sm:$0xff]  }
 0x3c4   : > { %v20299_v47 = vadd.f32 %v14524_v0, %v14412_v62  ;;  %12188 = vmatprep.mubr.bf16.mxu0 %v11513_v45  ;;  %14956 = vmatpush3.bf16.msra.mxu0 %v15932_v37  ;;  %10927 = vst.msk [vmem:[#allocation3 + $0x180] sm:$0xff] %vm600_vm0, %v15952_v3 }
 0x3c5   : > { %14957 = vmatprep.subr.bf16.mxu0 %v15936_v49  ;;  %15196 = vmatmul.mubr.bf16.gmra.mrb[92].mxu1 %v20160_v51  ;;  %v15948_v51 = vld [vmem:[#allocation2 + $0xac] sm:$0xff]   ;;  %v11531_v49 = vld [vmem:[#allocation3 + $0x1b8] sm:$0xff] }
 0x3c6   : > { %v14525_v19 = vpop.f32.mrb[4].mxu0  ;;  %v14413_v34 = vpop.f32.mrb[244].mxu1  ;;  %15199 = vmatprep.mubr.bf16.mxu1 %v8962_v15  ;;  %14892 = vmatpush3.bf16.msra.mxu1 %v15928_v25  ;;  %10926 = vst.msk [vmem:[#allocation3 + $0x138] sm:$0xff] %vm600_vm0, %v15948_v51 }
 0x3c7   : > { %v14526_v40 = vpop.f32.mrb[5].mxu0  ;;  %v14414_v2 = vpop.f32.mrb[245].mxu1  ;;  %14893 = vmatprep.subr.bf16.mxu1 %v15933_v11 }
 0x3c8   : > { %v14527_v46 = vadd.f32 %v14526_v40, %v14525_v19  ;;  %v14528_v39 = vpop.f32.mrb[6].mxu0  ;;  %v14415_v36 = vadd.f32 %v14414_v2, %v14413_v34  ;;  %v14416_v31 = vpop.f32.mrb[246].mxu1  ;;  %14958 = vmatpush3.bf16.msra.mxu0 %v15937_v26  ;;  %v8989_v19 = vld [vmem:[#allocation3 + $0x358] sm:$0xff]  ;;  %v8998_v2 = vld [vmem:[#allocation3 + $0x3a0] sm:$0xff] }
 0x3c9   : > { %v14529_v21 = vpop.f32.mrb[7].mxu0  ;;  %v14417_v60 = vpop.f32.mrb[247].mxu1  ;;  %15215 = vmatprep.subr.bf16.mxu0 %v20327_v14 }
 0x3ca   : > { %v14530_v30 = vadd.f32 %v14529_v21, %v14528_v39  ;;  %v20316_v29 = vadd.f32 %v14527_v46, %v14415_v36  ;;  %v14418_v24 = vadd.f32 %v14417_v60, %v14416_v31  ;;  %14894 = vmatpush3.bf16.msra.mxu1 %v15934_v48  ;;  %v11530_v31 = vld [vmem:[#allocation3 + $0x1b0] sm:$0xff] }
 0x3cb   : > { %12189 = vmatmul.mubr.bf16.gmra.mrb[112].mxu0 %v11512_v41  ;;  %15007 = vmatprep.subr.bf16.mxu1 %v15938_v23  ;;  %v11540_v41 = vld [vmem:[#allocation3 + $0x200] sm:$0xff] }
 0x3cc   : > { %v20321_v16 = vadd.f32 %v14530_v30, %v14418_v24  ;;  %12196 = vmatprep.mubr.bf16.mxu0 %v11522_v42 }
 0x3cd   : > { %15200 = vmatmul.mubr.bf16.gmra.mrb[96].mxu1 %v8971_v33 }
 0x3ce   : > { %v14531_v54 = vpop.f32.mrb[8].mxu0  ;;  %v14419_v32 = vpop.f32.mrb[248].mxu1  ;;  %15203 = vmatprep.mubr.bf16.mxu1 %v8980_v28  ;;  %v11481_v28 = vld [vmem:[#allocation3 + $0x28] sm:$0xff] }
 0x3cf   : > { %v14532_v9 = vpop.f32.mrb[9].mxu0  ;;  %v14420_v17 = vpop.f32.mrb[249].mxu1 }
 0x3d0   : > { %v14533_v5 = vadd.f32 %v14532_v9, %v14531_v54  ;;  %v14534_v35 = vpop.f32.mrb[10].mxu0  ;;  %v14421_v57 = vadd.f32 %v14420_v17, %v14419_v32  ;;  %v14422_v50 = vpop.f32.mrb[250].mxu1  ;;  %v15962_v9 = vld [vmem:[#allocation2 + $0xc4] sm:$0xff]   ;;  %v9007_v32 = vld [vmem:[#allocation3 + $0x3e8] sm:$0xff]  ;;  %v9016_v17 = vld [vmem:[#allocation3 + $0x430] sm:$0xff] }
 0x3d1   : > { %v14535_v63 = vpop.f32.mrb[11].mxu0  ;;  %v14423_v0 = vpop.f32.mrb[251].mxu1  ;;  %10929 = vst.msk [vmem:[#allocation3 + $0x210] sm:$0xff] %vm600_vm0, %v15962_v9 }
 0x3d2   : > { %v14536_v37 = vadd.f32 %v14535_v63, %v14534_v35  ;;  %v20330_v4 = vadd.f32 %v14533_v5, %v14421_v57  ;;  %v14424_v45 = vadd.f32 %v14423_v0, %v14422_v50 }
 0x3d3   : > { %12197 = vmatmul.mubr.bf16.gmra.mrb[116].mxu0 %v11521_v61  ;;  %v11539_v61 = vld [vmem:[#allocation3 + $0x1f8] sm:$0xff] }
 0x3d4   : > { %v20333_v62 = vadd.f32 %v14536_v37, %v14424_v45  ;;  %12204 = vmatprep.mubr.bf16.mxu0 %v11531_v49 }
 0x3d5   : > { %15204 = vmatmul.mubr.bf16.gmra.mrb[100].mxu1 %v8989_v19  ;;  %v9025_v19 = vld [vmem:[#allocation3 + $0x478] sm:$0xff] }
 0x3d6   : > { %v14537_v58 = vpop.f32.mrb[12].mxu0  ;;  %v14425_v26 = vpop.f32.mrb[252].mxu1  ;;  %15207 = vmatprep.mubr.bf16.mxu1 %v8998_v2 }
 0x3d7   : > { %v14538_v8 = vpop.f32.mrb[13].mxu0  ;;  %v14426_v25 = vpop.f32.mrb[253].mxu1 }
 0x3d8   : > { %v14539_v40 = vadd.f32 %v14538_v8, %v14537_v58  ;;  %v14540_v34 = vpop.f32.mrb[14].mxu0  ;;  %v14427_v15 = vadd.f32 %v14426_v25, %v14425_v26  ;;  %v14428_v39 = vpop.f32.mrb[254].mxu1 }
 0x3d9   : > { %v14541_v46 = vpop.f32.mrb[15].mxu0  ;;  %v14429_v21 = vpop.f32.mrb[255].mxu1 }
 0x3da   : > { %v14542_v11 = vadd.f32 %v14541_v46, %v14540_v34  ;;  %v20336_v36 = vadd.f32 %v14539_v40, %v14427_v15  ;;  %v14430_v30 = vadd.f32 %v14429_v21, %v14428_v39  ;;  %v15954_v39 = vld [vmem:[%s20896_s5 + $0x208] sm:$0xff]  }
 0x3db   : > { %12205 = vmatmul.mubr.bf16.gmra.mrb[120].mxu0 %v11530_v31  ;;  %v11490_v31 = vld [vmem:[#allocation3 + $0x70] sm:$0xff] }
 0x3dc   : > { %v20338_v60 = vadd.f32 %v14542_v11, %v14430_v30  ;;  %12212 = vmatprep.mubr.bf16.mxu0 %v11540_v41  ;;  %v11480_v11 = vld [vmem:[#allocation3 + $0x20] sm:$0xff] }
 0x3dd   : > { %15208 = vmatmul.mubr.bf16.gmra.mrb[104].mxu1 %v9007_v32  ;;  %v15941_v32 = vld [vmem:[%s20896_s5 + $0x1c8] sm:$0xff]  }
 0x3de   : > { %v14543_v42 = vpop.f32.mrb[16].mxu0  ;;  %v14431_v24 = vpop.f32.mrb[0].mxu1  ;;  %15211 = vmatprep.mubr.bf16.mxu1 %v9016_v17  ;;  %v11488_v17 = vld [vmem:[#allocation3 + $0x60] sm:$0xff] }
 0x3df   : > { %v14544_v48 = vpop.f32.mrb[17].mxu0  ;;  %v14432_v54 = vpop.f32.mrb[1].mxu1 }
 0x3e0   : > { %v14545_v23 = vadd.f32 %v14544_v48, %v14543_v42  ;;  %v14546_v51 = vpop.f32.mrb[18].mxu0  ;;  %v14433_v5 = vadd.f32 %v14432_v54, %v14431_v24  ;;  %v14434_v35 = vpop.f32.mrb[2].mxu1  ;;  %v15955_v42 = vld [vmem:[%s20896_s5 + $0x210] sm:$0xff]   ;;  %v15940_v24 = vld [vmem:[%s20896_s5 + $0x180] sm:$0xff]  }
 0x3e1   : > { %v14547_v33 = vpop.f32.mrb[19].mxu0  ;;  %v14435_v57 = vpop.f32.mrb[3].mxu1 }
 0x3e2   : > { %v14548_v63 = vadd.f32 %v14547_v33, %v14546_v51  ;;  %v20341_v50 = vadd.f32 %v14545_v23, %v14433_v5  ;;  %v14436_v3 = vadd.f32 %v14435_v57, %v14434_v35 }
 0x3e3   : > { %12213 = vmatmul.mubr.bf16.gmra.mrb[124].mxu0 %v11539_v61  ;;  %v15959_v61 = vld [vmem:[%s20896_s5 + $0x218] sm:$0xff]  }
 0x3e4   : > { %v20343_v37 = vadd.f32 %v14548_v63, %v14436_v3  ;;  %12350 = vmatprep.mubr.bf16.mxu0 %v11481_v28  ;;  %v11489_v28 = vld [vmem:[#allocation3 + $0x68] sm:$0xff] }
 0x3e5   : > { %15212 = vmatmul.mubr.bf16.gmra.mrb[108].mxu1 %v9025_v19  ;;  %v15960_v19 = vld [vmem:[%s20896_s5 + $0x220] sm:$0xff]  }
 0x3e6   : > { %v14549_v0 = vpop.f32.mrb[20].mxu0  ;;  %v14437_v49 = vpop.f32.mrb[4].mxu1  ;;  %12253 = vmatprep.mubr.bf16.mxu1 %v11479_v12 }
 0x3e7   : > { %v14550_v45 = vpop.f32.mrb[21].mxu0  ;;  %v14438_v26 = vpop.f32.mrb[5].mxu1 }
 0x3e8   : > { %v14551_v58 = vadd.f32 %v14550_v45, %v14549_v0  ;;  %v14552_v8 = vpop.f32.mrb[22].mxu0  ;;  %v14439_v34 = vadd.f32 %v14438_v26, %v14437_v49  ;;  %v14440_v25 = vpop.f32.mrb[6].mxu1  ;;  %v15943_v45 = vld [vmem:[%s20896_s5 + $0x188] sm:$0xff]   ;;  %v11499_v49 = vld [vmem:[#allocation3 + $0xb8] sm:$0xff] }
 0x3e9   : > { %v14553_v40 = vpop.f32.mrb[23].mxu0  ;;  %v14441_v15 = vpop.f32.mrb[7].mxu1 }
 0x3ea   : > { %v14554_v46 = vadd.f32 %v14553_v40, %v14552_v8  ;;  %v20348_v2 = vadd.f32 %v14551_v58, %v14439_v34  ;;  %v14442_v21 = vadd.f32 %v14441_v15, %v14440_v25  ;;  %v15944_v58 = vld [vmem:[%s20896_s5 + $0x1d0] sm:$0xff]  }
 0x3eb   : > { %12351 = vmatmul.mubr.bf16.vlgmr.msra.gmra.mrb[128].mxu0 %v11480_v11  ;;  %v15946_v25 = vld [vmem:[%s20896_s5 + $0x190] sm:$0xff]   ;;  %v11487_v11 = vld [vmem:[#allocation3 + $0x58] sm:$0xff] }
 0x3ec   : > { %v20350_v30 = vadd.f32 %v14554_v46, %v14442_v21  ;;  %12358 = vmatprep.mubr.bf16.mxu0 %v11490_v31  ;;  %15216 = vmatpush3.bf16.msra.mxu0 %v20327_v14  ;;  %v11478_v14 = vld [vmem:[#allocation3 + $0x10] sm:$0xff] }
 0x3ed   : > { %15217 = vmatprep.subr.bf16.mxu0 %v15954_v39  ;;  %12254 = vmatmul.mubr.bf16.vlgmr.msra.gmra.mrb[112].mxu1 %v11478_v14  ;;  %v11508_v14 = vld [vmem:[#allocation3 + $0x100] sm:$0xff] }
 0x3ee   : > { %v14555_v41 = vpop.f32.mrb[24].mxu0  ;;  %v14443_v23 = vpop.f32.mrb[8].mxu1  ;;  %12261 = vmatprep.mubr.bf16.mxu1 %v11488_v17  ;;  %15008 = vmatpush3.bf16.msra.mxu1 %v15940_v24  ;;  %v15965_v17 = vld [vmem:[%s20896_s5 + $0x230] sm:$0xff]  }
 0x3ef   : > { %v14556_v48 = vpop.f32.mrb[25].mxu0  ;;  %v14444_v9 = vpop.f32.mrb[9].mxu1  ;;  %15009 = vmatprep.subr.bf16.mxu1 %v15941_v32  ;;  %v15949_v32 = vld [vmem:[%s20896_s5 + $0x198] sm:$0xff]  }
 0x3f0   : > { %v14557_v51 = vadd.f32 %v14556_v48, %v14555_v41  ;;  %v14558_v54 = vpop.f32.mrb[26].mxu0  ;;  %v14445_v5 = vadd.f32 %v14444_v9, %v14443_v23  ;;  %v14446_v35 = vpop.f32.mrb[10].mxu1  ;;  %15218 = vmatpush3.bf16.msra.mxu0 %v15954_v39  ;;  %v15947_v39 = vld [vmem:[%s20896_s5 + $0x1d8] sm:$0xff]   ;;  %v15964_v23 = vld [vmem:[%s20896_s5 + $0x228] sm:$0xff]  }
 0x3f1   : > { %v14559_v33 = vpop.f32.mrb[27].mxu0  ;;  %v14447_v57 = vpop.f32.mrb[11].mxu1  ;;  %15219 = vmatprep.subr.bf16.mxu0 %v15955_v42 }
 0x3f2   : > { %v14560_v63 = vadd.f32 %v14559_v33, %v14558_v54  ;;  %v20365_v3 = vadd.f32 %v14557_v51, %v14445_v5  ;;  %v14448_v0 = vadd.f32 %v14447_v57, %v14446_v35  ;;  %15010 = vmatpush3.bf16.msra.mxu1 %v15943_v45  ;;  %v11498_v54 = vld [vmem:[#allocation3 + $0xb0] sm:$0xff]  ;;  %v15951_v33 = vld [vmem:[%s20896_s5 + $0x1e0] sm:$0xff]  }
 0x3f3   : > { %12359 = vmatmul.mubr.bf16.gmra.mrb[132].mxu0 %v11489_v28  ;;  %15011 = vmatprep.subr.bf16.mxu1 %v15944_v58  ;;  %v11496_v58 = vld [vmem:[#allocation3 + $0xa0] sm:$0xff] }
 0x3f4   : > { %v20373_v8 = vadd.f32 %v14560_v63, %v14448_v0  ;;  %12366 = vmatprep.mubr.bf16.mxu0 %v11499_v49  ;;  %15220 = vmatpush3.bf16.msra.mxu0 %v15955_v42  ;;  %v11497_v42 = vld [vmem:[#allocation3 + $0xa8] sm:$0xff] }
 0x3f5   : > { %15221 = vmatprep.subr.bf16.mxu0 %v15959_v61  ;;  %12262 = vmatmul.mubr.bf16.gmra.mrb[116].mxu1 %v11487_v11  ;;  %v15956_v49 = vld [vmem:[%s20896_s5 + $0x1e8] sm:$0xff]  }
 0x3f6   : > { %v14561_v26 = vpop.f32.mrb[28].mxu0  ;;  %v14449_v34 = vpop.f32.mrb[12].mxu1  ;;  %12269 = vmatprep.mubr.bf16.mxu1 %v11497_v42  ;;  %15012 = vmatpush3.bf16.msra.mxu1 %v15946_v25 }
 0x3f7   : > { %v14562_v40 = vpop.f32.mrb[29].mxu0  ;;  %v14450_v15 = vpop.f32.mrb[13].mxu1  ;;  %15013 = vmatprep.subr.bf16.mxu1 %v15947_v39  ;;  %v11507_v39 = vld [vmem:[#allocation3 + $0xf8] sm:$0xff] }
 0x3f8   : > { %v14563_v12 = vadd.f32 %v14562_v40, %v14561_v26  ;;  %v14564_v46 = vpop.f32.mrb[30].mxu0  ;;  %v14451_v31 = vadd.f32 %v14450_v15, %v14449_v34  ;;  %v14452_v41 = vpop.f32.mrb[14].mxu1  ;;  %15222 = vmatpush3.bf16.msra.mxu0 %v15959_v61  ;;  %v15953_v61 = vld [vmem:[%s20896_s5 + $0x1a0] sm:$0xff]   ;;  %v11506_v34 = vld [vmem:[#allocation3 + $0xf0] sm:$0xff] }
 0x3f9   : > { %v14565_v21 = vpop.f32.mrb[31].mxu0  ;;  %v14453_v24 = vpop.f32.mrb[15].mxu1  ;;  %15223 = vmatprep.subr.bf16.mxu0 %v15960_v19 }
 0x3fa   : > { %v14566_v48 = vadd.f32 %v14565_v21, %v14564_v46  ;;  %v20387_v51 = vadd.f32 %v14563_v12, %v14451_v31  ;;  %v14454_v9 = vadd.f32 %v14453_v24, %v14452_v41  ;;  %15014 = vmatpush3.bf16.msra.mxu1 %v15949_v32  ;;  %v15968_v46 = vld [vmem:[%s20896_s5 + $0x238] sm:$0xff]   ;;  %v15958_v21 = vld [vmem:[%s20896_s5 + $0x1a8] sm:$0xff]   ;;  %v15961_v41 = vld [vmem:[%s20896_s5 + $0x1f0] sm:$0xff]  }
 0x3fb   : > { %12367 = vmatmul.mubr.bf16.gmra.mrb[136].mxu0 %v11498_v54  ;;  %15015 = vmatprep.subr.bf16.mxu1 %v15951_v33  ;;  %v11517_v31 = vld [vmem:[#allocation3 + $0x148] sm:$0xff] }
 0x3fc   : > { %v20395_v5 = vadd.f32 %v14566_v48, %v14454_v9  ;;  %12374 = vmatprep.mubr.bf16.mxu0 %v11508_v14  ;;  %15224 = vmatpush3.bf16.msra.mxu0 %v15960_v19  ;;  %v15966_v14 = vld [vmem:[%s20896_s5 + $0x1f8] sm:$0xff]  }
 0x3fd   : > { %15225 = vmatprep.subr.bf16.mxu0 %v15964_v23  ;;  %12270 = vmatmul.mubr.bf16.gmra.mrb[120].mxu1 %v11496_v58  ;;  %v15967_v58 = vld [vmem:[%s20896_s5 + $0x1b8] sm:$0xff]  }
 0x3fe   : > { %v14695_v35 = vpop.f32.mrb[32].mxu0  ;;  %v14583_v57 = vpop.f32.mrb[16].mxu1  ;;  %12277 = vmatprep.mubr.bf16.mxu1 %v11506_v34  ;;  %15016 = vmatpush3.bf16.msra.mxu1 %v15953_v61 }
 0x3ff   : > { %v14696_v63 = vpop.f32.mrb[33].mxu0  ;;  %v14584_v45 = vpop.f32.mrb[17].mxu1  ;;  %15017 = vmatprep.subr.bf16.mxu1 %v15956_v49 }
 0x400   : > { %v14697_v28 = vadd.f32 %v14696_v63, %v14695_v35  ;;  %v14698_v0 = vpop.f32.mrb[34].mxu0  ;;  %v14585_v19 = vadd.f32 %v14584_v45, %v14583_v57  ;;  %v14586_v40 = vpop.f32.mrb[18].mxu1  ;;  %15226 = vmatpush3.bf16.msra.mxu0 %v15964_v23  ;;  %v15963_v23 = vld [vmem:[%s20896_s5 + $0x1b0] sm:$0xff]   ;;  %v11515_v63 = vld [vmem:[#allocation3 + $0x138] sm:$0xff]  ;;  %v11516_v45 = vld [vmem:[#allocation3 + $0x140] sm:$0xff] }
 0x401   : > { %v14699_v26 = vpop.f32.mrb[35].mxu0  ;;  %v14587_v12 = vpop.f32.mrb[19].mxu1  ;;  %15227 = vmatprep.subr.bf16.mxu0 %v15965_v17 }
 0x402   : > { %v14700_v25 = vadd.f32 %v14699_v26, %v14698_v0  ;;  %v9959_v15 = vadd.f32 %v14585_v19, %v19924_v1  ;;  %v14588_v11 = vadd.f32 %v14587_v12, %v14586_v40  ;;  %15018 = vmatpush3.bf16.msra.mxu1 %v15958_v21  ;;  %v11526_v26 = vld [vmem:[#allocation3 + $0x190] sm:$0xff] }
 0x403   : > { %12375 = vmatmul.mubr.bf16.gmra.mrb[140].mxu0 %v11507_v39  ;;  %15019 = vmatprep.subr.bf16.mxu1 %v15961_v41 }
 0x404   : > { %v9962_v42 = vadd.f32 %v14588_v11, %v19940_v43  ;;  %12382 = vmatprep.mubr.bf16.mxu0 %v11517_v31  ;;  %15228 = vmatpush3.bf16.msra.mxu0 %v15965_v17  ;;  %v11505_v43 = vld [vmem:[#allocation3 + $0xe8] sm:$0xff]  ;;  %v20430_v12 = vadd.f32 %v14697_v28, %v9959_v15 }
 0x405   : > { %15229 = vmatprep.subr.bf16.mxu0 %v15968_v46  ;;  %12278 = vmatmul.mubr.bf16.gmra.mrb[124].mxu1 %v11505_v43  ;;  %v11525_v15 = vld [vmem:[#allocation3 + $0x188] sm:$0xff] }
 0x406   : > { %v14701_v48 = vpop.f32.mrb[36].mxu0  ;;  %v14589_v24 = vpop.f32.mrb[20].mxu1  ;;  %12285 = vmatprep.mubr.bf16.mxu1 %v11515_v63  ;;  %15020 = vmatpush3.bf16.msra.mxu1 %v15963_v23  ;;  %v20434_v41 = vadd.f32 %v14700_v25, %v9962_v42  ;;  %v11524_v23 = vld [vmem:[#allocation3 + $0x180] sm:$0xff] }
 0x407   : > { %v14702_v1 = vpop.f32.mrb[37].mxu0  ;;  %v14590_v32 = vpop.f32.mrb[21].mxu1  ;;  %15021 = vmatprep.subr.bf16.mxu1 %v15966_v14  ;;  %v11535_v14 = vld [vmem:[#allocation3 + $0x1d8] sm:$0xff] }
 0x408   : > { %v14703_v54 = vadd.f32 %v14702_v1, %v14701_v48  ;;  %v14704_v9 = vpop.f32.mrb[38].mxu0  ;;  %v14591_v35 = vadd.f32 %v14590_v32, %v14589_v24  ;;  %v14592_v17 = vpop.f32.mrb[22].mxu1  ;;  %15230 = vmatpush3.bf16.msra.mxu0 %v15968_v46  ;;  %v11514_v48 = vld [vmem:[#allocation3 + $0x130] sm:$0xff] }
 0x409   : > { %v14705_v33 = vpop.f32.mrb[39].mxu0  ;;  %v14593_v61 = vpop.f32.mrb[23].mxu1 }
 0x40a   : > { %v14706_v57 = vadd.f32 %v14705_v33, %v14704_v9  ;;  %v9967_v0 = vadd.f32 %v14591_v35, %v19964_v18  ;;  %v14594_v49 = vadd.f32 %v14593_v61, %v14592_v17  ;;  %15022 = vmatpush3.bf16.msra.mxu1 %v15967_v58  ;;  %v11533_v58 = vld [vmem:[#allocation3 + $0x1c8] sm:$0xff] }
 0x40b   : > { %12383 = vmatmul.mubr.bf16.gmra.mrb[144].mxu0 %v11516_v45 }
 0x40c   : > { %v9970_v19 = vadd.f32 %v14594_v49, %v19968_v27  ;;  %12390 = vmatprep.mubr.bf16.mxu0 %v11526_v26  ;;  %v20428_v40 = vadd.f32 %v14703_v54, %v9967_v0  ;;  %v11523_v0 = vld [vmem:[#allocation3 + $0x178] sm:$0xff] }
 0x40d   : > { %12286 = vmatmul.mubr.bf16.gmra.mrb[128].mxu1 %v11514_v48 }
 0x40e   : > { %v14707_v34 = vpop.f32.mrb[40].mxu0  ;;  %v14595_v18 = vpop.f32.mrb[24].mxu1  ;;  %v20432_v39 = vadd.f32 %v14706_v57, %v9970_v19  ;;  %12293 = vmatprep.mubr.bf16.mxu1 %v11524_v23 }
 0x40f   : > { %v14708_v46 = vpop.f32.mrb[41].mxu0  ;;  %v14596_v31 = vpop.f32.mrb[25].mxu1 }
 0x410   : > { %v14709_v11 = vadd.f32 %v14708_v46, %v14707_v34  ;;  %v14710_v21 = vpop.f32.mrb[42].mxu0  ;;  %v14597_v24 = vadd.f32 %v14596_v31, %v14595_v18  ;;  %v14598_v27 = vpop.f32.mrb[26].mxu1  ;;  %v11534_v34 = vld [vmem:[#allocation3 + $0x1d0] sm:$0xff]  ;;  %v11544_v18 = vld [vmem:[#allocation3 + $0x220] sm:$0xff] }
 0x411   : > { %v14711_v1 = vpop.f32.mrb[43].mxu0  ;;  %v14599_v9 = vpop.f32.mrb[27].mxu1 }
 0x412   : > { %v14712_v54 = vadd.f32 %v14711_v1, %v14710_v21  ;;  %v9975_v28 = vadd.f32 %v14597_v24, %v20022_v38  ;;  %v14600_v32 = vadd.f32 %v14599_v9, %v14598_v27  ;;  %v11532_v9 = vld [vmem:[#allocation3 + $0x1c0] sm:$0xff] }
 0x413   : > { %12391 = vmatmul.mubr.bf16.gmra.mrb[148].mxu0 %v11525_v15 }
 0x414   : > { %v9978_v43 = vadd.f32 %v14600_v32, %v20038_v6  ;;  %12398 = vmatprep.mubr.bf16.mxu0 %v11535_v14  ;;  %v20438_v42 = vadd.f32 %v14709_v11, %v9975_v28  ;;  %v11542_v32 = vld [vmem:[#allocation3 + $0x210] sm:$0xff] }
 0x415   : > { %12294 = vmatmul.mubr.bf16.gmra.mrb[132].mxu1 %v11523_v0 }
 0x416   : > { %v14713_v25 = vpop.f32.mrb[44].mxu0  ;;  %v14601_v35 = vpop.f32.mrb[28].mxu1  ;;  %v20440_v61 = vadd.f32 %v14712_v54, %v9978_v43  ;;  %12301 = vmatprep.mubr.bf16.mxu1 %v11533_v58 }
 0x417   : > { %v14714_v33 = vpop.f32.mrb[45].mxu0  ;;  %v14602_v57 = vpop.f32.mrb[29].mxu1 }
 0x418   : > { %v14715_v17 = vadd.f32 %v14714_v33, %v14713_v25  ;;  %v14716_v63 = vpop.f32.mrb[46].mxu0  ;;  %v14603_v38 = vadd.f32 %v14602_v57, %v14601_v35  ;;  %v14604_v49 = vpop.f32.mrb[30].mxu1  ;;  %v11543_v25 = vld [vmem:[#allocation3 + $0x218] sm:$0xff]  ;;  %v11484_v35 = vld [vmem:[#allocation3 + $0x40] sm:$0xff] }
 0x419   : > { %v14717_v45 = vpop.f32.mrb[47].mxu0  ;;  %v14605_v19 = vpop.f32.mrb[31].mxu1 }
 0x41a   : > { %v14718_v26 = vadd.f32 %v14717_v45, %v14716_v63  ;;  %v9983_v6 = vadd.f32 %v14603_v38, %v20078_v52  ;;  %v14606_v46 = vadd.f32 %v14605_v19, %v14604_v49 }
 0x41b   : > { %12399 = vmatmul.mubr.bf16.gmra.mrb[152].mxu0 %v11534_v34 }
 0x41c   : > { %v9986_v11 = vadd.f32 %v14606_v46, %v20089_v55  ;;  %12406 = vmatprep.mubr.bf16.mxu0 %v11544_v18  ;;  %v20444_v21 = vadd.f32 %v14715_v17, %v9983_v6 }
 0x41d   : > { %12302 = vmatmul.mubr.bf16.gmra.mrb[136].mxu1 %v11532_v9 }
 0x41e   : > { %v14719_v31 = vpop.f32.mrb[48].mxu0  ;;  %v14607_v1 = vpop.f32.mrb[32].mxu1  ;;  %v20446_v24 = vadd.f32 %v14718_v26, %v9986_v11  ;;  %12309 = vmatprep.mubr.bf16.mxu1 %v11542_v32  ;;  %v11541_v26 = vld [vmem:[#allocation3 + $0x208] sm:$0xff]  ;;  %v11482_v32 = vld [vmem:[#allocation3 + $0x30] sm:$0xff] }
 0x41f   : > { %v14720_v48 = vpop.f32.mrb[49].mxu0  ;;  %v14608_v54 = vpop.f32.mrb[33].mxu1 }
 0x420   : > { %v14721_v27 = vadd.f32 %v14720_v48, %v14719_v31  ;;  %v14722_v23 = vpop.f32.mrb[50].mxu0  ;;  %v14609_v52 = vadd.f32 %v14608_v54, %v14607_v1  ;;  %v14610_v15 = vpop.f32.mrb[34].mxu1  ;;  %v11502_v1 = vld [vmem:[#allocation3 + $0xd0] sm:$0xff] }
 0x421   : > { %v14723_v28 = vpop.f32.mrb[51].mxu0  ;;  %v14611_v43 = vpop.f32.mrb[35].mxu1 }
 0x422   : > { %v14724_v14 = vadd.f32 %v14723_v28, %v14722_v23  ;;  %v9991_v55 = vadd.f32 %v14609_v52, %v20153_v22  ;;  %v14612_v33 = vadd.f32 %v14611_v43, %v14610_v15  ;;  %v11483_v22 = vld [vmem:[#allocation3 + $0x38] sm:$0xff]  ;;  %v11492_v43 = vld [vmem:[#allocation3 + $0x80] sm:$0xff] }
 0x423   : > { %12407 = vmatmul.mubr.bf16.gmra.mrb[156].mxu0 %v11543_v25  ;;  %v11511_v25 = vld [vmem:[#allocation3 + $0x118] sm:$0xff] }
 0x424   : > { %v9994_v17 = vadd.f32 %v14612_v33, %v20162_v20  ;;  %15231 = vmatprep.mubr.bf16.mxu0 %v11484_v35  ;;  %v20450_v63 = vadd.f32 %v14721_v27, %v9991_v55  ;;  %v11493_v20 = vld [vmem:[#allocation3 + $0x88] sm:$0xff]  ;;  %v11520_v35 = vld [vmem:[#allocation3 + $0x160] sm:$0xff] }
 0x425   : > { %12310 = vmatmul.mubr.bf16.gmra.mrb[140].mxu1 %v11541_v26 }
 0x426   : > { %v14725_v57 = vpop.f32.mrb[52].mxu0  ;;  %v20452_v45 = vadd.f32 %v14724_v14, %v9994_v17  ;;  %v14613_v58 = vpop.f32.mrb[36].mxu1  ;;  %12447 = vmatprep.mubr.bf16.mxu1 %v11483_v22  ;;  %v11491_v22 = vld [vmem:[#allocation3 + $0x78] sm:$0xff] }
 0x427   : > { %v14726_v0 = vpop.f32.mrb[53].mxu0  ;;  %v14614_v6 = vpop.f32.mrb[37].mxu1 }
 0x428   : > { %v14727_v38 = vadd.f32 %v14726_v0, %v14725_v57  ;;  %v14728_v49 = vpop.f32.mrb[54].mxu0  ;;  %v14615_v46 = vadd.f32 %v14614_v6, %v14613_v58  ;;  %v14616_v18 = vpop.f32.mrb[38].mxu1 }
 0x429   : > { %v14729_v19 = vpop.f32.mrb[55].mxu0  ;;  %v14617_v11 = vpop.f32.mrb[39].mxu1 }
 0x42a   : > { %v14730_v34 = vadd.f32 %v14729_v19, %v14728_v49  ;;  %v9999_v31 = vadd.f32 %v14615_v46, %v20189_v44  ;;  %v14618_v48 = vadd.f32 %v14617_v11, %v14616_v18  ;;  %v11501_v18 = vld [vmem:[#allocation3 + $0xc8] sm:$0xff] }
 0x42b   : > { %15232 = vmatmul.mubr.bf16.vlgmr.msra.gmra.mrb[160].mxu0 %v11493_v20  ;;  %v11529_v11 = vld [vmem:[#allocation3 + $0x1a8] sm:$0xff] }
 0x42c   : > { %15235 = vmatprep.mubr.bf16.mxu0 %v11502_v1  ;;  %v10002_v27 = vadd.f32 %v14618_v48, %v20198_v56  ;;  %v20456_v54 = vadd.f32 %v14727_v38, %v9999_v31  ;;  %v11538_v48 = vld [vmem:[#allocation3 + $0x1f0] sm:$0xff] }
 0x42d   : > { %12448 = vmatmul.mubr.bf16.vlgmr.msra.gmra.mrb[144].mxu1 %v11482_v32 }
 0x42e   : > { %v14731_v23 = vpop.f32.mrb[56].mxu0  ;;  %v20458_v15 = vadd.f32 %v14730_v34, %v10002_v27  ;;  %12455 = vmatprep.mubr.bf16.mxu1 %v11492_v43  ;;  %v14619_v44 = vpop.f32.mrb[40].mxu1 }
 0x42f   : > { %v14732_v9 = vpop.f32.mrb[57].mxu0  ;;  %v14620_v33 = vpop.f32.mrb[41].mxu1 }
 0x430   : > { %v14733_v28 = vadd.f32 %v14732_v9, %v14731_v23  ;;  %v14734_v52 = vpop.f32.mrb[58].mxu0  ;;  %v14621_v56 = vadd.f32 %v14620_v33, %v14619_v44  ;;  %v14622_v17 = vpop.f32.mrb[42].mxu1  ;;  %v11500_v44 = vld [vmem:[#allocation3 + $0xc0] sm:$0xff]  ;;  %v11547_v33 = vld [vmem:[#allocation3 + $0x238] sm:$0xff] }
 0x431   : > { %v14735_v14 = vpop.f32.mrb[59].mxu0  ;;  %v14623_v57 = vpop.f32.mrb[43].mxu1 }
 0x432   : > { %v14736_v55 = vadd.f32 %v14735_v14, %v14734_v52  ;;  %v10007_v38 = vadd.f32 %v14621_v56, %v20223_v10  ;;  %v14624_v49 = vadd.f32 %v14623_v57, %v14622_v17 }
 0x433   : > { %15236 = vmatmul.mubr.bf16.gmra.mrb[164].mxu0 %v11511_v25 }
 0x434   : > { %15239 = vmatprep.mubr.bf16.mxu0 %v11520_v35  ;;  %v10010_v6 = vadd.f32 %v14624_v49, %v20236_v7  ;;  %v20462_v46 = vadd.f32 %v14733_v28, %v10007_v38 }
 0x435   : > { %12456 = vmatmul.mubr.bf16.gmra.mrb[148].mxu1 %v11491_v22 }
 0x436   : > { %v14737_v0 = vpop.f32.mrb[60].mxu0  ;;  %12463 = vmatprep.mubr.bf16.mxu1 %v11501_v18  ;;  %v20464_v31 = vadd.f32 %v14736_v55, %v10010_v6  ;;  %v14625_v10 = vpop.f32.mrb[44].mxu1  ;;  %v11510_v55 = vld [vmem:[#allocation3 + $0x110] sm:$0xff] }
 0x437   : > { %v14738_v58 = vpop.f32.mrb[61].mxu0  ;;  %v14626_v1 = vpop.f32.mrb[45].mxu1 }
 0x438   : > { %v14739_v26 = vadd.f32 %v14738_v58, %v14737_v0  ;;  %v14740_v19 = vpop.f32.mrb[62].mxu0  ;;  %v14627_v23 = vadd.f32 %v14626_v1, %v14625_v10  ;;  %v14628_v9 = vpop.f32.mrb[46].mxu1 }
 0x439   : > { %v14741_v34 = vpop.f32.mrb[63].mxu0  ;;  %v14629_v52 = vpop.f32.mrb[47].mxu1 }
 0x43a   : > { %v14742_v20 = vadd.f32 %v14741_v34, %v14740_v19  ;;  %v10015_v14 = vadd.f32 %v14627_v23, %v20259_v13  ;;  %v14630_v43 = vadd.f32 %v14629_v52, %v14628_v9 }
 0x43b   : > { %15240 = vmatmul.mubr.bf16.gmra.mrb[168].mxu0 %v11529_v11 }
 0x43c   : > { %15243 = vmatprep.mubr.bf16.mxu0 %v11538_v48  ;;  %v10018_v56 = vadd.f32 %v14630_v43, %v20268_v59  ;;  %v20468_v17 = vadd.f32 %v14739_v26, %v10015_v14  ;;  %v11509_v48 = vld [vmem:[#allocation3 + $0x108] sm:$0xff]  ;;  %v11519_v26 = vld [vmem:[#allocation3 + $0x158] sm:$0xff] }
 0x43d   : > { %12464 = vmatmul.mubr.bf16.gmra.mrb[152].mxu1 %v11500_v44 }
 0x43e   : > { %v14743_v27 = vpop.f32.mrb[64].mxu0  ;;  %12471 = vmatprep.mubr.bf16.mxu1 %v11510_v55  ;;  %v14631_v57 = vpop.f32.mrb[48].mxu1  ;;  %v20470_v0 = vadd.f32 %v14742_v20, %v10018_v56  ;;  %v11518_v55 = vld [vmem:[#allocation3 + $0x150] sm:$0xff] }
 0x43f   : > { %v14744_v7 = vpop.f32.mrb[65].mxu0  ;;  %v14632_v38 = vpop.f32.mrb[49].mxu1 }
 0x440   : > { %v14745_v32 = vadd.f32 %v14744_v7, %v14743_v27  ;;  %v14746_v28 = vpop.f32.mrb[66].mxu0  ;;  %v14633_v58 = vadd.f32 %v14632_v38, %v14631_v57  ;;  %v14634_v13 = vpop.f32.mrb[50].mxu1 }
 0x441   : > { %v14747_v25 = vpop.f32.mrb[67].mxu0  ;;  %v14635_v6 = vpop.f32.mrb[51].mxu1 }
 0x442   : > { %v14748_v35 = vadd.f32 %v14747_v25, %v14746_v28  ;;  %v10023_v18 = vadd.f32 %v14633_v58, %v20294_v53  ;;  %v14636_v11 = vadd.f32 %v14635_v6, %v14634_v13 }
 0x443   : > { %15244 = vmatmul.mubr.bf16.gmra.mrb[172].mxu0 %v11547_v33 }
 0x444   : > { %v10026_v1 = vadd.f32 %v14636_v11, %v20299_v47  ;;  %v20474_v20 = vadd.f32 %v14745_v32, %v10023_v18  ;;  %v11528_v47 = vld [vmem:[#allocation3 + $0x1a0] sm:$0xff] }
 0x445   : > { %12472 = vmatmul.mubr.bf16.gmra.mrb[156].mxu1 %v11509_v48 }
 0x446   : > { %v14749_v49 = vpop.f32.mrb[68].mxu0  ;;  %12479 = vmatprep.mubr.bf16.mxu1 %v11519_v26  ;;  %v14637_v27 = vpop.f32.mrb[52].mxu1  ;;  %v20476_v23 = vadd.f32 %v14748_v35, %v10026_v1  ;;  %v11527_v26 = vld [vmem:[#allocation3 + $0x198] sm:$0xff] }
 0x447   : > { %v14750_v19 = vpop.f32.mrb[69].mxu0  ;;  %v14638_v9 = vpop.f32.mrb[53].mxu1 }
 0x448   : > { %v14751_v22 = vadd.f32 %v14750_v19, %v14749_v49  ;;  %v14752_v34 = vpop.f32.mrb[70].mxu0  ;;  %v14639_v52 = vadd.f32 %v14638_v9, %v14637_v27  ;;  %v14640_v28 = vpop.f32.mrb[54].mxu1 }
 0x449   : > { %v14753_v59 = vpop.f32.mrb[71].mxu0  ;;  %v14641_v53 = vpop.f32.mrb[55].mxu1 }
 0x44a   : > { %v14754_v10 = vadd.f32 %v14753_v59, %v14752_v34  ;;  %v10031_v25 = vadd.f32 %v14639_v52, %v20316_v29  ;;  %v14642_v33 = vadd.f32 %v14641_v53, %v14640_v28 }
 0x44c   : > { %v10034_v57 = vadd.f32 %v14642_v33, %v20321_v16  ;;  %v20480_v35 = vadd.f32 %v14751_v22, %v10031_v25  ;;  %v11537_v16 = vld [vmem:[#allocation3 + $0x1e8] sm:$0xff] }
 0x44d   : > { %12480 = vmatmul.mubr.bf16.gmra.mrb[160].mxu1 %v11518_v55  ;;  %v11546_v55 = vld [vmem:[#allocation3 + $0x230] sm:$0xff] }
 0x44e   : > { %v14755_v7 = vpop.f32.mrb[72].mxu0  ;;  %12487 = vmatprep.mubr.bf16.mxu1 %v11528_v47  ;;  %v14643_v38 = vpop.f32.mrb[56].mxu1  ;;  %v20482_v49 = vadd.f32 %v14754_v10, %v10034_v57  ;;  %v11536_v57 = vld [vmem:[#allocation3 + $0x1e0] sm:$0xff] }
 0x44f   : > { %v14756_v14 = vpop.f32.mrb[73].mxu0  ;;  %v14644_v58 = vpop.f32.mrb[57].mxu1 }
 0x450   : > { %v14757_v43 = vadd.f32 %v14756_v14, %v14755_v7  ;;  %v14758_v44 = vpop.f32.mrb[74].mxu0  ;;  %v14645_v19 = vadd.f32 %v14644_v58, %v14643_v38  ;;  %v14646_v6 = vpop.f32.mrb[58].mxu1 }
 0x451   : > { %v14759_v56 = vpop.f32.mrb[75].mxu0  ;;  %v14647_v29 = vpop.f32.mrb[59].mxu1 }
 0x452   : > { %v14760_v32 = vadd.f32 %v14759_v56, %v14758_v44  ;;  %v10039_v48 = vadd.f32 %v14645_v19, %v20330_v4  ;;  %v14648_v59 = vadd.f32 %v14647_v29, %v14646_v6 }
 0x454   : > { %v10042_v27 = vadd.f32 %v14648_v59, %v20333_v62  ;;  %v20486_v10 = vadd.f32 %v14757_v43, %v10039_v48 }
 0x455   : > { %12488 = vmatmul.mubr.bf16.gmra.mrb[164].mxu1 %v11527_v26 }
 0x456   : > { %v14761_v13 = vpop.f32.mrb[76].mxu0  ;;  %12495 = vmatprep.mubr.bf16.mxu1 %v11537_v16  ;;  %v14649_v9 = vpop.f32.mrb[60].mxu1  ;;  %v20488_v7 = vadd.f32 %v14760_v32, %v10042_v27 }
 0x457   : > { %v14762_v34 = vpop.f32.mrb[77].mxu0  ;;  %v14650_v52 = vpop.f32.mrb[61].mxu1 }
 0x458   : > { %v14763_v18 = vadd.f32 %v14762_v34, %v14761_v13  ;;  %v14764_v11 = vpop.f32.mrb[78].mxu0  ;;  %v14651_v14 = vadd.f32 %v14650_v52, %v14649_v9  ;;  %v14652_v53 = vpop.f32.mrb[62].mxu1 }
 0x459   : > { %v14765_v1 = vpop.f32.mrb[79].mxu0  ;;  %v14653_v4 = vpop.f32.mrb[63].mxu1 }
 0x45a   : > { %v14766_v22 = vadd.f32 %v14765_v1, %v14764_v11  ;;  %v10047_v56 = vadd.f32 %v14651_v14, %v20336_v36  ;;  %v14654_v47 = vadd.f32 %v14653_v4, %v14652_v53  ;;  %v11545_v11 = vld [vmem:[#allocation3 + $0x228] sm:$0xff] }
 0x45c   : > { %v10050_v38 = vadd.f32 %v14654_v47, %v20338_v60  ;;  %v20492_v32 = vadd.f32 %v14763_v18, %v10047_v56 }
 0x45d   : > { %12496 = vmatmul.mubr.bf16.gmra.mrb[168].mxu1 %v11536_v57 }
 0x45e   : > { %v14767_v28 = vpop.f32.mrb[80].mxu0  ;;  %12503 = vmatprep.mubr.bf16.mxu1 %v11546_v55  ;;  %v14655_v58 = vpop.f32.mrb[64].mxu1  ;;  %v20494_v13 = vadd.f32 %v14766_v22, %v10050_v38 }
 0x45f   : > { %v14768_v44 = vpop.f32.mrb[81].mxu0  ;;  %v14656_v19 = vpop.f32.mrb[65].mxu1 }
 0x460   : > { %v14769_v25 = vadd.f32 %v14768_v44, %v14767_v28  ;;  %v14770_v33 = vpop.f32.mrb[82].mxu0  ;;  %v14657_v34 = vadd.f32 %v14656_v19, %v14655_v58  ;;  %v14658_v29 = vpop.f32.mrb[66].mxu1 }
 0x461   : > { %v14771_v62 = vpop.f32.mrb[83].mxu0  ;;  %v14659_v36 = vpop.f32.mrb[67].mxu1 }
 0x462   : > { %v14772_v43 = vadd.f32 %v14771_v62, %v14770_v33  ;;  %v10055_v1 = vadd.f32 %v14657_v34, %v20341_v50  ;;  %v14660_v16 = vadd.f32 %v14659_v36, %v14658_v29 }
 0x464   : > { %v10058_v18 = vadd.f32 %v14660_v16, %v20343_v37  ;;  %v20498_v9 = vadd.f32 %v14769_v25, %v10055_v1 }
 0x465   : > { %12504 = vmatmul.mubr.bf16.gmra.mrb[172].mxu1 %v11545_v11 }
 0x466   : > { %v14773_v6 = vpop.f32.mrb[84].mxu0  ;;  %v14661_v22 = vpop.f32.mrb[68].mxu1  ;;  %v20500_v52 = vadd.f32 %v14772_v43, %v10058_v18 }
 0x467   : > { %v14774_v48 = vpop.f32.mrb[85].mxu0  ;;  %v14662_v28 = vpop.f32.mrb[69].mxu1 }
 0x468   : > { %v14775_v59 = vadd.f32 %v14774_v48, %v14773_v6  ;;  %v14776_v26 = vpop.f32.mrb[86].mxu0  ;;  %v14663_v53 = vadd.f32 %v14662_v28, %v14661_v22  ;;  %v14664_v44 = vpop.f32.mrb[70].mxu1 }
 0x469   : > { %v14777_v27 = vpop.f32.mrb[87].mxu0  ;;  %v14665_v33 = vpop.f32.mrb[71].mxu1 }
 0x46a   : > { %v14778_v60 = vadd.f32 %v14777_v27, %v14776_v26  ;;  %v10063_v50 = vadd.f32 %v14663_v53, %v20348_v2  ;;  %v14666_v47 = vadd.f32 %v14665_v33, %v14664_v44 }
 0x46c   : > { %v10066_v37 = vadd.f32 %v14666_v47, %v20350_v30  ;;  %v20504_v25 = vadd.f32 %v14775_v59, %v10063_v50 }
 0x46e   : > { %v14779_v14 = vpop.f32.mrb[88].mxu0  ;;  %v14667_v38 = vpop.f32.mrb[72].mxu1  ;;  %v20506_v43 = vadd.f32 %v14778_v60, %v10066_v37 }
 0x46f   : > { %v14780_v4 = vpop.f32.mrb[89].mxu0  ;;  %v14668_v58 = vpop.f32.mrb[73].mxu1 }
 0x470   : > { %v14781_v55 = vadd.f32 %v14780_v4, %v14779_v14  ;;  %v14782_v56 = vpop.f32.mrb[90].mxu0  ;;  %v14669_v6 = vadd.f32 %v14668_v58, %v14667_v38  ;;  %v14670_v34 = vpop.f32.mrb[74].mxu1 }
 0x471   : > { %v14783_v57 = vpop.f32.mrb[91].mxu0  ;;  %v14671_v11 = vpop.f32.mrb[75].mxu1 }
 0x472   : > { %v14784_v62 = vadd.f32 %v14783_v57, %v14782_v56  ;;  %v10071_v2 = vadd.f32 %v14669_v6, %v20365_v3  ;;  %v14672_v26 = vadd.f32 %v14671_v11, %v14670_v34 }
 0x474   : > { %v10074_v30 = vadd.f32 %v14672_v26, %v20373_v8  ;;  %v20510_v59 = vadd.f32 %v14781_v55, %v10071_v2 }
 0x476   : > { %v14785_v19 = vpop.f32.mrb[92].mxu0  ;;  %v14673_v27 = vpop.f32.mrb[76].mxu1  ;;  %v20512_v60 = vadd.f32 %v14784_v62, %v10074_v30  ;;  %v20525_v62 = vld [vmem:[%s20897_s6] ss:$0 sm:$0xff] }
 0x477   : > { %v14786_v29 = vpop.f32.mrb[93].mxu0  ;;  %v14674_v18 = vpop.f32.mrb[77].mxu1 }
 0x478   : > { %v14787_v48 = vadd.f32 %v14786_v29, %v14785_v19  ;;  %v14788_v36 = vpop.f32.mrb[94].mxu0  ;;  %v14675_v28 = vadd.f32 %v14674_v18, %v14673_v27  ;;  %v14676_v14 = vpop.f32.mrb[78].mxu1 }
 0x479   : > { %v14789_v1 = vpop.f32.mrb[95].mxu0  ;;  %v14677_v44 = vpop.f32.mrb[79].mxu1 }
 0x47a   : > { %v14790_v16 = vadd.f32 %v14789_v1, %v14788_v36  ;;  %v10079_v33 = vadd.f32 %v14675_v28, %v20387_v51  ;;  %v14678_v56 = vadd.f32 %v14677_v44, %v14676_v14  ;;  %v20534_v51 = vld [vmem:[%s20898_s7] ss:$0 sm:$0xff] }
 0x47c   : > { %v10082_v55 = vadd.f32 %v14678_v56, %v20395_v5  ;;  %v20520_v47 = vadd.f32 %v14787_v48, %v10079_v33 }
 0x47e   : > { %v14831_v22 = vpop.f32.mrb[96].mxu0  ;;  %v15185_v57 = vpop.f32.mrb[80].mxu1  ;;  %v20527_v37 = vadd.f32 %v14790_v16, %v10082_v55 }
 0x47f   : > { %v14832_v53 = vpop.f32.mrb[97].mxu0  ;;  %v10289_v38 = vadd.f32 %v15185_v57, %v20428_v40  ;;  %v10280_v58 = vpop.f32.mrb[81].mxu1 }
 0x480   : > { %v20514_v4 = vadd.f32 %v14832_v53, %v14831_v22  ;;  %v14834_v3 = vpop.f32.mrb[98].mxu0  ;;  %v10281_v5 = vadd.f32 %v10280_v58, %v20430_v12  ;;  %v15186_v19 = vpop.f32.mrb[82].mxu1 }
 0x481   : > { %v14835_v50 = vpop.f32.mrb[99].mxu0  ;;  %v10416_v34 = vmul.f32 %v20525_v62, %v10289_v38  ;;  %v10292_v29 = vadd.f32 %v15186_v19, %v20432_v39  ;;  %v10283_v11 = vpop.f32.mrb[83].mxu1 }
 0x482   : > { %v20517_v8 = vadd.f32 %v14835_v50, %v14834_v3  ;;  %v10414_v36 = vmul.f32 %v20525_v62, %v10281_v5  ;;  %v10284_v40 = vadd.f32 %v10283_v11, %v20434_v41 }
 0x483   : > { %v10455_v1 = vadd.f32 %v20534_v51, %v10416_v34  ;;  %v10417_v16 = vmul.f32 %v20525_v62, %v10292_v29 }
 0x484   : > { %v10453_v39 = vadd.f32 %v20534_v51, %v10414_v36  ;;  %v10415_v30 = vmul.f32 %v20525_v62, %v10284_v40 }
 0x485   : > { %v10487_v27 = vmax.f32 %v10455_v1, 0.0  ;;  %v10456_v18 = vadd.f32 %v20534_v51, %v10417_v16 }
 0x486   : > { %v14837_v6 = vpop.f32.mrb[100].mxu0  ;;  %v10485_v22 = vmax.f32 %v10453_v39, 0.0  ;;  %v10454_v28 = vadd.f32 %v20534_v51, %v10415_v30 }
 0x487   : > { %v14838_v48 = vpop.f32.mrb[101].mxu0  ;;  %10519 = vst.msk [vmem:[%s20548_s12 + $0x10] sm:$0xff] %vm600_vm0, %v10487_v27  ;;  %v10488_v53 = vmax.f32 %v10456_v18, 0.0 }
 0x488   : > { %v20541_v2 = vadd.f32 %v14838_v48, %v14837_v6  ;;  %v14840_v26 = vpop.f32.mrb[102].mxu0  ;;  %v15189_v14 = vpop.f32.mrb[84].mxu1  ;;  %10517 = vst.msk [vmem:[%s20548_s12] sm:$0xff] %vm600_vm0, %v10485_v22  ;;  %v10486_v33 = vmax.f32 %v10454_v28, 0.0 }
 0x489   : > { %v14841_v12 = vpop.f32.mrb[103].mxu0  ;;  %v10305_v44 = vadd.f32 %v15189_v14, %v20444_v21  ;;  %v10296_v3 = vpop.f32.mrb[85].mxu1  ;;  %10520 = vst.msk [vmem:[%s20548_s12 + $0x18] sm:$0xff] %vm600_vm0, %v10488_v53 }
 0x48a   : > { %v20552_v41 = vadd.f32 %v14841_v12, %v14840_v26  ;;  %v10297_v56 = vadd.f32 %v10296_v3, %v20438_v42  ;;  %v15190_v50 = vpop.f32.mrb[86].mxu1  ;;  %10518 = vst.msk [vmem:[%s20548_s12 + $0x8] sm:$0xff] %vm600_vm0, %v10486_v33 }
 0x48b   : > { %v10420_v57 = vmul.f32 %v20525_v62, %v10305_v44  ;;  %v10308_v38 = vadd.f32 %v15190_v50, %v20446_v24  ;;  %v10299_v58 = vpop.f32.mrb[87].mxu1 }
 0x48c   : > { %v10418_v21 = vmul.f32 %v20525_v62, %v10297_v56  ;;  %v10300_v19 = vadd.f32 %v10299_v58, %v20440_v61 }
 0x48d   : > { %v10459_v34 = vadd.f32 %v20534_v51, %v10420_v57  ;;  %v10421_v29 = vmul.f32 %v20525_v62, %v10308_v38 }
 0x48e   : > { %v14843_v55 = vpop.f32.mrb[104].mxu0  ;;  %v10457_v24 = vadd.f32 %v20534_v51, %v10418_v21  ;;  %v10419_v48 = vmul.f32 %v20525_v62, %v10300_v19 }
 0x48f   : > { %v14844_v5 = vpop.f32.mrb[105].mxu0  ;;  %v10491_v40 = vmax.f32 %v10459_v34, 0.0  ;;  %v10460_v26 = vadd.f32 %v20534_v51, %v10421_v29 }
 0x490   : > { %v20570_v6 = vadd.f32 %v14844_v5, %v14843_v55  ;;  %v14846_v42 = vpop.f32.mrb[106].mxu0  ;;  %v10489_v61 = vmax.f32 %v10457_v24, 0.0  ;;  %v10458_v1 = vadd.f32 %v20534_v51, %v10419_v48  ;;  %v15193_v16 = vpop.f32.mrb[88].mxu1 }
 0x491   : > { %v14847_v11 = vpop.f32.mrb[107].mxu0  ;;  %10523 = vst.msk [vmem:[%s20548_s12 + $0x30] sm:$0xff] %vm600_vm0, %v10491_v40  ;;  %v10492_v12 = vmax.f32 %v10460_v26, 0.0  ;;  %v10321_v39 = vadd.f32 %v15193_v16, %v20456_v54  ;;  %v10312_v30 = vpop.f32.mrb[89].mxu1 }
 0x492   : > { %v20576_v36 = vadd.f32 %v14847_v11, %v14846_v42  ;;  %10521 = vst.msk [vmem:[%s20548_s12 + $0x20] sm:$0xff] %vm600_vm0, %v10489_v61  ;;  %v10490_v27 = vmax.f32 %v10458_v1, 0.0  ;;  %v10313_v18 = vadd.f32 %v10312_v30, %v20450_v63  ;;  %v15194_v22 = vpop.f32.mrb[90].mxu1 }
 0x493   : > { %10524 = vst.msk [vmem:[%s20548_s12 + $0x38] sm:$0xff] %vm600_vm0, %v10492_v12  ;;  %v10424_v14 = vmul.f32 %v20525_v62, %v10321_v39  ;;  %v10324_v53 = vadd.f32 %v15194_v22, %v20458_v15  ;;  %v10315_v44 = vpop.f32.mrb[91].mxu1 }
 0x494   : > { %10522 = vst.msk [vmem:[%s20548_s12 + $0x28] sm:$0xff] %vm600_vm0, %v10490_v27  ;;  %v10422_v54 = vmul.f32 %v20525_v62, %v10313_v18  ;;  %v10316_v33 = vadd.f32 %v10315_v44, %v20452_v45 }
 0x495   : > { %v10463_v50 = vadd.f32 %v20534_v51, %v10424_v14  ;;  %v10425_v55 = vmul.f32 %v20525_v62, %v10324_v53 }
 0x496   : > { %v14849_v28 = vpop.f32.mrb[108].mxu0  ;;  %v10461_v15 = vadd.f32 %v20534_v51, %v10422_v54  ;;  %v10423_v38 = vmul.f32 %v20525_v62, %v10316_v33 }
 0x497   : > { %v14850_v3 = vpop.f32.mrb[109].mxu0  ;;  %v10495_v5 = vmax.f32 %v10463_v50, 0.0  ;;  %v10464_v21 = vadd.f32 %v20534_v51, %v10425_v55 }
 0x498   : > { %v20594_v56 = vadd.f32 %v14850_v3, %v14849_v28  ;;  %v14852_v63 = vpop.f32.mrb[110].mxu0  ;;  %v10493_v45 = vmax.f32 %v10461_v15, 0.0  ;;  %v10462_v19 = vadd.f32 %v20534_v51, %v10423_v38  ;;  %v15197_v42 = vpop.f32.mrb[92].mxu1 }
 0x499   : > { %v14853_v57 = vpop.f32.mrb[111].mxu0  ;;  %10527 = vst.msk [vmem:[%s20548_s12 + $0x50] sm:$0xff] %vm600_vm0, %v10495_v5  ;;  %v10496_v34 = vmax.f32 %v10464_v21, 0.0  ;;  %v10337_v29 = vadd.f32 %v15197_v42, %v20468_v17  ;;  %v10328_v11 = vpop.f32.mrb[93].mxu1 }
 0x49a   : > { %v20600_v58 = vadd.f32 %v14853_v57, %v14852_v63  ;;  %10525 = vst.msk [vmem:[%s20548_s12 + $0x40] sm:$0xff] %vm600_vm0, %v10493_v45  ;;  %v10494_v24 = vmax.f32 %v10462_v19, 0.0  ;;  %v10329_v48 = vadd.f32 %v10328_v11, %v20462_v46  ;;  %v15198_v40 = vpop.f32.mrb[94].mxu1 }
 0x49b   : > { %10528 = vst.msk [vmem:[%s20548_s12 + $0x58] sm:$0xff] %vm600_vm0, %v10496_v34  ;;  %v10428_v61 = vmul.f32 %v20525_v62, %v10337_v29  ;;  %v10340_v1 = vadd.f32 %v15198_v40, %v20470_v0  ;;  %v10331_v16 = vpop.f32.mrb[95].mxu1 }
 0x49c   : > { %10526 = vst.msk [vmem:[%s20548_s12 + $0x48] sm:$0xff] %vm600_vm0, %v10494_v24  ;;  %v10426_v17 = vmul.f32 %v20525_v62, %v10329_v48  ;;  %v10332_v39 = vadd.f32 %v10331_v16, %v20464_v31 }
 0x49d   : > { %v10467_v27 = vadd.f32 %v20534_v51, %v10428_v61  ;;  %v10429_v18 = vmul.f32 %v20525_v62, %v10340_v1 }
 0x49e   : > { %v14855_v26 = vpop.f32.mrb[112].mxu0  ;;  %v10465_v0 = vadd.f32 %v20534_v51, %v10426_v17  ;;  %v10427_v28 = vmul.f32 %v20525_v62, %v10332_v39 }
 0x49f   : > { %v14856_v12 = vpop.f32.mrb[113].mxu0  ;;  %v10499_v53 = vmax.f32 %v10467_v27, 0.0  ;;  %v10468_v44 = vadd.f32 %v20534_v51, %v10429_v18 }
 0x4a0   : > { %v20618_v30 = vadd.f32 %v14856_v12, %v14855_v26  ;;  %v14858_v46 = vpop.f32.mrb[114].mxu0  ;;  %v10497_v31 = vmax.f32 %v10465_v0, 0.0  ;;  %v10466_v3 = vadd.f32 %v20534_v51, %v10427_v28  ;;  %v15201_v54 = vpop.f32.mrb[96].mxu1 }
 0x4a1   : > { %v14859_v22 = vpop.f32.mrb[115].mxu0  ;;  %10531 = vst.msk [vmem:[%s20548_s12 + $0x70] sm:$0xff] %vm600_vm0, %v10499_v53  ;;  %v10500_v33 = vmax.f32 %v10468_v44, 0.0  ;;  %v10353_v63 = vadd.f32 %v15201_v54, %v20480_v35  ;;  %v10344_v50 = vpop.f32.mrb[97].mxu1 }
 0x4a2   : > { %v20624_v14 = vadd.f32 %v14859_v22, %v14858_v46  ;;  %10529 = vst.msk [vmem:[%s20548_s12 + $0x60] sm:$0xff] %vm600_vm0, %v10497_v31  ;;  %v10498_v55 = vmax.f32 %v10466_v3, 0.0  ;;  %v10345_v57 = vadd.f32 %v10344_v50, %v20474_v20  ;;  %v15202_v15 = vpop.f32.mrb[98].mxu1 }
 0x4a3   : > { %10532 = vst.msk [vmem:[%s20548_s12 + $0x78] sm:$0xff] %vm600_vm0, %v10500_v33  ;;  %v10432_v5 = vmul.f32 %v20525_v62, %v10353_v63  ;;  %v10356_v21 = vadd.f32 %v15202_v15, %v20482_v49  ;;  %v10347_v45 = vpop.f32.mrb[99].mxu1 }
 0x4a4   : > { %10530 = vst.msk [vmem:[%s20548_s12 + $0x68] sm:$0xff] %vm600_vm0, %v10498_v55  ;;  %v10430_v35 = vmul.f32 %v20525_v62, %v10345_v57  ;;  %v10348_v42 = vadd.f32 %v10347_v45, %v20476_v23 }
 0x4a5   : > { %v10471_v29 = vadd.f32 %v20534_v51, %v10432_v5  ;;  %v10433_v11 = vmul.f32 %v20525_v62, %v10356_v21 }
 0x4a6   : > { %v14861_v38 = vpop.f32.mrb[116].mxu0  ;;  %v10469_v49 = vadd.f32 %v20534_v51, %v10430_v35  ;;  %v10431_v48 = vmul.f32 %v20525_v62, %v10348_v42 }
 0x4a7   : > { %v14862_v19 = vpop.f32.mrb[117].mxu0  ;;  %v10503_v26 = vmax.f32 %v10471_v29, 0.0  ;;  %v10472_v61 = vadd.f32 %v20534_v51, %v10433_v11 }
 0x4a8   : > { %v20642_v34 = vadd.f32 %v14862_v19, %v14861_v38  ;;  %v14864_v20 = vpop.f32.mrb[118].mxu0  ;;  %v10501_v23 = vmax.f32 %v10469_v49, 0.0  ;;  %v10470_v1 = vadd.f32 %v20534_v51, %v10431_v48  ;;  %v15205_v16 = vpop.f32.mrb[100].mxu1 }
 0x4a9   : > { %v14865_v24 = vpop.f32.mrb[119].mxu0  ;;  %10535 = vst.msk [vmem:[%s20548_s12 + $0x90] sm:$0xff] %vm600_vm0, %v10503_v26  ;;  %v10504_v12 = vmax.f32 %v10472_v61, 0.0  ;;  %v10369_v17 = vadd.f32 %v15205_v16, %v20492_v32  ;;  %v10360_v39 = vpop.f32.mrb[101].mxu1 }
 0x4aa   : > { %v20648_v40 = vadd.f32 %v14865_v24, %v14864_v20  ;;  %10533 = vst.msk [vmem:[%s20548_s12 + $0x80] sm:$0xff] %vm600_vm0, %v10501_v23  ;;  %v10502_v46 = vmax.f32 %v10470_v1, 0.0  ;;  %v10361_v27 = vadd.f32 %v10360_v39, %v20486_v10  ;;  %v15206_v18 = vpop.f32.mrb[102].mxu1 }
 0x4ab   : > { %10536 = vst.msk [vmem:[%s20548_s12 + $0x98] sm:$0xff] %vm600_vm0, %v10504_v12  ;;  %v10436_v0 = vmul.f32 %v20525_v62, %v10369_v17  ;;  %v10372_v28 = vadd.f32 %v15206_v18, %v20494_v13  ;;  %v10363_v53 = vpop.f32.mrb[103].mxu1 }
 0x4ac   : > { %10534 = vst.msk [vmem:[%s20548_s12 + $0x88] sm:$0xff] %vm600_vm0, %v10502_v46  ;;  %v10434_v32 = vmul.f32 %v20525_v62, %v10361_v27  ;;  %v10364_v31 = vadd.f32 %v10363_v53, %v20488_v7 }
 0x4ad   : > { %v10475_v54 = vadd.f32 %v20534_v51, %v10436_v0  ;;  %v10437_v33 = vmul.f32 %v20525_v62, %v10372_v28 }
 0x4ae   : > { %v14867_v22 = vpop.f32.mrb[120].mxu0  ;;  %v10473_v13 = vadd.f32 %v20534_v51, %v10434_v32  ;;  %v10435_v50 = vmul.f32 %v20525_v62, %v10364_v31 }
 0x4af   : > { %v14868_v44 = vpop.f32.mrb[121].mxu0  ;;  %v10507_v57 = vmax.f32 %v10475_v54, 0.0  ;;  %v10476_v15 = vadd.f32 %v20534_v51, %v10437_v33 }
 0x4b0   : > { %v20666_v3 = vadd.f32 %v14868_v44, %v14867_v22  ;;  %v14870_v10 = vpop.f32.mrb[122].mxu0  ;;  %v10505_v7 = vmax.f32 %v10473_v13, 0.0  ;;  %v10474_v38 = vadd.f32 %v20534_v51, %v10435_v50  ;;  %v15209_v5 = vpop.f32.mrb[104].mxu1 }
 0x4b1   : > { %v14871_v63 = vpop.f32.mrb[123].mxu0  ;;  %10539 = vst.msk [vmem:[%s20548_s12 + $0xb0] sm:$0xff] %vm600_vm0, %v10507_v57  ;;  %v10508_v21 = vmax.f32 %v10476_v15, 0.0  ;;  %v10385_v45 = vadd.f32 %v15209_v5, %v20504_v25  ;;  %v10376_v19 = vpop.f32.mrb[105].mxu1 }
 0x4b2   : > { %v20672_v55 = vadd.f32 %v14871_v63, %v14870_v10  ;;  %10537 = vst.msk [vmem:[%s20548_s12 + $0xa0] sm:$0xff] %vm600_vm0, %v10505_v7  ;;  %v10506_v35 = vmax.f32 %v10474_v38, 0.0  ;;  %v10377_v42 = vadd.f32 %v10376_v19, %v20498_v9  ;;  %v15210_v20 = vpop.f32.mrb[106].mxu1 }
 0x4b3   : > { %10540 = vst.msk [vmem:[%s20548_s12 + $0xb8] sm:$0xff] %vm600_vm0, %v10508_v21  ;;  %v10440_v11 = vmul.f32 %v20525_v62, %v10385_v45  ;;  %v10388_v24 = vadd.f32 %v15210_v20, %v20506_v43  ;;  %v10379_v49 = vpop.f32.mrb[107].mxu1 }
 0x4b4   : > { %10538 = vst.msk [vmem:[%s20548_s12 + $0xa8] sm:$0xff] %vm600_vm0, %v10506_v35  ;;  %v10438_v25 = vmul.f32 %v20525_v62, %v10377_v42  ;;  %v10380_v26 = vadd.f32 %v10379_v49, %v20500_v52 }
 0x4b5   : > { %v10479_v23 = vadd.f32 %v20534_v51, %v10440_v11  ;;  %v10441_v1 = vmul.f32 %v20525_v62, %v10388_v24 }
 0x4b6   : > { %v14873_v29 = vpop.f32.mrb[124].mxu0  ;;  %v10477_v43 = vadd.f32 %v20534_v51, %v10438_v25  ;;  %v10439_v12 = vmul.f32 %v20525_v62, %v10380_v26 }
 0x4b7   : > { %v14874_v48 = vpop.f32.mrb[125].mxu0  ;;  %v10511_v39 = vmax.f32 %v10479_v23, 0.0  ;;  %v10480_v46 = vadd.f32 %v20534_v51, %v10441_v1 }
 0x4b8   : > { %v20690_v61 = vadd.f32 %v14874_v48, %v14873_v29  ;;  %v14876_v9 = vpop.f32.mrb[126].mxu0  ;;  %v10509_v52 = vmax.f32 %v10477_v43, 0.0  ;;  %v10478_v27 = vadd.f32 %v20534_v51, %v10439_v12  ;;  %v15213_v18 = vpop.f32.mrb[108].mxu1 }
 0x4b9   : > { %v14877_v16 = vpop.f32.mrb[127].mxu0  ;;  %10543 = vst.msk [vmem:[%s20548_s12 + $0xd0] sm:$0xff] %vm600_vm0, %v10511_v39  ;;  %v10512_v22 = vmax.f32 %v10480_v46, 0.0  ;;  %v10401_v0 = vadd.f32 %v15213_v18, %v20520_v47  ;;  %v10392_v28 = vpop.f32.mrb[109].mxu1 }
 0x4ba   : > { %v20696_v17 = vadd.f32 %v14877_v16, %v14876_v9  ;;  %10541 = vst.msk [vmem:[%s20548_s12 + $0xc0] sm:$0xff] %vm600_vm0, %v10509_v52  ;;  %v10510_v53 = vmax.f32 %v10478_v27, 0.0  ;;  %v10393_v44 = vadd.f32 %v10392_v28, %v20510_v59  ;;  %v15214_v32 = vpop.f32.mrb[110].mxu1 }
 0x4bb   : > { %10544 = vst.msk [vmem:[%s20548_s12 + $0xd8] sm:$0xff] %vm600_vm0, %v10512_v22  ;;  %v10444_v10 = vmul.f32 %v20525_v62, %v10401_v0  ;;  %v10404_v54 = vadd.f32 %v15214_v32, %v20527_v37  ;;  %v10395_v33 = vpop.f32.mrb[111].mxu1 }
 0x4bc   : > { %10542 = vst.msk [vmem:[%s20548_s12 + $0xc8] sm:$0xff] %vm600_vm0, %v10510_v53  ;;  %v10442_v47 = vmul.f32 %v20525_v62, %v10393_v44  ;;  %v10396_v13 = vadd.f32 %v10395_v33, %v20512_v60 }
 0x4bd   : > { %v10483_v57 = vadd.f32 %v20534_v51, %v10444_v10  ;;  %v10445_v15 = vmul.f32 %v20525_v62, %v10404_v54 }
 0x4be   : > { %v14959_v31 = vpop.f32.mrb[128].mxu0  ;;  %v10481_v38 = vadd.f32 %v20534_v51, %v10442_v47  ;;  %v10443_v37 = vmul.f32 %v20525_v62, %v10396_v13 }
 0x4bf   : > { %v14960_v63 = vpop.f32.mrb[129].mxu0  ;;  %v10515_v21 = vmax.f32 %v10483_v57, 0.0  ;;  %v10484_v45 = vadd.f32 %v20534_v51, %v10445_v15 }
 0x4c0   : > { %v14961_v50 = vadd.f32 %v14960_v63, %v14959_v31  ;;  %v14962_v59 = vpop.f32.mrb[130].mxu0  ;;  %v10513_v19 = vmax.f32 %v10481_v38, 0.0  ;;  %v10482_v60 = vadd.f32 %v20534_v51, %v10443_v37  ;;  %v14895_v35 = vpop.f32.mrb[112].mxu1 }
 0x4c1   : > { %v14963_v7 = vpop.f32.mrb[131].mxu0  ;;  %10547 = vst.msk [vmem:[%s20548_s12 + $0xf0] sm:$0xff] %vm600_vm0, %v10515_v21  ;;  %v10516_v42 = vmax.f32 %v10484_v45, 0.0  ;;  %v14896_v20 = vpop.f32.mrb[113].mxu1 }
 0x4c2   : > { %v14964_v5 = vadd.f32 %v14963_v7, %v14962_v59  ;;  %10545 = vst.msk [vmem:[%s20548_s12 + $0xe0] sm:$0xff] %vm600_vm0, %v10513_v19  ;;  %v10514_v29 = vmax.f32 %v10482_v60, 0.0  ;;  %v14897_v11 = vadd.f32 %v14896_v20, %v14895_v35  ;;  %v14898_v24 = vpop.f32.mrb[114].mxu1 }
 0x4c3   : > { %10548 = vst.msk [vmem:[%s20548_s12 + $0xf8] sm:$0xff] %vm600_vm0, %v10516_v42  ;;  %v14899_v48 = vpop.f32.mrb[115].mxu1 }
 0x4c4   : > { %10546 = vst.msk [vmem:[%s20548_s12 + $0xe8] sm:$0xff] %vm600_vm0, %v10514_v29  ;;  %v12256_v26 = vadd.f32 %v14897_v11, %v20514_v4  ;;  %v14900_v9 = vadd.f32 %v14899_v48, %v14898_v24 }
 0x4c6   : > { %v14965_v49 = vpop.f32.mrb[132].mxu0  ;;  %v12259_v43 = vadd.f32 %v14900_v9, %v20517_v8  ;;  %v20730_v39 = vadd.f32 %v14961_v50, %v12256_v26 }
 0x4c7   : > { %v14966_v25 = vpop.f32.mrb[133].mxu0 }
 0x4c8   : > { %v14967_v23 = vadd.f32 %v14966_v25, %v14965_v49  ;;  %v14968_v1 = vpop.f32.mrb[134].mxu0  ;;  %v14901_v46 = vpop.f32.mrb[116].mxu1  ;;  %v20732_v52 = vadd.f32 %v14964_v5, %v12259_v43 }
 0x4c9   : > { %v14969_v16 = vpop.f32.mrb[135].mxu0  ;;  %v14902_v27 = vpop.f32.mrb[117].mxu1 }
 0x4ca   : > { %v14970_v12 = vadd.f32 %v14969_v16, %v14968_v1  ;;  %v14903_v18 = vadd.f32 %v14902_v27, %v14901_v46  ;;  %v14904_v22 = vpop.f32.mrb[118].mxu1 }
 0x4cb   : > { %v14905_v28 = vpop.f32.mrb[119].mxu1 }
 0x4cc   : > { %v12264_v4 = vadd.f32 %v14903_v18, %v20541_v2  ;;  %v14906_v44 = vadd.f32 %v14905_v28, %v14904_v22 }
 0x4ce   : > { %v14971_v0 = vpop.f32.mrb[136].mxu0  ;;  %v12267_v8 = vadd.f32 %v14906_v44, %v20552_v41  ;;  %v20736_v33 = vadd.f32 %v14967_v23, %v12264_v4 }
 0x4cf   : > { %v14972_v53 = vpop.f32.mrb[137].mxu0 }
 0x4d0   : > { %v14973_v32 = vadd.f32 %v14972_v53, %v14971_v0  ;;  %v14974_v31 = vpop.f32.mrb[138].mxu0  ;;  %v14907_v63 = vpop.f32.mrb[120].mxu1  ;;  %v20738_v47 = vadd.f32 %v14970_v12, %v12267_v8 }
 0x4d1   : > { %v14975_v10 = vpop.f32.mrb[139].mxu0  ;;  %v14908_v13 = vpop.f32.mrb[121].mxu1 }
 0x4d2   : > { %v14976_v54 = vadd.f32 %v14975_v10, %v14974_v31  ;;  %v14909_v50 = vadd.f32 %v14908_v13, %v14907_v63  ;;  %v14910_v59 = vpop.f32.mrb[122].mxu1 }
 0x4d3   : > { %v14911_v15 = vpop.f32.mrb[123].mxu1 }
 0x4d4   : > { %v12272_v2 = vadd.f32 %v14909_v50, %v20570_v6  ;;  %v14912_v38 = vadd.f32 %v14911_v15, %v14910_v59 }
 0x4d6   : > { %v14977_v57 = vpop.f32.mrb[140].mxu0  ;;  %v12275_v41 = vadd.f32 %v14912_v38, %v20576_v36  ;;  %v20742_v19 = vadd.f32 %v14973_v32, %v12272_v2 }
 0x4d7   : > { %v14978_v7 = vpop.f32.mrb[141].mxu0 }
 0x4d8   : > { %v14979_v37 = vadd.f32 %v14978_v7, %v14977_v57  ;;  %v14980_v5 = vpop.f32.mrb[142].mxu0  ;;  %v14913_v60 = vpop.f32.mrb[124].mxu1  ;;  %v20744_v35 = vadd.f32 %v14976_v54, %v12275_v41 }
 0x4d9   : > { %v14981_v21 = vpop.f32.mrb[143].mxu0  ;;  %v14914_v42 = vpop.f32.mrb[125].mxu1 }
 0x4da   : > { %v14982_v45 = vadd.f32 %v14981_v21, %v14980_v5  ;;  %v14915_v20 = vadd.f32 %v14914_v42, %v14913_v60  ;;  %v14916_v29 = vpop.f32.mrb[126].mxu1 }
 0x4db   : > { %v14917_v24 = vpop.f32.mrb[127].mxu1 }
 0x4dc   : > { %v12280_v6 = vadd.f32 %v14915_v20, %v20594_v56  ;;  %v14918_v48 = vadd.f32 %v14917_v24, %v14916_v29 }
 0x4de   : > { %v14983_v11 = vpop.f32.mrb[144].mxu0  ;;  %v12283_v36 = vadd.f32 %v14918_v48, %v20600_v58  ;;  %v20748_v1 = vadd.f32 %v14979_v37, %v12280_v6 }
 0x4df   : > { %v14984_v49 = vpop.f32.mrb[145].mxu0 }
 0x4e0   : > { %v14985_v25 = vadd.f32 %v14984_v49, %v14983_v11  ;;  %v14986_v26 = vpop.f32.mrb[146].mxu0  ;;  %v14919_v16 = vpop.f32.mrb[128].mxu1  ;;  %v20750_v43 = vadd.f32 %v14982_v45, %v12283_v36 }
 0x4e1   : > { %v14987_v9 = vpop.f32.mrb[147].mxu0  ;;  %v14920_v12 = vpop.f32.mrb[129].mxu1 }
 0x4e2   : > { %v14988_v23 = vadd.f32 %v14987_v9, %v14986_v26  ;;  %v14921_v46 = vadd.f32 %v14920_v12, %v14919_v16  ;;  %v14922_v27 = vpop.f32.mrb[130].mxu1 }
 0x4e3   : > { %v14923_v22 = vpop.f32.mrb[131].mxu1 }
 0x4e4   : > { %v12288_v56 = vadd.f32 %v14921_v46, %v20618_v30  ;;  %v14924_v28 = vadd.f32 %v14923_v22, %v14922_v27 }
 0x4e6   : > { %v14989_v18 = vpop.f32.mrb[148].mxu0  ;;  %v12291_v58 = vadd.f32 %v14924_v28, %v20624_v14  ;;  %v20754_v31 = vadd.f32 %v14985_v25, %v12288_v56 }
 0x4e7   : > { %v14990_v0 = vpop.f32.mrb[149].mxu0 }
 0x4e8   : > { %v14991_v53 = vadd.f32 %v14990_v0, %v14989_v18  ;;  %v14992_v4 = vpop.f32.mrb[150].mxu0  ;;  %v14925_v10 = vpop.f32.mrb[132].mxu1  ;;  %v20756_v8 = vadd.f32 %v14988_v23, %v12291_v58 }
 0x4e9   : > { %v14993_v44 = vpop.f32.mrb[151].mxu0  ;;  %v14926_v54 = vpop.f32.mrb[133].mxu1 }
 0x4ea   : > { %v14994_v32 = vadd.f32 %v14993_v44, %v14992_v4  ;;  %v14927_v63 = vadd.f32 %v14926_v54, %v14925_v10  ;;  %v14928_v13 = vpop.f32.mrb[134].mxu1 }
 0x4eb   : > { %v14929_v59 = vpop.f32.mrb[135].mxu1 }
 0x4ec   : > { %v12296_v30 = vadd.f32 %v14927_v63, %v20642_v34  ;;  %v14930_v15 = vadd.f32 %v14929_v59, %v14928_v13 }
 0x4ee   : > { %v14995_v50 = vpop.f32.mrb[152].mxu0  ;;  %v12299_v14 = vadd.f32 %v14930_v15, %v20648_v40  ;;  %v20760_v5 = vadd.f32 %v14991_v53, %v12296_v30 }
 0x4ef   : > { %v14996_v57 = vpop.f32.mrb[153].mxu0 }
 0x4f0   : > { %v14997_v7 = vadd.f32 %v14996_v57, %v14995_v50  ;;  %v14998_v2 = vpop.f32.mrb[154].mxu0  ;;  %v14931_v21 = vpop.f32.mrb[136].mxu1  ;;  %v20762_v41 = vadd.f32 %v14994_v32, %v12299_v14 }
 0x4f1   : > { %v14999_v38 = vpop.f32.mrb[155].mxu0  ;;  %v14932_v45 = vpop.f32.mrb[137].mxu1 }
 0x4f2   : > { %v15000_v37 = vadd.f32 %v14999_v38, %v14998_v2  ;;  %v14933_v60 = vadd.f32 %v14932_v45, %v14931_v21  ;;  %v14934_v42 = vpop.f32.mrb[138].mxu1 }
 0x4f3   : > { %v14935_v29 = vpop.f32.mrb[139].mxu1 }
 0x4f4   : > { %v12304_v34 = vadd.f32 %v14933_v60, %v20666_v3  ;;  %v14936_v24 = vadd.f32 %v14935_v29, %v14934_v42 }
 0x4f6   : > { %v15001_v20 = vpop.f32.mrb[156].mxu0  ;;  %v12307_v40 = vadd.f32 %v14936_v24, %v20672_v55  ;;  %v20766_v26 = vadd.f32 %v14997_v7, %v12304_v34 }
 0x4f7   : > { %v15002_v11 = vpop.f32.mrb[157].mxu0 }
 0x4f8   : > { %v15003_v49 = vadd.f32 %v15002_v11, %v15001_v20  ;;  %v15004_v6 = vpop.f32.mrb[158].mxu0  ;;  %v14937_v9 = vpop.f32.mrb[140].mxu1  ;;  %v20768_v36 = vadd.f32 %v15000_v37, %v12307_v40 }
 0x4f9   : > { %v15005_v48 = vpop.f32.mrb[159].mxu0  ;;  %v14938_v23 = vpop.f32.mrb[141].mxu1 }
 0x4fa   : > { %v15006_v25 = vadd.f32 %v15005_v48, %v15004_v6  ;;  %v14939_v16 = vadd.f32 %v14938_v23, %v14937_v9  ;;  %v14940_v12 = vpop.f32.mrb[142].mxu1 }
 0x4fb   : > { %v14941_v27 = vpop.f32.mrb[143].mxu1 }
 0x4fc   : > { %v12312_v3 = vadd.f32 %v14939_v16, %v20690_v61  ;;  %v14942_v22 = vadd.f32 %v14941_v27, %v14940_v12 }
 0x4fe   : > { %v15233_v46 = vpop.f32.mrb[160].mxu0  ;;  %v12315_v28 = vadd.f32 %v14942_v22, %v20696_v17  ;;  %v20772_v55 = vadd.f32 %v15003_v49, %v12312_v3 }
 0x4ff   : > { %v12546_v18 = vpop.f32.mrb[161].mxu0 }
 0x500   : > { %v15234_v0 = vpop.f32.mrb[162].mxu0  ;;  %v15023_v53 = vpop.f32.mrb[144].mxu1  ;;  %v20774_v4 = vadd.f32 %v15006_v25, %v12315_v28 }
 0x501   : > { %v12549_v56 = vpop.f32.mrb[163].mxu0  ;;  %v15024_v44 = vpop.f32.mrb[145].mxu1 }
 0x502   : > { %v15025_v58 = vadd.f32 %v15024_v44, %v15023_v53  ;;  %v15026_v32 = vpop.f32.mrb[146].mxu1 }
 0x503   : > { %v15027_v54 = vpop.f32.mrb[147].mxu1 }
 0x504   : > { %v12450_v13 = vadd.f32 %v15025_v58, %v20730_v39  ;;  %v15028_v61 = vadd.f32 %v15027_v54, %v15026_v32 }
 0x506   : > { %v20776_v10 = vpop.f32.mrb[164].mxu0  ;;  %v12547_v57 = vadd.f32 %v12546_v18, %v12450_v13  ;;  %v12453_v17 = vadd.f32 %v15028_v61, %v20732_v52 }
 0x507   : > { %v12562_v63 = vpop.f32.mrb[165].mxu0 }
 0x508   : > { %v20779_v50 = vpop.f32.mrb[166].mxu0  ;;  %v12616_v30 = vmul.f32 %v20525_v62, %v12547_v57  ;;  %v12550_v15 = vadd.f32 %v12549_v56, %v12453_v17  ;;  %v15029_v7 = vpop.f32.mrb[148].mxu1 }
 0x509   : > { %v12565_v59 = vpop.f32.mrb[167].mxu0  ;;  %v15030_v2 = vpop.f32.mrb[149].mxu1 }
 0x50a   : > { %v12639_v38 = vadd.f32 %v20534_v51, %v12616_v30  ;;  %v12617_v14 = vmul.f32 %v20525_v62, %v12550_v15  ;;  %v15031_v37 = vadd.f32 %v15030_v2, %v15029_v7  ;;  %v15032_v39 = vpop.f32.mrb[150].mxu1 }
 0x50b   : > { %v15033_v45 = vpop.f32.mrb[151].mxu1 }
 0x50c   : > { %v12655_v42 = vmax.f32 %v12639_v38, 0.0  ;;  %v12640_v52 = vadd.f32 %v20534_v51, %v12617_v14  ;;  %v12458_v20 = vadd.f32 %v15031_v37, %v20736_v33  ;;  %v15034_v29 = vadd.f32 %v15033_v45, %v15032_v39 }
 0x50e   : > { %v20785_v21 = vpop.f32.mrb[168].mxu0  ;;  %12671 = vst.msk [vmem:[%s20548_s12 + $0x100] sm:$0xff] %vm600_vm0, %v12655_v42  ;;  %v12656_v24 = vmax.f32 %v12640_v52, 0.0  ;;  %v12555_v49 = vadd.f32 %v15233_v46, %v12458_v20  ;;  %v12461_v6 = vadd.f32 %v15034_v29, %v20738_v47 }
 0x50f   : > { %v20787_v60 = vpop.f32.mrb[169].mxu0 }
 0x510   : > { %v20791_v11 = vpop.f32.mrb[170].mxu0  ;;  %12672 = vst.msk [vmem:[%s20548_s12 + $0x108] sm:$0xff] %vm600_vm0, %v12656_v24  ;;  %v12618_v48 = vmul.f32 %v20525_v62, %v12555_v49  ;;  %v12558_v40 = vadd.f32 %v15234_v0, %v12461_v6  ;;  %v15035_v25 = vpop.f32.mrb[152].mxu1 }
 0x511   : > { %v20793_v34 = vpop.f32.mrb[171].mxu0  ;;  %v15036_v9 = vpop.f32.mrb[153].mxu1 }
 0x512   : > { %v12641_v33 = vadd.f32 %v20534_v51, %v12618_v48  ;;  %v12619_v23 = vmul.f32 %v20525_v62, %v12558_v40  ;;  %v15037_v16 = vadd.f32 %v15036_v9, %v15035_v25  ;;  %v15038_v12 = vpop.f32.mrb[154].mxu1 }
 0x513   : > { %v15039_v46 = vpop.f32.mrb[155].mxu1 }
 0x514   : > { %v12657_v47 = vmax.f32 %v12641_v33, 0.0  ;;  %v12642_v3 = vadd.f32 %v20534_v51, %v12619_v23  ;;  %v12466_v22 = vadd.f32 %v15037_v16, %v20742_v19  ;;  %v15040_v0 = vadd.f32 %v15039_v46, %v15038_v12 }
 0x516   : > { %v20803_v27 = vpop.f32.mrb[172].mxu0  ;;  %12673 = vst.msk [vmem:[%s20548_s12 + $0x110] sm:$0xff] %vm600_vm0, %v12657_v47  ;;  %v12658_v53 = vmax.f32 %v12642_v3, 0.0  ;;  %v12563_v44 = vadd.f32 %v12562_v63, %v12466_v22  ;;  %v12469_v58 = vadd.f32 %v15040_v0, %v20744_v35 }
 0x517   : > { %v20805_v18 = vpop.f32.mrb[173].mxu0 }
 0x518   : > { %v20809_v56 = vpop.f32.mrb[174].mxu0  ;;  %12674 = vst.msk [vmem:[%s20548_s12 + $0x118] sm:$0xff] %vm600_vm0, %v12658_v53  ;;  %v12620_v32 = vmul.f32 %v20525_v62, %v12563_v44  ;;  %v12566_v54 = vadd.f32 %v12565_v59, %v12469_v58  ;;  %v15041_v13 = vpop.f32.mrb[156].mxu1 }
 0x519   : > { %v20811_v28 = vpop.f32.mrb[175].mxu0  ;;  %v15042_v19 = vpop.f32.mrb[157].mxu1 }
 0x51a   : > { %v12643_v61 = vadd.f32 %v20534_v51, %v12620_v32  ;;  %v12621_v57 = vmul.f32 %v20525_v62, %v12566_v54  ;;  %v15043_v17 = vadd.f32 %v15042_v19, %v15041_v13  ;;  %v15044_v30 = vpop.f32.mrb[158].mxu1 }
 0x51b   : > { %v15045_v15 = vpop.f32.mrb[159].mxu1 }
 0x51c   : > { %v12659_v7 = vmax.f32 %v12643_v61, 0.0  ;;  %v12644_v63 = vadd.f32 %v20534_v51, %v12621_v57  ;;  %v12474_v35 = vadd.f32 %v15043_v17, %v20748_v1  ;;  %v15046_v2 = vadd.f32 %v15045_v15, %v15044_v30 }
 0x51e   : > { %12675 = vst.msk [vmem:[%s20548_s12 + $0x120] sm:$0xff] %vm600_vm0, %v12659_v7  ;;  %v12660_v38 = vmax.f32 %v12644_v63, 0.0  ;;  %v12571_v59 = vadd.f32 %v20776_v10, %v12474_v35  ;;  %v12477_v14 = vadd.f32 %v15046_v2, %v20750_v43 }
 0x520   : > { %12676 = vst.msk [vmem:[%s20548_s12 + $0x128] sm:$0xff] %vm600_vm0, %v12660_v38  ;;  %v12622_v37 = vmul.f32 %v20525_v62, %v12571_v59  ;;  %v12574_v39 = vadd.f32 %v20779_v50, %v12477_v14  ;;  %v15047_v45 = vpop.f32.mrb[160].mxu1 }
 0x521   : > { %v15048_v42 = vpop.f32.mrb[161].mxu1 }
 0x522   : > { %v12645_v1 = vadd.f32 %v20534_v51, %v12622_v37  ;;  %v12623_v52 = vmul.f32 %v20525_v62, %v12574_v39  ;;  %v15049_v20 = vadd.f32 %v15048_v42, %v15047_v45  ;;  %v15050_v29 = vpop.f32.mrb[162].mxu1 }
 0x523   : > { %v15051_v24 = vpop.f32.mrb[163].mxu1 }
 0x524   : > { %v12661_v10 = vmax.f32 %v12645_v1, 0.0  ;;  %v12646_v49 = vadd.f32 %v20534_v51, %v12623_v52  ;;  %v12482_v43 = vadd.f32 %v15049_v20, %v20754_v31  ;;  %v15052_v6 = vadd.f32 %v15051_v24, %v15050_v29 }
 0x526   : > { %12677 = vst.msk [vmem:[%s20548_s12 + $0x130] sm:$0xff] %vm600_vm0, %v12661_v10  ;;  %v12662_v48 = vmax.f32 %v12646_v49, 0.0  ;;  %v12579_v50 = vadd.f32 %v20787_v60, %v12482_v43  ;;  %v12485_v40 = vadd.f32 %v15052_v6, %v20756_v8 }
 0x528   : > { %12678 = vst.msk [vmem:[%s20548_s12 + $0x138] sm:$0xff] %vm600_vm0, %v12662_v48  ;;  %v12624_v25 = vmul.f32 %v20525_v62, %v12579_v50  ;;  %v12582_v9 = vadd.f32 %v20793_v34, %v12485_v40  ;;  %v15053_v33 = vpop.f32.mrb[164].mxu1 }
 0x529   : > { %v15054_v23 = vpop.f32.mrb[165].mxu1 }
 0x52a   : > { %v12647_v31 = vadd.f32 %v20534_v51, %v12624_v25  ;;  %v12625_v16 = vmul.f32 %v20525_v62, %v12582_v9  ;;  %v15055_v12 = vadd.f32 %v15054_v23, %v15053_v33  ;;  %v15056_v46 = vpop.f32.mrb[166].mxu1 }
 0x52b   : > { %v15057_v47 = vpop.f32.mrb[167].mxu1 }
 0x52c   : > { %v12663_v60 = vmax.f32 %v12647_v31, 0.0  ;;  %v12648_v3 = vadd.f32 %v20534_v51, %v12625_v16  ;;  %v12490_v8 = vadd.f32 %v15055_v12, %v20760_v5  ;;  %v15058_v22 = vadd.f32 %v15057_v47, %v15056_v46 }
 0x52e   : > { %12679 = vst.msk [vmem:[%s20548_s12 + $0x140] sm:$0xff] %vm600_vm0, %v12663_v60  ;;  %v12664_v0 = vmax.f32 %v12648_v3, 0.0  ;;  %v12587_v34 = vadd.f32 %v20785_v21, %v12490_v8  ;;  %v12493_v53 = vadd.f32 %v15058_v22, %v20762_v41 }
 0x530   : > { %12680 = vst.msk [vmem:[%s20548_s12 + $0x148] sm:$0xff] %vm600_vm0, %v12664_v0  ;;  %v12626_v44 = vmul.f32 %v20525_v62, %v12587_v34  ;;  %v12590_v58 = vadd.f32 %v20791_v11, %v12493_v53  ;;  %v15059_v32 = vpop.f32.mrb[168].mxu1 }
 0x531   : > { %v15060_v54 = vpop.f32.mrb[169].mxu1 }
 0x532   : > { %v12649_v5 = vadd.f32 %v20534_v51, %v12626_v44  ;;  %v12627_v13 = vmul.f32 %v20525_v62, %v12590_v58  ;;  %v15061_v19 = vadd.f32 %v15060_v54, %v15059_v32  ;;  %v15062_v61 = vpop.f32.mrb[170].mxu1 }
 0x533   : > { %v15063_v57 = vpop.f32.mrb[171].mxu1 }
 0x534   : > { %v12665_v21 = vmax.f32 %v12649_v5, 0.0  ;;  %v12650_v17 = vadd.f32 %v20534_v51, %v12627_v13  ;;  %v15064_v41 = vadd.f32 %v15063_v57, %v15062_v61  ;;  %v12498_v30 = vadd.f32 %v15061_v19, %v20766_v26 }
 0x536   : > { %12681 = vst.msk [vmem:[%s20548_s12 + $0x150] sm:$0xff] %vm600_vm0, %v12665_v21  ;;  %v12666_v15 = vmax.f32 %v12650_v17, 0.0  ;;  %v12595_v11 = vadd.f32 %v20805_v18, %v12498_v30  ;;  %v12501_v7 = vadd.f32 %v15064_v41, %v20768_v36 }
 0x538   : > { %12682 = vst.msk [vmem:[%s20548_s12 + $0x158] sm:$0xff] %vm600_vm0, %v12666_v15  ;;  %v12628_v63 = vmul.f32 %v20525_v62, %v12595_v11  ;;  %v12598_v35 = vadd.f32 %v20811_v28, %v12501_v7  ;;  %v15065_v2 = vpop.f32.mrb[172].mxu1 }
 0x539   : > { %v15066_v38 = vpop.f32.mrb[173].mxu1 }
 0x53a   : > { %v12651_v59 = vadd.f32 %v20534_v51, %v12628_v63  ;;  %v12629_v26 = vmul.f32 %v20525_v62, %v12598_v35  ;;  %v15067_v14 = vadd.f32 %v15066_v38, %v15065_v2  ;;  %v15068_v37 = vpop.f32.mrb[174].mxu1  ;;  %v15983_v62 = vld [vmem:[%s20897_s6] ss:$0 sm:$0xff] }
 0x53b   : > { %v15069_v39 = vpop.f32.mrb[175].mxu1 }
 0x53c   : > { %v12667_v18 = vmax.f32 %v12651_v59, 0.0  ;;  %v12652_v45 = vadd.f32 %v20534_v51, %v12629_v26  ;;  %v12506_v36 = vadd.f32 %v15067_v14, %v20772_v55  ;;  %v15070_v42 = vadd.f32 %v15069_v39, %v15068_v37  ;;  %v15984_v55 = vld [vmem:[%s20898_s7] ss:$0 sm:$0xff] }
 0x53e   : > { %12683 = vst.msk [vmem:[%s20548_s12 + $0x160] sm:$0xff] %vm600_vm0, %v12667_v18  ;;  %v12668_v28 = vmax.f32 %v12652_v45, 0.0  ;;  %v12603_v1 = vadd.f32 %v20803_v27, %v12506_v36  ;;  %v12509_v52 = vadd.f32 %v15070_v42, %v20774_v4 }
 0x540   : > { %12684 = vst.msk [vmem:[%s20548_s12 + $0x168] sm:$0xff] %vm600_vm0, %v12668_v28  ;;  %v12630_v20 = vmul.f32 %v15983_v62, %v12603_v1  ;;  %v12606_v51 = vadd.f32 %v20809_v56, %v12509_v52 }
 0x542   : > { %v12653_v29 = vadd.f32 %v15984_v55, %v12630_v20  ;;  %v12631_v24 = vmul.f32 %v15983_v62, %v12606_v51 }
 0x544   : > { %v12669_v10 = vmax.f32 %v12653_v29, 0.0  ;;  %v12654_v49 = vadd.f32 %v15984_v55, %v12631_v24 }
 0x546   : > { %12685 = vst.msk [vmem:[%s20548_s12 + $0x170] sm:$0xff] %vm600_vm0, %v12669_v10  ;;  %v12670_v4 = vmax.f32 %v12654_v49, 0.0 }
 0x548   : > { %12686 = vst.msk [vmem:[%s20548_s12 + $0x178] sm:$0xff] %vm600_vm0, %v12670_v4 }
 0x549 PF: > { %s18_s27 = sadd.s32 1, %s15991_s27  }
 0x54a   : > { %p15_p4 = scmp.ge.s32.totalorder %s18_s27, 4  }
 0x54c   :  { %17 = sbr.rel (!%p15_p4) target bundleno = 1 (0x1), region = 82 }

</bundles_post_ra>
